<compile_context>
chip_gen: v7x
topology: tpu7x:2x2x1
jax: 0.10.0
libtpu: 0.0.40
codegen_flags: <defaults>
</compile_context>

<pallas_src>
from functools import partial

import numpy as np

import jax
import jax.numpy as jnp
from jax.experimental import pallas as pl
from jax.experimental.pallas import tpu as pltpu

# ----------------------------- constants -----------------------------------
IN_PLANES = 10
GROUPS = 10
KS = (5, 11, 21)                     # mse_b1 / mse_b2 / mse_b3 intra kernels
EXPANSION = 2
T1 = max(KS)                         # 21 taps for the unified im2col
PAD = (T1 - 1) // 2                  # 10
HALO = 2 * PAD + 1                   # 21: full receptive-field halo of the Cell
C_MSE = IN_PLANES * EXPANSION * 3    # 60  (I2CMSE / Cell output channels)
C_MID = C_MSE // 3                   # 20  (BottleNeck mid channels)
CIN_PAD = 16                         # input channels padded 10 -> 16 (aligned slabs)
C1_PAD = 64                          # intermediate channels padded 60 -> 64

SELU_ALPHA = 1.6732632423543772
SELU_LAMBDA = 1.0507009873554805
BN_EPS = 1e-5
BN_SCALE = float(1.0 / np.sqrt(1.0 + BN_EPS))   # eval BN: (x-0)/sqrt(1+eps)


def _selu(x):
    return SELU_LAMBDA * jnp.where(x > 0, x, SELU_ALPHA * (jnp.exp(x) - 1.0))


# ----------------------------- fused Cell kernel ----------------------------
def _cell_kernel(x_ref, w1_ref, w2_ref, wf_ref, o_ref, xc, u1pad, z, u2pad, uc):
    # x_ref : (1, 1, 16, lt+42)   w1_ref: (64, 336)   w2_ref: (64, 1344)
    # wf_ref: (60, 192)           o_ref : (1, 60, lt)
    lt = o_ref.shape[-1]            # output tile length
    n1 = lt + 2 * (PAD + 1)         # u1 (stage-1 output) extended width
    n2 = lt + 2                     # u2 (stage-2 output) extended width
    l = pl.program_id(1)
    last_l = pl.num_programs(1) - 1
    f32 = jnp.float32

    # --- stage 1: branch{1,2,3}_1 fused into one dot over a 21-tap im2col of x ---
    for t in range(T1):
        xc[t * CIN_PAD:(t + 1) * CIN_PAD, :] = x_ref[0, 0, :, t:t + n1]
    u1pad[...] = jnp.dot(w1_ref[...], xc[...],
                         preferred_element_type=f32).astype(u1pad.dtype)

    # Zero u1 at global positions outside [0, L): the reference zero-pads u1
    # (not x) before the stage-2 convolutions.  Only first/last tiles need it.
    @pl.when(l == 0)
    def _():
        u1pad[:, 0:PAD + 1] = jnp.zeros((C1_PAD, PAD + 1), u1pad.dtype)

    @pl.when(l == last_l)
    def _():
        u1pad[:, n1 - (PAD + 1):n1] = jnp.zeros((C1_PAD, PAD + 1), u1pad.dtype)

    # --- stage 2: the three branch_*_2 blocks merged into one dot (+BN+SELU) ---
    for t in range(T1):
        z[t * C1_PAD:(t + 1) * C1_PAD, :] = u1pad[:, t:t + n2]
    u2pad[...] = _selu(jnp.dot(w2_ref[...], z[...],
                               preferred_element_type=f32)).astype(u2pad.dtype)

    # Zero u2 at global positions outside [0, L) (the 3-tap conv's zero padding).
    @pl.when(l == 0)
    def _():
        u2pad[:, 0:1] = jnp.zeros((C1_PAD, 1), u2pad.dtype)

    @pl.when(l == last_l)
    def _():
        u2pad[:, n2 - 1:n2] = jnp.zeros((C1_PAD, 1), u2pad.dtype)

    # --- stage 3: BottleNeck chain + channel-shuffle + identity folded into wf ---
    for t in range(3):
        uc[t * C1_PAD:(t + 1) * C1_PAD, :] = u2pad[:, t:t + lt]
    o_ref[0] = _selu(jnp.dot(wf_ref[...], uc[...],
                             preferred_element_type=f32)).astype(o_ref.dtype)


@partial(jax.jit, static_argnames=("l_tile",))
def cell_forward(x, w1, w2, wf, *, l_tile=512):
    B, cin, L = x.shape
    assert cin == IN_PLANES
    lt = min(l_tile, L)
    if L % lt != 0:
        # TODO(synk): ragged final tile not handled; fall back to one full tile.
        lt = L
    n_l = L // lt

    # bf16 inputs/weights (MXU-native); zero-pad channels 10->16 and hand each
    # L-tile its 21-element receptive-field halo so tiles are fully independent.
    xb = x.astype(jnp.bfloat16)
    xp = jnp.pad(xb, ((0, 0), (0, CIN_PAD - IN_PLANES), (HALO, HALO)))
    xw = jnp.stack([xp[:, :, i * lt:i * lt + lt + 2 * HALO] for i in range(n_l)],
                   axis=1)                                  # (B, n_l, 16, lt+42)
    w1b = w1.astype(jnp.bfloat16)
    w2b = w2.astype(jnp.bfloat16)
    wfb = wf.astype(jnp.bfloat16)

    n1 = lt + 2 * (PAD + 1)
    n2 = lt + 2
    cost = pl.CostEstimate(
        flops=2 * B * L * (C1_PAD * w1.shape[1] + C1_PAD * w2.shape[1]
                           + C_MSE * wf.shape[1]),
        transcendentals=B * L * (C1_PAD + C_MSE),
        bytes_accessed=xw.size * 2 + (w1.size + w2.size + wf.size) * 2
                       + B * C_MSE * L * 4)

    return pl.pallas_call(
        _cell_kernel,
        out_shape=jax.ShapeDtypeStruct((B, C_MSE, L), jnp.float32),
        grid=(B, n_l),
        in_specs=[
            pl.BlockSpec((1, 1, CIN_PAD, lt + 2 * HALO), lambda b, l: (b, l, 0, 0)),
            pl.BlockSpec(w1.shape, lambda b, l: (0, 0)),   # constant blocks: no re-DMA
            pl.BlockSpec(w2.shape, lambda b, l: (0, 0)),
            pl.BlockSpec(wf.shape, lambda b, l: (0, 0)),
        ],
        out_specs=pl.BlockSpec((1, C_MSE, lt), lambda b, l: (b, 0, l)),
        scratch_shapes=[
            pltpu.VMEM((T1 * CIN_PAD, n1), jnp.bfloat16),   # xc    (336, lt+22)
            pltpu.VMEM((C1_PAD, n1), jnp.bfloat16),         # u1pad (64,  lt+22)
            pltpu.VMEM((T1 * C1_PAD, n2), jnp.bfloat16),    # z     (1344, lt+2)
            pltpu.VMEM((C1_PAD, n2), jnp.bfloat16),         # u2pad (64,  lt+2)
            pltpu.VMEM((3 * C1_PAD, lt), jnp.bfloat16),     # uc    (192, lt)
        ],
        compiler_params=pltpu.CompilerParams(
            dimension_semantics=("parallel", "parallel"),
            vmem_limit_bytes=32 * 1024 * 1024),
        cost_estimate=cost,
    )(xw, w1b, w2b, wfb)


# ----------------------------- parameter building ---------------------------
def _kaiming(key, shape):
    # PyTorch kaiming_normal_ default: fan_in = Cin_per_group * K, gain=sqrt(2)
    fan_in = shape[1] * shape[2]
    std = (2.0 / fan_in) ** 0.5
    return np.asarray(std * jax.random.normal(key, shape, jnp.float32))


def build_params(key):
    """Draw the PyTorch-equivalent Conv1d weights and compose them (once, at init)
    into the three dense matmul weights consumed by the fused kernel (f32)."""
    keys = jax.random.split(key, 21)
    ki = iter(keys)

    # stage 1: rows 0..53 = intra outputs (branch-major, 18 each),
    #          rows 54..59 = inter outputs (branch-major, 2 each), rows 60..63 = 0.
    w1 = np.zeros((C1_PAD, T1 * CIN_PAD), np.float32)      # (64, 336)
    # stage 2 (branches merged): rows 20*br + [0..19] = branch br (intra 18, inter 2).
    w2 = np.zeros((C1_PAD, T1 * C1_PAD), np.float32)       # (64, 1344)

    for br, b in enumerate(KS):
        t0 = PAD - (b - 1) // 2                 # tap index of the kernel's start

        # --- branch_{br}_1 : I2CBlockv2(in=10, e=2, intra_k=b, groups=10, ac=False)
        wi1 = _kaiming(next(ki), (2, 9, 1))     # inter_channel1 (9 -> 2, k=1)
        wi2 = _kaiming(next(ki), (2, 3, 1))     # inter_channel2 (3 -> 2, k=1)
        wia = _kaiming(next(ki), (18, 1, b))    # intra_channel  (9 -> 18, groups=9)
        for r in range(18):                     # intra rows
            g = r // 2
            for k in range(b):
                w1[18 * br + r, (t0 + k) * CIN_PAD + g] = wia[r, 0, k]
        comb = wi2[:, 1:3, 0] @ wi1[:, :, 0]    # inter2 ∘ inter1  (2, 9)
        for j in range(2):                      # inter rows (centre tap, k=1)
            row = 54 + 2 * br + j
            w1[row, PAD * CIN_PAD + 9] = wi2[j, 0, 0]
            w1[row, PAD * CIN_PAD + 0:PAD * CIN_PAD + 9] = comb[j]

        # --- branch_{br}_2 : I2CBlockv2(in=20, e=1, intra_k=b, groups=10, ac=True)
        wi1b = _kaiming(next(ki), (2, 18, 1))
        wi2b = _kaiming(next(ki), (2, 4, 1))
        wiab = _kaiming(next(ki), (18, 2, b))   # groups=9, 2 -> 2 per group
        for r in range(18):
            g = r // 2
            for m in range(2):
                for k in range(b):
                    w2[20 * br + r, (t0 + k) * C1_PAD + 18 * br + 2 * g + m] = \
                        BN_SCALE * wiab[r, m, k]
        combb = wi2b[:, 2:4, 0] @ wi1b[:, :, 0]              # (2, 18)
        for j in range(2):
            row = 20 * br + 18 + j
            w2[row, PAD * C1_PAD + 54 + 2 * br + 0] = BN_SCALE * wi2b[j, 0, 0]
            w2[row, PAD * C1_PAD + 54 + 2 * br + 1] = BN_SCALE * wi2b[j, 1, 0]
            w2[row, PAD * C1_PAD + 18 * br:PAD * C1_PAD + 18 * br + 18] += \
                BN_SCALE * combb[j]

    # --- BottleNeck: conv1x1_1/bn1 -> conv3x3/bn2 -> conv1x1_2/bn3 (all linear),
    #     with the I2CMSE channel shuffle folded as a column permutation and the
    #     identity shortcut folded as a +permutation-matrix on the centre tap.
    w1c = _kaiming(next(ki), (C_MID, 6, 1))     # 60 -> 20, groups=10
    w2c = _kaiming(next(ki), (C_MID, 2, 3))     # 20 -> 20, groups=10, k=3
    w3c = _kaiming(next(ki), (C_MSE, 2, 1))     # 20 -> 60, groups=10

    W1d = np.zeros((C_MID, C_MSE), np.float32)
    W3d = np.zeros((C_MSE, C_MID), np.float32)
    for g in range(GROUPS):
        W1d[2 * g:2 * g + 2, 6 * g:6 * g + 6] = w1c[2 * g:2 * g + 2, :, 0]
        W3d[6 * g:6 * g + 6, 2 * g:2 * g + 2] = w3c[6 * g:6 * g + 6, :, 0]

    # shuffled channel 6*i + 2*br + j  <-  branch-major row 20*br + 2*i + j
    perm = np.zeros(C_MSE, np.int64)
    for i in range(GROUPS):
        for br in range(3):
            for j in range(2):
                perm[6 * i + 2 * br + j] = C_MID * br + 2 * i + j

    wf = np.zeros((C_MSE, 3 * C1_PAD), np.float32)          # (60, 192)
    for t in range(3):
        W2d = np.zeros((C_MID, C_MID), np.float32)
        for g in range(GROUPS):
            W2d[2 * g:2 * g + 2, 2 * g:2 * g + 2] = w2c[2 * g:2 * g + 2, :, t]
        Weff = (BN_SCALE ** 3) * (W3d @ W2d @ W1d)   # acts on shuffled channels
        Wu = np.zeros((C_MSE, C_MSE), np.float32)
        Wu[:, perm] = Weff                           # now acts on branch-major rows
        if t == 1:                                   # identity shortcut @ centre tap
            Wu[np.arange(C_MSE), perm] += 1.0
        wf[:, t * C1_PAD:t * C1_PAD + C_MSE] = Wu

    return jnp.asarray(w1), jnp.asarray(w2), jnp.asarray(wf)


# ----------------------------- f32 reference --------------------------------
@jax.jit
def reference_forward(x, w1, w2, wf):
    """Untiled f32 reference built from the same composed weights (validates the
    halo / tiling / edge-masking / merged-branch logic of the kernel)."""
    B, _, L = x.shape
    hp = "highest"
    xp = jnp.pad(x, ((0, 0), (0, CIN_PAD - IN_PLANES), (PAD, PAD)))
    xc = jnp.concatenate([xp[:, :, t:t + L] for t in range(T1)], axis=1)
    u1 = jnp.einsum("ok,bkl->bol", w1, xc, precision=hp)
    u1p = jnp.pad(u1, ((0, 0), (0, 0), (PAD, PAD)))
    z = jnp.concatenate([u1p[:, :, t:t + L] for t in range(T1)], axis=1)
    u2 = _selu(jnp.einsum("ok,bkl->bol", w2, z, precision=hp))
    u2p = jnp.pad(u2, ((0, 0), (0, 0), (1, 1)))
    uc = jnp.concatenate([u2p[:, :, t:t + L] for t in range(3)], axis=1)
    return _selu(jnp.einsum("ok,bkl->bol", wf, uc, precision=hp))


# ----------------------------- main ------------------------------------------
if __name__ == "__main__":
    key = jax.random.PRNGKey(0)
    pkey, xkey = jax.random.split(key)
    w1, w2, wf = build_params(pkey)

    B, L = 2, 1024
    x = jax.random.normal(xkey, (B, IN_PLANES, L), jnp.float32)   # NCL

    out = jax.block_until_ready(cell_forward(x, w1, w2, wf, l_tile=512))
    assert out.shape == (B, C_MSE, L), out.shape
    assert bool(jnp.all(jnp.isfinite(out)))

    # cross-check the tiled bf16 kernel against the untiled f32 composed reference
    ref = jax.block_until_ready(reference_forward(x, w1, w2, wf))
    rel = float(jnp.linalg.norm(out - ref) / (jnp.linalg.norm(ref) + 1e-9))
    assert rel < 0.05, f"relative L2 error too large: {rel}"

    print("KERNEL_OK")
</pallas_src>

<mosaic_0001>
module attributes {stable_mosaic.version = 11 : i64} {
  func.func @_cell_kernel(%arg0: i32, %arg1: i32, %arg2: memref<1x1x16x554xbf16, #tpu.memory_space<vmem>>, %arg3: memref<64x336xbf16, #tpu.memory_space<vmem>>, %arg4: memref<64x1344xbf16, #tpu.memory_space<vmem>>, %arg5: memref<60x192xbf16, #tpu.memory_space<vmem>>, %arg6: memref<1x60x512xf32, #tpu.memory_space<vmem>>, %arg7: memref<336x534xbf16, #tpu.memory_space<vmem>>, %arg8: memref<64x534xbf16, #tpu.memory_space<vmem>>, %arg9: memref<1344x514xbf16, #tpu.memory_space<vmem>>, %arg10: memref<64x514xbf16, #tpu.memory_space<vmem>>, %arg11: memref<192x512xbf16, #tpu.memory_space<vmem>>) attributes {dimension_semantics = [#tpu.dimension_semantics<parallel>, #tpu.dimension_semantics<parallel>], iteration_bounds = array<i64: 2, 2>, scalar_prefetch = 0 : i64, scratch_operands = 5 : i64, tpu.core_type = #tpu.core_type<tc>, window_params = [{transform_indices = @transform_0, window_bounds = array<i64: 1, 1, 16, 554>}, {pipeline_mode = #tpu.pipeline_mode<synchronous>, transform_indices = @transform_1, window_bounds = array<i64: 64, 336>}, {pipeline_mode = #tpu.pipeline_mode<synchronous>, transform_indices = @transform_2, window_bounds = array<i64: 64, 1344>}, {pipeline_mode = #tpu.pipeline_mode<synchronous>, transform_indices = @transform_3, window_bounds = array<i64: 60, 192>}, {transform_indices = @transform_4, window_bounds = array<i64: 1, 60, 512>}]} {
    %c0 = arith.constant 0 : index
    %c0_0 = arith.constant 0 : index
    %c0_1 = arith.constant 0 : index
    %c0_2 = arith.constant 0 : index
    %0 = vector.load %arg2[%c0, %c0_0, %c0_1, %c0_2] : memref<1x1x16x554xbf16, #tpu.memory_space<vmem>>, vector<1x1x16x534xbf16>
    %1 = vector.shape_cast %0 : vector<1x1x16x534xbf16> to vector<16x534xbf16>
    %c0_3 = arith.constant 0 : index
    %c0_4 = arith.constant 0 : index
    %2 = vector.load %arg7[%c0_3, %c0_4] : memref<336x534xbf16, #tpu.memory_space<vmem>>, vector<16x534xbf16>
    tpu.vector_store %arg7[%c0_3, %c0_4], %1 {strides = array<i32>} : memref<336x534xbf16, #tpu.memory_space<vmem>>, vector<16x534xbf16>,
    %c0_5 = arith.constant 0 : index
    %c0_6 = arith.constant 0 : index
    %c0_7 = arith.constant 0 : index
    %c1 = arith.constant 1 : index
    %3 = vector.load %arg2[%c0_5, %c0_6, %c0_7, %c1] : memref<1x1x16x554xbf16, #tpu.memory_space<vmem>>, vector<1x1x16x534xbf16>
    %4 = vector.shape_cast %3 : vector<1x1x16x534xbf16> to vector<16x534xbf16>
    %c16 = arith.constant 16 : index
    %c0_8 = arith.constant 0 : index
    %5 = vector.load %arg7[%c16, %c0_8] : memref<336x534xbf16, #tpu.memory_space<vmem>>, vector<16x534xbf16>
    tpu.vector_store %arg7[%c16, %c0_8], %4 {strides = array<i32>} : memref<336x534xbf16, #tpu.memory_space<vmem>>, vector<16x534xbf16>,
    %c0_9 = arith.constant 0 : index
    %c0_10 = arith.constant 0 : index
    %c0_11 = arith.constant 0 : index
    %c2 = arith.constant 2 : index
    %6 = vector.load %arg2[%c0_9, %c0_10, %c0_11, %c2] : memref<1x1x16x554xbf16, #tpu.memory_space<vmem>>, vector<1x1x16x534xbf16>
    %7 = vector.shape_cast %6 : vector<1x1x16x534xbf16> to vector<16x534xbf16>
    %c32 = arith.constant 32 : index
    %c0_12 = arith.constant 0 : index
    %8 = vector.load %arg7[%c32, %c0_12] : memref<336x534xbf16, #tpu.memory_space<vmem>>, vector<16x534xbf16>
    tpu.vector_store %arg7[%c32, %c0_12], %7 {strides = array<i32>} : memref<336x534xbf16, #tpu.memory_space<vmem>>, vector<16x534xbf16>,
    %c0_13 = arith.constant 0 : index
    %c0_14 = arith.constant 0 : index
    %c0_15 = arith.constant 0 : index
    %c3 = arith.constant 3 : index
    %9 = vector.load %arg2[%c0_13, %c0_14, %c0_15, %c3] : memref<1x1x16x554xbf16, #tpu.memory_space<vmem>>, vector<1x1x16x534xbf16>
    %10 = vector.shape_cast %9 : vector<1x1x16x534xbf16> to vector<16x534xbf16>
    %c48 = arith.constant 48 : index
    %c0_16 = arith.constant 0 : index
    %11 = vector.load %arg7[%c48, %c0_16] : memref<336x534xbf16, #tpu.memory_space<vmem>>, vector<16x534xbf16>
    tpu.vector_store %arg7[%c48, %c0_16], %10 {strides = array<i32>} : memref<336x534xbf16, #tpu.memory_space<vmem>>, vector<16x534xbf16>,
    %c0_17 = arith.constant 0 : index
    %c0_18 = arith.constant 0 : index
    %c0_19 = arith.constant 0 : index
    %c4 = arith.constant 4 : index
    %12 = vector.load %arg2[%c0_17, %c0_18, %c0_19, %c4] : memref<1x1x16x554xbf16, #tpu.memory_space<vmem>>, vector<1x1x16x534xbf16>
    %13 = vector.shape_cast %12 : vector<1x1x16x534xbf16> to vector<16x534xbf16>
    %c64 = arith.constant 64 : index
    %c0_20 = arith.constant 0 : index
    %14 = vector.load %arg7[%c64, %c0_20] : memref<336x534xbf16, #tpu.memory_space<vmem>>, vector<16x534xbf16>
    tpu.vector_store %arg7[%c64, %c0_20], %13 {strides = array<i32>} : memref<336x534xbf16, #tpu.memory_space<vmem>>, vector<16x534xbf16>,
    %c0_21 = arith.constant 0 : index
    %c0_22 = arith.constant 0 : index
    %c0_23 = arith.constant 0 : index
    %c5 = arith.constant 5 : index
    %15 = vector.load %arg2[%c0_21, %c0_22, %c0_23, %c5] : memref<1x1x16x554xbf16, #tpu.memory_space<vmem>>, vector<1x1x16x534xbf16>
    %16 = vector.shape_cast %15 : vector<1x1x16x534xbf16> to vector<16x534xbf16>
    %c80 = arith.constant 80 : index
    %c0_24 = arith.constant 0 : index
    %17 = vector.load %arg7[%c80, %c0_24] : memref<336x534xbf16, #tpu.memory_space<vmem>>, vector<16x534xbf16>
    tpu.vector_store %arg7[%c80, %c0_24], %16 {strides = array<i32>} : memref<336x534xbf16, #tpu.memory_space<vmem>>, vector<16x534xbf16>,
    %c0_25 = arith.constant 0 : index
    %c0_26 = arith.constant 0 : index
    %c0_27 = arith.constant 0 : index
    %c6 = arith.constant 6 : index
    %18 = vector.load %arg2[%c0_25, %c0_26, %c0_27, %c6] : memref<1x1x16x554xbf16, #tpu.memory_space<vmem>>, vector<1x1x16x534xbf16>
    %19 = vector.shape_cast %18 : vector<1x1x16x534xbf16> to vector<16x534xbf16>
    %c96 = arith.constant 96 : index
    %c0_28 = arith.constant 0 : index
    %20 = vector.load %arg7[%c96, %c0_28] : memref<336x534xbf16, #tpu.memory_space<vmem>>, vector<16x534xbf16>
    tpu.vector_store %arg7[%c96, %c0_28], %19 {strides = array<i32>} : memref<336x534xbf16, #tpu.memory_space<vmem>>, vector<16x534xbf16>,
    %c0_29 = arith.constant 0 : index
    %c0_30 = arith.constant 0 : index
    %c0_31 = arith.constant 0 : index
    %c7 = arith.constant 7 : index
    %21 = vector.load %arg2[%c0_29, %c0_30, %c0_31, %c7] : memref<1x1x16x554xbf16, #tpu.memory_space<vmem>>, vector<1x1x16x534xbf16>
    %22 = vector.shape_cast %21 : vector<1x1x16x534xbf16> to vector<16x534xbf16>
    %c112 = arith.constant 112 : index
    %c0_32 = arith.constant 0 : index
    %23 = vector.load %arg7[%c112, %c0_32] : memref<336x534xbf16, #tpu.memory_space<vmem>>, vector<16x534xbf16>
    tpu.vector_store %arg7[%c112, %c0_32], %22 {strides = array<i32>} : memref<336x534xbf16, #tpu.memory_space<vmem>>, vector<16x534xbf16>,
    %c0_33 = arith.constant 0 : index
    %c0_34 = arith.constant 0 : index
    %c0_35 = arith.constant 0 : index
    %c8 = arith.constant 8 : index
    %24 = vector.load %arg2[%c0_33, %c0_34, %c0_35, %c8] : memref<1x1x16x554xbf16, #tpu.memory_space<vmem>>, vector<1x1x16x534xbf16>
    %25 = vector.shape_cast %24 : vector<1x1x16x534xbf16> to vector<16x534xbf16>
    %c128 = arith.constant 128 : index
    %c0_36 = arith.constant 0 : index
    %26 = vector.load %arg7[%c128, %c0_36] : memref<336x534xbf16, #tpu.memory_space<vmem>>, vector<16x534xbf16>
    tpu.vector_store %arg7[%c128, %c0_36], %25 {strides = array<i32>} : memref<336x534xbf16, #tpu.memory_space<vmem>>, vector<16x534xbf16>,
    %c0_37 = arith.constant 0 : index
    %c0_38 = arith.constant 0 : index
    %c0_39 = arith.constant 0 : index
    %c9 = arith.constant 9 : index
    %27 = vector.load %arg2[%c0_37, %c0_38, %c0_39, %c9] : memref<1x1x16x554xbf16, #tpu.memory_space<vmem>>, vector<1x1x16x534xbf16>
    %28 = vector.shape_cast %27 : vector<1x1x16x534xbf16> to vector<16x534xbf16>
    %c144 = arith.constant 144 : index
    %c0_40 = arith.constant 0 : index
    %29 = vector.load %arg7[%c144, %c0_40] : memref<336x534xbf16, #tpu.memory_space<vmem>>, vector<16x534xbf16>
    tpu.vector_store %arg7[%c144, %c0_40], %28 {strides = array<i32>} : memref<336x534xbf16, #tpu.memory_space<vmem>>, vector<16x534xbf16>,
    %c0_41 = arith.constant 0 : index
    %c0_42 = arith.constant 0 : index
    %c0_43 = arith.constant 0 : index
    %c10 = arith.constant 10 : index
    %30 = vector.load %arg2[%c0_41, %c0_42, %c0_43, %c10] : memref<1x1x16x554xbf16, #tpu.memory_space<vmem>>, vector<1x1x16x534xbf16>
    %31 = vector.shape_cast %30 : vector<1x1x16x534xbf16> to vector<16x534xbf16>
    %c160 = arith.constant 160 : index
    %c0_44 = arith.constant 0 : index
    %32 = vector.load %arg7[%c160, %c0_44] : memref<336x534xbf16, #tpu.memory_space<vmem>>, vector<16x534xbf16>
    tpu.vector_store %arg7[%c160, %c0_44], %31 {strides = array<i32>} : memref<336x534xbf16, #tpu.memory_space<vmem>>, vector<16x534xbf16>,
    %c0_45 = arith.constant 0 : index
    %c0_46 = arith.constant 0 : index
    %c0_47 = arith.constant 0 : index
    %c11 = arith.constant 11 : index
    %33 = vector.load %arg2[%c0_45, %c0_46, %c0_47, %c11] : memref<1x1x16x554xbf16, #tpu.memory_space<vmem>>, vector<1x1x16x534xbf16>
    %34 = vector.shape_cast %33 : vector<1x1x16x534xbf16> to vector<16x534xbf16>
    %c176 = arith.constant 176 : index
    %c0_48 = arith.constant 0 : index
    %35 = vector.load %arg7[%c176, %c0_48] : memref<336x534xbf16, #tpu.memory_space<vmem>>, vector<16x534xbf16>
    tpu.vector_store %arg7[%c176, %c0_48], %34 {strides = array<i32>} : memref<336x534xbf16, #tpu.memory_space<vmem>>, vector<16x534xbf16>,
    %c0_49 = arith.constant 0 : index
    %c0_50 = arith.constant 0 : index
    %c0_51 = arith.constant 0 : index
    %c12 = arith.constant 12 : index
    %36 = vector.load %arg2[%c0_49, %c0_50, %c0_51, %c12] : memref<1x1x16x554xbf16, #tpu.memory_space<vmem>>, vector<1x1x16x534xbf16>
    %37 = vector.shape_cast %36 : vector<1x1x16x534xbf16> to vector<16x534xbf16>
    %c192 = arith.constant 192 : index
    %c0_52 = arith.constant 0 : index
    %38 = vector.load %arg7[%c192, %c0_52] : memref<336x534xbf16, #tpu.memory_space<vmem>>, vector<16x534xbf16>
    tpu.vector_store %arg7[%c192, %c0_52], %37 {strides = array<i32>} : memref<336x534xbf16, #tpu.memory_space<vmem>>, vector<16x534xbf16>,
    %c0_53 = arith.constant 0 : index
    %c0_54 = arith.constant 0 : index
    %c0_55 = arith.constant 0 : index
    %c13 = arith.constant 13 : index
    %39 = vector.load %arg2[%c0_53, %c0_54, %c0_55, %c13] : memref<1x1x16x554xbf16, #tpu.memory_space<vmem>>, vector<1x1x16x534xbf16>
    %40 = vector.shape_cast %39 : vector<1x1x16x534xbf16> to vector<16x534xbf16>
    %c208 = arith.constant 208 : index
    %c0_56 = arith.constant 0 : index
    %41 = vector.load %arg7[%c208, %c0_56] : memref<336x534xbf16, #tpu.memory_space<vmem>>, vector<16x534xbf16>
    tpu.vector_store %arg7[%c208, %c0_56], %40 {strides = array<i32>} : memref<336x534xbf16, #tpu.memory_space<vmem>>, vector<16x534xbf16>,
    %c0_57 = arith.constant 0 : index
    %c0_58 = arith.constant 0 : index
    %c0_59 = arith.constant 0 : index
    %c14 = arith.constant 14 : index
    %42 = vector.load %arg2[%c0_57, %c0_58, %c0_59, %c14] : memref<1x1x16x554xbf16, #tpu.memory_space<vmem>>, vector<1x1x16x534xbf16>
    %43 = vector.shape_cast %42 : vector<1x1x16x534xbf16> to vector<16x534xbf16>
    %c224 = arith.constant 224 : index
    %c0_60 = arith.constant 0 : index
    %44 = vector.load %arg7[%c224, %c0_60] : memref<336x534xbf16, #tpu.memory_space<vmem>>, vector<16x534xbf16>
    tpu.vector_store %arg7[%c224, %c0_60], %43 {strides = array<i32>} : memref<336x534xbf16, #tpu.memory_space<vmem>>, vector<16x534xbf16>,
    %c0_61 = arith.constant 0 : index
    %c0_62 = arith.constant 0 : index
    %c0_63 = arith.constant 0 : index
    %c15 = arith.constant 15 : index
    %45 = vector.load %arg2[%c0_61, %c0_62, %c0_63, %c15] : memref<1x1x16x554xbf16, #tpu.memory_space<vmem>>, vector<1x1x16x534xbf16>
    %46 = vector.shape_cast %45 : vector<1x1x16x534xbf16> to vector<16x534xbf16>
    %c240 = arith.constant 240 : index
    %c0_64 = arith.constant 0 : index
    %47 = vector.load %arg7[%c240, %c0_64] : memref<336x534xbf16, #tpu.memory_space<vmem>>, vector<16x534xbf16>
    tpu.vector_store %arg7[%c240, %c0_64], %46 {strides = array<i32>} : memref<336x534xbf16, #tpu.memory_space<vmem>>, vector<16x534xbf16>,
    %c0_65 = arith.constant 0 : index
    %c0_66 = arith.constant 0 : index
    %c0_67 = arith.constant 0 : index
    %c16_68 = arith.constant 16 : index
    %48 = vector.load %arg2[%c0_65, %c0_66, %c0_67, %c16_68] : memref<1x1x16x554xbf16, #tpu.memory_space<vmem>>, vector<1x1x16x534xbf16>
    %49 = vector.shape_cast %48 : vector<1x1x16x534xbf16> to vector<16x534xbf16>
    %c256 = arith.constant 256 : index
    %c0_69 = arith.constant 0 : index
    %50 = vector.load %arg7[%c256, %c0_69] : memref<336x534xbf16, #tpu.memory_space<vmem>>, vector<16x534xbf16>
    tpu.vector_store %arg7[%c256, %c0_69], %49 {strides = array<i32>} : memref<336x534xbf16, #tpu.memory_space<vmem>>, vector<16x534xbf16>,
    %c0_70 = arith.constant 0 : index
    %c0_71 = arith.constant 0 : index
    %c0_72 = arith.constant 0 : index
    %c17 = arith.constant 17 : index
    %51 = vector.load %arg2[%c0_70, %c0_71, %c0_72, %c17] : memref<1x1x16x554xbf16, #tpu.memory_space<vmem>>, vector<1x1x16x534xbf16>
    %52 = vector.shape_cast %51 : vector<1x1x16x534xbf16> to vector<16x534xbf16>
    %c272 = arith.constant 272 : index
    %c0_73 = arith.constant 0 : index
    %53 = vector.load %arg7[%c272, %c0_73] : memref<336x534xbf16, #tpu.memory_space<vmem>>, vector<16x534xbf16>
    tpu.vector_store %arg7[%c272, %c0_73], %52 {strides = array<i32>} : memref<336x534xbf16, #tpu.memory_space<vmem>>, vector<16x534xbf16>,
    %c0_74 = arith.constant 0 : index
    %c0_75 = arith.constant 0 : index
    %c0_76 = arith.constant 0 : index
    %c18 = arith.constant 18 : index
    %54 = vector.load %arg2[%c0_74, %c0_75, %c0_76, %c18] : memref<1x1x16x554xbf16, #tpu.memory_space<vmem>>, vector<1x1x16x534xbf16>
    %55 = vector.shape_cast %54 : vector<1x1x16x534xbf16> to vector<16x534xbf16>
    %c288 = arith.constant 288 : index
    %c0_77 = arith.constant 0 : index
    %56 = vector.load %arg7[%c288, %c0_77] : memref<336x534xbf16, #tpu.memory_space<vmem>>, vector<16x534xbf16>
    tpu.vector_store %arg7[%c288, %c0_77], %55 {strides = array<i32>} : memref<336x534xbf16, #tpu.memory_space<vmem>>, vector<16x534xbf16>,
    %c0_78 = arith.constant 0 : index
    %c0_79 = arith.constant 0 : index
    %c0_80 = arith.constant 0 : index
    %c19 = arith.constant 19 : index
    %57 = vector.load %arg2[%c0_78, %c0_79, %c0_80, %c19] : memref<1x1x16x554xbf16, #tpu.memory_space<vmem>>, vector<1x1x16x534xbf16>
    %58 = vector.shape_cast %57 : vector<1x1x16x534xbf16> to vector<16x534xbf16>
    %c304 = arith.constant 304 : index
    %c0_81 = arith.constant 0 : index
    %59 = vector.load %arg7[%c304, %c0_81] : memref<336x534xbf16, #tpu.memory_space<vmem>>, vector<16x534xbf16>
    tpu.vector_store %arg7[%c304, %c0_81], %58 {strides = array<i32>} : memref<336x534xbf16, #tpu.memory_space<vmem>>, vector<16x534xbf16>,
    %c0_82 = arith.constant 0 : index
    %c0_83 = arith.constant 0 : index
    %c0_84 = arith.constant 0 : index
    %c20 = arith.constant 20 : index
    %60 = vector.load %arg2[%c0_82, %c0_83, %c0_84, %c20] : memref<1x1x16x554xbf16, #tpu.memory_space<vmem>>, vector<1x1x16x534xbf16>
    %61 = vector.shape_cast %60 : vector<1x1x16x534xbf16> to vector<16x534xbf16>
    %c320 = arith.constant 320 : index
    %c0_85 = arith.constant 0 : index
    %62 = vector.load %arg7[%c320, %c0_85] : memref<336x534xbf16, #tpu.memory_space<vmem>>, vector<16x534xbf16>
    tpu.vector_store %arg7[%c320, %c0_85], %61 {strides = array<i32>} : memref<336x534xbf16, #tpu.memory_space<vmem>>, vector<16x534xbf16>,
    %c0_86 = arith.constant 0 : index
    %c0_87 = arith.constant 0 : index
    %63 = vector.load %arg3[%c0_86, %c0_87] : memref<64x336xbf16, #tpu.memory_space<vmem>>, vector<64x336xbf16>
    %c0_88 = arith.constant 0 : index
    %c0_89 = arith.constant 0 : index
    %64 = vector.load %arg7[%c0_88, %c0_89] : memref<336x534xbf16, #tpu.memory_space<vmem>>, vector<336x534xbf16>
    %cst = arith.constant dense<0.000000e+00> : vector<64x534xf32>
    %65 = tpu.matmul %63, %64, %cst {dimension_numbers = #tpu.dot_dimension_numbers<[1], [0], [0], [1], [0, 0, 1, 1], [], []>} : vector<64x336xbf16>, vector<336x534xbf16>, vector<64x534xf32> -> vector<64x534xf32>
    %66 = arith.truncf %65 : vector<64x534xf32> to vector<64x534xbf16>
    %c0_90 = arith.constant 0 : index
    %c0_91 = arith.constant 0 : index
    %67 = vector.load %arg8[%c0_90, %c0_91] : memref<64x534xbf16, #tpu.memory_space<vmem>>, vector<64x534xbf16>
    tpu.vector_store %arg8[%c0_90, %c0_91], %66 {strides = array<i32>} : memref<64x534xbf16, #tpu.memory_space<vmem>>, vector<64x534xbf16>,
    %c0_i32 = arith.constant 0 : i32
    %68 = arith.cmpi eq, %arg1, %c0_i32 : i32
    %69 = arith.extui %68 : i1 to i32
    %c0_i32_92 = arith.constant 0 : i32
    %70 = arith.cmpi ne, %69, %c0_i32_92 : i32
    scf.if %70 {
      %cst_202 = arith.constant 0.000000e+00 : bf16
      %159 = vector.broadcast %cst_202 : bf16 to vector<64x11xbf16>
      %c0_203 = arith.constant 0 : index
      %c0_204 = arith.constant 0 : index
      %160 = vector.load %arg8[%c0_203, %c0_204] : memref<64x534xbf16, #tpu.memory_space<vmem>>, vector<64x11xbf16>
      tpu.vector_store %arg8[%c0_203, %c0_204], %159 {strides = array<i32>} : memref<64x534xbf16, #tpu.memory_space<vmem>>, vector<64x11xbf16>,
    } else {
    }
    %c1_i32 = arith.constant 1 : i32
    %71 = arith.cmpi eq, %arg1, %c1_i32 : i32
    %72 = arith.extui %71 : i1 to i32
    %c0_i32_93 = arith.constant 0 : i32
    %73 = arith.cmpi ne, %72, %c0_i32_93 : i32
    scf.if %73 {
      %cst_202 = arith.constant 0.000000e+00 : bf16
      %159 = vector.broadcast %cst_202 : bf16 to vector<64x11xbf16>
      %c0_203 = arith.constant 0 : index
      %c523 = arith.constant 523 : index
      %160 = vector.load %arg8[%c0_203, %c523] : memref<64x534xbf16, #tpu.memory_space<vmem>>, vector<64x11xbf16>
      tpu.vector_store %arg8[%c0_203, %c523], %159 {strides = array<i32>} : memref<64x534xbf16, #tpu.memory_space<vmem>>, vector<64x11xbf16>,
    } else {
    }
    %c0_94 = arith.constant 0 : index
    %c0_95 = arith.constant 0 : index
    %74 = vector.load %arg8[%c0_94, %c0_95] : memref<64x534xbf16, #tpu.memory_space<vmem>>, vector<64x514xbf16>
    %c0_96 = arith.constant 0 : index
    %c0_97 = arith.constant 0 : index
    %75 = vector.load %arg9[%c0_96, %c0_97] : memref<1344x514xbf16, #tpu.memory_space<vmem>>, vector<64x514xbf16>
    tpu.vector_store %arg9[%c0_96, %c0_97], %74 {strides = array<i32>} : memref<1344x514xbf16, #tpu.memory_space<vmem>>, vector<64x514xbf16>,
    %c0_98 = arith.constant 0 : index
    %c1_99 = arith.constant 1 : index
    %76 = vector.load %arg8[%c0_98, %c1_99] : memref<64x534xbf16, #tpu.memory_space<vmem>>, vector<64x514xbf16>
    %c64_100 = arith.constant 64 : index
    %c0_101 = arith.constant 0 : index
    %77 = vector.load %arg9[%c64_100, %c0_101] : memref<1344x514xbf16, #tpu.memory_space<vmem>>, vector<64x514xbf16>
    tpu.vector_store %arg9[%c64_100, %c0_101], %76 {strides = array<i32>} : memref<1344x514xbf16, #tpu.memory_space<vmem>>, vector<64x514xbf16>,
    %c0_102 = arith.constant 0 : index
    %c2_103 = arith.constant 2 : index
    %78 = vector.load %arg8[%c0_102, %c2_103] : memref<64x534xbf16, #tpu.memory_space<vmem>>, vector<64x514xbf16>
    %c128_104 = arith.constant 128 : index
    %c0_105 = arith.constant 0 : index
    %79 = vector.load %arg9[%c128_104, %c0_105] : memref<1344x514xbf16, #tpu.memory_space<vmem>>, vector<64x514xbf16>
    tpu.vector_store %arg9[%c128_104, %c0_105], %78 {strides = array<i32>} : memref<1344x514xbf16, #tpu.memory_space<vmem>>, vector<64x514xbf16>,
    %c0_106 = arith.constant 0 : index
    %c3_107 = arith.constant 3 : index
    %80 = vector.load %arg8[%c0_106, %c3_107] : memref<64x534xbf16, #tpu.memory_space<vmem>>, vector<64x514xbf16>
    %c192_108 = arith.constant 192 : index
    %c0_109 = arith.constant 0 : index
    %81 = vector.load %arg9[%c192_108, %c0_109] : memref<1344x514xbf16, #tpu.memory_space<vmem>>, vector<64x514xbf16>
    tpu.vector_store %arg9[%c192_108, %c0_109], %80 {strides = array<i32>} : memref<1344x514xbf16, #tpu.memory_space<vmem>>, vector<64x514xbf16>,
    %c0_110 = arith.constant 0 : index
    %c4_111 = arith.constant 4 : index
    %82 = vector.load %arg8[%c0_110, %c4_111] : memref<64x534xbf16, #tpu.memory_space<vmem>>, vector<64x514xbf16>
    %c256_112 = arith.constant 256 : index
    %c0_113 = arith.constant 0 : index
    %83 = vector.load %arg9[%c256_112, %c0_113] : memref<1344x514xbf16, #tpu.memory_space<vmem>>, vector<64x514xbf16>
    tpu.vector_store %arg9[%c256_112, %c0_113], %82 {strides = array<i32>} : memref<1344x514xbf16, #tpu.memory_space<vmem>>, vector<64x514xbf16>,
    %c0_114 = arith.constant 0 : index
    %c5_115 = arith.constant 5 : index
    %84 = vector.load %arg8[%c0_114, %c5_115] : memref<64x534xbf16, #tpu.memory_space<vmem>>, vector<64x514xbf16>
    %c320_116 = arith.constant 320 : index
    %c0_117 = arith.constant 0 : index
    %85 = vector.load %arg9[%c320_116, %c0_117] : memref<1344x514xbf16, #tpu.memory_space<vmem>>, vector<64x514xbf16>
    tpu.vector_store %arg9[%c320_116, %c0_117], %84 {strides = array<i32>} : memref<1344x514xbf16, #tpu.memory_space<vmem>>, vector<64x514xbf16>,
    %c0_118 = arith.constant 0 : index
    %c6_119 = arith.constant 6 : index
    %86 = vector.load %arg8[%c0_118, %c6_119] : memref<64x534xbf16, #tpu.memory_space<vmem>>, vector<64x514xbf16>
    %c384 = arith.constant 384 : index
    %c0_120 = arith.constant 0 : index
    %87 = vector.load %arg9[%c384, %c0_120] : memref<1344x514xbf16, #tpu.memory_space<vmem>>, vector<64x514xbf16>
    tpu.vector_store %arg9[%c384, %c0_120], %86 {strides = array<i32>} : memref<1344x514xbf16, #tpu.memory_space<vmem>>, vector<64x514xbf16>,
    %c0_121 = arith.constant 0 : index
    %c7_122 = arith.constant 7 : index
    %88 = vector.load %arg8[%c0_121, %c7_122] : memref<64x534xbf16, #tpu.memory_space<vmem>>, vector<64x514xbf16>
    %c448 = arith.constant 448 : index
    %c0_123 = arith.constant 0 : index
    %89 = vector.load %arg9[%c448, %c0_123] : memref<1344x514xbf16, #tpu.memory_space<vmem>>, vector<64x514xbf16>
    tpu.vector_store %arg9[%c448, %c0_123], %88 {strides = array<i32>} : memref<1344x514xbf16, #tpu.memory_space<vmem>>, vector<64x514xbf16>,
    %c0_124 = arith.constant 0 : index
    %c8_125 = arith.constant 8 : index
    %90 = vector.load %arg8[%c0_124, %c8_125] : memref<64x534xbf16, #tpu.memory_space<vmem>>, vector<64x514xbf16>
    %c512 = arith.constant 512 : index
    %c0_126 = arith.constant 0 : index
    %91 = vector.load %arg9[%c512, %c0_126] : memref<1344x514xbf16, #tpu.memory_space<vmem>>, vector<64x514xbf16>
    tpu.vector_store %arg9[%c512, %c0_126], %90 {strides = array<i32>} : memref<1344x514xbf16, #tpu.memory_space<vmem>>, vector<64x514xbf16>,
    %c0_127 = arith.constant 0 : index
    %c9_128 = arith.constant 9 : index
    %92 = vector.load %arg8[%c0_127, %c9_128] : memref<64x534xbf16, #tpu.memory_space<vmem>>, vector<64x514xbf16>
    %c576 = arith.constant 576 : index
    %c0_129 = arith.constant 0 : index
    %93 = vector.load %arg9[%c576, %c0_129] : memref<1344x514xbf16, #tpu.memory_space<vmem>>, vector<64x514xbf16>
    tpu.vector_store %arg9[%c576, %c0_129], %92 {strides = array<i32>} : memref<1344x514xbf16, #tpu.memory_space<vmem>>, vector<64x514xbf16>,
    %c0_130 = arith.constant 0 : index
    %c10_131 = arith.constant 10 : index
    %94 = vector.load %arg8[%c0_130, %c10_131] : memref<64x534xbf16, #tpu.memory_space<vmem>>, vector<64x514xbf16>
    %c640 = arith.constant 640 : index
    %c0_132 = arith.constant 0 : index
    %95 = vector.load %arg9[%c640, %c0_132] : memref<1344x514xbf16, #tpu.memory_space<vmem>>, vector<64x514xbf16>
    tpu.vector_store %arg9[%c640, %c0_132], %94 {strides = array<i32>} : memref<1344x514xbf16, #tpu.memory_space<vmem>>, vector<64x514xbf16>,
    %c0_133 = arith.constant 0 : index
    %c11_134 = arith.constant 11 : index
    %96 = vector.load %arg8[%c0_133, %c11_134] : memref<64x534xbf16, #tpu.memory_space<vmem>>, vector<64x514xbf16>
    %c704 = arith.constant 704 : index
    %c0_135 = arith.constant 0 : index
    %97 = vector.load %arg9[%c704, %c0_135] : memref<1344x514xbf16, #tpu.memory_space<vmem>>, vector<64x514xbf16>
    tpu.vector_store %arg9[%c704, %c0_135], %96 {strides = array<i32>} : memref<1344x514xbf16, #tpu.memory_space<vmem>>, vector<64x514xbf16>,
    %c0_136 = arith.constant 0 : index
    %c12_137 = arith.constant 12 : index
    %98 = vector.load %arg8[%c0_136, %c12_137] : memref<64x534xbf16, #tpu.memory_space<vmem>>, vector<64x514xbf16>
    %c768 = arith.constant 768 : index
    %c0_138 = arith.constant 0 : index
    %99 = vector.load %arg9[%c768, %c0_138] : memref<1344x514xbf16, #tpu.memory_space<vmem>>, vector<64x514xbf16>
    tpu.vector_store %arg9[%c768, %c0_138], %98 {strides = array<i32>} : memref<1344x514xbf16, #tpu.memory_space<vmem>>, vector<64x514xbf16>,
    %c0_139 = arith.constant 0 : index
    %c13_140 = arith.constant 13 : index
    %100 = vector.load %arg8[%c0_139, %c13_140] : memref<64x534xbf16, #tpu.memory_space<vmem>>, vector<64x514xbf16>
    %c832 = arith.constant 832 : index
    %c0_141 = arith.constant 0 : index
    %101 = vector.load %arg9[%c832, %c0_141] : memref<1344x514xbf16, #tpu.memory_space<vmem>>, vector<64x514xbf16>
    tpu.vector_store %arg9[%c832, %c0_141], %100 {strides = array<i32>} : memref<1344x514xbf16, #tpu.memory_space<vmem>>, vector<64x514xbf16>,
    %c0_142 = arith.constant 0 : index
    %c14_143 = arith.constant 14 : index
    %102 = vector.load %arg8[%c0_142, %c14_143] : memref<64x534xbf16, #tpu.memory_space<vmem>>, vector<64x514xbf16>
    %c896 = arith.constant 896 : index
    %c0_144 = arith.constant 0 : index
    %103 = vector.load %arg9[%c896, %c0_144] : memref<1344x514xbf16, #tpu.memory_space<vmem>>, vector<64x514xbf16>
    tpu.vector_store %arg9[%c896, %c0_144], %102 {strides = array<i32>} : memref<1344x514xbf16, #tpu.memory_space<vmem>>, vector<64x514xbf16>,
    %c0_145 = arith.constant 0 : index
    %c15_146 = arith.constant 15 : index
    %104 = vector.load %arg8[%c0_145, %c15_146] : memref<64x534xbf16, #tpu.memory_space<vmem>>, vector<64x514xbf16>
    %c960 = arith.constant 960 : index
    %c0_147 = arith.constant 0 : index
    %105 = vector.load %arg9[%c960, %c0_147] : memref<1344x514xbf16, #tpu.memory_space<vmem>>, vector<64x514xbf16>
    tpu.vector_store %arg9[%c960, %c0_147], %104 {strides = array<i32>} : memref<1344x514xbf16, #tpu.memory_space<vmem>>, vector<64x514xbf16>,
    %c0_148 = arith.constant 0 : index
    %c16_149 = arith.constant 16 : index
    %106 = vector.load %arg8[%c0_148, %c16_149] : memref<64x534xbf16, #tpu.memory_space<vmem>>, vector<64x514xbf16>
    %c1024 = arith.constant 1024 : index
    %c0_150 = arith.constant 0 : index
    %107 = vector.load %arg9[%c1024, %c0_150] : memref<1344x514xbf16, #tpu.memory_space<vmem>>, vector<64x514xbf16>
    tpu.vector_store %arg9[%c1024, %c0_150], %106 {strides = array<i32>} : memref<1344x514xbf16, #tpu.memory_space<vmem>>, vector<64x514xbf16>,
    %c0_151 = arith.constant 0 : index
    %c17_152 = arith.constant 17 : index
    %108 = vector.load %arg8[%c0_151, %c17_152] : memref<64x534xbf16, #tpu.memory_space<vmem>>, vector<64x514xbf16>
    %c1088 = arith.constant 1088 : index
    %c0_153 = arith.constant 0 : index
    %109 = vector.load %arg9[%c1088, %c0_153] : memref<1344x514xbf16, #tpu.memory_space<vmem>>, vector<64x514xbf16>
    tpu.vector_store %arg9[%c1088, %c0_153], %108 {strides = array<i32>} : memref<1344x514xbf16, #tpu.memory_space<vmem>>, vector<64x514xbf16>,
    %c0_154 = arith.constant 0 : index
    %c18_155 = arith.constant 18 : index
    %110 = vector.load %arg8[%c0_154, %c18_155] : memref<64x534xbf16, #tpu.memory_space<vmem>>, vector<64x514xbf16>
    %c1152 = arith.constant 1152 : index
    %c0_156 = arith.constant 0 : index
    %111 = vector.load %arg9[%c1152, %c0_156] : memref<1344x514xbf16, #tpu.memory_space<vmem>>, vector<64x514xbf16>
    tpu.vector_store %arg9[%c1152, %c0_156], %110 {strides = array<i32>} : memref<1344x514xbf16, #tpu.memory_space<vmem>>, vector<64x514xbf16>,
    %c0_157 = arith.constant 0 : index
    %c19_158 = arith.constant 19 : index
    %112 = vector.load %arg8[%c0_157, %c19_158] : memref<64x534xbf16, #tpu.memory_space<vmem>>, vector<64x514xbf16>
    %c1216 = arith.constant 1216 : index
    %c0_159 = arith.constant 0 : index
    %113 = vector.load %arg9[%c1216, %c0_159] : memref<1344x514xbf16, #tpu.memory_space<vmem>>, vector<64x514xbf16>
    tpu.vector_store %arg9[%c1216, %c0_159], %112 {strides = array<i32>} : memref<1344x514xbf16, #tpu.memory_space<vmem>>, vector<64x514xbf16>,
    %c0_160 = arith.constant 0 : index
    %c20_161 = arith.constant 20 : index
    %114 = vector.load %arg8[%c0_160, %c20_161] : memref<64x534xbf16, #tpu.memory_space<vmem>>, vector<64x514xbf16>
    %c1280 = arith.constant 1280 : index
    %c0_162 = arith.constant 0 : index
    %115 = vector.load %arg9[%c1280, %c0_162] : memref<1344x514xbf16, #tpu.memory_space<vmem>>, vector<64x514xbf16>
    tpu.vector_store %arg9[%c1280, %c0_162], %114 {strides = array<i32>} : memref<1344x514xbf16, #tpu.memory_space<vmem>>, vector<64x514xbf16>,
    %c0_163 = arith.constant 0 : index
    %c0_164 = arith.constant 0 : index
    %116 = vector.load %arg4[%c0_163, %c0_164] : memref<64x1344xbf16, #tpu.memory_space<vmem>>, vector<64x1344xbf16>
    %c0_165 = arith.constant 0 : index
    %c0_166 = arith.constant 0 : index
    %117 = vector.load %arg9[%c0_165, %c0_166] : memref<1344x514xbf16, #tpu.memory_space<vmem>>, vector<1344x514xbf16>
    %cst_167 = arith.constant dense<0.000000e+00> : vector<64x514xf32>
    %118 = tpu.matmul %116, %117, %cst_167 {dimension_numbers = #tpu.dot_dimension_numbers<[1], [0], [0], [1], [0, 0, 1, 1], [], []>} : vector<64x1344xbf16>, vector<1344x514xbf16>, vector<64x514xf32> -> vector<64x514xf32>
    %cst_168 = arith.constant 0.000000e+00 : f32
    %119 = vector.broadcast %cst_168 : f32 to vector<64x514xf32>
    %120 = arith.cmpf ogt, %118, %119 : vector<64x514xf32>
    %121 = math.exp %118 : vector<64x514xf32>
    %cst_169 = arith.constant 1.000000e+00 : f32
    %122 = vector.broadcast %cst_169 : f32 to vector<64x514xf32>
    %123 = arith.subf %121, %122 : vector<64x514xf32>
    %cst_170 = arith.constant 1.67326319 : f32
    %124 = vector.broadcast %cst_170 : f32 to vector<64x514xf32>
    %125 = arith.mulf %124, %123 : vector<64x514xf32>
    %126 = arith.select %120, %118, %125 : vector<64x514xi1>, vector<64x514xf32>
    %cst_171 = arith.constant 1.05070102 : f32
    %127 = vector.broadcast %cst_171 : f32 to vector<64x514xf32>
    %128 = arith.mulf %127, %126 : vector<64x514xf32>
    %129 = arith.truncf %128 : vector<64x514xf32> to vector<64x514xbf16>
    %c0_172 = arith.constant 0 : index
    %c0_173 = arith.constant 0 : index
    %130 = vector.load %arg10[%c0_172, %c0_173] : memref<64x514xbf16, #tpu.memory_space<vmem>>, vector<64x514xbf16>
    tpu.vector_store %arg10[%c0_172, %c0_173], %129 {strides = array<i32>} : memref<64x514xbf16, #tpu.memory_space<vmem>>, vector<64x514xbf16>,
    %c0_i32_174 = arith.constant 0 : i32
    %131 = arith.cmpi eq, %arg1, %c0_i32_174 : i32
    %132 = arith.extui %131 : i1 to i32
    %c0_i32_175 = arith.constant 0 : i32
    %133 = arith.cmpi ne, %132, %c0_i32_175 : i32
    scf.if %133 {
      %cst_202 = arith.constant 0.000000e+00 : bf16
      %159 = vector.broadcast %cst_202 : bf16 to vector<64x1xbf16>
      %c0_203 = arith.constant 0 : index
      %c0_204 = arith.constant 0 : index
      %160 = vector.load %arg10[%c0_203, %c0_204] : memref<64x514xbf16, #tpu.memory_space<vmem>>, vector<64x1xbf16>
      tpu.vector_store %arg10[%c0_203, %c0_204], %159 {strides = array<i32>} : memref<64x514xbf16, #tpu.memory_space<vmem>>, vector<64x1xbf16>,
    } else {
    }
    %c1_i32_176 = arith.constant 1 : i32
    %134 = arith.cmpi eq, %arg1, %c1_i32_176 : i32
    %135 = arith.extui %134 : i1 to i32
    %c0_i32_177 = arith.constant 0 : i32
    %136 = arith.cmpi ne, %135, %c0_i32_177 : i32
    scf.if %136 {
      %cst_202 = arith.constant 0.000000e+00 : bf16
      %159 = vector.broadcast %cst_202 : bf16 to vector<64x1xbf16>
      %c0_203 = arith.constant 0 : index
      %c513 = arith.constant 513 : index
      %160 = vector.load %arg10[%c0_203, %c513] : memref<64x514xbf16, #tpu.memory_space<vmem>>, vector<64x1xbf16>
      tpu.vector_store %arg10[%c0_203, %c513], %159 {strides = array<i32>} : memref<64x514xbf16, #tpu.memory_space<vmem>>, vector<64x1xbf16>,
    } else {
    }
    %c0_178 = arith.constant 0 : index
    %c0_179 = arith.constant 0 : index
    %137 = vector.load %arg10[%c0_178, %c0_179] : memref<64x514xbf16, #tpu.memory_space<vmem>>, vector<64x512xbf16>
    %c0_180 = arith.constant 0 : index
    %c0_181 = arith.constant 0 : index
    %138 = vector.load %arg11[%c0_180, %c0_181] : memref<192x512xbf16, #tpu.memory_space<vmem>>, vector<64x512xbf16>
    tpu.vector_store %arg11[%c0_180, %c0_181], %137 {strides = array<i32>} : memref<192x512xbf16, #tpu.memory_space<vmem>>, vector<64x512xbf16>,
    %c0_182 = arith.constant 0 : index
    %c1_183 = arith.constant 1 : index
    %139 = vector.load %arg10[%c0_182, %c1_183] : memref<64x514xbf16, #tpu.memory_space<vmem>>, vector<64x512xbf16>
    %c64_184 = arith.constant 64 : index
    %c0_185 = arith.constant 0 : index
    %140 = vector.load %arg11[%c64_184, %c0_185] : memref<192x512xbf16, #tpu.memory_space<vmem>>, vector<64x512xbf16>
    tpu.vector_store %arg11[%c64_184, %c0_185], %139 {strides = array<i32>} : memref<192x512xbf16, #tpu.memory_space<vmem>>, vector<64x512xbf16>,
    %c0_186 = arith.constant 0 : index
    %c2_187 = arith.constant 2 : index
    %141 = vector.load %arg10[%c0_186, %c2_187] : memref<64x514xbf16, #tpu.memory_space<vmem>>, vector<64x512xbf16>
    %c128_188 = arith.constant 128 : index
    %c0_189 = arith.constant 0 : index
    %142 = vector.load %arg11[%c128_188, %c0_189] : memref<192x512xbf16, #tpu.memory_space<vmem>>, vector<64x512xbf16>
    tpu.vector_store %arg11[%c128_188, %c0_189], %141 {strides = array<i32>} : memref<192x512xbf16, #tpu.memory_space<vmem>>, vector<64x512xbf16>,
    %c0_190 = arith.constant 0 : index
    %c0_191 = arith.constant 0 : index
    %143 = vector.load %arg5[%c0_190, %c0_191] : memref<60x192xbf16, #tpu.memory_space<vmem>>, vector<60x192xbf16>
    %c0_192 = arith.constant 0 : index
    %c0_193 = arith.constant 0 : index
    %144 = vector.load %arg11[%c0_192, %c0_193] : memref<192x512xbf16, #tpu.memory_space<vmem>>, vector<192x512xbf16>
    %cst_194 = arith.constant dense<0.000000e+00> : vector<60x512xf32>
    %145 = tpu.matmul %143, %144, %cst_194 {dimension_numbers = #tpu.dot_dimension_numbers<[1], [0], [0], [1], [0, 0, 1, 1], [], []>} : vector<60x192xbf16>, vector<192x512xbf16>, vector<60x512xf32> -> vector<60x512xf32>
    %cst_195 = arith.constant 0.000000e+00 : f32
    %146 = vector.broadcast %cst_195 : f32 to vector<60x512xf32>
    %147 = arith.cmpf ogt, %145, %146 : vector<60x512xf32>
    %148 = math.exp %145 : vector<60x512xf32>
    %cst_196 = arith.constant 1.000000e+00 : f32
    %149 = vector.broadcast %cst_196 : f32 to vector<60x512xf32>
    %150 = arith.subf %148, %149 : vector<60x512xf32>
    %cst_197 = arith.constant 1.67326319 : f32
    %151 = vector.broadcast %cst_197 : f32 to vector<60x512xf32>
    %152 = arith.mulf %151, %150 : vector<60x512xf32>
    %153 = arith.select %147, %145, %152 : vector<60x512xi1>, vector<60x512xf32>
    %cst_198 = arith.constant 1.05070102 : f32
    %154 = vector.broadcast %cst_198 : f32 to vector<60x512xf32>
    %155 = arith.mulf %154, %153 : vector<60x512xf32>
    %c0_199 = arith.constant 0 : index
    %c0_200 = arith.constant 0 : index
    %c0_201 = arith.constant 0 : index
    %156 = vector.load %arg6[%c0_199, %c0_200, %c0_201] : memref<1x60x512xf32, #tpu.memory_space<vmem>>, vector<1x60x512xf32>
    %157 = vector.shape_cast %156 : vector<1x60x512xf32> to vector<60x512xf32>
    %158 = vector.shape_cast %155 : vector<60x512xf32> to vector<1x60x512xf32>
    tpu.vector_store %arg6[%c0_199, %c0_200, %c0_201], %158 {strides = array<i32>} : memref<1x60x512xf32, #tpu.memory_space<vmem>>, vector<1x60x512xf32>,
    return
  }
  func.func @transform_0(%arg0: i32, %arg1: i32) -> (i32, i32, i32, i32) {
    %c0_i32 = arith.constant 0 : i32
    %c0_i32_0 = arith.constant 0 : i32
    %c0_i32_1 = arith.constant 0 : i32
    return %arg0, %arg1, %c0_i32, %c0_i32_0 : i32, i32, i32, i32
  }
  func.func @transform_1(%arg0: i32, %arg1: i32) -> (i32, i32) {
    %c0_i32 = arith.constant 0 : i32
    %c0_i32_0 = arith.constant 0 : i32
    %c0_i32_1 = arith.constant 0 : i32
    return %c0_i32, %c0_i32_0 : i32, i32
  }
  func.func @transform_2(%arg0: i32, %arg1: i32) -> (i32, i32) {
    %c0_i32 = arith.constant 0 : i32
    %c0_i32_0 = arith.constant 0 : i32
    %c0_i32_1 = arith.constant 0 : i32
    return %c0_i32, %c0_i32_0 : i32, i32
  }
  func.func @transform_3(%arg0: i32, %arg1: i32) -> (i32, i32) {
    %c0_i32 = arith.constant 0 : i32
    %c0_i32_0 = arith.constant 0 : i32
    %c0_i32_1 = arith.constant 0 : i32
    return %c0_i32, %c0_i32_0 : i32, i32
  }
  func.func @transform_4(%arg0: i32, %arg1: i32) -> (i32, i32, i32) {
    %c0_i32 = arith.constant 0 : i32
    %c0_i32_0 = arith.constant 0 : i32
    return %arg0, %c0_i32, %arg1 : i32, i32, i32
  }
}

</mosaic_0001>

<bundles_post_ra>
// kernel: cell_forward.1
= control target key start
LH: loop header
LB: loop body
LE: loop exit
PB: predicated region body
PF: predicated region fallthrough
CT: control target
= control target key end

     0   :  { %s9255_s15 = smov 0   ;;  %s9257_s16 = smov 0   ;;  %s12601_s0 = inlined_call_operand.vmem [shape: bf16[2,2,16,554], index: 0, kind: input, shape index: {}]   ;;  %s12602_s1 = inlined_call_operand.vmem [shape: bf16[64,336], index: 1, kind: input, shape index: {}]   ;;  %s12603_s2 = inlined_call_operand.vmem [shape: bf16[64,1344], index: 2, kind: input, shape index: {}]   ;;  %s12604_s3 = inlined_call_operand.vmem [shape: bf16[60,192], index: 3, kind: input, shape index: {}]   ;;  %s12605_s4 = inlined_call_operand.vmem [shape: f32[2,60,1024], index: 4, kind: output, shape index: {}]  }
   0x1   :  { %s9259_s17 = smov 0   ;;  %s9261_s18 = smov 0  }
   0x2   :  { %s9263_s19 = smov 0   ;;  %s9265_s20 = smov 0  }
   0x3   :  { %s9267_s21 = smov 0  }
   0x4 LB: > { %s23_s22 = sadd.s32 1, %s9195_s19  ;;  %s26_s23 = sadd.s32 1, %s9199_s20  ;;  %s9203_s21 = sphi %s9267_s21, %s14_s21   ;;  %s9199_s20 = sphi %s9265_s20, %s12728_s20   ;;  %s9195_s19 = sphi %s9263_s19, %s12727_s19   ;;  %s9191_s18 = sphi %s9261_s18, %s12726_s18   ;;  %s9187_s17 = sphi %s9259_s17, %s12725_s17   ;;  %s9183_s16 = sphi %s9257_s16, %s12724_s16   ;;  %s9179_s15 = sphi %s9255_s15, %s12723_s15  }
   0x5   : > { %p24_p0 = scmp.ge.s32.totalorder %s23_s22, 2  ;;  %s7997_s24 = sadd.s32 4294967295, %s9203_s21  }
   0x6   : > { %p136_p1 = scmp.ne.s32.totalorder %s9183_s16, %s9179_s15  ;;  %p137_p2 = scmp.eq.s32.totalorder %s7997_s24, 3 }
   0x7   : > { %s12730_s22 = smov (%p24_p0, %s23_s22), 0  ;;  %s12732_s23 = smov (!%p24_p0, %s26_s23), %s9199_s20 }
   0x8   : > { %s122_s25 = ssub.s32 %s9195_s19, %s12730_s22  ;;  %p28_p3 = scmp.ge.s32.totalorder %s12732_s23, 2 }
   0x9   : > { %p8001_p4 = scmp.ge.s32.totalorder %s9203_s21, 1  ;;  %p9301_p5 = por %p137_p2, %p136_p1 }
   0xa   : > { %p182_p6 = scmp.lt.s32.totalorder %s9203_s21, 5  ;;  %s12734_s23 = smov (%p28_p3, %s12732_s23), 0 }
   0xb   : > { %s121_s27 = ssub.s32 %s9199_s20, %s12734_s23  ;;  %s126_s29 = sadd.s32 1, %s9183_s16 }
   0xc   : > { %p183_p7 = pnand %p8001_p4, %p182_p6  ;;  %s123_s28 = sor.u32 %s122_s25, %s121_s27 }
   0xd   : > { %p124_p8 = scmp.eq.s32.totalorder %s123_s28, 0  ;;  %p211_p9 = scmp.lt.s32.totalorder (!%p183_p7), %s9191_s18, 1  ;;  %vm297_vm0 = vcmask (!%p183_p7), 1039360   ;;  %vm349_vm1 = vcmask (!%p183_p7), 1031168   ;;  %vm401_vm2 = vcmask (!%p183_p7), 1022976   ;;  %vm453_vm3 = vcmask (!%p183_p7), 1014784  }
   0xe   : > { %186 = sbr.rel (%p183_p7) target bundleno = 2379 (0x94b), region = 36  ;;  %p213_p10 = scmp.lt.s32.totalorder (!%p183_p7), %s9187_s17, 1  ;;  %v9496_v33 = vld [vmem:[%s12602_s1 + $0x4] ss:$12 sps:$4 sm:$0xff] (!%p183_p7)   ;;  %vm505_vm4 = vcmask (!%p183_p7), 1006592   ;;  %vm258_vm5 = vcmask (!%p183_p7), 179200  }
   0xf   : > { %s9312_s30 = scalar_select %p124_p8, %s9183_s16, %s126_s29  }
  0x10   : > { %s9205_s14 = smov (!%p183_p7), 127   ;;  %s9206_s24 = smov (!%p183_p7), 126   ;;  %1526 = vmatprep.mubr.bf16.mxu0 (!%p183_p7), %v9496_v33  ;;  %1672 = vmatprep.mubr.bf16.mxu1 (!%p183_p7), %v9496_v33  ;;  %vm557_vm6 = vcmask (!%p183_p7), 998400   ;;  %vm609_vm7 = vcmask (!%p183_p7), 990208   ;;  %vm661_vm8 = vcmask (!%p183_p7), 982016   ;;  %vm713_vm9 = vcmask (!%p183_p7), 973824  }
  0x11   : > { %s208_s25 = sand.u32 (!%p183_p7), 1, %s9179_s15   ;;  %s9207_s27 = smov (!%p183_p7), 125   ;;  %vm12629_vm10 = vcmask (!%p183_p7), 965632   ;;  %vm12628_vm11 = vcmask (!%p183_p7), 957440   ;;  %vm12627_vm12 = vcmask (!%p183_p7), 949248   ;;  %vm12624_vm13 = vcmask (!%p183_p7), 941056  }
  0x12   : > { %s9354_s28 = sshll.u32 (!%p183_p7), %s208_s25, 8  ;;  %s9208_s29 = smov (!%p183_p7), 124   ;;  %vm12625_vm14 = vcmask (!%p183_p7), 932864   ;;  %vm12626_vm15 = vcmask (!%p183_p7), 924672  }
  0x13   : > { %s9209_s15 = smov (!%p183_p7), 123   ;;  %s9216_s11 = smov (!%p183_p7), 116  }
  0x14   : > { %s12616_s12 = smov (!%p183_p7), 115   ;;  %s12614_s25 = smov (!%p183_p7), 114  }
  0x15   : > { %s212_s5 = scalar_select %p211_p9, %s9191_s18, 1 }
  0x16   : > { %s214_s6 = scalar_select %p213_p10, %s9187_s17, 1 }
  0x17   : > { %s8771_s7 = smul.u32 20, %s212_s5  ;;  %s9210_s5 = smov 122  }
  0x18   : > { %s8770_s8 = smul.u32 10, %s214_s6  ;;  %s9211_s6 = smov 121  }
  0x19   : > { %p8133_p11 = scmp.ne.s32.totalorder %s9187_s17, 0 }
  0x1a   : > { %s217_s9 = sadd.s32 %s8771_s7, %s8770_s8  ;;  %s12610_s7 = smov 120  }
  0x1b   : > { %s8003_s10 = sshll.u32 %s217_s9, 2  ;;  %s12606_s8 = smov 119  }
  0x1c   : > { %s9321_s13 = scalar_lea.vmem %s12601_s0, %s8003_s10  ;;  %s12608_s9 = smov 118  }
  0x1d   : > { %v9324_v0 = vld [vmem:[%s9321_s13 + $0x4] ss:$20 sps:$4 sm:$0xff]   ;;  %v9327_v1 = vld [vmem:[%s9321_s13] ss:$20 sps:$4 sm:$0xff]   ;;  %v9332_v2 = vld [vmem:[%s9321_s13 + $0x8] ss:$20 sps:$4 sm:$0xff]  }
  0x1e   : > { %289 = vrot.lane.b32.xlu0 %v9324_v0, %s9205_s14  ;;  %v9335_v3 = vld [vmem:[%s9321_s13 + $0xc] ss:$20 sps:$4 sm:$0xff]   ;;  %1494 = vmatprep.subr.bf16.mxu0 %v9324_v0  ;;  %v8859_v4 = vld [vmem:[%s9321_s13 + $0x10] ss:$20 sps:$4 sm:$0xff]   ;;  %s9215_s10 = smov 117  }
  0x1f   : > { %287 = vrot.lane.b32.xlu1 %v9327_v1, %s9205_s14  ;;  %1495 = vmatpush1.bf16.msra.mxu0 %v9327_v1  ;;  %v8860_v5 = vld [vmem:[%s9321_s13 + $0x10] ss:$20 sps:$4 sm:$0xff]  }
  0x20   : > { %1640 = vmatprep.subr.bf16.mxu1 %v9335_v3  ;;  %v8861_v6 = vld [vmem:[%s9321_s13 + $0x10] ss:$20 sps:$4 sm:$0xff]  }
  0x21   : > { %1641 = vmatpush1.bf16.msra.mxu1 %v9332_v2  ;;  %v8862_v7 = vld [vmem:[%s9321_s13 + $0x10] ss:$20 sps:$4 sm:$0xff]  }
  0x22   : > { %291 = vrot.lane.b32.xlu0 %v9332_v2, %s9205_s14  ;;  %v8863_v8 = vld [vmem:[%s9321_s13 + $0x10] ss:$20 sps:$4 sm:$0xff]  }
  0x23   : > { %341 = vrot.lane.b32.xlu1 %v9324_v0, %s9206_s24  ;;  %v8864_v9 = vld [vmem:[%s9321_s13 + $0x10] ss:$20 sps:$4 sm:$0xff]  }
  0x24   : > { %v8865_v10 = vld [vmem:[%s9321_s13 + $0x10] ss:$20 sps:$4 sm:$0xff]  }
  0x25   : > { %v8866_v11 = vld [vmem:[%s9321_s13 + $0x10] ss:$20 sps:$4 sm:$0xff]  }
  0x26   : > { %343 = vrot.lane.b32.xlu0 %v9332_v2, %s9206_s24  ;;  %v8867_v12 = vld [vmem:[%s9321_s13 + $0x10] ss:$20 sps:$4 sm:$0xff]  }
  0x27   : > { %339 = vrot.lane.b32.xlu1 %v9327_v1, %s9206_s24  ;;  %v8868_v16 = vld [vmem:[%s9321_s13 + $0x10] ss:$20 sps:$4 sm:$0xff]  }
  0x28   : > { %v8869_v27 = vld [vmem:[%s9321_s13 + $0x10] ss:$20 sps:$4 sm:$0xff]  }
  0x29   : > { %v8870_v31 = vld [vmem:[%s9321_s13 + $0x10] ss:$20 sps:$4 sm:$0xff]  }
  0x2a   : > { %393 = vrot.lane.b32.xlu0 %v9324_v0, %s9207_s27  ;;  %v8871_v37 = vld [vmem:[%s9321_s13 + $0x10] ss:$20 sps:$4 sm:$0xff]  }
  0x2b   : > { %395 = vrot.lane.b32.xlu1 %v9332_v2, %s9207_s27  ;;  %v8872_v41 = vld [vmem:[%s9321_s13 + $0x10] ss:$20 sps:$4 sm:$0xff]  }
  0x2c   : > { %v8873_v49 = vld [vmem:[%s9321_s13 + $0x10] ss:$20 sps:$4 sm:$0xff]  }
  0x2d   : > { %v8892_v61 = vld [vmem:[%s9321_s13 + $0x10] ss:$20 sps:$4 sm:$0xff]  }
  0x2e   : > { %391 = vrot.lane.b32.xlu0 %v9327_v1, %s9207_s27  ;;  %259 = vst.msk [vmem:[#allocation2 + $0x20] sm:$0xff] %vm258_vm5, %v8892_v61 }
  0x2f   : > { %445 = vrot.lane.b32.xlu1 %v9324_v0, %s9208_s29 }
  0x32   : > { %447 = vrot.lane.b32.xlu0 %v9332_v2, %s9208_s29 }
  0x33   : > { %443 = vrot.lane.b32.xlu1 %v9327_v1, %s9208_s29 }
  0x36   : > { %497 = vrot.lane.b32.xlu0 %v9324_v0, %s9209_s15 }
  0x37   : > { %499 = vrot.lane.b32.xlu1 %v9332_v2, %s9209_s15 }
  0x3a   : > { %495 = vrot.lane.b32.xlu0 %v9327_v1, %s9209_s15 }
  0x3b   : > { %293 = vrot.lane.b32.xlu1 %v9335_v3, %s9205_s14 }
  0x3e   : > { %295 = vrot.lane.b32.xlu0 %v8859_v4, %s9205_s14 }
  0x3f   : > { %549 = vrot.lane.b32.xlu1 %v9324_v0, %s9210_s5 }
  0x42   : > { %551 = vrot.lane.b32.xlu0 %v9332_v2, %s9210_s5 }
  0x43   : > { %547 = vrot.lane.b32.xlu1 %v9327_v1, %s9210_s5 }
  0x46   : > { %345 = vrot.lane.b32.xlu0 %v9335_v3, %s9206_s24 }
  0x47   : > { %347 = vrot.lane.b32.xlu1 %v8860_v5, %s9206_s24 }
  0x4a   : > { %601 = vrot.lane.b32.xlu0 %v9324_v0, %s9211_s6 }
  0x4b   : > { %603 = vrot.lane.b32.xlu1 %v9332_v2, %s9211_s6 }
  0x4e   : > { %599 = vrot.lane.b32.xlu0 %v9327_v1, %s9211_s6 }
  0x4f   : > { %397 = vrot.lane.b32.xlu1 %v9335_v3, %s9207_s27 }
  0x52   : > { %399 = vrot.lane.b32.xlu0 %v8861_v6, %s9207_s27 }
  0x53   : > { %653 = vrot.lane.b32.xlu1 %v9324_v0, %s12610_s7 }
  0x56   : > { %655 = vrot.lane.b32.xlu0 %v9332_v2, %s12610_s7 }
  0x57   : > { %651 = vrot.lane.b32.xlu1 %v9327_v1, %s12610_s7 }
  0x5a   : > { %449 = vrot.lane.b32.xlu0 %v9335_v3, %s9208_s29 }
  0x5b   : > { %451 = vrot.lane.b32.xlu1 %v8862_v7, %s9208_s29 }
  0x5e   : > { %705 = vrot.lane.b32.xlu0 %v9324_v0, %s12606_s8 }
  0x5f   : > { %707 = vrot.lane.b32.xlu1 %v9332_v2, %s12606_s8 }
  0x62   : > { %703 = vrot.lane.b32.xlu0 %v9327_v1, %s12606_s8 }
  0x63   : > { %501 = vrot.lane.b32.xlu1 %v9335_v3, %s9209_s15 }
  0x66   : > { %503 = vrot.lane.b32.xlu0 %v8863_v8, %s9209_s15 }
  0x67   : > { %757 = vrot.lane.b32.xlu1 %v9324_v0, %s12608_s9 }
  0x6a   : > { %759 = vrot.lane.b32.xlu0 %v9332_v2, %s12608_s9 }
  0x6b   : > { %755 = vrot.lane.b32.xlu1 %v9327_v1, %s12608_s9 }
  0x6e   : > { %553 = vrot.lane.b32.xlu0 %v9335_v3, %s9210_s5 }
  0x6f   : > { %555 = vrot.lane.b32.xlu1 %v8864_v9, %s9210_s5 }
  0x72   : > { %809 = vrot.lane.b32.xlu0 %v9324_v0, %s9215_s10 }
  0x73   : > { %811 = vrot.lane.b32.xlu1 %v9332_v2, %s9215_s10 }
  0x76   : > { %807 = vrot.lane.b32.xlu0 %v9327_v1, %s9215_s10 }
  0x77   : > { %605 = vrot.lane.b32.xlu1 %v9335_v3, %s9211_s6 }
  0x7a   : > { %607 = vrot.lane.b32.xlu0 %v8865_v10, %s9211_s6 }
  0x7b   : > { %861 = vrot.lane.b32.xlu1 %v9324_v0, %s9216_s11 }
  0x7e   : > { %863 = vrot.lane.b32.xlu0 %v9332_v2, %s9216_s11 }
  0x7f   : > { %859 = vrot.lane.b32.xlu1 %v9327_v1, %s9216_s11 }
  0x82   : > { %657 = vrot.lane.b32.xlu0 %v9335_v3, %s12610_s7 }
  0x83   : > { %659 = vrot.lane.b32.xlu1 %v8866_v11, %s12610_s7  ;;  %s9220_s7 = smov 112  }
  0x86   : > { %913 = vrot.lane.b32.xlu0 %v9324_v0, %s12616_s12 }
  0x87   : > { %915 = vrot.lane.b32.xlu1 %v9332_v2, %s12616_s12 }
  0x8a   : > { %911 = vrot.lane.b32.xlu0 %v9327_v1, %s12616_s12 }
  0x8b   : > { %709 = vrot.lane.b32.xlu1 %v9335_v3, %s12606_s8 }
  0x8e   : > { %711 = vrot.lane.b32.xlu0 %v8867_v12, %s12606_s8  ;;  %s12612_s8 = smov 113  }
  0x8f   : > { %965 = vrot.lane.b32.xlu1 %v9324_v0, %s12614_s25 }
  0x90   : > { %v290_v13 = vpop.permute.xlu0 %289 }
  0x91   : > { %v288_v14 = vpop.permute.xlu1 %287 }
  0x92   : > { %v298_v15 = vsel %vm297_vm0, %v288_v14, %v290_v13  ;;  %967 = vrot.lane.b32.xlu0 %v9332_v2, %s12614_s25 }
  0x93   : > { %963 = vrot.lane.b32.xlu1 %v9327_v1, %s12614_s25 }
  0x94   : > { %v292_v17 = vpop.permute.xlu0 %291 }
  0x95   : > { %v299_v18 = vsel %vm297_vm0, %v290_v13, %v292_v17  ;;  %v342_v19 = vpop.permute.xlu1 %341 }
  0x96   : > { %761 = vrot.lane.b32.xlu0 %v9335_v3, %s12608_s9  ;;  %1496 = vmatprep.subr.bf16.mxu0 %v299_v18 }
  0x97   : > { %763 = vrot.lane.b32.xlu1 %v8868_v16, %s12608_s9  ;;  %1497 = vmatpush1.bf16.msra.mxu0 %v298_v15  ;;  %s9221_s9 = smov 111  }
  0x98   : > { %v9468_v20 = vpop.permute.xlu0 %343 }
  0x99   : > { %v351_v21 = vsel %vm349_vm1, %v342_v19, %v9468_v20  ;;  %v340_v22 = vpop.permute.xlu1 %339 }
  0x9a   : > { %v350_v23 = vsel %vm349_vm1, %v340_v22, %v342_v19  ;;  %1017 = vrot.lane.b32.xlu0 %v9324_v0, %s12612_s8  ;;  %1498 = vmatprep.subr.bf16.mxu0 %v351_v21 }
  0x9b   : > { %1019 = vrot.lane.b32.xlu1 %v9332_v2, %s12612_s8  ;;  %1499 = vmatpush1.bf16.msra.mxu0 %v350_v23  ;;  %v8876_v23 = vld [vmem:[%s9321_s13 + $0x10] ss:$20 sps:$4 sm:$0xff]  }
  0x9c   : > { %v394_v24 = vpop.permute.xlu0 %393 }
  0x9d   : > { %v9477_v25 = vpop.permute.xlu1 %395 }
  0x9e   : > { %v403_v26 = vsel %vm401_vm2, %v394_v24, %v9477_v25  ;;  %1015 = vrot.lane.b32.xlu0 %v9327_v1, %s12612_s8 }
  0x9f   : > { %813 = vrot.lane.b32.xlu1 %v9335_v3, %s9215_s10  ;;  %1500 = vmatprep.subr.bf16.mxu0 %v403_v26 }
  0xa0   : > { %v392_v28 = vpop.permute.xlu0 %391 }
  0xa1   : > { %v402_v29 = vsel %vm401_vm2, %v392_v28, %v394_v24  ;;  %v446_v30 = vpop.permute.xlu1 %445 }
  0xa2   : > { %815 = vrot.lane.b32.xlu0 %v8869_v27, %s9215_s10  ;;  %1501 = vmatpush1.bf16.msra.mxu0 %v402_v29  ;;  %v8877_v27 = vld [vmem:[%s9321_s13 + $0x10] ss:$20 sps:$4 sm:$0xff]  }
  0xa3   : > { %865 = vrot.lane.b32.xlu1 %v9335_v3, %s9216_s11 }
  0xa4   : > { %v9491_v32 = vpop.permute.xlu0 %447 }
  0xa5   : > { %v455_v34 = vsel %vm453_vm3, %v446_v30, %v9491_v32  ;;  %v444_v35 = vpop.permute.xlu1 %443 }
  0xa6   : > { %v454_v36 = vsel %vm453_vm3, %v444_v35, %v446_v30  ;;  %867 = vrot.lane.b32.xlu0 %v8870_v31, %s9216_s11  ;;  %1502 = vmatprep.subr.bf16.mxu0 %v455_v34 }
  0xa7   : > { %917 = vrot.lane.b32.xlu1 %v9335_v3, %s12616_s12  ;;  %1503 = vmatpush1.bf16.msra.mxu0 %v454_v36 }
  0xa8   : > { %v498_v38 = vpop.permute.xlu0 %497 }
  0xa9   : > { %v9507_v39 = vpop.permute.xlu1 %499 }
  0xaa   : > { %v507_v40 = vsel %vm505_vm4, %v498_v38, %v9507_v39  ;;  %919 = vrot.lane.b32.xlu0 %v8871_v37, %s12616_s12  ;;  %s12618_s12 = smov 108  }
  0xab   : > { %969 = vrot.lane.b32.xlu1 %v9335_v3, %s12614_s25  ;;  %1504 = vmatprep.subr.bf16.mxu0 %v507_v40 }
  0xac   : > { %v496_v42 = vpop.permute.xlu0 %495 }
  0xad   : > { %v506_v43 = vsel %vm505_vm4, %v496_v42, %v498_v38  ;;  %v294_v44 = vpop.permute.xlu1 %293 }
  0xae   : > { %v300_v45 = vsel %vm297_vm0, %v292_v17, %v294_v44  ;;  %971 = vrot.lane.b32.xlu0 %v8872_v41, %s12614_s25  ;;  %1505 = vmatpush1.bf16.msra.mxu0 %v506_v43  ;;  %s12620_s25 = smov 109   ;;  %v8874_v17 = vld [vmem:[%s9321_s13 + $0x10] ss:$20 sps:$4 sm:$0xff]  }
  0xaf   : > { %1069 = vrot.lane.b32.xlu1 %v9324_v0, %s9220_s7 }
  0xb0   : > { %v296_v46 = vpop.permute.xlu0 %295 }
  0xb1   : > { %v301_v47 = vsel %vm297_vm0, %v294_v44, %v296_v46  ;;  %311 = vst.msk [vmem:[#allocation2 + $0x48] sm:$0xff] %vm258_vm5, %v296_v46  ;;  %v550_v48 = vpop.permute.xlu1 %549 }
  0xb2   : > { %1071 = vrot.lane.b32.xlu0 %v9332_v2, %s9220_s7  ;;  %1642 = vmatprep.subr.bf16.mxu1 %v301_v47 }
  0xb3   : > { %1067 = vrot.lane.b32.xlu1 %v9327_v1, %s9220_s7  ;;  %1643 = vmatpush1.bf16.msra.mxu1 %v300_v45 }
  0xb4   : > { %v9527_v50 = vpop.permute.xlu0 %551 }
  0xb5   : > { %v559_v51 = vsel %vm557_vm6, %v550_v48, %v9527_v50  ;;  %v548_v52 = vpop.permute.xlu1 %547 }
  0xb6   : > { %v558_v53 = vsel %vm557_vm6, %v548_v52, %v550_v48  ;;  %1021 = vrot.lane.b32.xlu0 %v9335_v3, %s12612_s8  ;;  %1506 = vmatprep.subr.bf16.mxu0 %v559_v51 }
  0xb7   : > { %1023 = vrot.lane.b32.xlu1 %v8873_v49, %s12612_s8  ;;  %1507 = vmatpush1.bf16.msra.mxu0 %v558_v53  ;;  %s12622_s8 = smov 110  }
  0xb8   : > { %v346_v54 = vpop.permute.xlu0 %345 }
  0xb9   : > { %v352_v55 = vsel %vm349_vm1, %v9468_v20, %v346_v54  ;;  %v348_v56 = vpop.permute.xlu1 %347 }
  0xba   : > { %v353_v57 = vsel %vm349_vm1, %v346_v54, %v348_v56  ;;  %363 = vst.msk [vmem:[#allocation2 + $0x70] sm:$0xff] %vm258_vm5, %v348_v56  ;;  %1121 = vrot.lane.b32.xlu0 %v9324_v0, %s9221_s9 }
  0xbb   : > { %1123 = vrot.lane.b32.xlu1 %v9332_v2, %s9221_s9  ;;  %1644 = vmatprep.subr.bf16.mxu1 %v353_v57 }
  0xbc   : > { %v602_v58 = vpop.permute.xlu0 %601  ;;  %1645 = vmatpush1.bf16.msra.mxu1 %v352_v55 }
  0xbd   : > { %v9543_v59 = vpop.permute.xlu1 %603 }
  0xbe   : > { %v611_v60 = vsel %vm609_vm7, %v602_v58, %v9543_v59  ;;  %1119 = vrot.lane.b32.xlu0 %v9327_v1, %s9221_s9 }
  0xbf   : > { %1173 = vrot.lane.b32.xlu1 %v9324_v0, %s12622_s8  ;;  %1508 = vmatprep.subr.bf16.mxu0 %v611_v60 }
  0xc0   : > { %v600_v62 = vpop.permute.xlu0 %599 }
  0xc1   : > { %v610_v63 = vsel %vm609_vm7, %v600_v62, %v602_v58  ;;  %v398_v4 = vpop.permute.xlu1 %397 }
  0xc2   : > { %v404_v5 = vsel %vm401_vm2, %v9477_v25, %v398_v4  ;;  %1175 = vrot.lane.b32.xlu0 %v9332_v2, %s12622_s8  ;;  %1509 = vmatpush1.bf16.msra.mxu0 %v610_v63 }
  0xc3   : > { %1171 = vrot.lane.b32.xlu1 %v9327_v1, %s12622_s8 }
  0xc4   : > { %v400_v6 = vpop.permute.xlu0 %399 }
  0xc5   : > { %v405_v7 = vsel %vm401_vm2, %v398_v4, %v400_v6  ;;  %415 = vst.msk [vmem:[#allocation2 + $0x98] sm:$0xff] %vm258_vm5, %v400_v6  ;;  %v654_v8 = vpop.permute.xlu1 %653 }
  0xc6   : > { %1225 = vrot.lane.b32.xlu0 %v9324_v0, %s12620_s25  ;;  %1646 = vmatprep.subr.bf16.mxu1 %v405_v7 }
  0xc7   : > { %1227 = vrot.lane.b32.xlu1 %v9332_v2, %s12620_s25  ;;  %1647 = vmatpush1.bf16.msra.mxu1 %v404_v5 }
  0xc8   : > { %v9566_v9 = vpop.permute.xlu0 %655 }
  0xc9   : > { %v663_v10 = vsel %vm661_vm8, %v654_v8, %v9566_v9  ;;  %v652_v11 = vpop.permute.xlu1 %651 }
  0xca   : > { %v662_v12 = vsel %vm661_vm8, %v652_v11, %v654_v8  ;;  %1223 = vrot.lane.b32.xlu0 %v9327_v1, %s12620_s25  ;;  %1510 = vmatprep.subr.bf16.mxu0 %v663_v10 }
  0xcb   : > { %1277 = vrot.lane.b32.xlu1 %v9324_v0, %s12618_s12  ;;  %1511 = vmatpush1.bf16.msra.mxu0 %v662_v12 }
  0xcc   : > { %v450_v13 = vpop.permute.xlu0 %449 }
  0xcd   : > { %v456_v14 = vsel %vm453_vm3, %v9491_v32, %v450_v13  ;;  %v452_v15 = vpop.permute.xlu1 %451  ;;  %v8878_v32 = vld [vmem:[%s9321_s13 + $0x10] ss:$20 sps:$4 sm:$0xff]  }
  0xce   : > { %v457_v16 = vsel %vm453_vm3, %v450_v13, %v452_v15  ;;  %467 = vst.msk [vmem:[#allocation2 + $0xc0] sm:$0xff] %vm258_vm5, %v452_v15  ;;  %1279 = vrot.lane.b32.xlu0 %v9332_v2, %s12618_s12  ;;  %v8875_v2 = vld [vmem:[%s9321_s13 + $0x10] ss:$20 sps:$4 sm:$0xff]  }
  0xcf   : > { %1275 = vrot.lane.b32.xlu1 %v9327_v1, %s12618_s12  ;;  %1648 = vmatprep.subr.bf16.mxu1 %v457_v16 }
  0xd0   : > { %v706_v0 = vpop.permute.xlu0 %705  ;;  %1649 = vmatpush1.bf16.msra.mxu1 %v456_v14 }
  0xd1   : > { %v9584_v18 = vpop.permute.xlu1 %707 }
  0xd2   : > { %v715_v19 = vsel %vm713_vm9, %v706_v0, %v9584_v18  ;;  %1073 = vrot.lane.b32.xlu0 %v9335_v3, %s9220_s7 }
  0xd3   : > { %1075 = vrot.lane.b32.xlu1 %v8874_v17, %s9220_s7  ;;  %1512 = vmatprep.subr.bf16.mxu0 %v715_v19 }
  0xd4   : > { %v704_v20 = vpop.permute.xlu0 %703 }
  0xd5   : > { %v714_v1 = vsel %vm713_vm9, %v704_v20, %v706_v0  ;;  %v502_v21 = vpop.permute.xlu1 %501 }
  0xd6   : > { %v508_v22 = vsel %vm505_vm4, %v9507_v39, %v502_v21  ;;  %1125 = vrot.lane.b32.xlu0 %v9335_v3, %s9221_s9  ;;  %1513 = vmatpush1.bf16.msra.mxu0 %v714_v1 }
  0xd7   : > { %1127 = vrot.lane.b32.xlu1 %v8875_v2, %s9221_s9  ;;  %v9660_v2 = vld [vmem:[%s12602_s1 + $0x1c] ss:$12 sps:$4 sm:$0xff]  }
  0xd8   : > { %v504_v24 = vpop.permute.xlu0 %503 }
  0xd9   : > { %v509_v25 = vsel %vm505_vm4, %v502_v21, %v504_v24  ;;  %519 = vst.msk [vmem:[#allocation2 + $0xe8] sm:$0xff] %vm258_vm5, %v504_v24  ;;  %v758_v26 = vpop.permute.xlu1 %757 }
  0xda   : > { %1177 = vrot.lane.b32.xlu0 %v9335_v3, %s12622_s8  ;;  %1650 = vmatprep.subr.bf16.mxu1 %v509_v25 }
  0xdb   : > { %1179 = vrot.lane.b32.xlu1 %v8876_v23, %s12622_s8  ;;  %1651 = vmatpush1.bf16.msra.mxu1 %v508_v22 }
  0xdc   : > { %v9605_v28 = vpop.permute.xlu0 %759 }
  0xdd   : > { %v767_v29 = vsel %vm12629_vm10, %v758_v26, %v9605_v28  ;;  %v756_v30 = vpop.permute.xlu1 %755 }
  0xde   : > { %v766_v31 = vsel %vm12629_vm10, %v756_v30, %v758_v26  ;;  %1229 = vrot.lane.b32.xlu0 %v9335_v3, %s12620_s25  ;;  %1514 = vmatprep.subr.bf16.mxu0 %v767_v29  ;;  %v9672_v26 = vld [vmem:[%s12602_s1 + $0x18] ss:$12 sps:$4 sm:$0xff]  }
  0xdf   : > { %1231 = vrot.lane.b32.xlu1 %v8877_v27, %s12620_s25  ;;  %1515 = vmatpush1.bf16.msra.mxu0 %v766_v31  ;;  %s9803_s25 = scalar_lea.vmem [#allocation7], %s9354_s28 }
  0xe0   : > { %v554_v34 = vpop.permute.xlu0 %553 }
  0xe1   : > { %v560_v35 = vsel %vm557_vm6, %v9527_v50, %v554_v34  ;;  %v556_v36 = vpop.permute.xlu1 %555 }
  0xe2   : > { %v561_v37 = vsel %vm557_vm6, %v554_v34, %v556_v36  ;;  %571 = vst.msk [vmem:[#allocation2 + $0x110] sm:$0xff] %vm258_vm5, %v556_v36  ;;  %1281 = vrot.lane.b32.xlu0 %v9335_v3, %s12618_s12 }
  0xe3   : > { %1283 = vrot.lane.b32.xlu1 %v8878_v32, %s12618_s12  ;;  %1652 = vmatprep.subr.bf16.mxu1 %v561_v37  ;;  %v9690_v37 = vld [vmem:[%s12602_s1 + $0x30] ss:$12 sps:$4 sm:$0xff]  }
  0xe4   : > { %v810_v38 = vpop.permute.xlu0 %809  ;;  %1653 = vmatpush1.bf16.msra.mxu1 %v560_v35 }
  0xe5   : > { %v9621_v39 = vpop.permute.xlu1 %811 }
  0xe6   : > { %v819_v40 = vsel %vm12628_vm11, %v810_v38, %v9621_v39 }
  0xe7   : > { %1516 = vmatprep.subr.bf16.mxu0 %v819_v40 }
  0xe8   : > { %v808_v41 = vpop.permute.xlu0 %807 }
  0xe9   : > { %v818_v42 = vsel %vm12628_vm11, %v808_v41, %v810_v38  ;;  %v606_v43 = vpop.permute.xlu1 %605  ;;  %v9695_v38 = vld [vmem:[%s12602_s1 + $0x4c] ss:$12 sps:$4 sm:$0xff]  }
  0xea   : > { %v612_v44 = vsel %vm609_vm7, %v9543_v59, %v606_v43  ;;  %1517 = vmatpush1.bf16.msra.mxu0 %v818_v42 }
  0xec   : > { %v608_v3 = vpop.permute.xlu0 %607 }
  0xed   : > { %v613_v45 = vsel %vm609_vm7, %v606_v43, %v608_v3  ;;  %623 = vst.msk [vmem:[#allocation2 + $0x138] sm:$0xff] %vm258_vm5, %v608_v3  ;;  %v862_v46 = vpop.permute.xlu1 %861 }
  0xee   : > { %1654 = vmatprep.subr.bf16.mxu1 %v613_v45  ;;  %v9708_v45 = vld [vmem:[%s12602_s1 + $0x48] ss:$12 sps:$4 sm:$0xff]  }
  0xef   : > { %1655 = vmatpush1.bf16.msra.mxu1 %v612_v44 }
  0xf0   : > { %v864_v47 = vpop.permute.xlu0 %863 }
  0xf1   : > { %v871_v48 = vsel %vm12627_vm12, %v862_v46, %v864_v47  ;;  %v860_v49 = vpop.permute.xlu1 %859 }
  0xf2   : > { %v870_v50 = vsel %vm12627_vm12, %v860_v49, %v862_v46  ;;  %1518 = vmatprep.subr.bf16.mxu0 %v871_v48 }
  0xf3   : > { %1519 = vmatpush1.bf16.msra.mxu0 %v870_v50  ;;  %v9225_v50 = vmov 0  }
  0xf4   : > { %v658_v51 = vpop.permute.xlu0 %657 }
  0xf5   : > { %v664_v52 = vsel %vm661_vm8, %v9566_v9, %v658_v51  ;;  %v660_v53 = vpop.permute.xlu1 %659 }
  0xf6   : > { %v665_v54 = vsel %vm661_vm8, %v658_v51, %v660_v53  ;;  %675 = vst.msk [vmem:[#allocation2 + $0x160] sm:$0xff] %vm258_vm5, %v660_v53 }
  0xf7   : > { %1656 = vmatprep.subr.bf16.mxu1 %v665_v54 }
  0xf8   : > { %v914_v55 = vpop.permute.xlu0 %913  ;;  %1657 = vmatpush1.bf16.msra.mxu1 %v664_v52 }
  0xf9   : > { %v916_v56 = vpop.permute.xlu1 %915 }
  0xfa   : > { %v923_v57 = vsel %vm12624_vm13, %v914_v55, %v916_v56 }
  0xfb   : > { %1520 = vmatprep.subr.bf16.mxu0 %v923_v57 }
  0xfc   : > { %v912_v58 = vpop.permute.xlu0 %911 }
  0xfd   : > { %v922_v59 = vsel %vm12624_vm13, %v912_v58, %v914_v55  ;;  %v710_v60 = vpop.permute.xlu1 %709 }
  0xfe   : > { %v716_v61 = vsel %vm713_vm9, %v9584_v18, %v710_v60  ;;  %1521 = vmatpush1.bf16.msra.mxu0 %v922_v59  ;;  %v9653_v18 = vld [vmem:[%s12602_s1] ss:$12 sps:$4 sm:$0xff]  }
 0x100   : > { %v712_v62 = vpop.permute.xlu0 %711 }
 0x101   : > { %v717_v63 = vsel %vm713_vm9, %v710_v60, %v712_v62  ;;  %727 = vst.msk [vmem:[#allocation2 + $0x188] sm:$0xff] %vm258_vm5, %v712_v62  ;;  %v966_v4 = vpop.permute.xlu1 %965 }
 0x102   : > { %1658 = vmatprep.subr.bf16.mxu1 %v717_v63 }
 0x103   : > { %1659 = vmatpush1.bf16.msra.mxu1 %v716_v61 }
 0x104   : > { %v968_v5 = vpop.permute.xlu0 %967 }
 0x105   : > { %v975_v6 = vsel %vm12625_vm14, %v966_v4, %v968_v5  ;;  %v964_v7 = vpop.permute.xlu1 %963 }
 0x106   : > { %v974_v8 = vsel %vm12625_vm14, %v964_v7, %v966_v4  ;;  %1522 = vmatprep.subr.bf16.mxu0 %v975_v6 }
 0x107   : > { %1523 = vmatpush1.bf16.msra.mxu0 %v974_v8  ;;  %v9734_v8 = vld [vmem:[%s12602_s1 + $0x8] ss:$12 sps:$4 sm:$0xff]  }
 0x108   : > { %v762_v9 = vpop.permute.xlu0 %761 }
 0x109   : > { %v768_v10 = vsel %vm12629_vm10, %v9605_v28, %v762_v9  ;;  %v764_v11 = vpop.permute.xlu1 %763  ;;  %v9678_v28 = vld [vmem:[%s12602_s1 + $0x34] ss:$12 sps:$4 sm:$0xff]  }
 0x10a   : > { %v769_v12 = vsel %vm12629_vm10, %v762_v9, %v764_v11  ;;  %779 = vst.msk [vmem:[#allocation2 + $0x1b0] sm:$0xff] %vm258_vm5, %v764_v11  ;;  %v1360_v9 = vld [vmem:[#allocation2 + $0x160] sm:$0xff]  ;;  %vm1481_vm10 = vcmask 654336  }
 0x10b   : > { %1660 = vmatprep.subr.bf16.mxu1 %v769_v12  ;;  %v1320_v11 = vld [vmem:[#allocation2 + $0x20] sm:$0xff] }
 0x10c   : > { %v1018_v13 = vpop.permute.xlu0 %1017  ;;  %1661 = vmatpush1.bf16.msra.mxu1 %v768_v10 }
 0x10d   : > { %v1020_v14 = vpop.permute.xlu1 %1019 }
 0x10e   : > { %v1027_v15 = vsel %vm12626_vm15, %v1018_v13, %v1020_v14 }
 0x10f   : > { %1524 = vmatprep.subr.bf16.mxu0 %v1027_v15  ;;  %v1365_v15 = vld [vmem:[#allocation2 + $0x188] sm:$0xff] }
 0x110   : > { %v1016_v16 = vpop.permute.xlu0 %1015 }
 0x111   : > { %v1026_v17 = vsel %vm12626_vm15, %v1016_v16, %v1018_v13  ;;  %v814_v0 = vpop.permute.xlu1 %813 }
 0x112   : > { %v820_v19 = vsel %vm12628_vm11, %v9621_v39, %v814_v0  ;;  %1525 = vmatpush1.bf16.msra.mxu0 %v1026_v17 }
 0x114   : > { %v816_v20 = vpop.permute.xlu0 %815 }
 0x115   : > { %v821_v1 = vsel %vm12628_vm11, %v814_v0, %v816_v20  ;;  %831 = vst.msk [vmem:[#allocation2 + $0x1d8] sm:$0xff] %vm258_vm5, %v816_v20  ;;  %v866_v21 = vpop.permute.xlu1 %865  ;;  %1527 = vmatmul.mubr.bf16.vlgmr.msra.gmra.mrb[0].mxu0 %v9653_v18  ;;  %vm1285_vm11 = vcmask 883712   ;;  %v1325_v20 = vld [vmem:[#allocation2 + $0x48] sm:$0xff] }
 0x116   : > { %v872_v22 = vsel %vm12627_vm12, %v864_v47, %v866_v21  ;;  %1662 = vmatprep.subr.bf16.mxu1 %v821_v1  ;;  %1536 = vmatprep.mubr.bf16.mxu0 %v9660_v2  ;;  %v9750_v1 = vld [vmem:[%s12602_s1 + $0x20] ss:$12 sps:$4 sm:$0xff]  }
 0x117   : > { %1663 = vmatpush1.bf16.msra.mxu1 %v820_v19 }
 0x118   : > { %v868_v23 = vpop.permute.xlu0 %867 }
 0x119   : > { %v873_v24 = vsel %vm12627_vm12, %v866_v21, %v868_v23  ;;  %883 = vst.msk [vmem:[#allocation2 + $0x200] sm:$0xff] %vm258_vm5, %v868_v23  ;;  %v918_v25 = vpop.permute.xlu1 %917  ;;  %vm1233_vm12 = vcmask 891904   ;;  %v1370_v21 = vld [vmem:[#allocation2 + $0x1b0] sm:$0xff] }
 0x11a   : > { %v924_v27 = vsel %vm12624_vm13, %v916_v56, %v918_v25  ;;  %1664 = vmatprep.subr.bf16.mxu1 %v873_v24 }
 0x11b   : > { %1665 = vmatpush1.bf16.msra.mxu1 %v872_v22 }
 0x11c   : > { %v920_v29 = vpop.permute.xlu0 %919 }
 0x11d   : > { %v925_v30 = vsel %vm12624_vm13, %v918_v25, %v920_v29  ;;  %935 = vst.msk [vmem:[#allocation2 + $0x228] sm:$0xff] %vm258_vm5, %v920_v29  ;;  %v970_v31 = vpop.permute.xlu1 %969  ;;  %1537 = vmatmul.mubr.bf16.gmra.mrb[4].mxu0 %v9672_v26  ;;  %vm1077_vm13 = vcmask 916480   ;;  %v1375_v29 = vld [vmem:[#allocation2 + $0x1d8] sm:$0xff] }
 0x11e   : > { %v976_v32 = vsel %vm12625_vm14, %v968_v5, %v970_v31  ;;  %1666 = vmatprep.subr.bf16.mxu1 %v925_v30  ;;  %1546 = vmatprep.mubr.bf16.mxu0 %v9678_v28 }
 0x11f   : > { %1667 = vmatpush1.bf16.msra.mxu1 %v924_v27  ;;  %v1330_v27 = vld [vmem:[#allocation2 + $0x70] sm:$0xff] }
 0x120   : > { %v972_v34 = vpop.permute.xlu0 %971 }
 0x121   : > { %v977_v35 = vsel %vm12625_vm14, %v970_v31, %v972_v34  ;;  %987 = vst.msk [vmem:[#allocation2 + $0x250] sm:$0xff] %vm258_vm5, %v972_v34  ;;  %v1070_v36 = vpop.permute.xlu1 %1069  ;;  %vm1129_vm14 = vcmask 908288  }
 0x122   : > { %1668 = vmatprep.subr.bf16.mxu1 %v977_v35  ;;  %v1335_v35 = vld [vmem:[#allocation2 + $0x98] sm:$0xff] }
 0x123   : > { %1669 = vmatpush1.bf16.msra.mxu1 %v976_v32 }
 0x124   : > { %v9697_v39 = vpop.permute.xlu0 %1071 }
 0x125   : > { %v1079_v40 = vsel %vm1077_vm13, %v1070_v36, %v9697_v39  ;;  %v1068_v41 = vpop.permute.xlu1 %1067  ;;  %1547 = vmatmul.mubr.bf16.gmra.mrb[8].mxu0 %v9690_v37 }
 0x126   : > { %v1078_v42 = vsel %vm1077_vm13, %v1068_v41, %v1070_v36  ;;  %1567 = vmatprep.subr.bf16.mxu0 %v1079_v40  ;;  %1556 = vmatprep.mubr.bf16.mxu0 %v9695_v38  ;;  %v8894_v36 = vld [vmem:[%s12602_s1 + $0x38] ss:$12 sps:$4 sm:$0xff]  }
 0x127   : > { %1568 = vmatpush1.bf16.msra.mxu0 %v1078_v42 }
 0x128   : > { %v1022_v43 = vpop.permute.xlu0 %1021 }
 0x129   : > { %v1028_v44 = vsel %vm12626_vm15, %v1020_v14, %v1022_v43  ;;  %v1024_v3 = vpop.permute.xlu1 %1023 }
 0x12a   : > { %v1029_v46 = vsel %vm12626_vm15, %v1022_v43, %v1024_v3  ;;  %1039 = vst.msk [vmem:[#allocation2 + $0x278] sm:$0xff] %vm258_vm5, %v1024_v3  ;;  %vm1181_vm15 = vcmask 900096   ;;  %v1385_v3 = vld [vmem:[#allocation2 + $0x228] sm:$0xff] }
 0x12b   : > { %1670 = vmatprep.subr.bf16.mxu1 %v1029_v46 }
 0x12c   : > { %v1122_v47 = vpop.permute.xlu0 %1121  ;;  %1671 = vmatpush1.bf16.msra.mxu1 %v1028_v44  ;;  %v1340_v44 = vld [vmem:[#allocation2 + $0xc0] sm:$0xff] }
 0x12d   : > { %v1124_v48 = vpop.permute.xlu1 %1123  ;;  %1557 = vmatmul.mubr.bf16.gmra.mrb[12].mxu0 %v9708_v45 }
 0x12e   : > { %v1131_v49 = vsel %vm1129_vm14, %v1122_v47, %v1124_v48  ;;  %1599 = vmatprep.mubr.bf16.mxu0 %v9225_v50 }
 0x12f   : > { %1569 = vmatprep.subr.bf16.mxu0 %v1131_v49  ;;  %1673 = vmatmul.mubr.bf16.vlgmr.msra.gmra.mrb[0].mxu1 %v9653_v18  ;;  %v1390_v49 = vld [vmem:[#allocation2 + $0x250] sm:$0xff] }
 0x130   : > { %v1120_v51 = vpop.permute.xlu0 %1119  ;;  %1682 = vmatprep.mubr.bf16.mxu1 %v9660_v2 }
 0x131   : > { %v1130_v52 = vsel %vm1129_vm14, %v1120_v51, %v1122_v47  ;;  %v1174_v53 = vpop.permute.xlu1 %1173  ;;  %v1345_v47 = vld [vmem:[#allocation2 + $0xe8] sm:$0xff] }
 0x132   : > { %1570 = vmatpush1.bf16.msra.mxu0 %v1130_v52  ;;  %v1350_v52 = vld [vmem:[#allocation2 + $0x110] sm:$0xff] }
 0x134   : > { %v1176_v54 = vpop.permute.xlu0 %1175 }
 0x135   : > { %v1183_v55 = vsel %vm1181_vm15, %v1174_v53, %v1176_v54  ;;  %v1172_v56 = vpop.permute.xlu1 %1171 }
 0x136   : > { %v1182_v57 = vsel %vm1181_vm15, %v1172_v56, %v1174_v53  ;;  %1571 = vmatprep.subr.bf16.mxu0 %v1183_v55  ;;  %v1395_v53 = vld [vmem:[#allocation2 + $0x278] sm:$0xff] }
 0x137   : > { %1572 = vmatpush1.bf16.msra.mxu0 %v1182_v57  ;;  %1683 = vmatmul.mubr.bf16.gmra.mrb[4].mxu1 %v9672_v26  ;;  %v1355_v55 = vld [vmem:[#allocation2 + $0x138] sm:$0xff] }
 0x138   : > { %v1226_v58 = vpop.permute.xlu0 %1225  ;;  %1692 = vmatprep.mubr.bf16.mxu1 %v9678_v28 }
 0x139   : > { %v1228_v59 = vpop.permute.xlu1 %1227 }
 0x13a   : > { %v1235_v60 = vsel %vm1233_vm12, %v1226_v58, %v1228_v59 }
 0x13b   : > { %1573 = vmatprep.subr.bf16.mxu0 %v1235_v60 }
 0x13c   : > { %v1224_v61 = vpop.permute.xlu0 %1223 }
 0x13d   : > { %v1234_v62 = vsel %vm1233_vm12, %v1224_v61, %v1226_v58  ;;  %v1278_v63 = vpop.permute.xlu1 %1277 }
 0x13e   : > { %1574 = vmatpush1.bf16.msra.mxu0 %v1234_v62 }
 0x13f   : > { %1693 = vmatmul.mubr.bf16.gmra.mrb[8].mxu1 %v9690_v37 }
 0x140   : > { %v9725_v4 = vpop.permute.xlu0 %1279  ;;  %1702 = vmatprep.mubr.bf16.mxu1 %v9695_v38 }
 0x141   : > { %v1287_v5 = vsel %vm1285_vm11, %v1278_v63, %v9725_v4  ;;  %v1276_v6 = vpop.permute.xlu1 %1275 }
 0x142   : > { %v1286_v7 = vsel %vm1285_vm11, %v1276_v6, %v1278_v63  ;;  %1575 = vmatprep.subr.bf16.mxu0 %v1287_v5 }
 0x143   : > { %1576 = vmatpush1.bf16.msra.mxu0 %v1286_v7 }
 0x144   : > { %v1074_v10 = vpop.permute.xlu0 %1073  ;;  %8287 = vmatprep.subr.bf16.mxu0 %v1360_v9 }
 0x145   : > { %v1080_v12 = vsel %vm1077_vm13, %v9697_v39, %v1074_v10  ;;  %v1076_v13 = vpop.permute.xlu1 %1075  ;;  %v1380_v39 = vld [vmem:[#allocation2 + $0x200] sm:$0xff] }
 0x146   : > { %v1081_v14 = vsel %vm1077_vm13, %v1074_v10, %v1076_v13  ;;  %1091 = vst.msk [vmem:[#allocation2 + $0x2a0] sm:$0xff] %vm258_vm5, %v1076_v13  ;;  %8121 = vmatmul.mubr.msk.bf16.vlgmr.msra.gmra.mrb[0].mxu0 %vm1481_vm10, %v9734_v8 }
 0x147   : > { %1713 = vmatprep.subr.bf16.mxu1 %v1081_v14  ;;  %8288 = vmatpush3.bf16.msra.mxu0 %v1320_v11 }
 0x148   : > { %v1126_v16 = vpop.permute.xlu0 %1125  ;;  %1714 = vmatpush1.bf16.msra.mxu1 %v1080_v12  ;;  %8289 = vmatprep.subr.bf16.mxu0 %v1365_v15 }
 0x149   : > { %v1132_v17 = vsel %vm1129_vm14, %v1124_v48, %v1126_v16  ;;  %v1128_v0 = vpop.permute.xlu1 %1127  ;;  %1609 = vmatprep.mubr.bf16.mxu0 %v9225_v50  ;;  %1703 = vmatmul.mubr.bf16.gmra.mrb[12].mxu1 %v9708_v45  ;;  %v8895_v48 = vld [vmem:[%s12602_s1 + $0x50] ss:$12 sps:$4 sm:$0xff]  }
 0x14a   : > { %v1133_v19 = vsel %vm1129_vm14, %v1126_v16, %v1128_v0  ;;  %1143 = vst.msk [vmem:[#allocation2 + $0x2c8] sm:$0xff] %vm258_vm5, %v1128_v0  ;;  %1745 = vmatprep.mubr.bf16.mxu1 %v9225_v50 }
 0x14b   : > { %1715 = vmatprep.subr.bf16.mxu1 %v1133_v19  ;;  %8290 = vmatpush3.bf16.msra.mxu0 %v1325_v20 }
 0x14c   : > { %v1178_v22 = vpop.permute.xlu0 %1177  ;;  %1716 = vmatpush1.bf16.msra.mxu1 %v1132_v17  ;;  %8291 = vmatprep.subr.bf16.mxu0 %v1370_v21 }
 0x14d   : > { %v1184_v23 = vsel %vm1181_vm15, %v1176_v54, %v1178_v22  ;;  %v1180_v24 = vpop.permute.xlu1 %1179  ;;  %v1400_v46 = vld [vmem:[#allocation2 + $0x2a0] sm:$0xff] }
 0x14e   : > { %v1185_v25 = vsel %vm1181_vm15, %v1178_v22, %v1180_v24  ;;  %1195 = vst.msk [vmem:[#allocation2 + $0x2f0] sm:$0xff] %vm258_vm5, %v1180_v24  ;;  %8122 = vmatmul.mubr.msk.bf16.gmra.mrb[4].mxu0 %vm1481_vm10, %v9750_v1 }
 0x14f   : > { %1717 = vmatprep.subr.bf16.mxu1 %v1185_v25  ;;  %8292 = vmatpush3.bf16.msra.mxu0 %v1330_v27 }
 0x150   : > { %v1230_v30 = vpop.permute.xlu0 %1229  ;;  %1718 = vmatpush1.bf16.msra.mxu1 %v1184_v23  ;;  %8293 = vmatprep.subr.bf16.mxu0 %v1375_v29 }
 0x151   : > { %v1236_v31 = vsel %vm1233_vm12, %v1228_v59, %v1230_v30  ;;  %v1232_v32 = vpop.permute.xlu1 %1231  ;;  %1619 = vmatprep.mubr.bf16.mxu0 %v9225_v50  ;;  %v1405_v51 = vld [vmem:[#allocation2 + $0x2c8] sm:$0xff] }
 0x152   : > { %v1237_v34 = vsel %vm1233_vm12, %v1230_v30, %v1232_v32  ;;  %1247 = vst.msk [vmem:[#allocation2 + $0x318] sm:$0xff] %vm258_vm5, %v1232_v32 }
 0x153   : > { %1719 = vmatprep.subr.bf16.mxu1 %v1237_v34  ;;  %8294 = vmatpush3.bf16.msra.mxu0 %v1335_v35 }
 0x154   : > { %v1282_v40 = vpop.permute.xlu0 %1281  ;;  %1720 = vmatpush1.bf16.msra.mxu1 %v1236_v31  ;;  %8295 = vmatprep.subr.bf16.mxu0 %v1380_v39 }
 0x155   : > { %v1288_v41 = vsel %vm1285_vm11, %v9725_v4, %v1282_v40  ;;  %v1284_v42 = vpop.permute.xlu1 %1283  ;;  %v1410_v54 = vld [vmem:[#allocation2 + $0x2f0] sm:$0xff] }
 0x156   : > { %v1289_v43 = vsel %vm1285_vm11, %v1282_v40, %v1284_v42  ;;  %1299 = vst.msk [vmem:[#allocation2 + $0x340] sm:$0xff] %vm258_vm5, %v1284_v42  ;;  %8123 = vmatmul.mubr.msk.bf16.gmra.mrb[8].mxu0 %vm1481_vm10, %v8894_v36 }
 0x157   : > { %1721 = vmatprep.subr.bf16.mxu1 %v1289_v43  ;;  %8296 = vmatpush3.bf16.msra.mxu0 %v1340_v44 }
 0x158   : > { %1722 = vmatpush1.bf16.msra.mxu1 %v1288_v41  ;;  %8297 = vmatprep.subr.bf16.mxu0 %v1385_v3 }
 0x159   : > { %8544 = vmatprep.subr.bf16.mxu1 %v1400_v46  ;;  %1629 = vmatprep.mubr.bf16.mxu0 %v9225_v50  ;;  %v1415_v56 = vld [vmem:[#allocation2 + $0x318] sm:$0xff] }
 0x15b   : > { %8125 = vmatmul.mubr.msk.bf16.vlgmr.msra.gmra.mrb[0].mxu1 %vm1481_vm10, %v9734_v8  ;;  %8298 = vmatpush3.bf16.msra.mxu0 %v1345_v47 }
 0x15c   : > { %8545 = vmatpush3.bf16.msra.mxu1 %v1400_v46  ;;  %8299 = vmatprep.subr.bf16.mxu0 %v1390_v49 }
 0x15d   : > { %8546 = vmatprep.subr.bf16.mxu1 %v1405_v51  ;;  %1755 = vmatprep.mubr.bf16.mxu1 %v9225_v50 }
 0x15e   : > { %8124 = vmatmul.mubr.msk.bf16.gmra.mrb[12].mxu0 %vm1481_vm10, %v8895_v48 }
 0x15f   : > { %8300 = vmatpush3.bf16.msra.mxu0 %v1350_v52  ;;  %1818 = vmatprep.mubr.bf16.mxu0 %v9496_v33  ;;  %v1420_v33 = vld [vmem:[#allocation2 + $0x340] sm:$0xff] }
 0x160   : > { %8547 = vmatpush3.bf16.msra.mxu1 %v1405_v51  ;;  %8301 = vmatprep.subr.bf16.mxu0 %v1395_v53 }
 0x161   : > { %8548 = vmatprep.subr.bf16.mxu1 %v1410_v54 }
 0x163   : > { %8126 = vmatmul.mubr.msk.bf16.gmra.mrb[4].mxu1 %vm1481_vm10, %v9750_v1  ;;  %8302 = vmatpush3.bf16.msra.mxu0 %v1355_v55 }
 0x164   : > { %8549 = vmatpush3.bf16.msra.mxu1 %v1410_v54  ;;  %1765 = vmatprep.mubr.bf16.mxu1 %v9225_v50 }
 0x165   : > { %8550 = vmatprep.subr.bf16.mxu1 %v1415_v56 }
 0x166   : > { %1819 = vmatmul.mubr.bf16.vlgmr.msra.gmra.mrb[16].mxu0 %v9653_v18 }
 0x167   : > { %1826 = vmatprep.mubr.bf16.mxu0 %v9660_v2 }
 0x168   : > { %8551 = vmatpush3.bf16.msra.mxu1 %v1415_v56 }
 0x169   : > { %8552 = vmatprep.subr.bf16.mxu1 %v1420_v33 }
 0x16b   : > { %8127 = vmatmul.mubr.msk.bf16.gmra.mrb[8].mxu1 %vm1481_vm10, %v8894_v36 }
 0x16c   : > { %8553 = vmatpush3.bf16.msra.mxu1 %v1420_v33  ;;  %1775 = vmatprep.mubr.bf16.mxu1 %v9225_v50 }
 0x16e   : > { %1827 = vmatmul.mubr.bf16.gmra.mrb[20].mxu0 %v9672_v26 }
 0x16f   : > { %1834 = vmatprep.mubr.bf16.mxu0 %v9678_v28 }
 0x173   : > { %8128 = vmatmul.mubr.msk.bf16.gmra.mrb[12].mxu1 %vm1481_vm10, %v8895_v48 }
 0x174   : > { %8554 = vmatprep.mubr.msk.bf16.mxu1 %vm1481_vm10, %v9734_v8 }
 0x176   : > { %1835 = vmatmul.mubr.bf16.gmra.mrb[24].mxu0 %v9690_v37 }
 0x177   : > { %1842 = vmatprep.mubr.bf16.mxu0 %v9695_v38 }
 0x17b   : > { %8555 = vmatmul.mubr.msk.bf16.vlgmr.msra.gmra.mrb[16].mxu1 %vm1481_vm10, %v9750_v1 }
 0x17c   : > { %8558 = vmatprep.mubr.msk.bf16.mxu1 %vm1481_vm10, %v8894_v36 }
 0x17e   : > { %1843 = vmatmul.mubr.bf16.gmra.mrb[28].mxu0 %v9708_v45 }
 0x183   : > { %8559 = vmatmul.mubr.msk.bf16.gmra.mrb[20].mxu1 %vm1481_vm10, %v8895_v48  ;;  %vm1960_vm10 = vcmask (!%p8133_p11), 89088  }
 0x219   : > { %v1601_v18 = vpop.f32.mrb[0].mxu0 }
 0x21a   : > { %v1603_v2 = vpop.f32.mrb[1].mxu0 }
 0x21b   : > { %v1605_v26 = vpop.f32.mrb[2].mxu0 }
 0x21c   : > { %v1916_v28 = vpack.c.bf16 %v1605_v26, %v1601_v18  ;;  %v1607_v57 = vpop.f32.mrb[3].mxu0 }
 0x21d   : > { %v1917_v58 = vpack.c.bf16 %v1607_v57, %v1603_v2 }
 0x21e   : > { %1936 = vst [vmem:[#allocation3] sm:$0xff] %v1916_v28 }
 0x21f   : > { %1937 = vst [vmem:[#allocation3 + $0x8] sm:$0xff] %v1917_v58 }
 0x221   : > { %v1611_v37 = vpop.f32.mrb[4].mxu0 }
 0x222   : > { %v1613_v59 = vpop.f32.mrb[5].mxu0 }
 0x223   : > { %v1615_v38 = vpop.f32.mrb[6].mxu0 }
 0x224   : > { %v1921_v60 = vpack.c.bf16 %v1615_v38, %v1611_v37  ;;  %v1617_v61 = vpop.f32.mrb[7].mxu0 }
 0x225   : > { %v1922_v62 = vpack.c.bf16 %v1617_v61, %v1613_v59 }
 0x226   : > { %1941 = vst [vmem:[#allocation3 + $0x28] sm:$0xff] %v1921_v60 }
 0x227   : > { %1942 = vst [vmem:[#allocation3 + $0x30] sm:$0xff] %v1922_v62 }
 0x229   : > { %v1621_v63 = vpop.f32.mrb[8].mxu0 }
 0x22a   : > { %v1623_v45 = vpop.f32.mrb[9].mxu0 }
 0x22b   : > { %v1625_v4 = vpop.f32.mrb[10].mxu0 }
 0x22c   : > { %v1926_v5 = vpack.c.bf16 %v1625_v4, %v1621_v63  ;;  %v1627_v6 = vpop.f32.mrb[11].mxu0 }
 0x22d   : > { %v1927_v7 = vpack.c.bf16 %v1627_v6, %v1623_v45 }
 0x22e   : > { %1946 = vst [vmem:[#allocation3 + $0x50] sm:$0xff] %v1926_v5  ;;  %v1747_v8 = vpop.f32.mrb[0].mxu1 }
 0x22f   : > { %1947 = vst [vmem:[#allocation3 + $0x58] sm:$0xff] %v1927_v7  ;;  %v1749_v9 = vpop.f32.mrb[1].mxu1 }
 0x230   : > { %v1751_v10 = vpop.f32.mrb[2].mxu1 }
 0x231   : > { %v1918_v11 = vpack.c.bf16 %v1751_v10, %v1747_v8  ;;  %v1753_v12 = vpop.f32.mrb[3].mxu1  ;;  %v1631_v13 = vpop.f32.mrb[12].mxu0 }
 0x232   : > { %v1919_v14 = vpack.c.bf16 %v1753_v12, %v1749_v9  ;;  %v1633_v15 = vpop.f32.mrb[13].mxu0 }
 0x233   : > { %1938 = vst [vmem:[#allocation3 + $0x10] sm:$0xff] %v1918_v11  ;;  %v1635_v16 = vpop.f32.mrb[14].mxu0 }
 0x234   : > { %1939 = vst [vmem:[#allocation3 + $0x18] sm:$0xff] %v1919_v14  ;;  %v1931_v17 = vpack.c.bf16 %v1635_v16, %v1631_v13  ;;  %v1637_v0 = vpop.f32.mrb[15].mxu0 }
 0x235   : > { %v1932_v19 = vpack.c.bf16 %v1637_v0, %v1633_v15 }
 0x236   : > { %1951 = vst [vmem:[#allocation3 + $0x78] sm:$0xff] %v1931_v17  ;;  %v1757_v20 = vpop.f32.mrb[4].mxu1 }
 0x237   : > { %1952 = vst [vmem:[#allocation3 + $0x80] sm:$0xff] %v1932_v19  ;;  %v1759_v1 = vpop.f32.mrb[5].mxu1  ;;  %v9226_v19 = vmov (!%p8133_p11), 0  }
 0x238   : > { %v1761_v21 = vpop.f32.mrb[6].mxu1  ;;  %1961 = vst.msk [vmem:[#allocation3] sm:$0xff] (!%p8133_p11), %vm1960_vm10, %v9226_v19  ;;  %1962 = vst.msk [vmem:[#allocation3 + $0x28] sm:$0xff] (!%p8133_p11), %vm1960_vm10, %v9226_v19 }
 0x239   : > { %v1923_v22 = vpack.c.bf16 %v1761_v21, %v1757_v20  ;;  %v1763_v23 = vpop.f32.mrb[7].mxu1  ;;  %v8303_v24 = vpop.f32.mrb[16].mxu0  ;;  %1963 = vst.msk [vmem:[#allocation3 + $0x50] sm:$0xff] (!%p8133_p11), %vm1960_vm10, %v9226_v19  ;;  %1964 = vst.msk [vmem:[#allocation3 + $0x78] sm:$0xff] (!%p8133_p11), %vm1960_vm10, %v9226_v19 }
 0x23a   : > { %v1924_v25 = vpack.c.bf16 %v1763_v23, %v1759_v1  ;;  %v8304_v27 = vpop.f32.mrb[17].mxu0 }
 0x23b   : > { %1943 = vst [vmem:[#allocation3 + $0x38] sm:$0xff] %v1923_v22  ;;  %v8305_v29 = vadd.f32 %v8304_v27, %v8303_v24  ;;  %v8306_v30 = vpop.f32.mrb[18].mxu0 }
 0x23c   : > { %1944 = vst [vmem:[#allocation3 + $0x40] sm:$0xff] %v1924_v25  ;;  %v8307_v31 = vpop.f32.mrb[19].mxu0 }
 0x23d   : > { %v8308_v32 = vadd.f32 %v8307_v31, %v8306_v30 }
 0x23e   : > { %v1767_v34 = vpop.f32.mrb[8].mxu1 }
 0x23f   : > { %v1769_v35 = vpop.f32.mrb[9].mxu1 }
 0x240   : > { %v1771_v36 = vpop.f32.mrb[10].mxu1 }
 0x241   : > { %v1928_v39 = vpack.c.bf16 %v1771_v36, %v1767_v34  ;;  %v1773_v40 = vpop.f32.mrb[11].mxu1  ;;  %v8309_v41 = vpop.f32.mrb[20].mxu0 }
 0x242   : > { %v1929_v42 = vpack.c.bf16 %v1773_v40, %v1769_v35  ;;  %v8310_v43 = vpop.f32.mrb[21].mxu0 }
 0x243   : > { %1948 = vst [vmem:[#allocation3 + $0x60] sm:$0xff] %v1928_v39  ;;  %v8311_v44 = vadd.f32 %v8310_v43, %v8309_v41  ;;  %v8312_v3 = vpop.f32.mrb[22].mxu0 }
 0x244   : > { %1949 = vst [vmem:[#allocation3 + $0x68] sm:$0xff] %v1929_v42  ;;  %v8313_v46 = vpop.f32.mrb[23].mxu0 }
 0x245   : > { %v8314_v47 = vadd.f32 %v8313_v46, %v8312_v3 }
 0x246   : > { %v1777_v48 = vpop.f32.mrb[12].mxu1 }
 0x247   : > { %v1779_v49 = vpop.f32.mrb[13].mxu1 }
 0x248   : > { %v1781_v51 = vpop.f32.mrb[14].mxu1 }
 0x249   : > { %v1933_v52 = vpack.c.bf16 %v1781_v51, %v1777_v48  ;;  %v1783_v53 = vpop.f32.mrb[15].mxu1  ;;  %v8315_v54 = vpop.f32.mrb[24].mxu0 }
 0x24a   : > { %v1934_v55 = vpack.c.bf16 %v1783_v53, %v1779_v49  ;;  %v8316_v56 = vpop.f32.mrb[25].mxu0 }
 0x24b   : > { %1953 = vst [vmem:[#allocation3 + $0x88] sm:$0xff] %v1933_v52  ;;  %v8317_v33 = vadd.f32 %v8316_v56, %v8315_v54  ;;  %v8318_v18 = vpop.f32.mrb[26].mxu0 }
 0x24c   : > { %1954 = vst [vmem:[#allocation3 + $0x90] sm:$0xff] %v1934_v55  ;;  %v8319_v2 = vpop.f32.mrb[27].mxu0 }
 0x24d   : > { %v8320_v26 = vadd.f32 %v8319_v2, %v8318_v18 }
 0x24e   : > { %v8556_v28 = vpop.f32.mrb[16].mxu1 }
 0x24f   : > { %v1894_v57 = vadd.f32 %v8556_v28, %v8311_v44  ;;  %v1885_v58 = vpop.f32.mrb[17].mxu1 }
 0x250   : > { %v1886_v37 = vadd.f32 %v8305_v29, %v1885_v58  ;;  %v8557_v59 = vpop.f32.mrb[18].mxu1 }
 0x251   : > { %v1897_v38 = vadd.f32 %v8557_v59, %v8314_v47  ;;  %v1888_v60 = vpop.f32.mrb[19].mxu1  ;;  %v8321_v61 = vpop.f32.mrb[28].mxu0 }
 0x252   : > { %v1889_v62 = vadd.f32 %v8308_v32, %v1888_v60  ;;  %v8322_v63 = vpop.f32.mrb[29].mxu0 }
 0x253   : > { %v1925_v45 = vpack.c.bf16 %v1897_v38, %v1894_v57  ;;  %v8323_v4 = vadd.f32 %v8322_v63, %v8321_v61  ;;  %v8324_v5 = vpop.f32.mrb[30].mxu0 }
 0x254   : > { %v1920_v6 = vpack.c.bf16 %v1889_v62, %v1886_v37  ;;  %v8325_v7 = vpop.f32.mrb[31].mxu0 }
 0x255   : > { %1945 = vst.msk [vmem:[#allocation3 + $0x48] sm:$0xff] %vm258_vm5, %v1925_v45  ;;  %v8326_v8 = vadd.f32 %v8325_v7, %v8324_v5 }
 0x256   : > { %1940 = vst.msk [vmem:[#allocation3 + $0x20] sm:$0xff] %vm258_vm5, %v1920_v6  ;;  %v8560_v9 = vpop.f32.mrb[20].mxu1 }
 0x257   : > { %v1901_v10 = vpop.f32.mrb[21].mxu1  ;;  %v1910_v11 = vadd.f32 %v8560_v9, %v8323_v4 }
 0x258   : > { %v1902_v12 = vadd.f32 %v8317_v33, %v1901_v10  ;;  %v8561_v13 = vpop.f32.mrb[22].mxu1  ;;  %1959 = sbr.rel (%p8133_p11) target bundleno = 607 (0x25f), region = 40 }
 0x259   : > { %v1904_v14 = vpop.f32.mrb[23].mxu1  ;;  %v1913_v15 = vadd.f32 %v8561_v13, %v8326_v8 }
 0x25a   : > { %v1905_v16 = vadd.f32 %v8320_v26, %v1904_v14 }
 0x25b   : > { %v1935_v17 = vpack.c.bf16 %v1913_v15, %v1910_v11 }
 0x25c   : > { %v1930_v0 = vpack.c.bf16 %v1905_v16, %v1902_v12 }
 0x25d   : > { %1955 = vst.msk [vmem:[#allocation3 + $0x98] sm:$0xff] %vm258_vm5, %v1935_v17 }
 0x25e   : > { %1950 = vst.msk [vmem:[#allocation3 + $0x70] sm:$0xff] %vm258_vm5, %v1930_v0 }
 0x25f PF: > { %p8134_p12 = scmp.ne.s32.totalorder %s9187_s17, 1 }
 0x260   : > { %vm1969_vm5 = vcmask (!%p8134_p12), 179288   ;;  %v9227_v20 = vmov (!%p8134_p12), 0  }
 0x261   : > { %1968 = sbr.rel (%p8134_p12) target bundleno = 616 (0x268), region = 44  ;;  %1970 = vst.msk [vmem:[#allocation3 + $0x20] sm:$0xff] (!%p8134_p12), %vm1969_vm5, %v9227_v20  ;;  %1971 = vst.msk [vmem:[#allocation3 + $0x48] sm:$0xff] (!%p8134_p12), %vm1969_vm5, %v9227_v20 }
 0x262   : > { %1972 = vst.msk [vmem:[#allocation3 + $0x70] sm:$0xff] (!%p8134_p12), %vm1969_vm5, %v9227_v20  ;;  %1973 = vst.msk [vmem:[#allocation3 + $0x98] sm:$0xff] (!%p8134_p12), %vm1969_vm5, %v9227_v20 }
 0x268 PF: > { %v9811_v1 = vld [vmem:[#allocation3 + $0x10] sm:$0xff]  ;;  %v9813_v21 = vld [vmem:[#allocation3] sm:$0xff]  ;;  %v9815_v22 = vld [vmem:[#allocation3 + $0x18] sm:$0xff]  ;;  %vm1998_vm10 = vcmask 15360   ;;  %s12659_s12 = smov 113  }
 0x269   : > { %2059 = vrot.lane.b32.xlu1 %v9811_v1, %s9205_s14  ;;  %2055 = vrot.lane.b32.xlu0 %v9813_v21, %s9205_s14  ;;  %v9821_v23 = vld [vmem:[#allocation3 + $0x8] sm:$0xff]  ;;  %v9825_v25 = vld [vmem:[#allocation3 + $0x38] sm:$0xff]  ;;  %v9827_v27 = vld [vmem:[#allocation3 + $0x30] sm:$0xff] }
 0x26a   : > { %v9823_v24 = vld [vmem:[#allocation3 + $0x28] sm:$0xff]  ;;  %5436 = vmatprep.subr.bf16.mxu0 %v9821_v23  ;;  %5874 = vmatprep.subr.bf16.mxu1 %v9815_v22  ;;  %v9831_v29 = vld [vmem:[#allocation3 + $0x40] sm:$0xff]  ;;  %v9833_v30 = vld [vmem:[#allocation3 + $0x58] sm:$0xff] }
 0x26b   : > { %v9835_v31 = vld [vmem:[#allocation3 + $0x50] sm:$0xff]  ;;  %5437 = vmatpush1.bf16.msra.mxu0 %v9813_v21  ;;  %5875 = vmatpush1.bf16.msra.mxu1 %v9811_v1  ;;  %v9839_v32 = vld [vmem:[#allocation3 + $0x68] sm:$0xff]  ;;  %v9841_v34 = vld [vmem:[#allocation3 + $0x60] sm:$0xff] }
 0x26c   : > { %v9843_v35 = vld [vmem:[#allocation3 + $0x78] sm:$0xff]  ;;  %5438 = vmatprep.subr.bf16.mxu0 %v9827_v27  ;;  %5876 = vmatprep.subr.bf16.mxu1 %v9831_v29  ;;  %v9851_v36 = vld [vmem:[#allocation3 + $0x88] sm:$0xff]  ;;  %v9853_v39 = vld [vmem:[#allocation3 + $0x80] sm:$0xff] }
 0x26d   : > { %2061 = vrot.lane.b32.xlu1 %v9815_v22, %s9205_s14  ;;  %2057 = vrot.lane.b32.xlu0 %v9821_v23, %s9205_s14  ;;  %v9855_v40 = vld [vmem:[#allocation3 + $0x20] sm:$0xff]  ;;  %v9857_v41 = vld [vmem:[#allocation3 + $0x90] sm:$0xff]  ;;  %v9875_v42 = vld [vmem:[#allocation3 + $0x48] sm:$0xff] }
 0x26e   : > { %v9891_v43 = vld [vmem:[#allocation3 + $0x70] sm:$0xff]  ;;  %v9901_v44 = vld [vmem:[#allocation3 + $0x98] sm:$0xff] }
 0x26f   : > { %5439 = vmatpush1.bf16.msra.mxu0 %v9823_v24  ;;  %5877 = vmatpush1.bf16.msra.mxu1 %v9825_v25  ;;  %v8896_v3 = vld [vmem:[%s12603_s2 + $0x4] ss:$44 sps:$4 sm:$0xff]  }
 0x270   : > { %5440 = vmatprep.subr.bf16.mxu0 %v9833_v30  ;;  %5878 = vmatprep.subr.bf16.mxu1 %v9839_v32 }
 0x271   : > { %2065 = vrot.lane.b32.xlu1 %v9823_v24, %s9205_s14  ;;  %2063 = vrot.lane.b32.xlu0 %v9855_v40, %s9205_s14 }
 0x272   : > { %5468 = vmatprep.mubr.bf16.mxu0 %v8896_v3  ;;  %5906 = vmatprep.mubr.bf16.mxu1 %v8896_v3 }
 0x273   : > { %5441 = vmatpush1.bf16.msra.mxu0 %v9835_v31  ;;  %5879 = vmatpush1.bf16.msra.mxu1 %v9841_v34 }
 0x274   : > { %5442 = vmatprep.subr.bf16.mxu0 %v9853_v39  ;;  %5880 = vmatprep.subr.bf16.mxu1 %v9857_v41 }
 0x275   : > { %2069 = vrot.lane.b32.xlu1 %v9825_v25, %s9205_s14  ;;  %2067 = vrot.lane.b32.xlu0 %v9827_v27, %s9205_s14 }
 0x277   : > { %5443 = vmatpush1.bf16.msra.mxu0 %v9843_v35  ;;  %5881 = vmatpush1.bf16.msra.mxu1 %v9851_v36 }
 0x279   : > { %2073 = vrot.lane.b32.xlu1 %v9875_v42, %s9205_s14  ;;  %2071 = vrot.lane.b32.xlu0 %v9831_v29, %s9205_s14 }
 0x27d   : > { %2077 = vrot.lane.b32.xlu1 %v9833_v30, %s9205_s14  ;;  %2075 = vrot.lane.b32.xlu0 %v9835_v31, %s9205_s14 }
 0x281   : > { %2081 = vrot.lane.b32.xlu1 %v9839_v32, %s9205_s14  ;;  %2079 = vrot.lane.b32.xlu0 %v9841_v34, %s9205_s14 }
 0x285   : > { %2085 = vrot.lane.b32.xlu1 %v9843_v35, %s9205_s14  ;;  %2083 = vrot.lane.b32.xlu0 %v9891_v43, %s9205_s14 }
 0x289   : > { %2089 = vrot.lane.b32.xlu1 %v9851_v36, %s9205_s14  ;;  %2087 = vrot.lane.b32.xlu0 %v9853_v39, %s9205_s14 }
 0x28d   : > { %2093 = vrot.lane.b32.xlu1 %v9901_v44, %s9205_s14  ;;  %2091 = vrot.lane.b32.xlu0 %v9857_v41, %s9205_s14 }
 0x291   : > { %2193 = vrot.lane.b32.xlu1 %v9821_v23, %s9206_s24  ;;  %2191 = vrot.lane.b32.xlu0 %v9813_v21, %s9206_s24 }
 0x295   : > { %2197 = vrot.lane.b32.xlu1 %v9815_v22, %s9206_s24  ;;  %2195 = vrot.lane.b32.xlu0 %v9811_v1, %s9206_s24 }
 0x299   : > { %2201 = vrot.lane.b32.xlu1 %v9823_v24, %s9206_s24  ;;  %2199 = vrot.lane.b32.xlu0 %v9855_v40, %s9206_s24 }
 0x29d   : > { %2205 = vrot.lane.b32.xlu1 %v9825_v25, %s9206_s24  ;;  %2203 = vrot.lane.b32.xlu0 %v9827_v27, %s9206_s24 }
 0x2a1   : > { %2213 = vrot.lane.b32.xlu1 %v9833_v30, %s9206_s24  ;;  %2207 = vrot.lane.b32.xlu0 %v9831_v29, %s9206_s24 }
 0x2a5   : > { %2211 = vrot.lane.b32.xlu1 %v9835_v31, %s9206_s24  ;;  %2215 = vrot.lane.b32.xlu0 %v9841_v34, %s9206_s24 }
 0x2a9   : > { %2225 = vrot.lane.b32.xlu1 %v9851_v36, %s9206_s24  ;;  %2223 = vrot.lane.b32.xlu0 %v9853_v39, %s9206_s24 }
 0x2ad   : > { %2329 = vrot.lane.b32.xlu1 %v9821_v23, %s9207_s27  ;;  %2221 = vrot.lane.b32.xlu0 %v9843_v35, %s9206_s24 }
 0x2b1   : > { %2327 = vrot.lane.b32.xlu1 %v9813_v21, %s9207_s27  ;;  %2331 = vrot.lane.b32.xlu0 %v9811_v1, %s9207_s27 }
 0x2b5   : > { %2341 = vrot.lane.b32.xlu1 %v9825_v25, %s9207_s27  ;;  %2339 = vrot.lane.b32.xlu0 %v9827_v27, %s9207_s27 }
 0x2b9   : > { %2209 = vrot.lane.b32.xlu1 %v9875_v42, %s9206_s24  ;;  %2337 = vrot.lane.b32.xlu0 %v9823_v24, %s9207_s27 }
 0x2bd   : > { %2351 = vrot.lane.b32.xlu1 %v9841_v34, %s9207_s27  ;;  %2349 = vrot.lane.b32.xlu0 %v9833_v30, %s9207_s27 }
 0x2c1   : > { %2217 = vrot.lane.b32.xlu1 %v9839_v32, %s9206_s24  ;;  %2347 = vrot.lane.b32.xlu0 %v9835_v31, %s9207_s27 }
 0x2c5   : > { %2359 = vrot.lane.b32.xlu1 %v9853_v39, %s9207_s27  ;;  %2219 = vrot.lane.b32.xlu0 %v9891_v43, %s9206_s24 }
 0x2c9   : > { %2357 = vrot.lane.b32.xlu1 %v9843_v35, %s9207_s27  ;;  %2361 = vrot.lane.b32.xlu0 %v9851_v36, %s9207_s27 }
 0x2cd   : > { %2229 = vrot.lane.b32.xlu1 %v9901_v44, %s9206_s24  ;;  %2227 = vrot.lane.b32.xlu0 %v9857_v41, %s9206_s24 }
 0x2d1   : > { %2467 = vrot.lane.b32.xlu1 %v9811_v1, %s9208_s29  ;;  %2465 = vrot.lane.b32.xlu0 %v9821_v23, %s9208_s29 }
 0x2d5   : > { %2333 = vrot.lane.b32.xlu1 %v9815_v22, %s9207_s27  ;;  %2463 = vrot.lane.b32.xlu0 %v9813_v21, %s9208_s29 }
 0x2d9   : > { %2475 = vrot.lane.b32.xlu1 %v9827_v27, %s9208_s29  ;;  %2335 = vrot.lane.b32.xlu0 %v9855_v40, %s9207_s27 }
 0x2db   : > { %v2060_v46 = vpop.permute.xlu1 %2059  ;;  %v2056_v47 = vpop.permute.xlu0 %2055 }
 0x2dd   : > { %2473 = vrot.lane.b32.xlu1 %v9823_v24, %s9208_s29  ;;  %2477 = vrot.lane.b32.xlu0 %v9825_v25, %s9208_s29 }
 0x2df   : > { %v2062_v48 = vpop.permute.xlu1 %2061  ;;  %v2058_v49 = vpop.permute.xlu0 %2057 }
 0x2e0   : > { %v2097_v51 = vsel %vm297_vm0, %v2060_v46, %v2062_v48  ;;  %v2095_v52 = vsel %vm297_vm0, %v2056_v47, %v2058_v49  ;;  %v2096_v53 = vsel %vm297_vm0, %v2058_v49, %v2060_v46 }
 0x2e1   : > { %2345 = vrot.lane.b32.xlu1 %v9875_v42, %s9207_s27  ;;  %2343 = vrot.lane.b32.xlu0 %v9831_v29, %s9207_s27 }
 0x2e2   : > { %5444 = vmatprep.subr.bf16.mxu0 %v2096_v53 }
 0x2e3   : > { %v2066_v54 = vpop.permute.xlu1 %2065  ;;  %v2064_v55 = vpop.permute.xlu0 %2063  ;;  %5445 = vmatpush1.bf16.msra.mxu0 %v2095_v52 }
 0x2e4   : > { %v2098_v56 = vsel %vm297_vm0, %v2062_v48, %v2064_v55  ;;  %2135 = vst.msk [vmem:[#allocation4 + $0xc0] sm:$0xff] %vm1998_vm10, %v2064_v55 }
 0x2e5   : > { %2487 = vrot.lane.b32.xlu1 %v9841_v34, %s9208_s29  ;;  %2485 = vrot.lane.b32.xlu0 %v9833_v30, %s9208_s29 }
 0x2e6   : > { %5882 = vmatprep.subr.bf16.mxu1 %v2098_v56 }
 0x2e7   : > { %v2070_v33 = vpop.permute.xlu1 %2069  ;;  %v2068_v18 = vpop.permute.xlu0 %2067  ;;  %5883 = vmatpush1.bf16.msra.mxu1 %v2097_v51 }
 0x2e8   : > { %v2099_v2 = vsel %vm297_vm0, %v2066_v54, %v2068_v18  ;;  %v2100_v26 = vsel %vm297_vm0, %v2068_v18, %v2070_v33 }
 0x2e9   : > { %2353 = vrot.lane.b32.xlu1 %v9839_v32, %s9207_s27  ;;  %2483 = vrot.lane.b32.xlu0 %v9835_v31, %s9208_s29 }
 0x2ea   : > { %5446 = vmatprep.subr.bf16.mxu0 %v2100_v26 }
 0x2eb   : > { %v2074_v28 = vpop.permute.xlu1 %2073  ;;  %v2072_v57 = vpop.permute.xlu0 %2071  ;;  %5447 = vmatpush1.bf16.msra.mxu0 %v2099_v2 }
 0x2ec   : > { %2140 = vst.msk [vmem:[#allocation4 + $0xe8] sm:$0xff] %vm1998_vm10, %v2074_v28  ;;  %v2101_v58 = vsel %vm297_vm0, %v2070_v33, %v2072_v57  ;;  %v2102_v37 = vsel %vm297_vm0, %v2072_v57, %v2074_v28 }
 0x2ed   : > { %2495 = vrot.lane.b32.xlu1 %v9853_v39, %s9208_s29  ;;  %2355 = vrot.lane.b32.xlu0 %v9891_v43, %s9207_s27 }
 0x2ee   : > { %5884 = vmatprep.subr.bf16.mxu1 %v2102_v37 }
 0x2ef   : > { %v2078_v59 = vpop.permute.xlu1 %2077  ;;  %v2076_v38 = vpop.permute.xlu0 %2075  ;;  %5885 = vmatpush1.bf16.msra.mxu1 %v2101_v58 }
 0x2f0   : > { %v2103_v60 = vsel %vm297_vm0, %v2076_v38, %v2078_v59 }
 0x2f1   : > { %2493 = vrot.lane.b32.xlu1 %v9843_v35, %s9208_s29  ;;  %2497 = vrot.lane.b32.xlu0 %v9851_v36, %s9208_s29 }
 0x2f3   : > { %v2082_v61 = vpop.permute.xlu1 %2081  ;;  %v2080_v62 = vpop.permute.xlu0 %2079 }
 0x2f4   : > { %v2104_v63 = vsel %vm297_vm0, %v2078_v59, %v2080_v62  ;;  %v2105_v45 = vsel %vm297_vm0, %v2080_v62, %v2082_v61 }
 0x2f5   : > { %2365 = vrot.lane.b32.xlu1 %v9901_v44, %s9207_s27  ;;  %2363 = vrot.lane.b32.xlu0 %v9857_v41, %s9207_s27 }
 0x2f6   : > { %5448 = vmatprep.subr.bf16.mxu0 %v2104_v63 }
 0x2f7   : > { %v2086_v4 = vpop.permute.xlu1 %2085  ;;  %v2084_v5 = vpop.permute.xlu0 %2083  ;;  %5449 = vmatpush1.bf16.msra.mxu0 %v2103_v60 }
 0x2f8   : > { %v2106_v6 = vsel %vm297_vm0, %v2082_v61, %v2084_v5  ;;  %2145 = vst.msk [vmem:[#allocation4 + $0x110] sm:$0xff] %vm1998_vm10, %v2084_v5 }
 0x2f9   : > { %2603 = vrot.lane.b32.xlu1 %v9811_v1, %s9209_s15  ;;  %2601 = vrot.lane.b32.xlu0 %v9821_v23, %s9209_s15 }
 0x2fa   : > { %5886 = vmatprep.subr.bf16.mxu1 %v2106_v6 }
 0x2fb   : > { %v2090_v7 = vpop.permute.xlu1 %2089  ;;  %v2088_v8 = vpop.permute.xlu0 %2087  ;;  %5887 = vmatpush1.bf16.msra.mxu1 %v2105_v45 }
 0x2fc   : > { %v2107_v9 = vsel %vm297_vm0, %v2086_v4, %v2088_v8  ;;  %v2108_v10 = vsel %vm297_vm0, %v2088_v8, %v2090_v7 }
 0x2fd   : > { %2469 = vrot.lane.b32.xlu1 %v9815_v22, %s9208_s29  ;;  %2599 = vrot.lane.b32.xlu0 %v9813_v21, %s9209_s15 }
 0x2fe   : > { %5450 = vmatprep.subr.bf16.mxu0 %v2108_v10 }
 0x2ff   : > { %v2094_v11 = vpop.permute.xlu1 %2093  ;;  %v2092_v12 = vpop.permute.xlu0 %2091  ;;  %5451 = vmatpush1.bf16.msra.mxu0 %v2107_v9 }
 0x300   : > { %2150 = vst.msk [vmem:[#allocation4 + $0x138] sm:$0xff] %vm1998_vm10, %v2094_v11  ;;  %v2109_v13 = vsel %vm297_vm0, %v2090_v7, %v2092_v12  ;;  %v2110_v14 = vsel %vm297_vm0, %v2092_v12, %v2094_v11 }
 0x301   : > { %2611 = vrot.lane.b32.xlu1 %v9827_v27, %s9209_s15  ;;  %2471 = vrot.lane.b32.xlu0 %v9855_v40, %s9208_s29 }
 0x302   : > { %5888 = vmatprep.subr.bf16.mxu1 %v2110_v14 }
 0x303   : > { %v2194_v15 = vpop.permute.xlu1 %2193  ;;  %v2192_v16 = vpop.permute.xlu0 %2191  ;;  %5889 = vmatpush1.bf16.msra.mxu1 %v2109_v13 }
 0x304   : > { %v2231_v17 = vsel %vm349_vm1, %v2192_v16, %v2194_v15 }
 0x305   : > { %2609 = vrot.lane.b32.xlu1 %v9823_v24, %s9209_s15  ;;  %2613 = vrot.lane.b32.xlu0 %v9825_v25, %s9209_s15 }
 0x307   : > { %v2198_v0 = vpop.permute.xlu1 %2197  ;;  %v2196_v19 = vpop.permute.xlu0 %2195 }
 0x308   : > { %v2232_v20 = vsel %vm349_vm1, %v2194_v15, %v2196_v19  ;;  %v2233_v3 = vsel %vm349_vm1, %v2196_v19, %v2198_v0 }
 0x309   : > { %2481 = vrot.lane.b32.xlu1 %v9875_v42, %s9208_s29  ;;  %2479 = vrot.lane.b32.xlu0 %v9831_v29, %s9208_s29 }
 0x30a   : > { %5452 = vmatprep.subr.bf16.mxu0 %v2232_v20  ;;  %v10179_v20 = vld [vmem:[#allocation3] sm:$0xff] }
 0x30b   : > { %v2202_v46 = vpop.permute.xlu1 %2201  ;;  %v2200_v47 = vpop.permute.xlu0 %2199  ;;  %5453 = vmatpush1.bf16.msra.mxu0 %v2231_v17 }
 0x30c   : > { %v2234_v48 = vsel %vm349_vm1, %v2198_v0, %v2200_v47  ;;  %2271 = vst.msk [vmem:[#allocation4 + $0x160] sm:$0xff] %vm1998_vm10, %v2200_v47  ;;  %v10187_v47 = vld [vmem:[#allocation3 + $0x30] sm:$0xff] }
 0x30d   : > { %2623 = vrot.lane.b32.xlu1 %v9841_v34, %s9209_s15  ;;  %2621 = vrot.lane.b32.xlu0 %v9833_v30, %s9209_s15 }
 0x30e   : > { %5890 = vmatprep.subr.bf16.mxu1 %v2234_v48 }
 0x30f   : > { %v2206_v49 = vpop.permute.xlu1 %2205  ;;  %v2204_v51 = vpop.permute.xlu0 %2203  ;;  %5891 = vmatpush1.bf16.msra.mxu1 %v2233_v3 }
 0x310   : > { %v2235_v52 = vsel %vm349_vm1, %v2202_v46, %v2204_v51  ;;  %v2236_v53 = vsel %vm349_vm1, %v2204_v51, %v2206_v49  ;;  %v10196_v51 = vld [vmem:[%s12603_s2 + $0x5c] ss:$44 sps:$4 sm:$0xff]  }
 0x311   : > { %2489 = vrot.lane.b32.xlu1 %v9839_v32, %s9208_s29  ;;  %2619 = vrot.lane.b32.xlu0 %v9835_v31, %s9209_s15 }
 0x312   : > { %5454 = vmatprep.subr.bf16.mxu0 %v2236_v53 }
 0x313   : > { %v2214_v54 = vpop.permute.xlu1 %2213  ;;  %v2208_v55 = vpop.permute.xlu0 %2207  ;;  %5455 = vmatpush1.bf16.msra.mxu0 %v2235_v52 }
 0x314   : > { %v2237_v56 = vsel %vm349_vm1, %v2206_v49, %v2208_v55 }
 0x315   : > { %2631 = vrot.lane.b32.xlu1 %v9853_v39, %s9209_s15  ;;  %2491 = vrot.lane.b32.xlu0 %v9891_v43, %s9208_s29 }
 0x317   : > { %v2212_v33 = vpop.permute.xlu1 %2211  ;;  %v2216_v18 = vpop.permute.xlu0 %2215 }
 0x318   : > { %v2239_v2 = vsel %vm349_vm1, %v2212_v33, %v2214_v54  ;;  %v2240_v26 = vsel %vm349_vm1, %v2214_v54, %v2216_v18  ;;  %v10204_v54 = vld [vmem:[%s12603_s2 + $0x58] ss:$44 sps:$4 sm:$0xff]  }
 0x319   : > { %2629 = vrot.lane.b32.xlu1 %v9843_v35, %s9209_s15  ;;  %2633 = vrot.lane.b32.xlu0 %v9851_v36, %s9209_s15 }
 0x31a   : > { %5456 = vmatprep.subr.bf16.mxu0 %v2240_v26 }
 0x31b   : > { %v10080_v28 = vpop.permute.xlu1 %2225  ;;  %v2224_v57 = vpop.permute.xlu0 %2223  ;;  %5457 = vmatpush1.bf16.msra.mxu0 %v2239_v2 }
 0x31c   : > { %v2244_v58 = vsel %vm349_vm1, %v2224_v57, %v10080_v28 }
 0x31d   : > { %2501 = vrot.lane.b32.xlu1 %v9901_v44, %s9208_s29  ;;  %2499 = vrot.lane.b32.xlu0 %v9857_v41, %s9208_s29 }
 0x31e   : > { %5458 = vmatprep.subr.bf16.mxu0 %v2244_v58 }
 0x31f   : > { %v2330_v37 = vpop.permute.xlu1 %2329  ;;  %v2222_v59 = vpop.permute.xlu0 %2221 }
 0x320   : > { %v2243_v38 = vsel %vm349_vm1, %v2222_v59, %v2224_v57  ;;  %v10226_v57 = vld [vmem:[#allocation3 + $0x40] sm:$0xff]  ;;  %v10233_v59 = vld [vmem:[%s12603_s2 + $0xb4] ss:$44 sps:$4 sm:$0xff]  }
 0x321   : > { %2739 = vrot.lane.b32.xlu1 %v9811_v1, %s9210_s5  ;;  %2737 = vrot.lane.b32.xlu0 %v9821_v23, %s9210_s5 }
 0x322   : > { %5459 = vmatpush1.bf16.msra.mxu0 %v2243_v38 }
 0x323   : > { %v2328_v60 = vpop.permute.xlu1 %2327  ;;  %v10093_v61 = vpop.permute.xlu0 %2331 }
 0x324   : > { %v2367_v62 = vsel %vm401_vm2, %v2328_v60, %v2330_v37  ;;  %v2368_v63 = vsel %vm401_vm2, %v2330_v37, %v10093_v61  ;;  %v10240_v60 = vld [vmem:[%s12603_s2 + $0xb0] ss:$44 sps:$4 sm:$0xff]  }
 0x325   : > { %2605 = vrot.lane.b32.xlu1 %v9815_v22, %s9209_s15  ;;  %2735 = vrot.lane.b32.xlu0 %v9813_v21, %s9210_s5 }
 0x326   : > { %5460 = vmatprep.subr.bf16.mxu0 %v2368_v63 }
 0x327   : > { %v10102_v1 = vpop.permute.xlu1 %2341  ;;  %v2340_v45 = vpop.permute.xlu0 %2339  ;;  %5461 = vmatpush1.bf16.msra.mxu0 %v2367_v62  ;;  %v10248_v62 = vld [vmem:[#allocation3 + $0x58] sm:$0xff] }
 0x328   : > { %v2372_v4 = vsel %vm401_vm2, %v2340_v45, %v10102_v1 }
 0x329   : > { %2747 = vrot.lane.b32.xlu1 %v9827_v27, %s9210_s5  ;;  %2607 = vrot.lane.b32.xlu0 %v9855_v40, %s9209_s15 }
 0x32a   : > { %5462 = vmatprep.subr.bf16.mxu0 %v2372_v4 }
 0x32b   : > { %v2210_v5 = vpop.permute.xlu1 %2209  ;;  %v2338_v22 = vpop.permute.xlu0 %2337 }
 0x32c   : > { %v2238_v6 = vsel %vm349_vm1, %v2208_v55, %v2210_v5  ;;  %2276 = vst.msk [vmem:[#allocation4 + $0x188] sm:$0xff] %vm1998_vm10, %v2210_v5  ;;  %v2371_v21 = vsel %vm401_vm2, %v2338_v22, %v2340_v45  ;;  %v10210_v55 = vld [vmem:[#allocation3 + $0x28] sm:$0xff]  ;;  %v10261_v22 = vld [vmem:[#allocation3 + $0x50] sm:$0xff] }
 0x32d   : > { %2745 = vrot.lane.b32.xlu1 %v9823_v24, %s9210_s5  ;;  %2749 = vrot.lane.b32.xlu0 %v9825_v25, %s9210_s5  ;;  %v10259_v5 = vld [vmem:[#allocation3 + $0x68] sm:$0xff] }
 0x32e   : > { %5463 = vmatpush1.bf16.msra.mxu0 %v2371_v21  ;;  %5892 = vmatprep.subr.bf16.mxu1 %v2238_v6 }
 0x32f   : > { %v10117_v27 = vpop.permute.xlu1 %2351  ;;  %v2350_v40 = vpop.permute.xlu0 %2349  ;;  %5893 = vmatpush1.bf16.msra.mxu1 %v2237_v56  ;;  %v10212_v56 = vld [vmem:[#allocation3 + $0x38] sm:$0xff] }
 0x330   : > { %v2376_v7 = vsel %vm401_vm2, %v2350_v40, %v10117_v27 }
 0x331   : > { %2617 = vrot.lane.b32.xlu1 %v9875_v42, %s9209_s15  ;;  %2615 = vrot.lane.b32.xlu0 %v9831_v29, %s9209_s15 }
 0x332   : > { %5464 = vmatprep.subr.bf16.mxu0 %v2376_v7  ;;  %v10273_v7 = vld [vmem:[%s12603_s2 + $0x108] ss:$44 sps:$4 sm:$0xff]  }
 0x333   : > { %v2218_v24 = vpop.permute.xlu1 %2217  ;;  %v2348_v8 = vpop.permute.xlu0 %2347 }
 0x334   : > { %v2241_v25 = vsel %vm349_vm1, %v2216_v18, %v2218_v24  ;;  %v2375_v9 = vsel %vm401_vm2, %v2348_v8, %v2350_v40  ;;  %v10281_v8 = vld [vmem:[#allocation3 + $0x70] sm:$0xff] }
 0x335   : > { %2759 = vrot.lane.b32.xlu1 %v9841_v34, %s9210_s5  ;;  %2757 = vrot.lane.b32.xlu0 %v9833_v30, %s9210_s5 }
 0x336   : > { %5465 = vmatpush1.bf16.msra.mxu0 %v2375_v9 }
 0x337   : > { %v2360_v10 = vpop.permute.xlu1 %2359  ;;  %v2220_v11 = vpop.permute.xlu0 %2219 }
 0x338   : > { %v2242_v42 = vsel %vm349_vm1, %v2218_v24, %v2220_v11  ;;  %2281 = vst.msk [vmem:[#allocation4 + $0x1b0] sm:$0xff] %vm1998_vm10, %v2220_v11  ;;  %v10279_v24 = vld [vmem:[#allocation3 + $0x80] sm:$0xff] }
 0x339   : > { %2625 = vrot.lane.b32.xlu1 %v9839_v32, %s9209_s15  ;;  %2755 = vrot.lane.b32.xlu0 %v9835_v31, %s9210_s5  ;;  %v10149_v31 = vld [vmem:[%s12603_s2] ss:$44 sps:$4 sm:$0xff]  }
 0x33a   : > { %5894 = vmatprep.subr.bf16.mxu1 %v2242_v42  ;;  %v10294_v42 = vld [vmem:[#allocation3 + $0x78] sm:$0xff] }
 0x33b   : > { %v2358_v29 = vpop.permute.xlu1 %2357  ;;  %v10137_v12 = vpop.permute.xlu0 %2361  ;;  %5895 = vmatpush1.bf16.msra.mxu1 %v2241_v25 }
 0x33c   : > { %v2379_v30 = vsel %vm401_vm2, %v2358_v29, %v2360_v10  ;;  %v2380_v34 = vsel %vm401_vm2, %v2360_v10, %v10137_v12  ;;  %v10296_v29 = vld [vmem:[#allocation3 + $0x88] sm:$0xff] }
 0x33d   : > { %2767 = vrot.lane.b32.xlu1 %v9853_v39, %s9210_s5  ;;  %2627 = vrot.lane.b32.xlu0 %v9891_v43, %s9209_s15 }
 0x33e   : > { %5466 = vmatprep.subr.bf16.mxu0 %v2380_v34 }
 0x33f   : > { %v2230_v32 = vpop.permute.xlu1 %2229  ;;  %v2228_v13 = vpop.permute.xlu0 %2227  ;;  %5467 = vmatpush1.bf16.msra.mxu0 %v2379_v30 }
 0x340   : > { %2286 = vst.msk [vmem:[#allocation4 + $0x1d8] sm:$0xff] %vm1998_vm10, %v2230_v32  ;;  %v2245_v14 = vsel %vm349_vm1, %v10080_v28, %v2228_v13  ;;  %v2246_v15 = vsel %vm349_vm1, %v2228_v13, %v2230_v32  ;;  %v10224_v28 = vld [vmem:[#allocation3 + $0x48] sm:$0xff]  ;;  %v10301_v32 = vld [vmem:[%s12603_s2 + $0xc] ss:$44 sps:$4 sm:$0xff]  }
 0x341   : > { %2765 = vrot.lane.b32.xlu1 %v9843_v35, %s9210_s5  ;;  %2769 = vrot.lane.b32.xlu0 %v9851_v36, %s9210_s5  ;;  %v10168_v35 = vld [vmem:[#allocation3 + $0x10] sm:$0xff] }
 0x342   : > { %5896 = vmatprep.subr.bf16.mxu1 %v2246_v15  ;;  %5469 = vmatmul.mubr.bf16.vlgmr.msra.gmra.mrb[32].mxu0 %v10149_v31  ;;  %v10311_v15 = vld [vmem:[#allocation3 + $0x98] sm:$0xff] }
 0x343   : > { %v10160_v39 = vpop.permute.xlu1 %2467  ;;  %v2466_v43 = vpop.permute.xlu0 %2465  ;;  %5897 = vmatpush1.bf16.msra.mxu1 %v2245_v14  ;;  %5478 = vmatprep.mubr.bf16.mxu0 %v10196_v51 }
 0x344   : > { %v2504_v16 = vsel %vm453_vm3, %v2466_v43, %v10160_v39 }
 0x345   : > { %2637 = vrot.lane.b32.xlu1 %v9901_v44, %s9209_s15  ;;  %2635 = vrot.lane.b32.xlu0 %v9857_v41, %s9209_s15  ;;  %v10177_v44 = vld [vmem:[#allocation3 + $0x18] sm:$0xff]  ;;  %s12631_s15 = smov 120  }
 0x346   : > { %5509 = vmatprep.subr.bf16.mxu0 %v2504_v16 }
 0x347   : > { %v2334_v36 = vpop.permute.xlu1 %2333  ;;  %v2464_v17 = vpop.permute.xlu0 %2463 }
 0x348   : > { %v2369_v0 = vsel %vm401_vm2, %v10093_v61, %v2334_v36  ;;  %v2503_v19 = vsel %vm453_vm3, %v2464_v17, %v2466_v43  ;;  %v10246_v61 = vld [vmem:[#allocation3 + $0x60] sm:$0xff]  ;;  %v10313_v43 = vld [vmem:[#allocation3 + $0x90] sm:$0xff]  ;;  %v10324_v17 = vld [vmem:[#allocation3 + $0x8] sm:$0xff] }
 0x349   : > { %2875 = vrot.lane.b32.xlu1 %v10168_v35, %s9211_s6  ;;  %2873 = vrot.lane.b32.xlu0 %v9821_v23, %s9211_s6  ;;  %v10189_v23 = vld [vmem:[#allocation3 + $0x20] sm:$0xff] }
 0x34a   : > { %5510 = vmatpush1.bf16.msra.mxu0 %v2503_v19 }
 0x34b   : > { %v2476_v41 = vpop.permute.xlu1 %2475  ;;  %v2336_v3 = vpop.permute.xlu0 %2335  ;;  %5479 = vmatmul.mubr.bf16.gmra.mrb[36].mxu0 %v10204_v54 }
 0x34c   : > { %v2370_v46 = vsel %vm401_vm2, %v2334_v36, %v2336_v3  ;;  %2407 = vst.msk [vmem:[#allocation4 + $0x200] sm:$0xff] %vm1998_vm10, %v2336_v3  ;;  %5488 = vmatprep.mubr.bf16.mxu0 %v10233_v59 }
 0x34d   : > { %2741 = vrot.lane.b32.xlu1 %v10177_v44, %s9210_s5  ;;  %2871 = vrot.lane.b32.xlu0 %v10179_v20, %s9211_s6 }
 0x34e   : > { %5898 = vmatprep.subr.bf16.mxu1 %v2370_v46 }
 0x34f   : > { %v2474_v48 = vpop.permute.xlu1 %2473  ;;  %v10191_v49 = vpop.permute.xlu0 %2477  ;;  %5899 = vmatpush1.bf16.msra.mxu1 %v2369_v0 }
 0x350   : > { %v2507_v52 = vsel %vm453_vm3, %v2474_v48, %v2476_v41  ;;  %v2508_v53 = vsel %vm453_vm3, %v2476_v41, %v10191_v49 }
 0x351   : > { %2883 = vrot.lane.b32.xlu1 %v10187_v47, %s9211_s6  ;;  %2743 = vrot.lane.b32.xlu0 %v10189_v23, %s9210_s5 }
 0x352   : > { %5511 = vmatprep.subr.bf16.mxu0 %v2508_v53 }
 0x353   : > { %v2346_v33 = vpop.permute.xlu1 %2345  ;;  %v2344_v18 = vpop.permute.xlu0 %2343  ;;  %5512 = vmatpush1.bf16.msra.mxu0 %v2507_v52 }
 0x354   : > { %2412 = vst.msk [vmem:[#allocation4 + $0x228] sm:$0xff] %vm1998_vm10, %v2346_v33  ;;  %v2373_v2 = vsel %vm401_vm2, %v10102_v1, %v2344_v18  ;;  %v2374_v26 = vsel %vm401_vm2, %v2344_v18, %v2346_v33  ;;  %5489 = vmatmul.mubr.bf16.gmra.mrb[40].mxu0 %v10240_v60 }
 0x355   : > { %2881 = vrot.lane.b32.xlu1 %v10210_v55, %s9211_s6  ;;  %2885 = vrot.lane.b32.xlu0 %v10212_v56, %s9211_s6 }
 0x356   : > { %5900 = vmatprep.subr.bf16.mxu1 %v2374_v26 }
 0x357   : > { %v10228_v58 = vpop.permute.xlu1 %2487  ;;  %v2486_v37 = vpop.permute.xlu0 %2485  ;;  %5901 = vmatpush1.bf16.msra.mxu1 %v2373_v2 }
 0x358   : > { %v2512_v38 = vsel %vm453_vm3, %v2486_v37, %v10228_v58 }
 0x359   : > { %2753 = vrot.lane.b32.xlu1 %v10224_v28, %s9210_s5  ;;  %2751 = vrot.lane.b32.xlu0 %v10226_v57, %s9210_s5 }
 0x35a   : > { %5513 = vmatprep.subr.bf16.mxu0 %v2512_v38 }
 0x35b   : > { %v2354_v63 = vpop.permute.xlu1 %2353  ;;  %v2484_v1 = vpop.permute.xlu0 %2483 }
 0x35c   : > { %v2377_v45 = vsel %vm401_vm2, %v10117_v27, %v2354_v63  ;;  %v2511_v4 = vsel %vm453_vm3, %v2484_v1, %v2486_v37  ;;  %v10266_v27 = vld [vmem:[%s12603_s2 + $0x10c] ss:$44 sps:$4 sm:$0xff]  }
 0x35d   : > { %2895 = vrot.lane.b32.xlu1 %v10246_v61, %s9211_s6  ;;  %2893 = vrot.lane.b32.xlu0 %v10248_v62, %s9211_s6 }
 0x35e   : > { %5514 = vmatpush1.bf16.msra.mxu0 %v2511_v4  ;;  %5498 = vmatprep.mubr.bf16.mxu0 %v10266_v27 }
 0x35f   : > { %v2496_v6 = vpop.permute.xlu1 %2495  ;;  %v2356_v21 = vpop.permute.xlu0 %2355  ;;  %5499 = vmatmul.mubr.bf16.gmra.mrb[44].mxu0 %v10273_v7 }
 0x360   : > { %v2378_v40 = vsel %vm401_vm2, %v2354_v63, %v2356_v21  ;;  %2417 = vst.msk [vmem:[#allocation4 + $0x250] sm:$0xff] %vm1998_vm10, %v2356_v21  ;;  %5541 = vmatprep.mubr.bf16.mxu0 %v10301_v32 }
 0x361   : > { %2761 = vrot.lane.b32.xlu1 %v10259_v5, %s9210_s5  ;;  %2891 = vrot.lane.b32.xlu0 %v10261_v22, %s9211_s6 }
 0x362   : > { %5902 = vmatprep.subr.bf16.mxu1 %v2378_v40 }
 0x363   : > { %v2494_v25 = vpop.permute.xlu1 %2493  ;;  %v10284_v9 = vpop.permute.xlu0 %2497  ;;  %5903 = vmatpush1.bf16.msra.mxu1 %v2377_v45 }
 0x364   : > { %v2515_v10 = vsel %vm453_vm3, %v2494_v25, %v2496_v6  ;;  %v2516_v11 = vsel %vm453_vm3, %v2496_v6, %v10284_v9 }
 0x365   : > { %2903 = vrot.lane.b32.xlu1 %v10279_v24, %s9211_s6  ;;  %2763 = vrot.lane.b32.xlu0 %v10281_v8, %s9210_s5 }
 0x366   : > { %5515 = vmatprep.subr.bf16.mxu0 %v2516_v11 }
 0x367   : > { %v2366_v30 = vpop.permute.xlu1 %2365  ;;  %v2364_v34 = vpop.permute.xlu0 %2363  ;;  %5516 = vmatpush1.bf16.msra.mxu0 %v2515_v10 }
 0x368   : > { %2422 = vst.msk [vmem:[#allocation4 + $0x278] sm:$0xff] %vm1998_vm10, %v2366_v30  ;;  %v2381_v13 = vsel %vm401_vm2, %v10137_v12, %v2364_v34  ;;  %v2382_v14 = vsel %vm401_vm2, %v2364_v34, %v2366_v30  ;;  %vm12634_vm2 = vcmask 965632  }
 0x369   : > { %2901 = vrot.lane.b32.xlu1 %v10294_v42, %s9211_s6  ;;  %2905 = vrot.lane.b32.xlu0 %v10296_v29, %s9211_s6  ;;  %vm12641_vm5 = vmmov %vm12634_vm2 }
 0x36a   : > { %5904 = vmatprep.subr.bf16.mxu1 %v2382_v14 }
 0x36b   : > { %v10316_v16 = vpop.permute.xlu1 %2603  ;;  %v2602_v36 = vpop.permute.xlu0 %2601  ;;  %5905 = vmatpush1.bf16.msra.mxu1 %v2381_v13 }
 0x36c   : > { %v2640_v12 = vsel %vm505_vm4, %v2602_v36, %v10316_v16 }
 0x36d   : > { %2773 = vrot.lane.b32.xlu1 %v10311_v15, %s9210_s5  ;;  %2771 = vrot.lane.b32.xlu0 %v10313_v43, %s9210_s5  ;;  %s12632_s5 = smov 119  }
 0x36e   : > { %5517 = vmatprep.subr.bf16.mxu0 %v2640_v12  ;;  %5907 = vmatmul.mubr.bf16.vlgmr.msra.gmra.mrb[24].mxu1 %v10149_v31 }
 0x36f   : > { %v2470_v0 = vpop.permute.xlu1 %2469  ;;  %v2600_v19 = vpop.permute.xlu0 %2599  ;;  %5916 = vmatprep.mubr.bf16.mxu1 %v10196_v51 }
 0x370   : > { %v2505_v41 = vsel %vm453_vm3, %v10160_v39, %v2470_v0  ;;  %v2639_v3 = vsel %vm505_vm4, %v2600_v19, %v2602_v36 }
 0x371   : > { %3011 = vrot.lane.b32.xlu1 %v10168_v35, %s12631_s15  ;;  %3009 = vrot.lane.b32.xlu0 %v10324_v17, %s12631_s15 }
 0x372   : > { %5518 = vmatpush1.bf16.msra.mxu0 %v2639_v3 }
 0x373   : > { %v2612_v46 = vpop.permute.xlu1 %2611  ;;  %v2472_v48 = vpop.permute.xlu0 %2471 }
 0x374   : > { %v2506_v31 = vsel %vm453_vm3, %v2470_v0, %v2472_v48  ;;  %2543 = vst.msk [vmem:[#allocation4 + $0x2a0] sm:$0xff] %vm1998_vm10, %v2472_v48 }
 0x375   : > { %2877 = vrot.lane.b32.xlu1 %v10177_v44, %s9211_s6  ;;  %3007 = vrot.lane.b32.xlu0 %v10179_v20, %s12631_s15 }
 0x376   : > { %5947 = vmatprep.subr.bf16.mxu1 %v2506_v31  ;;  %5917 = vmatmul.mubr.bf16.gmra.mrb[28].mxu1 %v10204_v54 }
 0x377   : > { %v2610_v39 = vpop.permute.xlu1 %2609  ;;  %v10342_v51 = vpop.permute.xlu0 %2613  ;;  %5948 = vmatpush1.bf16.msra.mxu1 %v2505_v41  ;;  %5926 = vmatprep.mubr.bf16.mxu1 %v10233_v59 }
 0x378   : > { %v2643_v52 = vsel %vm505_vm4, %v2610_v39, %v2612_v46  ;;  %v2644_v53 = vsel %vm505_vm4, %v2612_v46, %v10342_v51 }
 0x379   : > { %3019 = vrot.lane.b32.xlu1 %v10187_v47, %s12631_s15  ;;  %2879 = vrot.lane.b32.xlu0 %v10189_v23, %s9211_s6 }
 0x37a   : > { %5519 = vmatprep.subr.bf16.mxu0 %v2644_v53 }
 0x37b   : > { %v2482_v33 = vpop.permute.xlu1 %2481  ;;  %v2480_v54 = vpop.permute.xlu0 %2479  ;;  %5520 = vmatpush1.bf16.msra.mxu0 %v2643_v52 }
 0x37c   : > { %2548 = vst.msk [vmem:[#allocation4 + $0x2c8] sm:$0xff] %vm1998_vm10, %v2482_v33  ;;  %v2509_v18 = vsel %vm453_vm3, %v10191_v49, %v2480_v54  ;;  %v2510_v2 = vsel %vm453_vm3, %v2480_v54, %v2482_v33 }
 0x37d   : > { %3017 = vrot.lane.b32.xlu1 %v10210_v55, %s12631_s15  ;;  %3021 = vrot.lane.b32.xlu0 %v10212_v56, %s12631_s15 }
 0x37e   : > { %5949 = vmatprep.subr.bf16.mxu1 %v2510_v2  ;;  %5927 = vmatmul.mubr.bf16.gmra.mrb[32].mxu1 %v10240_v60 }
 0x37f   : > { %v10361_v26 = vpop.permute.xlu1 %2623  ;;  %v2622_v37 = vpop.permute.xlu0 %2621  ;;  %5950 = vmatpush1.bf16.msra.mxu1 %v2509_v18  ;;  %5936 = vmatprep.mubr.bf16.mxu1 %v10266_v27 }
 0x380   : > { %v2648_v49 = vsel %vm505_vm4, %v2622_v37, %v10361_v26 }
 0x381   : > { %2889 = vrot.lane.b32.xlu1 %v10224_v28, %s9211_s6  ;;  %2887 = vrot.lane.b32.xlu0 %v10226_v57, %s9211_s6 }
 0x382   : > { %5521 = vmatprep.subr.bf16.mxu0 %v2648_v49 }
 0x383   : > { %v2490_v59 = vpop.permute.xlu1 %2489  ;;  %v2620_v38 = vpop.permute.xlu0 %2619 }
 0x384   : > { %v2513_v60 = vsel %vm453_vm3, %v10228_v58, %v2490_v59  ;;  %v2647_v63 = vsel %vm505_vm4, %v2620_v38, %v2622_v37 }
 0x385   : > { %3031 = vrot.lane.b32.xlu1 %v10246_v61, %s12631_s15  ;;  %3029 = vrot.lane.b32.xlu0 %v10248_v62, %s12631_s15 }
 0x386   : > { %5522 = vmatpush1.bf16.msra.mxu0 %v2647_v63  ;;  %5937 = vmatmul.mubr.bf16.gmra.mrb[36].mxu1 %v10273_v7 }
 0x387   : > { %v2632_v1 = vpop.permute.xlu1 %2631  ;;  %v2492_v45 = vpop.permute.xlu0 %2491  ;;  %5979 = vmatprep.mubr.bf16.mxu1 %v10301_v32 }
 0x388   : > { %v2514_v4 = vsel %vm453_vm3, %v2490_v59, %v2492_v45  ;;  %2553 = vst.msk [vmem:[#allocation4 + $0x2f0] sm:$0xff] %vm1998_vm10, %v2492_v45 }
 0x389   : > { %2897 = vrot.lane.b32.xlu1 %v10259_v5, %s9211_s6  ;;  %3027 = vrot.lane.b32.xlu0 %v10261_v22, %s12631_s15 }
 0x38a   : > { %5951 = vmatprep.subr.bf16.mxu1 %v2514_v4 }
 0x38b   : > { %v2630_v58 = vpop.permute.xlu1 %2629  ;;  %v10385_v6 = vpop.permute.xlu0 %2633  ;;  %5952 = vmatpush1.bf16.msra.mxu1 %v2513_v60 }
 0x38c   : > { %v2651_v21 = vsel %vm505_vm4, %v2630_v58, %v2632_v1  ;;  %v2652_v27 = vsel %vm505_vm4, %v2632_v1, %v10385_v6 }
 0x38d   : > { %3039 = vrot.lane.b32.xlu1 %v10279_v24, %s12631_s15  ;;  %2899 = vrot.lane.b32.xlu0 %v10281_v8, %s9211_s6 }
 0x38e   : > { %5523 = vmatprep.subr.bf16.mxu0 %v2652_v27 }
 0x38f   : > { %v2502_v40 = vpop.permute.xlu1 %2501  ;;  %v2500_v7 = vpop.permute.xlu0 %2499  ;;  %5524 = vmatpush1.bf16.msra.mxu0 %v2651_v21 }
 0x390   : > { %2558 = vst.msk [vmem:[#allocation4 + $0x318] sm:$0xff] %vm1998_vm10, %v2502_v40  ;;  %v2517_v25 = vsel %vm453_vm3, %v10284_v9, %v2500_v7  ;;  %v2518_v10 = vsel %vm453_vm3, %v2500_v7, %v2502_v40  ;;  %vm12635_vm3 = vmmov %vm12634_vm2 }
 0x391   : > { %3037 = vrot.lane.b32.xlu1 %v10294_v42, %s12631_s15  ;;  %3041 = vrot.lane.b32.xlu0 %v10296_v29, %s12631_s15 }
 0x392   : > { %5953 = vmatprep.subr.bf16.mxu1 %v2518_v10 }
 0x393   : > { %v10402_v11 = vpop.permute.xlu1 %2739  ;;  %v2738_v30 = vpop.permute.xlu0 %2737  ;;  %5954 = vmatpush1.bf16.msra.mxu1 %v2517_v25 }
 0x394   : > { %v2776_v34 = vsel %vm557_vm6, %v2738_v30, %v10402_v11 }
 0x395   : > { %2909 = vrot.lane.b32.xlu1 %v10311_v15, %s9211_s6  ;;  %2907 = vrot.lane.b32.xlu0 %v10313_v43, %s9211_s6  ;;  %s12633_s6 = smov 118  }
 0x396   : > { %5525 = vmatprep.subr.bf16.mxu0 %v2776_v34 }
 0x397   : > { %v2606_v9 = vpop.permute.xlu1 %2605  ;;  %v2736_v32 = vpop.permute.xlu0 %2735 }
 0x398   : > { %v2641_v13 = vsel %vm505_vm4, %v10316_v16, %v2606_v9  ;;  %v2775_v14 = vsel %vm557_vm6, %v2736_v32, %v2738_v30 }
 0x399   : > { %3147 = vrot.lane.b32.xlu1 %v10168_v35, %s12632_s5  ;;  %3145 = vrot.lane.b32.xlu0 %v10324_v17, %s12632_s5 }
 0x39a   : > { %5526 = vmatpush1.bf16.msra.mxu0 %v2775_v14 }
 0x39b   : > { %v2748_v36 = vpop.permute.xlu1 %2747  ;;  %v2608_v12 = vpop.permute.xlu0 %2607 }
 0x39c   : > { %v2642_v0 = vsel %vm505_vm4, %v2606_v9, %v2608_v12  ;;  %2679 = vst.msk [vmem:[#allocation4 + $0x340] sm:$0xff] %vm1998_vm10, %v2608_v12 }
 0x39d   : > { %3013 = vrot.lane.b32.xlu1 %v10177_v44, %s12631_s15  ;;  %3143 = vrot.lane.b32.xlu0 %v10179_v20, %s12632_s5 }
 0x39e   : > { %5955 = vmatprep.subr.bf16.mxu1 %v2642_v0 }
 0x39f   : > { %v2746_v16 = vpop.permute.xlu1 %2745  ;;  %v10423_v19 = vpop.permute.xlu0 %2749  ;;  %5956 = vmatpush1.bf16.msra.mxu1 %v2641_v13 }
 0x3a0   : > { %v2779_v41 = vsel %vm557_vm6, %v2746_v16, %v2748_v36  ;;  %v2780_v3 = vsel %vm557_vm6, %v2748_v36, %v10423_v19 }
 0x3a1   : > { %3155 = vrot.lane.b32.xlu1 %v10187_v47, %s12632_s5  ;;  %3015 = vrot.lane.b32.xlu0 %v10189_v23, %s12631_s15 }
 0x3a2   : > { %5527 = vmatprep.subr.bf16.mxu0 %v2780_v3 }
 0x3a3   : > { %v2618_v46 = vpop.permute.xlu1 %2617  ;;  %v2616_v48 = vpop.permute.xlu0 %2615  ;;  %5528 = vmatpush1.bf16.msra.mxu0 %v2779_v41 }
 0x3a4   : > { %2684 = vst.msk [vmem:[#allocation4 + $0x368] sm:$0xff] %vm1998_vm10, %v2618_v46  ;;  %v2645_v31 = vsel %vm505_vm4, %v10342_v51, %v2616_v48  ;;  %v2646_v39 = vsel %vm505_vm4, %v2616_v48, %v2618_v46 }
 0x3a5   : > { %3153 = vrot.lane.b32.xlu1 %v10210_v55, %s12632_s5  ;;  %3157 = vrot.lane.b32.xlu0 %v10212_v56, %s12632_s5 }
 0x3a6   : > { %5957 = vmatprep.subr.bf16.mxu1 %v2646_v39 }
 0x3a7   : > { %v10440_v52 = vpop.permute.xlu1 %2759  ;;  %v2758_v53 = vpop.permute.xlu0 %2757  ;;  %5958 = vmatpush1.bf16.msra.mxu1 %v2645_v31 }
 0x3a8   : > { %v2784_v33 = vsel %vm557_vm6, %v2758_v53, %v10440_v52 }
 0x3a9   : > { %3025 = vrot.lane.b32.xlu1 %v10224_v28, %s12631_s15  ;;  %3023 = vrot.lane.b32.xlu0 %v10226_v57, %s12631_s15 }
 0x3aa   : > { %5529 = vmatprep.subr.bf16.mxu0 %v2784_v33 }
 0x3ab   : > { %v2626_v51 = vpop.permute.xlu1 %2625  ;;  %v2756_v54 = vpop.permute.xlu0 %2755 }
 0x3ac   : > { %v2649_v18 = vsel %vm505_vm4, %v10361_v26, %v2626_v51  ;;  %v2783_v2 = vsel %vm557_vm6, %v2756_v54, %v2758_v53 }
 0x3ad   : > { %3167 = vrot.lane.b32.xlu1 %v10246_v61, %s12632_s5  ;;  %3165 = vrot.lane.b32.xlu0 %v10248_v62, %s12632_s5 }
 0x3ae   : > { %5530 = vmatpush1.bf16.msra.mxu0 %v2783_v2  ;;  %v10587_v2 = vld [vmem:[#allocation3 + $0x30] sm:$0xff] }
 0x3af   : > { %v2768_v37 = vpop.permute.xlu1 %2767  ;;  %v2628_v49 = vpop.permute.xlu0 %2627 }
 0x3b0   : > { %v2650_v59 = vsel %vm505_vm4, %v2626_v51, %v2628_v49  ;;  %2689 = vst.msk [vmem:[#allocation4 + $0x390] sm:$0xff] %vm1998_vm10, %v2628_v49  ;;  %v10579_v51 = vld [vmem:[#allocation3] sm:$0xff] }
 0x3b1   : > { %3033 = vrot.lane.b32.xlu1 %v10259_v5, %s12631_s15  ;;  %3163 = vrot.lane.b32.xlu0 %v10261_v22, %s12632_s5 }
 0x3b2   : > { %5959 = vmatprep.subr.bf16.mxu1 %v2650_v59  ;;  %v10596_v59 = vld [vmem:[%s12603_s2 + $0x64] ss:$44 sps:$4 sm:$0xff]  }
 0x3b3   : > { %v2766_v26 = vpop.permute.xlu1 %2765  ;;  %v10461_v38 = vpop.permute.xlu0 %2769  ;;  %5960 = vmatpush1.bf16.msra.mxu1 %v2649_v18 }
 0x3b4   : > { %v2787_v60 = vsel %vm557_vm6, %v2766_v26, %v2768_v37  ;;  %v2788_v63 = vsel %vm557_vm6, %v2768_v37, %v10461_v38 }
 0x3b5   : > { %3175 = vrot.lane.b32.xlu1 %v10279_v24, %s12632_s5  ;;  %3035 = vrot.lane.b32.xlu0 %v10281_v8, %s12631_s15 }
 0x3b6   : > { %5531 = vmatprep.subr.bf16.mxu0 %v2788_v63  ;;  %v10610_v63 = vld [vmem:[#allocation3 + $0x28] sm:$0xff] }
 0x3b7   : > { %v2638_v1 = vpop.permute.xlu1 %2637  ;;  %v2636_v45 = vpop.permute.xlu0 %2635  ;;  %5532 = vmatpush1.bf16.msra.mxu0 %v2787_v60  ;;  %v10604_v60 = vld [vmem:[%s12603_s2 + $0x60] ss:$44 sps:$4 sm:$0xff]  }
 0x3b8   : > { %2694 = vst.msk [vmem:[#allocation4 + $0x3b8] sm:$0xff] %vm1998_vm10, %v2638_v1  ;;  %v2653_v4 = vsel %vm505_vm4, %v10385_v6, %v2636_v45  ;;  %v2654_v58 = vsel %vm505_vm4, %v2636_v45, %v2638_v1  ;;  %v10612_v1 = vld [vmem:[#allocation3 + $0x38] sm:$0xff]  ;;  %vm12637_vm4 = vmmov %vm12634_vm2 }
 0x3b9   : > { %3173 = vrot.lane.b32.xlu1 %v10294_v42, %s12632_s5  ;;  %3177 = vrot.lane.b32.xlu0 %v10296_v29, %s12632_s5 }
 0x3ba   : > { %5961 = vmatprep.subr.bf16.mxu1 %v2654_v58 }
 0x3bb   : > { %v10478_v21 = vpop.permute.xlu1 %2875  ;;  %v2874_v27 = vpop.permute.xlu0 %2873  ;;  %5962 = vmatpush1.bf16.msra.mxu1 %v2653_v4 }
 0x3bc   : > { %v2912_v40 = vsel %vm609_vm7, %v2874_v27, %v10478_v21 }
 0x3bd   : > { %3045 = vrot.lane.b32.xlu1 %v10311_v15, %s12631_s15  ;;  %3043 = vrot.lane.b32.xlu0 %v10313_v43, %s12631_s15 }
 0x3be   : > { %5533 = vmatprep.subr.bf16.mxu0 %v2912_v40  ;;  %v10626_v40 = vld [vmem:[#allocation3 + $0x40] sm:$0xff] }
 0x3bf   : > { %v2742_v6 = vpop.permute.xlu1 %2741  ;;  %v2872_v7 = vpop.permute.xlu0 %2871 }
 0x3c0   : > { %v2777_v25 = vsel %vm557_vm6, %v10402_v11, %v2742_v6  ;;  %v2911_v10 = vsel %vm609_vm7, %v2872_v7, %v2874_v27  ;;  %v10624_v27 = vld [vmem:[#allocation3 + $0x48] sm:$0xff] }
 0x3c1   : > { %3283 = vrot.lane.b32.xlu1 %v10168_v35, %s12633_s6  ;;  %3281 = vrot.lane.b32.xlu0 %v10324_v17, %s12633_s6 }
 0x3c2   : > { %5534 = vmatpush1.bf16.msra.mxu0 %v2911_v10 }
 0x3c3   : > { %v2884_v30 = vpop.permute.xlu1 %2883  ;;  %v2744_v34 = vpop.permute.xlu0 %2743 }
 0x3c4   : > { %v2778_v9 = vsel %vm557_vm6, %v2742_v6, %v2744_v34  ;;  %2815 = vst.msk [vmem:[#allocation4 + $0x3e0] sm:$0xff] %vm1998_vm10, %v2744_v34  ;;  %v10646_v34 = vld [vmem:[#allocation3 + $0x60] sm:$0xff] }
 0x3c5   : > { %3149 = vrot.lane.b32.xlu1 %v10177_v44, %s12632_s5  ;;  %3279 = vrot.lane.b32.xlu0 %v10179_v20, %s12633_s6 }
 0x3c6   : > { %5963 = vmatprep.subr.bf16.mxu1 %v2778_v9  ;;  %v10648_v9 = vld [vmem:[#allocation3 + $0x58] sm:$0xff] }
 0x3c7   : > { %v2882_v11 = vpop.permute.xlu1 %2881  ;;  %v10499_v32 = vpop.permute.xlu0 %2885  ;;  %5964 = vmatpush1.bf16.msra.mxu1 %v2777_v25  ;;  %v10633_v25 = vld [vmem:[%s12603_s2 + $0xbc] ss:$44 sps:$4 sm:$0xff]  }
 0x3c8   : > { %v2915_v35 = vsel %vm609_vm7, %v2882_v11, %v2884_v30  ;;  %v2916_v13 = vsel %vm609_vm7, %v2884_v30, %v10499_v32  ;;  %v10640_v30 = vld [vmem:[%s12603_s2 + $0xb8] ss:$44 sps:$4 sm:$0xff]  }
 0x3c9   : > { %3291 = vrot.lane.b32.xlu1 %v10187_v47, %s12633_s6  ;;  %3151 = vrot.lane.b32.xlu0 %v10189_v23, %s12632_s5 }
 0x3ca   : > { %5535 = vmatprep.subr.bf16.mxu0 %v2916_v13 }
 0x3cb   : > { %v2754_v44 = vpop.permute.xlu1 %2753  ;;  %v2752_v14 = vpop.permute.xlu0 %2751  ;;  %5536 = vmatpush1.bf16.msra.mxu0 %v2915_v35 }
 0x3cc   : > { %2820 = vst.msk [vmem:[#allocation4 + $0x408] sm:$0xff] %vm1998_vm10, %v2754_v44  ;;  %v2781_v20 = vsel %vm557_vm6, %v10423_v19, %v2752_v14  ;;  %v2782_v36 = vsel %vm557_vm6, %v2752_v14, %v2754_v44  ;;  %v10659_v44 = vld [vmem:[#allocation3 + $0x68] sm:$0xff]  ;;  %v10661_v14 = vld [vmem:[#allocation3 + $0x50] sm:$0xff] }
 0x3cd   : > { %3289 = vrot.lane.b32.xlu1 %v10210_v55, %s12633_s6  ;;  %3293 = vrot.lane.b32.xlu0 %v10212_v56, %s12633_s6 }
 0x3ce   : > { %5965 = vmatprep.subr.bf16.mxu1 %v2782_v36 }
 0x3cf   : > { %v10516_v47 = vpop.permute.xlu1 %2895  ;;  %v2894_v23 = vpop.permute.xlu0 %2893  ;;  %5966 = vmatpush1.bf16.msra.mxu1 %v2781_v20 }
 0x3d0   : > { %v2920_v12 = vsel %vm609_vm7, %v2894_v23, %v10516_v47 }
 0x3d1   : > { %3161 = vrot.lane.b32.xlu1 %v10224_v28, %s12632_s5  ;;  %3159 = vrot.lane.b32.xlu0 %v10226_v57, %s12632_s5 }
 0x3d2   : > { %5537 = vmatprep.subr.bf16.mxu0 %v2920_v12  ;;  %v10673_v12 = vld [vmem:[%s12603_s2 + $0x110] ss:$44 sps:$4 sm:$0xff]  }
 0x3d3   : > { %v2762_v0 = vpop.permute.xlu1 %2761  ;;  %v2892_v55 = vpop.permute.xlu0 %2891 }
 0x3d4   : > { %v2785_v56 = vsel %vm557_vm6, %v10440_v52, %v2762_v0  ;;  %v2919_v16 = vsel %vm609_vm7, %v2892_v55, %v2894_v23  ;;  %v10681_v55 = vld [vmem:[#allocation3 + $0x70] sm:$0xff] }
 0x3d5   : > { %3303 = vrot.lane.b32.xlu1 %v10246_v61, %s12633_s6  ;;  %3301 = vrot.lane.b32.xlu0 %v10248_v62, %s12633_s6 }
 0x3d6   : > { %5538 = vmatpush1.bf16.msra.mxu0 %v2919_v16 }
 0x3d7   : > { %v2904_v19 = vpop.permute.xlu1 %2903  ;;  %v2764_v28 = vpop.permute.xlu0 %2763 }
 0x3d8   : > { %v2786_v41 = vsel %vm557_vm6, %v2762_v0, %v2764_v28  ;;  %2825 = vst.msk [vmem:[#allocation4 + $0x430] sm:$0xff] %vm1998_vm10, %v2764_v28  ;;  %v10679_v0 = vld [vmem:[#allocation3 + $0x80] sm:$0xff] }
 0x3d9   : > { %3169 = vrot.lane.b32.xlu1 %v10259_v5, %s12632_s5  ;;  %3299 = vrot.lane.b32.xlu0 %v10261_v22, %s12633_s6  ;;  %v10549_v5 = vld [vmem:[%s12603_s2 + $0x8] ss:$44 sps:$4 sm:$0xff]  }
 0x3da   : > { %5967 = vmatprep.subr.bf16.mxu1 %v2786_v41  ;;  %v10694_v41 = vld [vmem:[#allocation3 + $0x78] sm:$0xff] }
 0x3db   : > { %v2902_v57 = vpop.permute.xlu1 %2901  ;;  %v10537_v3 = vpop.permute.xlu0 %2905  ;;  %5968 = vmatpush1.bf16.msra.mxu1 %v2785_v56 }
 0x3dc   : > { %v2923_v61 = vsel %vm609_vm7, %v2902_v57, %v2904_v19  ;;  %v2924_v62 = vsel %vm609_vm7, %v2904_v19, %v10537_v3  ;;  %v10696_v57 = vld [vmem:[#allocation3 + $0x88] sm:$0xff] }
 0x3dd   : > { %3311 = vrot.lane.b32.xlu1 %v10279_v24, %s12633_s6  ;;  %3171 = vrot.lane.b32.xlu0 %v10281_v8, %s12632_s5 }
 0x3de   : > { %5539 = vmatprep.subr.bf16.mxu0 %v2924_v62 }
 0x3df   : > { %v2774_v22 = vpop.permute.xlu1 %2773  ;;  %v2772_v46 = vpop.permute.xlu0 %2771  ;;  %5540 = vmatpush1.bf16.msra.mxu0 %v2923_v61 }
 0x3e0   : > { %2830 = vst.msk [vmem:[#allocation4 + $0x458] sm:$0xff] %vm1998_vm10, %v2774_v22  ;;  %v2789_v48 = vsel %vm557_vm6, %v10461_v38, %v2772_v46  ;;  %v2790_v31 = vsel %vm557_vm6, %v2772_v46, %v2774_v22  ;;  %v10701_v22 = vld [vmem:[%s12603_s2 + $0x14] ss:$44 sps:$4 sm:$0xff]   ;;  %vm12638_vm6 = vmmov %vm12634_vm2 }
 0x3e1   : > { %3309 = vrot.lane.b32.xlu1 %v10294_v42, %s12633_s6  ;;  %3313 = vrot.lane.b32.xlu0 %v10296_v29, %s12633_s6  ;;  %v10568_v42 = vld [vmem:[#allocation3 + $0x10] sm:$0xff] }
 0x3e2   : > { %5969 = vmatprep.subr.bf16.mxu1 %v2790_v31  ;;  %5542 = vmatmul.mubr.bf16.vlgmr.msra.gmra.mrb[32].mxu0 %v10549_v5  ;;  %v10711_v31 = vld [vmem:[#allocation3 + $0x98] sm:$0xff] }
 0x3e3   : > { %v10560_v24 = vpop.permute.xlu1 %3011  ;;  %v3010_v8 = vpop.permute.xlu0 %3009  ;;  %5970 = vmatpush1.bf16.msra.mxu1 %v2789_v48  ;;  %5551 = vmatprep.mubr.bf16.mxu0 %v10596_v59 }
 0x3e4   : > { %v3048_v39 = vsel %vm661_vm8, %v3010_v8, %v10560_v24 }
 0x3e5   : > { %3181 = vrot.lane.b32.xlu1 %v10311_v15, %s12632_s5  ;;  %3179 = vrot.lane.b32.xlu0 %v10313_v43, %s12632_s5  ;;  %v10577_v15 = vld [vmem:[#allocation3 + $0x18] sm:$0xff]  ;;  %s12714_s5 = smov 109  }
 0x3e6   : > { %5582 = vmatprep.subr.bf16.mxu0 %v3048_v39 }
 0x3e7   : > { %v2878_v29 = vpop.permute.xlu1 %2877  ;;  %v3008_v52 = vpop.permute.xlu0 %3007 }
 0x3e8   : > { %v2913_v53 = vsel %vm609_vm7, %v10478_v21, %v2878_v29  ;;  %v3047_v33 = vsel %vm661_vm8, %v3008_v52, %v3010_v8  ;;  %v10713_v8 = vld [vmem:[#allocation3 + $0x90] sm:$0xff]  ;;  %v10724_v52 = vld [vmem:[#allocation3 + $0x8] sm:$0xff] }
 0x3e9   : > { %3419 = vrot.lane.b32.xlu1 %v10568_v42, %s9215_s10  ;;  %3417 = vrot.lane.b32.xlu0 %v10324_v17, %s9215_s10  ;;  %v10589_v17 = vld [vmem:[#allocation3 + $0x20] sm:$0xff] }
 0x3ea   : > { %5583 = vmatpush1.bf16.msra.mxu0 %v3047_v33 }
 0x3eb   : > { %v3020_v43 = vpop.permute.xlu1 %3019  ;;  %v2880_v54 = vpop.permute.xlu0 %2879  ;;  %5552 = vmatmul.mubr.bf16.gmra.mrb[36].mxu0 %v10604_v60 }
 0x3ec   : > { %v2914_v18 = vsel %vm609_vm7, %v2878_v29, %v2880_v54  ;;  %2951 = vst.msk [vmem:[#allocation4 + $0x480] sm:$0xff] %vm1998_vm10, %v2880_v54  ;;  %5561 = vmatprep.mubr.bf16.mxu0 %v10633_v25 }
 0x3ed   : > { %3285 = vrot.lane.b32.xlu1 %v10577_v15, %s12633_s6  ;;  %3415 = vrot.lane.b32.xlu0 %v10579_v51, %s9215_s10 }
 0x3ee   : > { %5971 = vmatprep.subr.bf16.mxu1 %v2914_v18 }
 0x3ef   : > { %v3018_v37 = vpop.permute.xlu1 %3017  ;;  %v10591_v49 = vpop.permute.xlu0 %3021  ;;  %5972 = vmatpush1.bf16.msra.mxu1 %v2913_v53 }
 0x3f0   : > { %v3051_v26 = vsel %vm661_vm8, %v3018_v37, %v3020_v43  ;;  %v3052_v38 = vsel %vm661_vm8, %v3020_v43, %v10591_v49 }
 0x3f1   : > { %3427 = vrot.lane.b32.xlu1 %v10587_v2, %s9215_s10  ;;  %3287 = vrot.lane.b32.xlu0 %v10589_v17, %s12633_s6 }
 0x3f2   : > { %5584 = vmatprep.subr.bf16.mxu0 %v3052_v38 }
 0x3f3   : > { %v2890_v45 = vpop.permute.xlu1 %2889  ;;  %v2888_v4 = vpop.permute.xlu0 %2887  ;;  %5585 = vmatpush1.bf16.msra.mxu0 %v3051_v26 }
 0x3f4   : > { %2956 = vst.msk [vmem:[#allocation4 + $0x4a8] sm:$0xff] %vm1998_vm10, %v2890_v45  ;;  %v2917_v58 = vsel %vm609_vm7, %v10499_v32, %v2888_v4  ;;  %v2918_v21 = vsel %vm609_vm7, %v2888_v4, %v2890_v45  ;;  %5562 = vmatmul.mubr.bf16.gmra.mrb[40].mxu0 %v10640_v30 }
 0x3f5   : > { %3425 = vrot.lane.b32.xlu1 %v10610_v63, %s9215_s10  ;;  %3429 = vrot.lane.b32.xlu0 %v10612_v1, %s9215_s10 }
 0x3f6   : > { %5973 = vmatprep.subr.bf16.mxu1 %v2918_v21 }
 0x3f7   : > { %v10628_v6 = vpop.permute.xlu1 %3031  ;;  %v3030_v7 = vpop.permute.xlu0 %3029  ;;  %5974 = vmatpush1.bf16.msra.mxu1 %v2917_v58 }
 0x3f8   : > { %v3056_v10 = vsel %vm661_vm8, %v3030_v7, %v10628_v6 }
 0x3f9   : > { %3297 = vrot.lane.b32.xlu1 %v10624_v27, %s12633_s6  ;;  %3295 = vrot.lane.b32.xlu0 %v10626_v40, %s12633_s6 }
 0x3fa   : > { %5586 = vmatprep.subr.bf16.mxu0 %v3056_v10 }
 0x3fb   : > { %v2898_v11 = vpop.permute.xlu1 %2897  ;;  %v3028_v32 = vpop.permute.xlu0 %3027 }
 0x3fc   : > { %v2921_v35 = vsel %vm609_vm7, %v10516_v47, %v2898_v11  ;;  %v3055_v13 = vsel %vm661_vm8, %v3028_v32, %v3030_v7  ;;  %v10666_v47 = vld [vmem:[%s12603_s2 + $0x114] ss:$44 sps:$4 sm:$0xff]  }
 0x3fd   : > { %3439 = vrot.lane.b32.xlu1 %v10646_v34, %s9215_s10  ;;  %3437 = vrot.lane.b32.xlu0 %v10648_v9, %s9215_s10 }
 0x3fe   : > { %5587 = vmatpush1.bf16.msra.mxu0 %v3055_v13  ;;  %5571 = vmatprep.mubr.bf16.mxu0 %v10666_v47 }
 0x3ff   : > { %v3040_v20 = vpop.permute.xlu1 %3039  ;;  %v2900_v36 = vpop.permute.xlu0 %2899  ;;  %5572 = vmatmul.mubr.bf16.gmra.mrb[44].mxu0 %v10673_v12 }
 0x400   : > { %v2922_v23 = vsel %vm609_vm7, %v2898_v11, %v2900_v36  ;;  %2961 = vst.msk [vmem:[#allocation4 + $0x4d0] sm:$0xff] %vm1998_vm10, %v2900_v36  ;;  %5614 = vmatprep.mubr.bf16.mxu0 %v10701_v22 }
 0x401   : > { %3305 = vrot.lane.b32.xlu1 %v10659_v44, %s12633_s6  ;;  %3435 = vrot.lane.b32.xlu0 %v10661_v14, %s9215_s10 }
 0x402   : > { %5975 = vmatprep.subr.bf16.mxu1 %v2922_v23 }
 0x403   : > { %v3038_v56 = vpop.permute.xlu1 %3037  ;;  %v10684_v16 = vpop.permute.xlu0 %3041  ;;  %5976 = vmatpush1.bf16.msra.mxu1 %v2921_v35 }
 0x404   : > { %v3059_v19 = vsel %vm661_vm8, %v3038_v56, %v3040_v20  ;;  %v3060_v28 = vsel %vm661_vm8, %v3040_v20, %v10684_v16 }
 0x405   : > { %3447 = vrot.lane.b32.xlu1 %v10679_v0, %s9215_s10  ;;  %3307 = vrot.lane.b32.xlu0 %v10681_v55, %s12633_s6 }
 0x406   : > { %5588 = vmatprep.subr.bf16.mxu0 %v3060_v28 }
 0x407   : > { %v2910_v61 = vpop.permute.xlu1 %2909  ;;  %v2908_v62 = vpop.permute.xlu0 %2907  ;;  %5589 = vmatpush1.bf16.msra.mxu0 %v3059_v19 }
 0x408   : > { %2966 = vst.msk [vmem:[#allocation4 + $0x4f8] sm:$0xff] %vm1998_vm10, %v2910_v61  ;;  %v2925_v46 = vsel %vm609_vm7, %v10537_v3, %v2908_v62  ;;  %v2926_v48 = vsel %vm609_vm7, %v2908_v62, %v2910_v61  ;;  %vm12639_vm7 = vmmov %vm12634_vm2 }
 0x409   : > { %3445 = vrot.lane.b32.xlu1 %v10694_v41, %s9215_s10  ;;  %3449 = vrot.lane.b32.xlu0 %v10696_v57, %s9215_s10 }
 0x40a   : > { %5977 = vmatprep.subr.bf16.mxu1 %v2926_v48 }
 0x40b   : > { %v10716_v39 = vpop.permute.xlu1 %3147  ;;  %v3146_v29 = vpop.permute.xlu0 %3145  ;;  %5978 = vmatpush1.bf16.msra.mxu1 %v2925_v46 }
 0x40c   : > { %v3184_v3 = vsel %vm713_vm9, %v3146_v29, %v10716_v39 }
 0x40d   : > { %3317 = vrot.lane.b32.xlu1 %v10711_v31, %s12633_s6  ;;  %3315 = vrot.lane.b32.xlu0 %v10713_v8, %s12633_s6  ;;  %s12636_s6 = smov 115  }
 0x40e   : > { %5590 = vmatprep.subr.bf16.mxu0 %v3184_v3  ;;  %5980 = vmatmul.mubr.bf16.vlgmr.msra.gmra.mrb[24].mxu1 %v10549_v5 }
 0x40f   : > { %v3014_v53 = vpop.permute.xlu1 %3013  ;;  %v3144_v33 = vpop.permute.xlu0 %3143  ;;  %5989 = vmatprep.mubr.bf16.mxu1 %v10596_v59 }
 0x410   : > { %v3049_v43 = vsel %vm661_vm8, %v10560_v24, %v3014_v53  ;;  %v3183_v54 = vsel %vm713_vm9, %v3144_v33, %v3146_v29 }
 0x411   : > { %3555 = vrot.lane.b32.xlu1 %v10568_v42, %s9216_s11  ;;  %3553 = vrot.lane.b32.xlu0 %v10724_v52, %s9216_s11 }
 0x412   : > { %5591 = vmatpush1.bf16.msra.mxu0 %v3183_v54 }
 0x413   : > { %v3156_v18 = vpop.permute.xlu1 %3155  ;;  %v3016_v37 = vpop.permute.xlu0 %3015 }
 0x414   : > { %v3050_v5 = vsel %vm661_vm8, %v3014_v53, %v3016_v37  ;;  %3087 = vst.msk [vmem:[#allocation4 + $0x520] sm:$0xff] %vm1998_vm10, %v3016_v37 }
 0x415   : > { %3421 = vrot.lane.b32.xlu1 %v10577_v15, %s9215_s10  ;;  %3551 = vrot.lane.b32.xlu0 %v10579_v51, %s9216_s11 }
 0x416   : > { %6020 = vmatprep.subr.bf16.mxu1 %v3050_v5  ;;  %5990 = vmatmul.mubr.bf16.gmra.mrb[28].mxu1 %v10604_v60 }
 0x417   : > { %v3154_v24 = vpop.permute.xlu1 %3153  ;;  %v10742_v59 = vpop.permute.xlu0 %3157  ;;  %6021 = vmatpush1.bf16.msra.mxu1 %v3049_v43  ;;  %5999 = vmatprep.mubr.bf16.mxu1 %v10633_v25 }
 0x418   : > { %v3187_v26 = vsel %vm713_vm9, %v3154_v24, %v3156_v18  ;;  %v3188_v38 = vsel %vm713_vm9, %v3156_v18, %v10742_v59 }
 0x419   : > { %3563 = vrot.lane.b32.xlu1 %v10587_v2, %s9216_s11  ;;  %3423 = vrot.lane.b32.xlu0 %v10589_v17, %s9215_s10 }
 0x41a   : > { %5592 = vmatprep.subr.bf16.mxu0 %v3188_v38 }
 0x41b   : > { %v3026_v45 = vpop.permute.xlu1 %3025  ;;  %v3024_v60 = vpop.permute.xlu0 %3023  ;;  %5593 = vmatpush1.bf16.msra.mxu0 %v3187_v26 }
 0x41c   : > { %3092 = vst.msk [vmem:[#allocation4 + $0x548] sm:$0xff] %vm1998_vm10, %v3026_v45  ;;  %v3053_v4 = vsel %vm661_vm8, %v10591_v49, %v3024_v60  ;;  %v3054_v58 = vsel %vm661_vm8, %v3024_v60, %v3026_v45 }
 0x41d   : > { %3561 = vrot.lane.b32.xlu1 %v10610_v63, %s9216_s11  ;;  %3565 = vrot.lane.b32.xlu0 %v10612_v1, %s9216_s11 }
 0x41e   : > { %6022 = vmatprep.subr.bf16.mxu1 %v3054_v58  ;;  %6000 = vmatmul.mubr.bf16.gmra.mrb[32].mxu1 %v10640_v30 }
 0x41f   : > { %v10761_v21 = vpop.permute.xlu1 %3167  ;;  %v3166_v7 = vpop.permute.xlu0 %3165  ;;  %6023 = vmatpush1.bf16.msra.mxu1 %v3053_v4  ;;  %6009 = vmatprep.mubr.bf16.mxu1 %v10666_v47 }
 0x420   : > { %v3192_v49 = vsel %vm713_vm9, %v3166_v7, %v10761_v21 }
 0x421   : > { %3433 = vrot.lane.b32.xlu1 %v10624_v27, %s9215_s10  ;;  %3431 = vrot.lane.b32.xlu0 %v10626_v40, %s9215_s10 }
 0x422   : > { %5594 = vmatprep.subr.bf16.mxu0 %v3192_v49 }
 0x423   : > { %v3034_v25 = vpop.permute.xlu1 %3033  ;;  %v3164_v10 = vpop.permute.xlu0 %3163 }
 0x424   : > { %v3057_v30 = vsel %vm661_vm8, %v10628_v6, %v3034_v25  ;;  %v3191_v11 = vsel %vm713_vm9, %v3164_v10, %v3166_v7 }
 0x425   : > { %3575 = vrot.lane.b32.xlu1 %v10646_v34, %s9216_s11  ;;  %3573 = vrot.lane.b32.xlu0 %v10648_v9, %s9216_s11 }
 0x426   : > { %5595 = vmatpush1.bf16.msra.mxu0 %v3191_v11  ;;  %6010 = vmatmul.mubr.bf16.gmra.mrb[36].mxu1 %v10673_v12 }
 0x427   : > { %v3176_v32 = vpop.permute.xlu1 %3175  ;;  %v3036_v35 = vpop.permute.xlu0 %3035  ;;  %6052 = vmatprep.mubr.bf16.mxu1 %v10701_v22 }
 0x428   : > { %v3058_v13 = vsel %vm661_vm8, %v3034_v25, %v3036_v35  ;;  %3097 = vst.msk [vmem:[#allocation4 + $0x570] sm:$0xff] %vm1998_vm10, %v3036_v35 }
 0x429   : > { %3441 = vrot.lane.b32.xlu1 %v10659_v44, %s9215_s10  ;;  %3571 = vrot.lane.b32.xlu0 %v10661_v14, %s9216_s11 }
 0x42a   : > { %6024 = vmatprep.subr.bf16.mxu1 %v3058_v13 }
 0x42b   : > { %v3174_v6 = vpop.permute.xlu1 %3173  ;;  %v10785_v20 = vpop.permute.xlu0 %3177  ;;  %6025 = vmatpush1.bf16.msra.mxu1 %v3057_v30 }
 0x42c   : > { %v3195_v36 = vsel %vm713_vm9, %v3174_v6, %v3176_v32  ;;  %v3196_v47 = vsel %vm713_vm9, %v3176_v32, %v10785_v20 }
 0x42d   : > { %3583 = vrot.lane.b32.xlu1 %v10679_v0, %s9216_s11  ;;  %3443 = vrot.lane.b32.xlu0 %v10681_v55, %s9215_s10 }
 0x42e   : > { %5596 = vmatprep.subr.bf16.mxu0 %v3196_v47 }
 0x42f   : > { %v3046_v23 = vpop.permute.xlu1 %3045  ;;  %v3044_v12 = vpop.permute.xlu0 %3043  ;;  %5597 = vmatpush1.bf16.msra.mxu0 %v3195_v36 }
 0x430   : > { %3102 = vst.msk [vmem:[#allocation4 + $0x598] sm:$0xff] %vm1998_vm10, %v3046_v23  ;;  %v3061_v56 = vsel %vm661_vm8, %v10684_v16, %v3044_v12  ;;  %v3062_v19 = vsel %vm661_vm8, %v3044_v12, %v3046_v23  ;;  %vm12640_vm8 = vmmov %vm12634_vm2 }
 0x431   : > { %3581 = vrot.lane.b32.xlu1 %v10694_v41, %s9216_s11  ;;  %3585 = vrot.lane.b32.xlu0 %v10696_v57, %s9216_s11 }
 0x432   : > { %6026 = vmatprep.subr.bf16.mxu1 %v3062_v19 }
 0x433   : > { %v10802_v28 = vpop.permute.xlu1 %3283  ;;  %v3282_v61 = vpop.permute.xlu0 %3281  ;;  %6027 = vmatpush1.bf16.msra.mxu1 %v3061_v56 }
 0x434   : > { %v3320_v62 = vsel %vm12634_vm2, %v3282_v61, %v10802_v28 }
 0x435   : > { %3453 = vrot.lane.b32.xlu1 %v10711_v31, %s9215_s10  ;;  %3451 = vrot.lane.b32.xlu0 %v10713_v8, %s9215_s10  ;;  %s12645_s10 = smov 114  }
 0x436   : > { %5598 = vmatprep.subr.bf16.mxu0 %v3320_v62 }
 0x437   : > { %v3150_v16 = vpop.permute.xlu1 %3149  ;;  %v3280_v22 = vpop.permute.xlu0 %3279 }
 0x438   : > { %v3185_v46 = vsel %vm713_vm9, %v10716_v39, %v3150_v16  ;;  %v3319_v48 = vsel %vm12635_vm3, %v3280_v22, %v3282_v61  ;;  %vm12642_vm3 = vcmask 957440  }
 0x439   : > { %3691 = vrot.lane.b32.xlu1 %v10568_v42, %s12636_s6  ;;  %3689 = vrot.lane.b32.xlu0 %v10724_v52, %s12636_s6 }
 0x43a   : > { %5599 = vmatpush1.bf16.msra.mxu0 %v3319_v48 }
 0x43b   : > { %v3292_v29 = vpop.permute.xlu1 %3291  ;;  %v3152_v3 = vpop.permute.xlu0 %3151 }
 0x43c   : > { %v3186_v53 = vsel %vm713_vm9, %v3150_v16, %v3152_v3  ;;  %3223 = vst.msk [vmem:[#allocation4 + $0x5c0] sm:$0xff] %vm1998_vm10, %v3152_v3 }
 0x43d   : > { %3557 = vrot.lane.b32.xlu1 %v10577_v15, %s9216_s11  ;;  %3687 = vrot.lane.b32.xlu0 %v10579_v51, %s12636_s6 }
 0x43e   : > { %6028 = vmatprep.subr.bf16.mxu1 %v3186_v53 }
 0x43f   : > { %v3290_v39 = vpop.permute.xlu1 %3289  ;;  %v10823_v33 = vpop.permute.xlu0 %3293  ;;  %6029 = vmatpush1.bf16.msra.mxu1 %v3185_v46 }
 0x440   : > { %v3323_v43 = vsel %vm12637_vm4, %v3290_v39, %v3292_v29  ;;  %v3324_v54 = vsel %vm12638_vm6, %v3292_v29, %v10823_v33  ;;  %vm12644_vm4 = vmmov %vm12642_vm3 }
 0x441   : > { %3699 = vrot.lane.b32.xlu1 %v10587_v2, %s12636_s6  ;;  %3559 = vrot.lane.b32.xlu0 %v10589_v17, %s9216_s11  ;;  %vm12646_vm6 = vmmov %vm12634_vm2 }
 0x442   : > { %5600 = vmatprep.subr.bf16.mxu0 %v3324_v54 }
 0x443   : > { %v3162_v18 = vpop.permute.xlu1 %3161  ;;  %v3160_v37 = vpop.permute.xlu0 %3159  ;;  %5601 = vmatpush1.bf16.msra.mxu0 %v3323_v43 }
 0x444   : > { %3228 = vst.msk [vmem:[#allocation4 + $0x5e8] sm:$0xff] %vm1998_vm10, %v3162_v18  ;;  %v3189_v5 = vsel %vm713_vm9, %v10742_v59, %v3160_v37  ;;  %v3190_v24 = vsel %vm713_vm9, %v3160_v37, %v3162_v18 }
 0x445   : > { %3697 = vrot.lane.b32.xlu1 %v10610_v63, %s12636_s6  ;;  %3701 = vrot.lane.b32.xlu0 %v10612_v1, %s12636_s6 }
 0x446   : > { %6030 = vmatprep.subr.bf16.mxu1 %v3190_v24 }
 0x447   : > { %v10840_v26 = vpop.permute.xlu1 %3303  ;;  %v3302_v38 = vpop.permute.xlu0 %3301  ;;  %6031 = vmatpush1.bf16.msra.mxu1 %v3189_v5 }
 0x448   : > { %v3328_v45 = vsel %vm12639_vm7, %v3302_v38, %v10840_v26  ;;  %vm12647_vm7 = vmmov %vm12642_vm3 }
 0x449   : > { %3569 = vrot.lane.b32.xlu1 %v10624_v27, %s9216_s11  ;;  %3567 = vrot.lane.b32.xlu0 %v10626_v40, %s9216_s11 }
 0x44a   : > { %5602 = vmatprep.subr.bf16.mxu0 %v3328_v45 }
 0x44b   : > { %v3170_v59 = vpop.permute.xlu1 %3169  ;;  %v3300_v60 = vpop.permute.xlu0 %3299 }
 0x44c   : > { %v3193_v4 = vsel %vm713_vm9, %v10761_v21, %v3170_v59  ;;  %v3327_v58 = vsel %vm12640_vm8, %v3300_v60, %v3302_v38  ;;  %vm12648_vm8 = vmmov %vm12642_vm3 }
 0x44d   : > { %3711 = vrot.lane.b32.xlu1 %v10646_v34, %s12636_s6  ;;  %3709 = vrot.lane.b32.xlu0 %v10648_v9, %s12636_s6 }
 0x44e   : > { %5603 = vmatpush1.bf16.msra.mxu0 %v3327_v58  ;;  %v10987_v58 = vld [vmem:[#allocation3 + $0x30] sm:$0xff] }
 0x44f   : > { %v3312_v7 = vpop.permute.xlu1 %3311  ;;  %v3172_v49 = vpop.permute.xlu0 %3171 }
 0x450   : > { %v3194_v25 = vsel %vm713_vm9, %v3170_v59, %v3172_v49  ;;  %3233 = vst.msk [vmem:[#allocation4 + $0x610] sm:$0xff] %vm1998_vm10, %v3172_v49  ;;  %v10979_v59 = vld [vmem:[#allocation3] sm:$0xff] }
 0x451   : > { %3577 = vrot.lane.b32.xlu1 %v10659_v44, %s9216_s11  ;;  %3707 = vrot.lane.b32.xlu0 %v10661_v14, %s12636_s6 }
 0x452   : > { %6032 = vmatprep.subr.bf16.mxu1 %v3194_v25  ;;  %v10996_v25 = vld [vmem:[%s12603_s2 + $0x6c] ss:$44 sps:$4 sm:$0xff]  }
 0x453   : > { %v3310_v21 = vpop.permute.xlu1 %3309  ;;  %v10861_v10 = vpop.permute.xlu0 %3313  ;;  %6033 = vmatpush1.bf16.msra.mxu1 %v3193_v4 }
 0x454   : > { %v3331_v30 = vsel %vm12641_vm5, %v3310_v21, %v3312_v7  ;;  %v3332_v11 = vsel %vm12634_vm2, %v3312_v7, %v10861_v10  ;;  %vm12649_vm5 = vmmov %vm12634_vm2 }
 0x455   : > { %3719 = vrot.lane.b32.xlu1 %v10679_v0, %s12636_s6  ;;  %3579 = vrot.lane.b32.xlu0 %v10681_v55, %s9216_s11 }
 0x456   : > { %5604 = vmatprep.subr.bf16.mxu0 %v3332_v11  ;;  %v11010_v11 = vld [vmem:[#allocation3 + $0x28] sm:$0xff] }
 0x457   : > { %v3182_v32 = vpop.permute.xlu1 %3181  ;;  %v3180_v35 = vpop.permute.xlu0 %3179  ;;  %5605 = vmatpush1.bf16.msra.mxu0 %v3331_v30  ;;  %v11004_v30 = vld [vmem:[%s12603_s2 + $0x68] ss:$44 sps:$4 sm:$0xff]  }
 0x458   : > { %3238 = vst.msk [vmem:[#allocation4 + $0x638] sm:$0xff] %vm1998_vm10, %v3182_v32  ;;  %v3197_v13 = vsel %vm713_vm9, %v10785_v20, %v3180_v35  ;;  %v3198_v6 = vsel %vm713_vm9, %v3180_v35, %v3182_v32  ;;  %vm12643_vm9 = vmmov %vm12634_vm2  ;;  %v11012_v32 = vld [vmem:[#allocation3 + $0x38] sm:$0xff] }
 0x459   : > { %3717 = vrot.lane.b32.xlu1 %v10694_v41, %s12636_s6  ;;  %3721 = vrot.lane.b32.xlu0 %v10696_v57, %s12636_s6 }
 0x45a   : > { %6034 = vmatprep.subr.bf16.mxu1 %v3198_v6 }
 0x45b   : > { %v10878_v36 = vpop.permute.xlu1 %3419  ;;  %v3418_v47 = vpop.permute.xlu0 %3417  ;;  %6035 = vmatpush1.bf16.msra.mxu1 %v3197_v13 }
 0x45c   : > { %v3456_v23 = vsel %vm12642_vm3, %v3418_v47, %v10878_v36 }
 0x45d   : > { %3589 = vrot.lane.b32.xlu1 %v10711_v31, %s9216_s11  ;;  %3587 = vrot.lane.b32.xlu0 %v10713_v8, %s9216_s11 }
 0x45e   : > { %5606 = vmatprep.subr.bf16.mxu0 %v3456_v23  ;;  %v11026_v23 = vld [vmem:[#allocation3 + $0x40] sm:$0xff] }
 0x45f   : > { %v3286_v20 = vpop.permute.xlu1 %3285  ;;  %v3416_v12 = vpop.permute.xlu0 %3415 }
 0x460   : > { %v3321_v56 = vsel %vm12643_vm9, %v10802_v28, %v3286_v20  ;;  %v3455_v19 = vsel %vm12644_vm4, %v3416_v12, %v3418_v47  ;;  %vm12650_vm9 = vmmov %vm12634_vm2  ;;  %v11024_v47 = vld [vmem:[#allocation3 + $0x48] sm:$0xff] }
 0x461   : > { %3827 = vrot.lane.b32.xlu1 %v10568_v42, %s12645_s10  ;;  %3825 = vrot.lane.b32.xlu0 %v10724_v52, %s12645_s10  ;;  %vm12651_vm4 = vmmov %vm12642_vm3 }
 0x462   : > { %5607 = vmatpush1.bf16.msra.mxu0 %v3455_v19 }
 0x463   : > { %v3428_v61 = vpop.permute.xlu1 %3427  ;;  %v3288_v62 = vpop.permute.xlu0 %3287 }
 0x464   : > { %v3322_v16 = vsel %vm12646_vm6, %v3286_v20, %v3288_v62  ;;  %3359 = vst.msk [vmem:[#allocation4 + $0x660] sm:$0xff] %vm1998_vm10, %v3288_v62  ;;  %vm12652_vm6 = vmmov %vm12634_vm2  ;;  %v11046_v62 = vld [vmem:[#allocation3 + $0x60] sm:$0xff] }
 0x465   : > { %3693 = vrot.lane.b32.xlu1 %v10577_v15, %s12636_s6  ;;  %3823 = vrot.lane.b32.xlu0 %v10579_v51, %s12645_s10 }
 0x466   : > { %6036 = vmatprep.subr.bf16.mxu1 %v3322_v16  ;;  %v11048_v16 = vld [vmem:[#allocation3 + $0x58] sm:$0xff] }
 0x467   : > { %v3426_v28 = vpop.permute.xlu1 %3425  ;;  %v10899_v22 = vpop.permute.xlu0 %3429  ;;  %6037 = vmatpush1.bf16.msra.mxu1 %v3321_v56  ;;  %v11033_v56 = vld [vmem:[%s12603_s2 + $0xc4] ss:$44 sps:$4 sm:$0xff]  }
 0x468   : > { %v3459_v42 = vsel %vm12647_vm7, %v3426_v28, %v3428_v61  ;;  %v3460_v46 = vsel %vm12648_vm8, %v3428_v61, %v10899_v22  ;;  %vm12653_vm7 = vmmov %vm12642_vm3  ;;  %v11040_v61 = vld [vmem:[%s12603_s2 + $0xc0] ss:$44 sps:$4 sm:$0xff]  }
 0x469   : > { %3835 = vrot.lane.b32.xlu1 %v10587_v2, %s12645_s10  ;;  %3695 = vrot.lane.b32.xlu0 %v10589_v17, %s12636_s6  ;;  %vm12654_vm8 = vmmov %vm12642_vm3 }
 0x46a   : > { %5608 = vmatprep.subr.bf16.mxu0 %v3460_v46 }
 0x46b   : > { %v3298_v15 = vpop.permute.xlu1 %3297  ;;  %v3296_v48 = vpop.permute.xlu0 %3295  ;;  %5609 = vmatpush1.bf16.msra.mxu0 %v3459_v42 }
 0x46c   : > { %3364 = vst.msk [vmem:[#allocation4 + $0x688] sm:$0xff] %vm1998_vm10, %v3298_v15  ;;  %v3325_v51 = vsel %vm12649_vm5, %v10823_v33, %v3296_v48  ;;  %v3326_v29 = vsel %vm12634_vm2, %v3296_v48, %v3298_v15  ;;  %vm12655_vm5 = vmmov %vm12634_vm2  ;;  %v11059_v15 = vld [vmem:[#allocation3 + $0x68] sm:$0xff]  ;;  %v11061_v48 = vld [vmem:[#allocation3 + $0x50] sm:$0xff] }
 0x46d   : > { %3833 = vrot.lane.b32.xlu1 %v10610_v63, %s12645_s10  ;;  %3837 = vrot.lane.b32.xlu0 %v10612_v1, %s12645_s10 }
 0x46e   : > { %6038 = vmatprep.subr.bf16.mxu1 %v3326_v29 }
 0x46f   : > { %v10916_v2 = vpop.permute.xlu1 %3439  ;;  %v3438_v17 = vpop.permute.xlu0 %3437  ;;  %6039 = vmatpush1.bf16.msra.mxu1 %v3325_v51 }
 0x470   : > { %v3464_v3 = vsel %vm12642_vm3, %v3438_v17, %v10916_v2  ;;  %vm12656_vm3 = vcmask 949248  }
 0x471   : > { %3705 = vrot.lane.b32.xlu1 %v10624_v27, %s12636_s6  ;;  %3703 = vrot.lane.b32.xlu0 %v10626_v40, %s12636_s6 }
 0x472   : > { %5610 = vmatprep.subr.bf16.mxu0 %v3464_v3  ;;  %v11073_v3 = vld [vmem:[%s12603_s2 + $0x118] ss:$44 sps:$4 sm:$0xff]  }
 0x473   : > { %v3306_v53 = vpop.permute.xlu1 %3305  ;;  %v3436_v63 = vpop.permute.xlu0 %3435 }
 0x474   : > { %v3329_v1 = vsel %vm12650_vm9, %v10840_v26, %v3306_v53  ;;  %v3463_v39 = vsel %vm12651_vm4, %v3436_v63, %v3438_v17  ;;  %vm12657_vm9 = vmmov %vm12651_vm4  ;;  %v11081_v63 = vld [vmem:[#allocation3 + $0x70] sm:$0xff] }
 0x475   : > { %3847 = vrot.lane.b32.xlu1 %v10646_v34, %s12645_s10  ;;  %3845 = vrot.lane.b32.xlu0 %v10648_v9, %s12645_s10  ;;  %vm12658_vm4 = vmmov %vm12656_vm3 }
 0x476   : > { %5611 = vmatpush1.bf16.msra.mxu0 %v3463_v39 }
 0x477   : > { %v3448_v33 = vpop.permute.xlu1 %3447  ;;  %v3308_v27 = vpop.permute.xlu0 %3307 }
 0x478   : > { %v3330_v43 = vsel %vm12652_vm6, %v3306_v53, %v3308_v27  ;;  %3369 = vst.msk [vmem:[#allocation4 + $0x6b0] sm:$0xff] %vm1998_vm10, %v3308_v27  ;;  %vm12660_vm6 = vmmov %vm12653_vm7  ;;  %v11079_v53 = vld [vmem:[#allocation3 + $0x80] sm:$0xff] }
 0x479   : > { %3713 = vrot.lane.b32.xlu1 %v10659_v44, %s12636_s6  ;;  %3843 = vrot.lane.b32.xlu0 %v10661_v14, %s12645_s10  ;;  %v10949_v44 = vld [vmem:[%s12603_s2 + $0x10] ss:$44 sps:$4 sm:$0xff]  }
 0x47a   : > { %6040 = vmatprep.subr.bf16.mxu1 %v3330_v43  ;;  %v11094_v43 = vld [vmem:[#allocation3 + $0x78] sm:$0xff] }
 0x47b   : > { %v3446_v40 = vpop.permute.xlu1 %3445  ;;  %v10937_v54 = vpop.permute.xlu0 %3449  ;;  %6041 = vmatpush1.bf16.msra.mxu1 %v3329_v1 }
 0x47c   : > { %v3467_v34 = vsel %vm12653_vm7, %v3446_v40, %v3448_v33  ;;  %v3468_v9 = vsel %vm12654_vm8, %v3448_v33, %v10937_v54  ;;  %vm12661_vm7 = vmmov %vm12656_vm3  ;;  %v11096_v40 = vld [vmem:[#allocation3 + $0x88] sm:$0xff] }
 0x47d   : > { %3855 = vrot.lane.b32.xlu1 %v10679_v0, %s12645_s10  ;;  %3715 = vrot.lane.b32.xlu0 %v10681_v55, %s12636_s6  ;;  %vm12662_vm8 = vmmov %vm12656_vm3 }
 0x47e   : > { %5612 = vmatprep.subr.bf16.mxu0 %v3468_v9 }
 0x47f   : > { %v3318_v14 = vpop.permute.xlu1 %3317  ;;  %v3316_v18 = vpop.permute.xlu0 %3315  ;;  %5613 = vmatpush1.bf16.msra.mxu0 %v3467_v34 }
 0x480   : > { %3374 = vst.msk [vmem:[#allocation4 + $0x6d8] sm:$0xff] %vm1998_vm10, %v3318_v14  ;;  %v3333_v37 = vsel %vm12655_vm5, %v10861_v10, %v3316_v18  ;;  %v3334_v5 = vsel %vm12634_vm2, %v3316_v18, %v3318_v14  ;;  %vm12663_vm5 = vmmov %vm12660_vm6  ;;  %v11101_v14 = vld [vmem:[%s12603_s2 + $0x1c] ss:$44 sps:$4 sm:$0xff]  }
 0x481   : > { %3853 = vrot.lane.b32.xlu1 %v10694_v41, %s12645_s10  ;;  %3857 = vrot.lane.b32.xlu0 %v10696_v57, %s12645_s10  ;;  %v10968_v41 = vld [vmem:[#allocation3 + $0x10] sm:$0xff]  ;;  %vm12664_vm2 = vmmov %vm12663_vm5 }
 0x482   : > { %6042 = vmatprep.subr.bf16.mxu1 %v3334_v5  ;;  %5615 = vmatmul.mubr.bf16.vlgmr.msra.gmra.mrb[32].mxu0 %v10949_v44  ;;  %v11111_v5 = vld [vmem:[#allocation3 + $0x98] sm:$0xff] }
 0x483   : > { %v10960_v0 = vpop.permute.xlu1 %3555  ;;  %v3554_v55 = vpop.permute.xlu0 %3553  ;;  %6043 = vmatpush1.bf16.msra.mxu1 %v3333_v37  ;;  %5624 = vmatprep.mubr.bf16.mxu0 %v10996_v25 }
 0x484   : > { %v3592_v24 = vsel %vm12656_vm3, %v3554_v55, %v10960_v0 }
 0x485   : > { %3725 = vrot.lane.b32.xlu1 %v10711_v31, %s12636_s6  ;;  %3723 = vrot.lane.b32.xlu0 %v10713_v8, %s12636_s6  ;;  %v10977_v31 = vld [vmem:[#allocation3 + $0x18] sm:$0xff] }
 0x486   : > { %5655 = vmatprep.subr.bf16.mxu0 %v3592_v24 }
 0x487   : > { %v3422_v57 = vpop.permute.xlu1 %3421  ;;  %v3552_v26 = vpop.permute.xlu0 %3551 }
 0x488   : > { %v3457_v38 = vsel %vm12657_vm9, %v10878_v36, %v3422_v57  ;;  %v3591_v45 = vsel %vm12658_vm4, %v3552_v26, %v3554_v55  ;;  %vm12665_vm9 = vmmov %vm12664_vm2  ;;  %v11113_v55 = vld [vmem:[#allocation3 + $0x90] sm:$0xff]  ;;  %v11124_v26 = vld [vmem:[#allocation3 + $0x8] sm:$0xff] }
 0x489   : > { %3963 = vrot.lane.b32.xlu1 %v10968_v41, %s12659_s12  ;;  %3961 = vrot.lane.b32.xlu0 %v10724_v52, %s12659_s12  ;;  %v10989_v52 = vld [vmem:[#allocation3 + $0x20] sm:$0xff]  ;;  %vm12666_vm4 = vmmov %vm12656_vm3 }
 0x48a   : > { %5656 = vmatpush1.bf16.msra.mxu0 %v3591_v45 }
 0x48b   : > { %v3564_v8 = vpop.permute.xlu1 %3563  ;;  %v3424_v60 = vpop.permute.xlu0 %3423  ;;  %5625 = vmatmul.mubr.bf16.gmra.mrb[36].mxu0 %v11004_v30 }
 0x48c   : > { %v3458_v4 = vsel %vm12660_vm6, %v3422_v57, %v3424_v60  ;;  %3495 = vst.msk [vmem:[#allocation4 + $0x700] sm:$0xff] %vm1998_vm10, %v3424_v60  ;;  %5634 = vmatprep.mubr.bf16.mxu0 %v11033_v56  ;;  %vm12667_vm6 = vmmov %vm12664_vm2 }
 0x48d   : > { %3829 = vrot.lane.b32.xlu1 %v10977_v31, %s12645_s10  ;;  %3959 = vrot.lane.b32.xlu0 %v10979_v59, %s12659_s12 }
 0x48e   : > { %6044 = vmatprep.subr.bf16.mxu1 %v3458_v4 }
 0x48f   : > { %v3562_v7 = vpop.permute.xlu1 %3561  ;;  %v10991_v49 = vpop.permute.xlu0 %3565  ;;  %6045 = vmatpush1.bf16.msra.mxu1 %v3457_v38 }
 0x490   : > { %v3595_v21 = vsel %vm12661_vm7, %v3562_v7, %v3564_v8  ;;  %v3596_v10 = vsel %vm12662_vm8, %v3564_v8, %v10991_v49  ;;  %vm12668_vm7 = vmmov %vm12656_vm3 }
 0x491   : > { %3971 = vrot.lane.b32.xlu1 %v10987_v58, %s12659_s12  ;;  %3831 = vrot.lane.b32.xlu0 %v10989_v52, %s12645_s10  ;;  %vm12669_vm8 = vmmov %vm12656_vm3 }
 0x492   : > { %5657 = vmatprep.subr.bf16.mxu0 %v3596_v10 }
 0x493   : > { %v3434_v35 = vpop.permute.xlu1 %3433  ;;  %v3432_v13 = vpop.permute.xlu0 %3431  ;;  %5658 = vmatpush1.bf16.msra.mxu0 %v3595_v21 }
 0x494   : > { %3500 = vst.msk [vmem:[#allocation4 + $0x728] sm:$0xff] %vm1998_vm10, %v3434_v35  ;;  %v3461_v6 = vsel %vm12663_vm5, %v10899_v22, %v3432_v13  ;;  %v3462_v36 = vsel %vm12664_vm2, %v3432_v13, %v3434_v35  ;;  %5635 = vmatmul.mubr.bf16.gmra.mrb[40].mxu0 %v11040_v61  ;;  %vm12670_vm5 = vmmov %vm12664_vm2 }
 0x495   : > { %3969 = vrot.lane.b32.xlu1 %v11010_v11, %s12659_s12  ;;  %3973 = vrot.lane.b32.xlu0 %v11012_v32, %s12659_s12 }
 0x496   : > { %6046 = vmatprep.subr.bf16.mxu1 %v3462_v36 }
 0x497   : > { %v11028_v20 = vpop.permute.xlu1 %3575  ;;  %v3574_v12 = vpop.permute.xlu0 %3573  ;;  %6047 = vmatpush1.bf16.msra.mxu1 %v3461_v6 }
 0x498   : > { %v3600_v19 = vsel %vm12656_vm3, %v3574_v12, %v11028_v20  ;;  %vm12671_vm3 = vcmask 941056  }
 0x499   : > { %3841 = vrot.lane.b32.xlu1 %v11024_v47, %s12645_s10  ;;  %3839 = vrot.lane.b32.xlu0 %v11026_v23, %s12645_s10 }
 0x49a   : > { %5659 = vmatprep.subr.bf16.mxu0 %v3600_v19 }
 0x49b   : > { %v3442_v28 = vpop.permute.xlu1 %3441  ;;  %v3572_v22 = vpop.permute.xlu0 %3571 }
 0x49c   : > { %v3465_v42 = vsel %vm12665_vm9, %v10916_v2, %v3442_v28  ;;  %v3599_v46 = vsel %vm12666_vm4, %v3572_v22, %v3574_v12  ;;  %v11066_v2 = vld [vmem:[%s12603_s2 + $0x11c] ss:$44 sps:$4 sm:$0xff]   ;;  %vm12672_vm9 = vmmov %vm12666_vm4 }
 0x49d   : > { %3983 = vrot.lane.b32.xlu1 %v11046_v62, %s12659_s12  ;;  %3981 = vrot.lane.b32.xlu0 %v11048_v16, %s12659_s12  ;;  %vm12673_vm4 = vmmov %vm12671_vm3 }
 0x49e   : > { %5660 = vmatpush1.bf16.msra.mxu0 %v3599_v46  ;;  %5644 = vmatprep.mubr.bf16.mxu0 %v11066_v2 }
 0x49f   : > { %v3584_v51 = vpop.permute.xlu1 %3583  ;;  %v3444_v29 = vpop.permute.xlu0 %3443  ;;  %5645 = vmatmul.mubr.bf16.gmra.mrb[44].mxu0 %v11073_v3 }
 0x4a0   : > { %v3466_v17 = vsel %vm12667_vm6, %v3442_v28, %v3444_v29  ;;  %3505 = vst.msk [vmem:[#allocation4 + $0x750] sm:$0xff] %vm1998_vm10, %v3444_v29  ;;  %5687 = vmatprep.mubr.bf16.mxu0 %v11101_v14  ;;  %vm12674_vm6 = vmmov %vm12668_vm7 }
 0x4a1   : > { %3849 = vrot.lane.b32.xlu1 %v11059_v15, %s12645_s10  ;;  %3979 = vrot.lane.b32.xlu0 %v11061_v48, %s12659_s12 }
 0x4a2   : > { %6048 = vmatprep.subr.bf16.mxu1 %v3466_v17 }
 0x4a3   : > { %v3582_v1 = vpop.permute.xlu1 %3581  ;;  %v11084_v39 = vpop.permute.xlu0 %3585  ;;  %6049 = vmatpush1.bf16.msra.mxu1 %v3465_v42 }
 0x4a4   : > { %v3603_v33 = vsel %vm12668_vm7, %v3582_v1, %v3584_v51  ;;  %v3604_v27 = vsel %vm12669_vm8, %v3584_v51, %v11084_v39  ;;  %vm12675_vm7 = vmmov %vm12671_vm3 }
 0x4a5   : > { %3991 = vrot.lane.b32.xlu1 %v11079_v53, %s12659_s12  ;;  %3851 = vrot.lane.b32.xlu0 %v11081_v63, %s12645_s10  ;;  %vm12676_vm8 = vmmov %vm12671_vm3 }
 0x4a6   : > { %5661 = vmatprep.subr.bf16.mxu0 %v3604_v27 }
 0x4a7   : > { %v3454_v34 = vpop.permute.xlu1 %3453  ;;  %v3452_v9 = vpop.permute.xlu0 %3451  ;;  %5662 = vmatpush1.bf16.msra.mxu0 %v3603_v33 }
 0x4a8   : > { %3510 = vst.msk [vmem:[#allocation4 + $0x778] sm:$0xff] %vm1998_vm10, %v3454_v34  ;;  %v3469_v18 = vsel %vm12670_vm5, %v10937_v54, %v3452_v9  ;;  %v3470_v37 = vsel %vm12664_vm2, %v3452_v9, %v3454_v34  ;;  %vm12677_vm5 = vmmov %vm12674_vm6 }
 0x4a9   : > { %3989 = vrot.lane.b32.xlu1 %v11094_v43, %s12659_s12  ;;  %3993 = vrot.lane.b32.xlu0 %v11096_v40, %s12659_s12  ;;  %vm12678_vm2 = vmmov %vm12677_vm5 }
 0x4aa   : > { %6050 = vmatprep.subr.bf16.mxu1 %v3470_v37 }
 0x4ab   : > { %v11116_v24 = vpop.permute.xlu1 %3691  ;;  %v3690_v57 = vpop.permute.xlu0 %3689  ;;  %6051 = vmatpush1.bf16.msra.mxu1 %v3469_v18 }
 0x4ac   : > { %v3728_v54 = vsel %vm12671_vm3, %v3690_v57, %v11116_v24 }
 0x4ad   : > { %3861 = vrot.lane.b32.xlu1 %v11111_v5, %s12645_s10  ;;  %3859 = vrot.lane.b32.xlu0 %v11113_v55, %s12645_s10  ;;  %s12702_s10 = smov 110  }
 0x4ae   : > { %5663 = vmatprep.subr.bf16.mxu0 %v3728_v54  ;;  %6053 = vmatmul.mubr.bf16.vlgmr.msra.gmra.mrb[24].mxu1 %v10949_v44 }
 0x4af   : > { %v3558_v38 = vpop.permute.xlu1 %3557  ;;  %v3688_v45 = vpop.permute.xlu0 %3687  ;;  %6062 = vmatprep.mubr.bf16.mxu1 %v10996_v25 }
 0x4b0   : > { %v3593_v8 = vsel %vm12672_vm9, %v10960_v0, %v3558_v38  ;;  %v3727_v60 = vsel %vm12673_vm4, %v3688_v45, %v3690_v57  ;;  %vm12679_vm9 = vmmov %vm12678_vm2 }
 0x4b1   : > { %4099 = vrot.lane.b32.xlu1 %v10968_v41, %s9220_s7  ;;  %4097 = vrot.lane.b32.xlu0 %v11124_v26, %s9220_s7  ;;  %vm12680_vm4 = vmmov %vm12671_vm3 }
 0x4b2   : > { %5664 = vmatpush1.bf16.msra.mxu0 %v3727_v60 }
 0x4b3   : > { %v3700_v4 = vpop.permute.xlu1 %3699  ;;  %v3560_v7 = vpop.permute.xlu0 %3559 }
 0x4b4   : > { %v3594_v44 = vsel %vm12674_vm6, %v3558_v38, %v3560_v7  ;;  %3631 = vst.msk [vmem:[#allocation4 + $0x7a0] sm:$0xff] %vm1998_vm10, %v3560_v7  ;;  %vm12681_vm6 = vmmov %vm12678_vm2 }
 0x4b5   : > { %3965 = vrot.lane.b32.xlu1 %v10977_v31, %s12659_s12  ;;  %4095 = vrot.lane.b32.xlu0 %v10979_v59, %s9220_s7 }
 0x4b6   : > { %6093 = vmatprep.subr.bf16.mxu1 %v3594_v44  ;;  %6063 = vmatmul.mubr.bf16.gmra.mrb[28].mxu1 %v11004_v30 }
 0x4b7   : > { %v3698_v0 = vpop.permute.xlu1 %3697  ;;  %v11142_v25 = vpop.permute.xlu0 %3701  ;;  %6094 = vmatpush1.bf16.msra.mxu1 %v3593_v8  ;;  %6072 = vmatprep.mubr.bf16.mxu1 %v11033_v56 }
 0x4b8   : > { %v3731_v21 = vsel %vm12675_vm7, %v3698_v0, %v3700_v4  ;;  %v3732_v10 = vsel %vm12676_vm8, %v3700_v4, %v11142_v25  ;;  %vm12682_vm7 = vmmov %vm12671_vm3 }
 0x4b9   : > { %4107 = vrot.lane.b32.xlu1 %v10987_v58, %s9220_s7  ;;  %3967 = vrot.lane.b32.xlu0 %v10989_v52, %s12659_s12  ;;  %vm12683_vm8 = vmmov %vm12671_vm3 }
 0x4ba   : > { %5665 = vmatprep.subr.bf16.mxu0 %v3732_v10 }
 0x4bb   : > { %v3570_v35 = vpop.permute.xlu1 %3569  ;;  %v3568_v30 = vpop.permute.xlu0 %3567  ;;  %5666 = vmatpush1.bf16.msra.mxu0 %v3731_v21 }
 0x4bc   : > { %3636 = vst.msk [vmem:[#allocation4 + $0x7c8] sm:$0xff] %vm1998_vm10, %v3570_v35  ;;  %v3597_v13 = vsel %vm12677_vm5, %v10991_v49, %v3568_v30  ;;  %v3598_v6 = vsel %vm12678_vm2, %v3568_v30, %v3570_v35  ;;  %vm12684_vm5 = vmmov %vm12678_vm2 }
 0x4bd   : > { %4105 = vrot.lane.b32.xlu1 %v11010_v11, %s9220_s7  ;;  %4109 = vrot.lane.b32.xlu0 %v11012_v32, %s9220_s7 }
 0x4be   : > { %6095 = vmatprep.subr.bf16.mxu1 %v3598_v6  ;;  %6073 = vmatmul.mubr.bf16.gmra.mrb[32].mxu1 %v11040_v61 }
 0x4bf   : > { %v11161_v36 = vpop.permute.xlu1 %3711  ;;  %v3710_v12 = vpop.permute.xlu0 %3709  ;;  %6096 = vmatpush1.bf16.msra.mxu1 %v3597_v13  ;;  %6082 = vmatprep.mubr.bf16.mxu1 %v11066_v2 }
 0x4c0   : > { %v3736_v49 = vsel %vm12671_vm3, %v3710_v12, %v11161_v36  ;;  %vm12685_vm3 = vcmask 932864  }
 0x4c1   : > { %3977 = vrot.lane.b32.xlu1 %v11024_v47, %s12659_s12  ;;  %3975 = vrot.lane.b32.xlu0 %v11026_v23, %s12659_s12 }
 0x4c2   : > { %5667 = vmatprep.subr.bf16.mxu0 %v3736_v49 }
 0x4c3   : > { %v3578_v56 = vpop.permute.xlu1 %3577  ;;  %v3708_v19 = vpop.permute.xlu0 %3707 }
 0x4c4   : > { %v3601_v61 = vsel %vm12679_vm9, %v11028_v20, %v3578_v56  ;;  %v3735_v28 = vsel %vm12680_vm4, %v3708_v19, %v3710_v12  ;;  %vm12686_vm9 = vmmov %vm12680_vm4 }
 0x4c5   : > { %4119 = vrot.lane.b32.xlu1 %v11046_v62, %s9220_s7  ;;  %4117 = vrot.lane.b32.xlu0 %v11048_v16, %s9220_s7  ;;  %vm12687_vm4 = vmmov %vm12685_vm3 }
 0x4c6   : > { %5668 = vmatpush1.bf16.msra.mxu0 %v3735_v28  ;;  %6083 = vmatmul.mubr.bf16.gmra.mrb[36].mxu1 %v11073_v3 }
 0x4c7   : > { %v3720_v22 = vpop.permute.xlu1 %3719  ;;  %v3580_v42 = vpop.permute.xlu0 %3579  ;;  %6125 = vmatprep.mubr.bf16.mxu1 %v11101_v14 }
 0x4c8   : > { %v3602_v46 = vsel %vm12681_vm6, %v3578_v56, %v3580_v42  ;;  %3641 = vst.msk [vmem:[#allocation4 + $0x7f0] sm:$0xff] %vm1998_vm10, %v3580_v42  ;;  %vm12688_vm6 = vmmov %vm12682_vm7 }
 0x4c9   : > { %3985 = vrot.lane.b32.xlu1 %v11059_v15, %s12659_s12  ;;  %4115 = vrot.lane.b32.xlu0 %v11061_v48, %s9220_s7 }
 0x4ca   : > { %6097 = vmatprep.subr.bf16.mxu1 %v3602_v46 }
 0x4cb   : > { %v3718_v20 = vpop.permute.xlu1 %3717  ;;  %v11185_v51 = vpop.permute.xlu0 %3721  ;;  %6098 = vmatpush1.bf16.msra.mxu1 %v3601_v61 }
 0x4cc   : > { %v3739_v29 = vsel %vm12682_vm7, %v3718_v20, %v3720_v22  ;;  %v3740_v2 = vsel %vm12683_vm8, %v3720_v22, %v11185_v51  ;;  %vm12689_vm7 = vmmov %vm12685_vm3 }
 0x4cd   : > { %4127 = vrot.lane.b32.xlu1 %v11079_v53, %s9220_s7  ;;  %3987 = vrot.lane.b32.xlu0 %v11081_v63, %s12659_s12  ;;  %vm12690_vm8 = vmmov %vm12685_vm3 }
 0x4ce   : > { %5669 = vmatprep.subr.bf16.mxu0 %v3740_v2 }
 0x4cf   : > { %v3590_v17 = vpop.permute.xlu1 %3589  ;;  %v3588_v3 = vpop.permute.xlu0 %3587  ;;  %5670 = vmatpush1.bf16.msra.mxu0 %v3739_v29 }
 0x4d0   : > { %3646 = vst.msk [vmem:[#allocation4 + $0x818] sm:$0xff] %vm1998_vm10, %v3590_v17  ;;  %v3605_v1 = vsel %vm12684_vm5, %v11084_v39, %v3588_v3  ;;  %v3606_v33 = vsel %vm12678_vm2, %v3588_v3, %v3590_v17  ;;  %vm12691_vm5 = vmmov %vm12688_vm6 }
 0x4d1   : > { %4125 = vrot.lane.b32.xlu1 %v11094_v43, %s9220_s7  ;;  %4129 = vrot.lane.b32.xlu0 %v11096_v40, %s9220_s7  ;;  %vm12692_vm2 = vmmov %vm12691_vm5 }
 0x4d2   : > { %6099 = vmatprep.subr.bf16.mxu1 %v3606_v33 }
 0x4d3   : > { %v11202_v27 = vpop.permute.xlu1 %3827  ;;  %v3826_v34 = vpop.permute.xlu0 %3825  ;;  %6100 = vmatpush1.bf16.msra.mxu1 %v3605_v1 }
 0x4d4   : > { %v3864_v9 = vsel %vm12685_vm3, %v3826_v34, %v11202_v27 }
 0x4d5   : > { %3997 = vrot.lane.b32.xlu1 %v11111_v5, %s12659_s12  ;;  %3995 = vrot.lane.b32.xlu0 %v11113_v55, %s12659_s12 }
 0x4d6   : > { %5671 = vmatprep.subr.bf16.mxu0 %v3864_v9 }
 0x4d7   : > { %v3694_v39 = vpop.permute.xlu1 %3693  ;;  %v3824_v14 = vpop.permute.xlu0 %3823 }
 0x4d8   : > { %v3729_v18 = vsel %vm12686_vm9, %v11116_v24, %v3694_v39  ;;  %v3863_v37 = vsel %vm12687_vm4, %v3824_v14, %v3826_v34  ;;  %vm12693_vm9 = vmmov %vm12692_vm2 }
 0x4d9   : > { %4235 = vrot.lane.b32.xlu1 %v10968_v41, %s9221_s9  ;;  %4233 = vrot.lane.b32.xlu0 %v11124_v26, %s9221_s9  ;;  %vm12694_vm4 = vmmov %vm12685_vm3 }
 0x4da   : > { %5672 = vmatpush1.bf16.msra.mxu0 %v3863_v37 }
 0x4db   : > { %v3836_v57 = vpop.permute.xlu1 %3835  ;;  %v3696_v54 = vpop.permute.xlu0 %3695 }
 0x4dc   : > { %v3730_v38 = vsel %vm12688_vm6, %v3694_v39, %v3696_v54  ;;  %3767 = vst.msk [vmem:[#allocation4 + $0x840] sm:$0xff] %vm1998_vm10, %v3696_v54  ;;  %vm12695_vm6 = vmmov %vm12692_vm2 }
 0x4dd   : > { %4101 = vrot.lane.b32.xlu1 %v10977_v31, %s9220_s7  ;;  %4231 = vrot.lane.b32.xlu0 %v10979_v59, %s9221_s9 }
 0x4de   : > { %6101 = vmatprep.subr.bf16.mxu1 %v3730_v38 }
 0x4df   : > { %v3834_v24 = vpop.permute.xlu1 %3833  ;;  %v11223_v45 = vpop.permute.xlu0 %3837  ;;  %6102 = vmatpush1.bf16.msra.mxu1 %v3729_v18 }
 0x4e0   : > { %v3867_v8 = vsel %vm12689_vm7, %v3834_v24, %v3836_v57  ;;  %v3868_v60 = vsel %vm12690_vm8, %v3836_v57, %v11223_v45  ;;  %vm12696_vm7 = vmmov %vm12685_vm3 }
 0x4e1   : > { %4243 = vrot.lane.b32.xlu1 %v10987_v58, %s9221_s9  ;;  %4103 = vrot.lane.b32.xlu0 %v10989_v52, %s9220_s7  ;;  %vm12697_vm8 = vmmov %vm12685_vm3 }
 0x4e2   : > { %5673 = vmatprep.subr.bf16.mxu0 %v3868_v60 }
 0x4e3   : > { %v3706_v4 = vpop.permute.xlu1 %3705  ;;  %v3704_v7 = vpop.permute.xlu0 %3703  ;;  %5674 = vmatpush1.bf16.msra.mxu0 %v3867_v8 }
 0x4e4   : > { %3772 = vst.msk [vmem:[#allocation4 + $0x868] sm:$0xff] %vm1998_vm10, %v3706_v4  ;;  %v3733_v44 = vsel %vm12691_vm5, %v11142_v25, %v3704_v7  ;;  %v3734_v0 = vsel %vm12692_vm2, %v3704_v7, %v3706_v4  ;;  %vm12698_vm5 = vmmov %vm12692_vm2 }
 0x4e5   : > { %4241 = vrot.lane.b32.xlu1 %v11010_v11, %s9221_s9  ;;  %4245 = vrot.lane.b32.xlu0 %v11012_v32, %s9221_s9 }
 0x4e6   : > { %6103 = vmatprep.subr.bf16.mxu1 %v3734_v0 }
 0x4e7   : > { %v11240_v21 = vpop.permute.xlu1 %3847  ;;  %v3846_v10 = vpop.permute.xlu0 %3845  ;;  %6104 = vmatpush1.bf16.msra.mxu1 %v3733_v44 }
 0x4e8   : > { %v3872_v35 = vsel %vm12685_vm3, %v3846_v10, %v11240_v21  ;;  %vm12699_vm3 = vcmask 924672  }
 0x4e9   : > { %4113 = vrot.lane.b32.xlu1 %v11024_v47, %s9220_s7  ;;  %4111 = vrot.lane.b32.xlu0 %v11026_v23, %s9220_s7 }
 0x4ea   : > { %5675 = vmatprep.subr.bf16.mxu0 %v3872_v35 }
 0x4eb   : > { %v3714_v25 = vpop.permute.xlu1 %3713  ;;  %v3844_v30 = vpop.permute.xlu0 %3843 }
 0x4ec   : > { %v3737_v13 = vsel %vm12693_vm9, %v11161_v36, %v3714_v25  ;;  %v3871_v6 = vsel %vm12694_vm4, %v3844_v30, %v3846_v10  ;;  %vm12700_vm9 = vmmov %vm12694_vm4 }
 0x4ed   : > { %4255 = vrot.lane.b32.xlu1 %v11046_v62, %s9221_s9  ;;  %4253 = vrot.lane.b32.xlu0 %v11048_v16, %s9221_s9  ;;  %vm12701_vm4 = vmmov %vm12699_vm3 }
 0x4ee   : > { %5676 = vmatpush1.bf16.msra.mxu0 %v3871_v6  ;;  %v11387_v6 = vld [vmem:[#allocation3 + $0x30] sm:$0xff] }
 0x4ef   : > { %v3856_v12 = vpop.permute.xlu1 %3855  ;;  %v3716_v49 = vpop.permute.xlu0 %3715 }
 0x4f0   : > { %v3738_v56 = vsel %vm12695_vm6, %v3714_v25, %v3716_v49  ;;  %3777 = vst.msk [vmem:[#allocation4 + $0x890] sm:$0xff] %vm1998_vm10, %v3716_v49  ;;  %vm12703_vm6 = vmmov %vm12696_vm7  ;;  %v11379_v25 = vld [vmem:[#allocation3] sm:$0xff] }
 0x4f1   : > { %4121 = vrot.lane.b32.xlu1 %v11059_v15, %s9220_s7  ;;  %4251 = vrot.lane.b32.xlu0 %v11061_v48, %s9221_s9 }
 0x4f2   : > { %6105 = vmatprep.subr.bf16.mxu1 %v3738_v56 }
 0x4f3   : > { %v3854_v36 = vpop.permute.xlu1 %3853  ;;  %v11261_v19 = vpop.permute.xlu0 %3857  ;;  %6106 = vmatpush1.bf16.msra.mxu1 %v3737_v13 }
 0x4f4   : > { %v3875_v61 = vsel %vm12696_vm7, %v3854_v36, %v3856_v12  ;;  %v3876_v28 = vsel %vm12697_vm8, %v3856_v12, %v11261_v19  ;;  %vm12704_vm7 = vmmov %vm12699_vm3 }
 0x4f5   : > { %4263 = vrot.lane.b32.xlu1 %v11079_v53, %s9221_s9  ;;  %4123 = vrot.lane.b32.xlu0 %v11081_v63, %s9220_s7  ;;  %vm12705_vm8 = vmmov %vm12699_vm3 }
 0x4f6   : > { %5677 = vmatprep.subr.bf16.mxu0 %v3876_v28 }
 0x4f7   : > { %v3726_v22 = vpop.permute.xlu1 %3725  ;;  %v3724_v42 = vpop.permute.xlu0 %3723  ;;  %5678 = vmatpush1.bf16.msra.mxu0 %v3875_v61  ;;  %v11402_v61 = vld [vmem:[#allocation3 + $0x38] sm:$0xff] }
 0x4f8   : > { %3782 = vst.msk [vmem:[#allocation4 + $0x8b8] sm:$0xff] %vm1998_vm10, %v3726_v22  ;;  %v3741_v46 = vsel %vm12698_vm5, %v11185_v51, %v3724_v42  ;;  %v3742_v20 = vsel %vm12692_vm2, %v3724_v42, %v3726_v22  ;;  %vm12706_vm5 = vmmov %vm12703_vm6  ;;  %v11407_v42 = vld [vmem:[%s12603_s2 + $0x74] ss:$44 sps:$4 sm:$0xff]  }
 0x4f9   : > { %4261 = vrot.lane.b32.xlu1 %v11094_v43, %s9221_s9  ;;  %4265 = vrot.lane.b32.xlu0 %v11096_v40, %s9221_s9  ;;  %vm12707_vm2 = vmmov %vm12706_vm5 }
 0x4fa   : > { %6107 = vmatprep.subr.bf16.mxu1 %v3742_v20 }
 0x4fb   : > { %v11278_v29 = vpop.permute.xlu1 %3963  ;;  %v3962_v2 = vpop.permute.xlu0 %3961  ;;  %6108 = vmatpush1.bf16.msra.mxu1 %v3741_v46 }
 0x4fc   : > { %v4000_v17 = vsel %vm12699_vm3, %v3962_v2, %v11278_v29 }
 0x4fd   : > { %4133 = vrot.lane.b32.xlu1 %v11111_v5, %s9220_s7  ;;  %4131 = vrot.lane.b32.xlu0 %v11113_v55, %s9220_s7 }
 0x4fe   : > { %5679 = vmatprep.subr.bf16.mxu0 %v4000_v17  ;;  %v11424_v17 = vld [vmem:[#allocation3 + $0x40] sm:$0xff] }
 0x4ff   : > { %v3830_v51 = vpop.permute.xlu1 %3829  ;;  %v3960_v3 = vpop.permute.xlu0 %3959 }
 0x500   : > { %v3865_v1 = vsel %vm12700_vm9, %v11202_v27, %v3830_v51  ;;  %v3999_v33 = vsel %vm12701_vm4, %v3960_v3, %v3962_v2  ;;  %vm12708_vm9 = vmmov %vm12707_vm2  ;;  %v11422_v2 = vld [vmem:[#allocation3 + $0x48] sm:$0xff] }
 0x501   : > { %4371 = vrot.lane.b32.xlu1 %v10968_v41, %s12702_s10  ;;  %4369 = vrot.lane.b32.xlu0 %v11124_v26, %s12702_s10  ;;  %vm12709_vm4 = vmmov %vm12699_vm3 }
 0x502   : > { %5680 = vmatpush1.bf16.msra.mxu0 %v3999_v33  ;;  %v11436_v33 = vld [vmem:[#allocation3 + $0x60] sm:$0xff] }
 0x503   : > { %v3972_v34 = vpop.permute.xlu1 %3971  ;;  %v3832_v9 = vpop.permute.xlu0 %3831 }
 0x504   : > { %v3866_v39 = vsel %vm12703_vm6, %v3830_v51, %v3832_v9  ;;  %3903 = vst.msk [vmem:[#allocation4 + $0x8e0] sm:$0xff] %vm1998_vm10, %v3832_v9  ;;  %vm12710_vm6 = vmmov %vm12707_vm2 }
 0x505   : > { %4237 = vrot.lane.b32.xlu1 %v10977_v31, %s9221_s9  ;;  %4367 = vrot.lane.b32.xlu0 %v10979_v59, %s12702_s10 }
 0x506   : > { %6109 = vmatprep.subr.bf16.mxu1 %v3866_v39 }
 0x507   : > { %v3970_v27 = vpop.permute.xlu1 %3969  ;;  %v11299_v14 = vpop.permute.xlu0 %3973  ;;  %6110 = vmatpush1.bf16.msra.mxu1 %v3865_v1 }
 0x508   : > { %v4003_v41 = vsel %vm12704_vm7, %v3970_v27, %v3972_v34  ;;  %v4004_v18 = vsel %vm12705_vm8, %v3972_v34, %v11299_v14  ;;  %vm12711_vm7 = vmmov %vm12699_vm3  ;;  %v11438_v34 = vld [vmem:[#allocation3 + $0x58] sm:$0xff]  ;;  %v11443_v27 = vld [vmem:[%s12603_s2 + $0xcc] ss:$44 sps:$4 sm:$0xff]  }
 0x509   : > { %4379 = vrot.lane.b32.xlu1 %v10987_v58, %s12702_s10  ;;  %4239 = vrot.lane.b32.xlu0 %v10989_v52, %s9221_s9  ;;  %vm12712_vm8 = vmmov %vm12699_vm3 }
 0x50a   : > { %5681 = vmatprep.subr.bf16.mxu0 %v4004_v18  ;;  %v11451_v18 = vld [vmem:[%s12603_s2 + $0xc8] ss:$44 sps:$4 sm:$0xff]  }
 0x50b   : > { %v3842_v31 = vpop.permute.xlu1 %3841  ;;  %v3840_v37 = vpop.permute.xlu0 %3839  ;;  %5682 = vmatpush1.bf16.msra.mxu0 %v4003_v41 }
 0x50c   : > { %3908 = vst.msk [vmem:[#allocation4 + $0x908] sm:$0xff] %vm1998_vm10, %v3842_v31  ;;  %v3869_v59 = vsel %vm12706_vm5, %v11223_v45, %v3840_v37  ;;  %v3870_v57 = vsel %vm12707_vm2, %v3840_v37, %v3842_v31  ;;  %vm12713_vm5 = vmmov %vm12707_vm2  ;;  %v11457_v31 = vld [vmem:[#allocation3 + $0x68] sm:$0xff]  ;;  %v11459_v37 = vld [vmem:[#allocation3 + $0x50] sm:$0xff] }
 0x50d   : > { %4377 = vrot.lane.b32.xlu1 %v11010_v11, %s12702_s10  ;;  %4381 = vrot.lane.b32.xlu0 %v11012_v32, %s12702_s10 }
 0x50e   : > { %6111 = vmatprep.subr.bf16.mxu1 %v3870_v57 }
 0x50f   : > { %v11316_v58 = vpop.permute.xlu1 %3983  ;;  %v3982_v52 = vpop.permute.xlu0 %3981  ;;  %6112 = vmatpush1.bf16.msra.mxu1 %v3869_v59 }
 0x510   : > { %v4008_v54 = vsel %vm12699_vm3, %v3982_v52, %v11316_v58 }
 0x511   : > { %4249 = vrot.lane.b32.xlu1 %v11024_v47, %s9221_s9  ;;  %4247 = vrot.lane.b32.xlu0 %v11026_v23, %s9221_s9 }
 0x512   : > { %5683 = vmatprep.subr.bf16.mxu0 %v4008_v54  ;;  %v11471_v54 = vld [vmem:[#allocation3 + $0x70] sm:$0xff] }
 0x513   : > { %v3850_v38 = vpop.permute.xlu1 %3849  ;;  %v3980_v11 = vpop.permute.xlu0 %3979 }
 0x514   : > { %v3873_v32 = vsel %vm12708_vm9, %v11240_v21, %v3850_v38  ;;  %v4007_v24 = vsel %vm12709_vm4, %v3980_v11, %v3982_v52  ;;  %vm12715_vm9 = vmmov %vm12699_vm3  ;;  %v11469_v52 = vld [vmem:[#allocation3 + $0x80] sm:$0xff] }
 0x515   : > { %4391 = vrot.lane.b32.xlu1 %v11046_v62, %s12702_s10  ;;  %4389 = vrot.lane.b32.xlu0 %v11048_v16, %s12702_s10  ;;  %vm12716_vm4 = vmmov %vm12699_vm3 }
 0x516   : > { %5684 = vmatpush1.bf16.msra.mxu0 %v4007_v24 }
 0x517   : > { %v3992_v45 = vpop.permute.xlu1 %3991  ;;  %v3852_v47 = vpop.permute.xlu0 %3851 }
 0x518   : > { %v3874_v8 = vsel %vm12710_vm6, %v3850_v38, %v3852_v47  ;;  %3913 = vst.msk [vmem:[#allocation4 + $0x930] sm:$0xff] %vm1998_vm10, %v3852_v47  ;;  %vm12717_vm6 = vmmov %vm12699_vm3  ;;  %v11486_v47 = vld [vmem:[%s12603_s2 + $0x120] ss:$44 sps:$4 sm:$0xff]  }
 0x519   : > { %4257 = vrot.lane.b32.xlu1 %v11059_v15, %s9221_s9  ;;  %4387 = vrot.lane.b32.xlu0 %v11061_v48, %s12702_s10  ;;  %v11349_v15 = vld [vmem:[%s12603_s2 + $0x18] ss:$44 sps:$4 sm:$0xff]  }
 0x51a   : > { %6113 = vmatprep.subr.bf16.mxu1 %v3874_v8  ;;  %v11492_v8 = vld [vmem:[#allocation3 + $0x78] sm:$0xff] }
 0x51b   : > { %v3990_v23 = vpop.permute.xlu1 %3989  ;;  %v11337_v60 = vpop.permute.xlu0 %3993  ;;  %6114 = vmatpush1.bf16.msra.mxu1 %v3873_v32  ;;  %v11478_v32 = vld [vmem:[%s12603_s2 + $0x124] ss:$44 sps:$4 sm:$0xff]  }
 0x51c   : > { %v4011_v62 = vsel %vm12711_vm7, %v3990_v23, %v3992_v45  ;;  %v4012_v16 = vsel %vm12712_vm8, %v3992_v45, %v11337_v60  ;;  %vm12718_vm7 = vmmov %vm12699_vm3  ;;  %v11494_v23 = vld [vmem:[#allocation3 + $0x88] sm:$0xff] }
 0x51d   : > { %4399 = vrot.lane.b32.xlu1 %v11079_v53, %s12702_s10  ;;  %4259 = vrot.lane.b32.xlu0 %v11081_v63, %s9221_s9  ;;  %vm12719_vm8 = vmmov %vm12699_vm3 }
 0x51e   : > { %5685 = vmatprep.subr.bf16.mxu0 %v4012_v16 }
 0x51f   : > { %v3862_v48 = vpop.permute.xlu1 %3861  ;;  %v3860_v4 = vpop.permute.xlu0 %3859  ;;  %5686 = vmatpush1.bf16.msra.mxu0 %v4011_v62 }
 0x520   : > { %3918 = vst.msk [vmem:[#allocation4 + $0x958] sm:$0xff] %vm1998_vm10, %v3862_v48  ;;  %v3877_v7 = vsel %vm12713_vm5, %v11261_v19, %v3860_v4  ;;  %v3878_v44 = vsel %vm12707_vm2, %v3860_v4, %v3862_v48  ;;  %v11400_v19 = vld [vmem:[#allocation3 + $0x28] sm:$0xff]  ;;  %vm12720_vm5 = vmmov %vm12699_vm3 }
 0x521   : > { %4397 = vrot.lane.b32.xlu1 %v11094_v43, %s12702_s10  ;;  %4401 = vrot.lane.b32.xlu0 %v11096_v40, %s12702_s10  ;;  %v11368_v43 = vld [vmem:[#allocation3 + $0x10] sm:$0xff]  ;;  %vm12721_vm2 = vmmov %vm12699_vm3 }
 0x522   : > { %6115 = vmatprep.subr.bf16.mxu1 %v3878_v44  ;;  %5688 = vmatmul.mubr.bf16.vlgmr.msra.gmra.mrb[32].mxu0 %v11349_v15  ;;  %v11508_v44 = vld [vmem:[#allocation3 + $0x90] sm:$0xff] }
 0x523   : > { %v11360_v53 = vpop.permute.xlu1 %4099  ;;  %v4098_v63 = vpop.permute.xlu0 %4097  ;;  %6116 = vmatpush1.bf16.msra.mxu1 %v3877_v7  ;;  %5697 = vmatprep.mubr.bf16.mxu0 %v11407_v42  ;;  %v11506_v7 = vld [vmem:[#allocation3 + $0x98] sm:$0xff] }
 0x524   : > { %v4136_v0 = vsel %vm1077_vm13, %v4098_v63, %v11360_v53 }
 0x525   : > { %4269 = vrot.lane.b32.xlu1 %v11111_v5, %s9221_s9  ;;  %4267 = vrot.lane.b32.xlu0 %v11113_v55, %s9221_s9  ;;  %v11377_v5 = vld [vmem:[#allocation3 + $0x18] sm:$0xff] }
 0x526   : > { %5728 = vmatprep.subr.bf16.mxu0 %v4136_v0 }
 0x527   : > { %v3966_v40 = vpop.permute.xlu1 %3965  ;;  %v4096_v21 = vpop.permute.xlu0 %4095 }
 0x528   : > { %v4001_v10 = vsel %vm12699_vm3, %v11278_v29, %v3966_v40  ;;  %v4135_v35 = vsel %vm1077_vm13, %v4096_v21, %v4098_v63  ;;  %v11416_v29 = vld [vmem:[%s12603_s2 + $0x70] ss:$44 sps:$4 sm:$0xff]  }
 0x529   : > { %4507 = vrot.lane.b32.xlu1 %v11368_v43, %s12714_s5  ;;  %4505 = vrot.lane.b32.xlu0 %v11124_v26, %s12714_s5  ;;  %v11389_v26 = vld [vmem:[#allocation3 + $0x20] sm:$0xff] }
 0x52a   : > { %5729 = vmatpush1.bf16.msra.mxu0 %v4135_v35 }
 0x52b   : > { %v4108_v55 = vpop.permute.xlu1 %4107  ;;  %v3968_v30 = vpop.permute.xlu0 %3967  ;;  %5698 = vmatmul.mubr.bf16.gmra.mrb[36].mxu0 %v11416_v29 }
 0x52c   : > { %v4002_v13 = vsel %vm12715_vm9, %v3966_v40, %v3968_v30  ;;  %4039 = vst.msk [vmem:[#allocation4 + $0x980] sm:$0xff] %vm1998_vm10, %v3968_v30  ;;  %5707 = vmatprep.mubr.bf16.mxu0 %v11443_v27 }
 0x52d   : > { %4373 = vrot.lane.b32.xlu1 %v11377_v5, %s12702_s10  ;;  %4503 = vrot.lane.b32.xlu0 %v11379_v25, %s12714_s5 }
 0x52e   : > { %6117 = vmatprep.subr.bf16.mxu1 %v4002_v13 }
 0x52f   : > { %v4106_v12 = vpop.permute.xlu1 %4105  ;;  %v11391_v49 = vpop.permute.xlu0 %4109  ;;  %6118 = vmatpush1.bf16.msra.mxu1 %v4001_v10 }
 0x530   : > { %v4139_v56 = vsel %vm1077_vm13, %v4106_v12, %v4108_v55  ;;  %v4140_v36 = vsel %vm1077_vm13, %v4108_v55, %v11391_v49 }
 0x531   : > { %4515 = vrot.lane.b32.xlu1 %v11387_v6, %s12714_s5  ;;  %4375 = vrot.lane.b32.xlu0 %v11389_v26, %s12702_s10 }
 0x532   : > { %5730 = vmatprep.subr.bf16.mxu0 %v4140_v36 }
 0x533   : > { %v3978_v28 = vpop.permute.xlu1 %3977  ;;  %v3976_v22 = vpop.permute.xlu0 %3975  ;;  %5731 = vmatpush1.bf16.msra.mxu0 %v4139_v56 }
 0x534   : > { %4044 = vst.msk [vmem:[#allocation4 + $0x9a8] sm:$0xff] %vm1998_vm10, %v3978_v28  ;;  %v4005_v46 = vsel %vm12716_vm4, %v11299_v14, %v3976_v22  ;;  %v4006_v20 = vsel %vm12717_vm6, %v3976_v22, %v3978_v28  ;;  %5708 = vmatmul.mubr.bf16.gmra.mrb[40].mxu0 %v11451_v18 }
 0x535   : > { %4513 = vrot.lane.b32.xlu1 %v11400_v19, %s12714_s5  ;;  %4517 = vrot.lane.b32.xlu0 %v11402_v61, %s12714_s5 }
 0x536   : > { %6119 = vmatprep.subr.bf16.mxu1 %v4006_v20  ;;  %5717 = vmatprep.mubr.bf16.mxu0 %v11478_v32  ;;  %v4600_v20 = vld [vmem:[#allocation3 + $0x8] sm:$0xff] }
 0x537   : > { %v11427_v51 = vpop.permute.xlu1 %4119  ;;  %v4118_v3 = vpop.permute.xlu0 %4117  ;;  %6120 = vmatpush1.bf16.msra.mxu1 %v4005_v46 }
 0x538   : > { %v4144_v1 = vsel %vm1077_vm13, %v4118_v3, %v11427_v51 }
 0x539   : > { %4385 = vrot.lane.b32.xlu1 %v11422_v2, %s12702_s10  ;;  %4383 = vrot.lane.b32.xlu0 %v11424_v17, %s12702_s10 }
 0x53a   : > { %5732 = vmatprep.subr.bf16.mxu0 %v4144_v1 }
 0x53b   : > { %v3986_v9 = vpop.permute.xlu1 %3985  ;;  %v4116_v39 = vpop.permute.xlu0 %4115 }
 0x53c   : > { %v4009_v14 = vsel %vm12718_vm7, %v11316_v58, %v3986_v9  ;;  %v4143_v41 = vsel %vm1077_vm13, %v4116_v39, %v4118_v3  ;;  %5718 = vmatmul.mubr.bf16.gmra.mrb[44].mxu0 %v11486_v47 }
 0x53d   : > { %4527 = vrot.lane.b32.xlu1 %v11436_v33, %s12714_s5  ;;  %4525 = vrot.lane.b32.xlu0 %v11438_v34, %s12714_s5 }
 0x53e   : > { %5733 = vmatpush1.bf16.msra.mxu0 %v4143_v41 }
 0x53f   : > { %v4128_v59 = vpop.permute.xlu1 %4127  ;;  %v3988_v57 = vpop.permute.xlu0 %3987 }
 0x540   : > { %v4010_v58 = vsel %vm12719_vm8, %v3986_v9, %v3988_v57  ;;  %4049 = vst.msk [vmem:[#allocation4 + $0x9d0] sm:$0xff] %vm1998_vm10, %v3988_v57 }
 0x541   : > { %4393 = vrot.lane.b32.xlu1 %v11457_v31, %s12702_s10  ;;  %4523 = vrot.lane.b32.xlu0 %v11459_v37, %s12714_s5 }
 0x542   : > { %6121 = vmatprep.subr.bf16.mxu1 %v4010_v58 }
 0x543   : > { %v4126_v38 = vpop.permute.xlu1 %4125  ;;  %v11473_v11 = vpop.permute.xlu0 %4129  ;;  %6122 = vmatpush1.bf16.msra.mxu1 %v4009_v14 }
 0x544   : > { %v4147_v24 = vsel %vm1077_vm13, %v4126_v38, %v4128_v59  ;;  %v4148_v45 = vsel %vm1077_vm13, %v4128_v59, %v11473_v11 }
 0x545   : > { %4535 = vrot.lane.b32.xlu1 %v11469_v52, %s12714_s5  ;;  %4395 = vrot.lane.b32.xlu0 %v11471_v54, %s12702_s10 }
 0x546   : > { %5734 = vmatprep.subr.bf16.mxu0 %v4148_v45 }
 0x547   : > { %v3998_v62 = vpop.permute.xlu1 %3997  ;;  %v3996_v16 = vpop.permute.xlu0 %3995  ;;  %5735 = vmatpush1.bf16.msra.mxu0 %v4147_v24 }
 0x548   : > { %4054 = vst.msk [vmem:[#allocation4 + $0x9f8] sm:$0xff] %vm1998_vm10, %v3998_v62  ;;  %v4013_v48 = vsel %vm12720_vm5, %v11337_v60, %v3996_v16  ;;  %v4014_v4 = vsel %vm12721_vm2, %v3996_v16, %v3998_v62  ;;  %v8946_v60 = vld [vmem:[%s12603_s2 + $0x24] ss:$44 sps:$4 sm:$0xff]  }
 0x549   : > { %4533 = vrot.lane.b32.xlu1 %v11492_v8, %s12714_s5  ;;  %4537 = vrot.lane.b32.xlu0 %v11494_v23, %s12714_s5 }
 0x54a   : > { %6123 = vmatprep.subr.bf16.mxu1 %v4014_v4  ;;  %5760 = vmatprep.mubr.bf16.mxu0 %v8946_v60 }
 0x54b   : > { %v11510_v63 = vpop.permute.xlu1 %4235  ;;  %v4234_v0 = vpop.permute.xlu0 %4233  ;;  %6124 = vmatpush1.bf16.msra.mxu1 %v4013_v48 }
 0x54c   : > { %v4272_v40 = vsel %vm1129_vm14, %v4234_v0, %v11510_v63 }
 0x54d   : > { %4405 = vrot.lane.b32.xlu1 %v11506_v7, %s12702_s10  ;;  %4403 = vrot.lane.b32.xlu0 %v11508_v44, %s12702_s10  ;;  %s12722_s10 = smov 108  }
 0x54e   : > { %5736 = vmatprep.subr.bf16.mxu0 %v4272_v40  ;;  %6126 = vmatmul.mubr.bf16.vlgmr.msra.gmra.mrb[24].mxu1 %v11349_v15 }
 0x54f   : > { %v4102_v21 = vpop.permute.xlu1 %4101  ;;  %v4232_v10 = vpop.permute.xlu0 %4231  ;;  %6135 = vmatprep.mubr.bf16.mxu1 %v11407_v42 }
 0x550   : > { %v4137_v35 = vsel %vm1077_vm13, %v11360_v53, %v4102_v21  ;;  %v4271_v55 = vsel %vm1129_vm14, %v4232_v10, %v4234_v0 }
 0x551   : > { %4511 = vrot.lane.b32.xlu1 %v11389_v26, %s12714_s5  ;;  %4509 = vrot.lane.b32.xlu0 %v11377_v5, %s12714_s5 }
 0x552   : > { %5737 = vmatpush1.bf16.msra.mxu0 %v4271_v55 }
 0x553   : > { %v4244_v30 = vpop.permute.xlu1 %4243  ;;  %v4104_v13 = vpop.permute.xlu0 %4103 }
 0x554   : > { %v4138_v15 = vsel %vm1077_vm13, %v4102_v21, %v4104_v13  ;;  %4175 = vst.msk [vmem:[#allocation4 + $0xa20] sm:$0xff] %vm1998_vm10, %v4104_v13 }
 0x555   : > { %4521 = vrot.lane.b32.xlu1 %v11422_v2, %s12714_s5  ;;  %4519 = vrot.lane.b32.xlu0 %v11424_v17, %s12714_s5 }
 0x556   : > { %6166 = vmatprep.subr.bf16.mxu1 %v4138_v15  ;;  %6136 = vmatmul.mubr.bf16.gmra.mrb[28].mxu1 %v11416_v29 }
 0x557   : > { %v4242_v53 = vpop.permute.xlu1 %4241  ;;  %v11537_v12 = vpop.permute.xlu0 %4245  ;;  %6167 = vmatpush1.bf16.msra.mxu1 %v4137_v35  ;;  %6145 = vmatprep.mubr.bf16.mxu1 %v11443_v27 }
 0x558   : > { %v4275_v56 = vsel %vm1129_vm14, %v4242_v53, %v4244_v30  ;;  %v4276_v36 = vsel %vm1129_vm14, %v4244_v30, %v11537_v12 }
 0x559   : > { %4531 = vrot.lane.b32.xlu1 %v11471_v54, %s12714_s5  ;;  %4529 = vrot.lane.b32.xlu0 %v11457_v31, %s12714_s5 }
 0x55a   : > { %5738 = vmatprep.subr.bf16.mxu0 %v4276_v36 }
 0x55b   : > { %v4114_v28 = vpop.permute.xlu1 %4113  ;;  %v4112_v22 = vpop.permute.xlu0 %4111  ;;  %5739 = vmatpush1.bf16.msra.mxu0 %v4275_v56 }
 0x55c   : > { %4180 = vst.msk [vmem:[#allocation4 + $0xa48] sm:$0xff] %vm1998_vm10, %v4114_v28  ;;  %v4141_v42 = vsel %vm1077_vm13, %v11391_v49, %v4112_v22  ;;  %v4142_v46 = vsel %vm1077_vm13, %v4112_v22, %v4114_v28 }
 0x55d   : > { %4541 = vrot.lane.b32.xlu1 %v11506_v7, %s12714_s5  ;;  %4539 = vrot.lane.b32.xlu0 %v11508_v44, %s12714_s5 }
 0x55e   : > { %6168 = vmatprep.subr.bf16.mxu1 %v4142_v46  ;;  %6146 = vmatmul.mubr.bf16.gmra.mrb[32].mxu1 %v11451_v18 }
 0x55f   : > { %v11556_v29 = vpop.permute.xlu1 %4255  ;;  %v4254_v3 = vpop.permute.xlu0 %4253  ;;  %6169 = vmatpush1.bf16.msra.mxu1 %v4141_v42  ;;  %6155 = vmatprep.mubr.bf16.mxu1 %v11478_v32 }
 0x560   : > { %v4280_v49 = vsel %vm1129_vm14, %v4254_v3, %v11556_v29 }
 0x561   : > { %4643 = vrot.lane.b32.xlu1 %v11368_v43, %s12722_s10  ;;  %4641 = vrot.lane.b32.xlu0 %v4600_v20, %s12722_s10  ;;  %v1978_v43 = vld [vmem:[#allocation3 + $0x20] sm:$0xff] }
 0x562   : > { %5740 = vmatprep.subr.bf16.mxu0 %v4280_v49  ;;  %1999 = vst.msk [vmem:[#allocation4 + $0x20] sm:$0xff] %vm1998_vm10, %v1978_v43 }
 0x563   : > { %v4122_v1 = vpop.permute.xlu1 %4121  ;;  %v4252_v9 = vpop.permute.xlu0 %4251 }
 0x564   : > { %v4145_v39 = vsel %vm1077_vm13, %v11427_v51, %v4122_v1  ;;  %v4279_v27 = vsel %vm1129_vm14, %v4252_v9, %v4254_v3 }
 0x565   : > { %4651 = vrot.lane.b32.xlu1 %v11387_v6, %s12722_s10  ;;  %4639 = vrot.lane.b32.xlu0 %v11379_v25, %s12722_s10  ;;  %v1983_v25 = vld [vmem:[#allocation3 + $0x48] sm:$0xff] }
 0x566   : > { %5741 = vmatpush1.bf16.msra.mxu0 %v4279_v27  ;;  %6156 = vmatmul.mubr.bf16.gmra.mrb[36].mxu1 %v11486_v47  ;;  %2004 = vst.msk [vmem:[#allocation4 + $0x48] sm:$0xff] %vm1998_vm10, %v1983_v25 }
 0x567   : > { %v4264_v14 = vpop.permute.xlu1 %4263  ;;  %v4124_v41 = vpop.permute.xlu0 %4123  ;;  %6198 = vmatprep.mubr.bf16.mxu1 %v8946_v60 }
 0x568   : > { %v4146_v18 = vsel %vm1077_vm13, %v4122_v1, %v4124_v41  ;;  %4185 = vst.msk [vmem:[#allocation4 + $0xa70] sm:$0xff] %vm1998_vm10, %v4124_v41 }
 0x569   : > { %4649 = vrot.lane.b32.xlu1 %v11400_v19, %s12722_s10  ;;  %4653 = vrot.lane.b32.xlu0 %v11402_v61, %s12722_s10  ;;  %v1988_v19 = vld [vmem:[#allocation3 + $0x70] sm:$0xff] }
 0x56a   : > { %6170 = vmatprep.subr.bf16.mxu1 %v4146_v18  ;;  %2009 = vst.msk [vmem:[#allocation4 + $0x70] sm:$0xff] %vm1998_vm10, %v1988_v19 }
 0x56b   : > { %v4262_v6 = vpop.permute.xlu1 %4261  ;;  %v11579_v51 = vpop.permute.xlu0 %4265  ;;  %6171 = vmatpush1.bf16.msra.mxu1 %v4145_v39 }
 0x56c   : > { %v4283_v59 = vsel %vm1129_vm14, %v4262_v6, %v4264_v14  ;;  %v4284_v57 = vsel %vm1129_vm14, %v4264_v14, %v11579_v51 }
 0x56d   : > { %4663 = vrot.lane.b32.xlu1 %v11436_v33, %s12722_s10  ;;  %4661 = vrot.lane.b32.xlu0 %v11438_v34, %s12722_s10  ;;  %v1993_v33 = vld [vmem:[#allocation3 + $0x98] sm:$0xff] }
 0x56e   : > { %5742 = vmatprep.subr.bf16.mxu0 %v4284_v57  ;;  %2014 = vst.msk [vmem:[#allocation4 + $0x98] sm:$0xff] %vm1998_vm10, %v1993_v33 }
 0x56f   : > { %v4134_v61 = vpop.permute.xlu1 %4133  ;;  %v4132_v58 = vpop.permute.xlu0 %4131  ;;  %5743 = vmatpush1.bf16.msra.mxu0 %v4283_v59 }
 0x570   : > { %4190 = vst.msk [vmem:[#allocation4 + $0xa98] sm:$0xff] %vm1998_vm10, %v4134_v61  ;;  %v4149_v38 = vsel %vm1077_vm13, %v11473_v11, %v4132_v58  ;;  %v4150_v32 = vsel %vm1077_vm13, %v4132_v58, %v4134_v61 }
 0x571   : > { %4671 = vrot.lane.b32.xlu1 %v11469_v52, %s12722_s10  ;;  %4659 = vrot.lane.b32.xlu0 %v11459_v37, %s12722_s10 }
 0x572   : > { %6172 = vmatprep.subr.bf16.mxu1 %v4150_v32 }
 0x573   : > { %v11598_v34 = vpop.permute.xlu1 %4371  ;;  %v4370_v24 = vpop.permute.xlu0 %4369  ;;  %6173 = vmatpush1.bf16.msra.mxu1 %v4149_v38 }
 0x574   : > { %v4408_v45 = vsel %vm1181_vm15, %v4370_v24, %v11598_v34 }
 0x575   : > { %4669 = vrot.lane.b32.xlu1 %v11492_v8, %s12722_s10  ;;  %4673 = vrot.lane.b32.xlu0 %v11494_v23, %s12722_s10 }
 0x576   : > { %5744 = vmatprep.subr.bf16.mxu0 %v4408_v45 }
 0x577   : > { %v4238_v52 = vpop.permute.xlu1 %4237  ;;  %v4368_v37 = vpop.permute.xlu0 %4367 }
 0x578   : > { %v4273_v11 = vsel %vm1129_vm14, %v11510_v63, %v4238_v52  ;;  %v4407_v47 = vsel %vm1181_vm15, %v4368_v37, %v4370_v24 }
 0x579   : > { %4647 = vrot.lane.b32.xlu1 %v11389_v26, %s12722_s10  ;;  %4645 = vrot.lane.b32.xlu0 %v11377_v5, %s12722_s10 }
 0x57a   : > { %5745 = vmatpush1.bf16.msra.mxu0 %v4407_v47  ;;  %v11686_v47 = vld [vmem:[%s12603_s2 + $0x7c] ss:$44 sps:$4 sm:$0xff]  }
 0x57b   : > { %v4380_v62 = vpop.permute.xlu1 %4379  ;;  %v4240_v8 = vpop.permute.xlu0 %4239 }
 0x57c   : > { %v4274_v16 = vsel %vm1129_vm14, %v4238_v52, %v4240_v8  ;;  %4311 = vst.msk [vmem:[#allocation4 + $0xac0] sm:$0xff] %vm1998_vm10, %v4240_v8 }
 0x57d   : > { %4657 = vrot.lane.b32.xlu1 %v11422_v2, %s12722_s10  ;;  %4655 = vrot.lane.b32.xlu0 %v11424_v17, %s12722_s10 }
 0x57e   : > { %6174 = vmatprep.subr.bf16.mxu1 %v4274_v16 }
 0x57f   : > { %v4378_v23 = vpop.permute.xlu1 %4377  ;;  %v11620_v48 = vpop.permute.xlu0 %4381  ;;  %6175 = vmatpush1.bf16.msra.mxu1 %v4273_v11  ;;  %v11681_v11 = vld [vmem:[%s12603_s2 + $0x20] ss:$44 sps:$4 sm:$0xff]  }
 0x580   : > { %v4411_v5 = vsel %vm1181_vm15, %v4378_v23, %v4380_v62  ;;  %v4412_v26 = vsel %vm1181_vm15, %v4380_v62, %v11620_v48 }
 0x581   : > { %4667 = vrot.lane.b32.xlu1 %v11471_v54, %s12722_s10  ;;  %4665 = vrot.lane.b32.xlu0 %v11457_v31, %s12722_s10 }
 0x582   : > { %5746 = vmatprep.subr.bf16.mxu0 %v4412_v26 }
 0x583   : > { %v4250_v2 = vpop.permute.xlu1 %4249  ;;  %v4248_v4 = vpop.permute.xlu0 %4247  ;;  %5747 = vmatpush1.bf16.msra.mxu0 %v4411_v5 }
 0x584   : > { %4316 = vst.msk [vmem:[#allocation4 + $0xae8] sm:$0xff] %vm1998_vm10, %v4250_v2  ;;  %v4277_v17 = vsel %vm1129_vm14, %v11537_v12, %v4248_v4  ;;  %v4278_v63 = vsel %vm1129_vm14, %v4248_v4, %v4250_v2  ;;  %v11701_v4 = vld [vmem:[%s12603_s2 + $0x78] ss:$44 sps:$4 sm:$0xff]  }
 0x585   : > { %4677 = vrot.lane.b32.xlu1 %v11506_v7, %s12722_s10  ;;  %4675 = vrot.lane.b32.xlu0 %v11508_v44, %s12722_s10 }
 0x586   : > { %6176 = vmatprep.subr.bf16.mxu1 %v4278_v63 }
 0x587   : > { %v11637_v54 = vpop.permute.xlu1 %4391  ;;  %v4390_v31 = vpop.permute.xlu0 %4389  ;;  %6177 = vmatpush1.bf16.msra.mxu1 %v4277_v17  ;;  %v11706_v17 = vld [vmem:[%s12603_s2 + $0xd4] ss:$44 sps:$4 sm:$0xff]  }
 0x588   : > { %v4416_v0 = vsel %vm1181_vm15, %v4390_v31, %v11637_v54 }
 0x589   : > { %5748 = vmatprep.subr.bf16.mxu0 %v4416_v0 }
 0x58b   : > { %v4258_v60 = vpop.permute.xlu1 %4257  ;;  %v4388_v40 = vpop.permute.xlu0 %4387 }
 0x58c   : > { %v4281_v21 = vsel %vm1129_vm14, %v11556_v29, %v4258_v60  ;;  %v4415_v10 = vsel %vm1181_vm15, %v4388_v40, %v4390_v31 }
 0x58d   : > { %5749 = vmatpush1.bf16.msra.mxu0 %v4415_v10 }
 0x58f   : > { %v4400_v7 = vpop.permute.xlu1 %4399  ;;  %v4260_v35 = vpop.permute.xlu0 %4259 }
 0x590   : > { %v4282_v44 = vsel %vm1129_vm14, %v4258_v60, %v4260_v35  ;;  %4321 = vst.msk [vmem:[#allocation4 + $0xb10] sm:$0xff] %vm1998_vm10, %v4260_v35  ;;  %v11724_v35 = vld [vmem:[%s12603_s2 + $0x12c] ss:$44 sps:$4 sm:$0xff]  }
 0x591   : > { %6178 = vmatprep.subr.bf16.mxu1 %v4282_v44 }
 0x592   : > { %6179 = vmatpush1.bf16.msra.mxu1 %v4281_v21 }
 0x593   : > { %v4398_v55 = vpop.permute.xlu1 %4397  ;;  %v11646_v30 = vpop.permute.xlu0 %4401 }
 0x594   : > { %v4419_v13 = vsel %vm1181_vm15, %v4398_v55, %v4400_v7  ;;  %v4420_v15 = vsel %vm1181_vm15, %v4400_v7, %v11646_v30  ;;  %v11719_v7 = vld [vmem:[%s12603_s2 + $0xd0] ss:$44 sps:$4 sm:$0xff]  }
 0x595   : > { %5750 = vmatprep.subr.bf16.mxu0 %v4420_v15 }
 0x596   : > { %5751 = vmatpush1.bf16.msra.mxu0 %v4419_v13 }
 0x597   : > { %v4270_v53 = vpop.permute.xlu1 %4269  ;;  %v4268_v12 = vpop.permute.xlu0 %4267 }
 0x598   : > { %4326 = vst.msk [vmem:[#allocation4 + $0xb38] sm:$0xff] %vm1998_vm10, %v4270_v53  ;;  %v4285_v56 = vsel %vm1129_vm14, %v11579_v51, %v4268_v12  ;;  %v4286_v36 = vsel %vm1129_vm14, %v4268_v12, %v4270_v53 }
 0x599   : > { %6180 = vmatprep.subr.bf16.mxu1 %v4286_v36 }
 0x59a   : > { %6181 = vmatpush1.bf16.msra.mxu1 %v4285_v56  ;;  %v11737_v56 = vld [vmem:[%s12603_s2 + $0x128] ss:$44 sps:$4 sm:$0xff]  }
 0x59b   : > { %v11655_v28 = vpop.permute.xlu1 %4507  ;;  %v4506_v22 = vpop.permute.xlu0 %4505 }
 0x59c   : > { %v4544_v42 = vsel %vm1233_vm12, %v4506_v22, %v11655_v28 }
 0x59d   : > { %5752 = vmatprep.subr.bf16.mxu0 %v4544_v42 }
 0x59f   : > { %v4374_v46 = vpop.permute.xlu1 %4373  ;;  %v4504_v20 = vpop.permute.xlu0 %4503 }
 0x5a0   : > { %v4409_v29 = vsel %vm1181_vm15, %v11598_v34, %v4374_v46  ;;  %v4543_v3 = vsel %vm1233_vm12, %v4504_v20, %v4506_v22 }
 0x5a1   : > { %5753 = vmatpush1.bf16.msra.mxu0 %v4543_v3 }
 0x5a3   : > { %v4516_v49 = vpop.permute.xlu1 %4515  ;;  %v4376_v1 = vpop.permute.xlu0 %4375 }
 0x5a4   : > { %v4410_v9 = vsel %vm1181_vm15, %v4374_v46, %v4376_v1  ;;  %4447 = vst.msk [vmem:[#allocation4 + $0xb60] sm:$0xff] %vm1998_vm10, %v4376_v1 }
 0x5a5   : > { %6182 = vmatprep.subr.bf16.mxu1 %v4410_v9 }
 0x5a6   : > { %6183 = vmatpush1.bf16.msra.mxu1 %v4409_v29 }
 0x5a7   : > { %v4514_v39 = vpop.permute.xlu1 %4513  ;;  %v4518_v27 = vpop.permute.xlu0 %4517 }
 0x5a8   : > { %v4547_v43 = vsel %vm1233_vm12, %v4514_v39, %v4516_v49  ;;  %v4548_v14 = vsel %vm1233_vm12, %v4516_v49, %v4518_v27 }
 0x5a9   : > { %5754 = vmatprep.subr.bf16.mxu0 %v4548_v14 }
 0x5aa   : > { %5755 = vmatpush1.bf16.msra.mxu0 %v4547_v43 }
 0x5ab   : > { %v4386_v41 = vpop.permute.xlu1 %4385  ;;  %v4384_v18 = vpop.permute.xlu0 %4383 }
 0x5ac   : > { %4452 = vst.msk [vmem:[#allocation4 + $0xb88] sm:$0xff] %vm1998_vm10, %v4386_v41  ;;  %v4413_v25 = vsel %vm1181_vm15, %v11620_v48, %v4384_v18  ;;  %v4414_v6 = vsel %vm1181_vm15, %v4384_v18, %v4386_v41 }
 0x5ad   : > { %6184 = vmatprep.subr.bf16.mxu1 %v4414_v6  ;;  %v4827_v6 = vld [vmem:[#allocation4 + $0x160] sm:$0xff] }
 0x5ae   : > { %6185 = vmatpush1.bf16.msra.mxu1 %v4413_v25  ;;  %v11755_v25 = vld [vmem:[%s12603_s2 + $0x28] ss:$44 sps:$4 sm:$0xff]  }
 0x5af   : > { %v4528_v51 = vpop.permute.xlu1 %4527  ;;  %v4526_v59 = vpop.permute.xlu0 %4525 }
 0x5b0   : > { %v4552_v57 = vsel %vm1233_vm12, %v4526_v59, %v4528_v51 }
 0x5b1   : > { %5756 = vmatprep.subr.bf16.mxu0 %v4552_v57  ;;  %v4787_v57 = vld [vmem:[#allocation4 + $0x20] sm:$0xff] }
 0x5b3   : > { %v4394_v19 = vpop.permute.xlu1 %4393  ;;  %v4524_v61 = vpop.permute.xlu0 %4523 }
 0x5b4   : > { %v4417_v58 = vsel %vm1181_vm15, %v11637_v54, %v4394_v19  ;;  %v4551_v38 = vsel %vm1233_vm12, %v4524_v61, %v4526_v59 }
 0x5b5   : > { %5757 = vmatpush1.bf16.msra.mxu0 %v4551_v38 }
 0x5b7   : > { %v4536_v32 = vpop.permute.xlu1 %4535  ;;  %v4396_v33 = vpop.permute.xlu0 %4395 }
 0x5b8   : > { %v4418_v34 = vsel %vm1181_vm15, %v4394_v19, %v4396_v33  ;;  %4457 = vst.msk [vmem:[#allocation4 + $0xbb0] sm:$0xff] %vm1998_vm10, %v4396_v33  ;;  %v4792_v33 = vld [vmem:[#allocation4 + $0x48] sm:$0xff] }
 0x5b9   : > { %6186 = vmatprep.subr.bf16.mxu1 %v4418_v34 }
 0x5ba   : > { %6187 = vmatpush1.bf16.msra.mxu1 %v4417_v58  ;;  %v4832_v58 = vld [vmem:[#allocation4 + $0x188] sm:$0xff] }
 0x5bb   : > { %v4534_v24 = vpop.permute.xlu1 %4533  ;;  %v4538_v45 = vpop.permute.xlu0 %4537 }
 0x5bc   : > { %v4555_v52 = vsel %vm1233_vm12, %v4534_v24, %v4536_v32  ;;  %v4556_v37 = vsel %vm1233_vm12, %v4536_v32, %v4538_v45 }
 0x5bd   : > { %5758 = vmatprep.subr.bf16.mxu0 %v4556_v37 }
 0x5be   : > { %5759 = vmatpush1.bf16.msra.mxu0 %v4555_v52  ;;  %v4837_v52 = vld [vmem:[#allocation4 + $0x1b0] sm:$0xff] }
 0x5bf   : > { %v4406_v62 = vpop.permute.xlu1 %4405  ;;  %v4404_v8 = vpop.permute.xlu0 %4403 }
 0x5c0   : > { %4462 = vst.msk [vmem:[#allocation4 + $0xbd8] sm:$0xff] %vm1998_vm10, %v4406_v62  ;;  %v4421_v16 = vsel %vm1181_vm15, %v11646_v30, %v4404_v8  ;;  %v4422_v23 = vsel %vm1181_vm15, %v4404_v8, %v4406_v62  ;;  %v4797_v8 = vld [vmem:[#allocation4 + $0x70] sm:$0xff] }
 0x5c1   : > { %6188 = vmatprep.subr.bf16.mxu1 %v4422_v23  ;;  %5761 = vmatmul.mubr.bf16.vlgmr.msra.gmra.mrb[32].mxu0 %v11681_v11 }
 0x5c2   : > { %6189 = vmatpush1.bf16.msra.mxu1 %v4421_v16  ;;  %5770 = vmatprep.mubr.bf16.mxu0 %v11686_v47 }
 0x5c3   : > { %v4512_v48 = vpop.permute.xlu1 %4511  ;;  %v4510_v5 = vpop.permute.xlu0 %4509 }
 0x5c4   : > { %4583 = vst.msk [vmem:[#allocation4 + $0xc00] sm:$0xff] %vm1998_vm10, %v4512_v48  ;;  %v4545_v26 = vsel %vm1233_vm12, %v11655_v28, %v4510_v5  ;;  %v4546_v2 = vsel %vm1233_vm12, %v4510_v5, %v4512_v48  ;;  %v4842_v48 = vld [vmem:[#allocation4 + $0x1d8] sm:$0xff] }
 0x5c5   : > { %6190 = vmatprep.subr.bf16.mxu1 %v4546_v2  ;;  %v4802_v2 = vld [vmem:[#allocation4 + $0x98] sm:$0xff] }
 0x5c6   : > { %6191 = vmatpush1.bf16.msra.mxu1 %v4545_v26 }
 0x5c7   : > { %v4522_v63 = vpop.permute.xlu1 %4521  ;;  %v4520_v54 = vpop.permute.xlu0 %4519 }
 0x5c8   : > { %4588 = vst.msk [vmem:[#allocation4 + $0xc28] sm:$0xff] %vm1998_vm10, %v4522_v63  ;;  %v4549_v31 = vsel %vm1233_vm12, %v4518_v27, %v4520_v54  ;;  %v4550_v0 = vsel %vm1233_vm12, %v4520_v54, %v4522_v63 }
 0x5c9   : > { %6192 = vmatprep.subr.bf16.mxu1 %v4550_v0  ;;  %5771 = vmatmul.mubr.bf16.gmra.mrb[36].mxu0 %v11701_v4  ;;  %v4847_v0 = vld [vmem:[#allocation4 + $0x200] sm:$0xff] }
 0x5ca   : > { %6193 = vmatpush1.bf16.msra.mxu1 %v4549_v31  ;;  %5780 = vmatprep.mubr.bf16.mxu0 %v11706_v17  ;;  %v11785_v31 = vld [vmem:[%s12603_s2 + $0xd8] ss:$44 sps:$4 sm:$0xff]  }
 0x5cb   : > { %v4532_v60 = vpop.permute.xlu1 %4531  ;;  %v4530_v40 = vpop.permute.xlu0 %4529 }
 0x5cc   : > { %4593 = vst.msk [vmem:[#allocation4 + $0xc50] sm:$0xff] %vm1998_vm10, %v4532_v60  ;;  %v4553_v21 = vsel %vm1233_vm12, %v4528_v51, %v4530_v40  ;;  %v4554_v10 = vsel %vm1233_vm12, %v4530_v40, %v4532_v60  ;;  %v4907_v60 = vld [vmem:[#allocation4 + $0x3e0] sm:$0xff] }
 0x5cd   : > { %6194 = vmatprep.subr.bf16.mxu1 %v4554_v10  ;;  %v4807_v40 = vld [vmem:[#allocation4 + $0xc0] sm:$0xff]  ;;  %v4852_v10 = vld [vmem:[#allocation4 + $0x228] sm:$0xff] }
 0x5ce   : > { %6195 = vmatpush1.bf16.msra.mxu1 %v4553_v21  ;;  %v4867_v21 = vld [vmem:[#allocation4 + $0x2a0] sm:$0xff] }
 0x5cf   : > { %v4542_v44 = vpop.permute.xlu1 %4541  ;;  %v4540_v55 = vpop.permute.xlu0 %4539 }
 0x5d0   : > { %4598 = vst.msk [vmem:[#allocation4 + $0xc78] sm:$0xff] %vm1998_vm10, %v4542_v44  ;;  %v4557_v30 = vsel %vm1233_vm12, %v4538_v45, %v4540_v55  ;;  %v4558_v13 = vsel %vm1233_vm12, %v4540_v55, %v4542_v44  ;;  %vm5423_vm12 = vcmask 523264   ;;  %v11770_v45 = vld [vmem:[%s12603_s2 + $0x80] ss:$44 sps:$4 sm:$0xff]   ;;  %v4912_v44 = vld [vmem:[#allocation4 + $0x408] sm:$0xff] }
 0x5d1   : > { %6196 = vmatprep.subr.bf16.mxu1 %v4558_v13  ;;  %5781 = vmatmul.mubr.bf16.gmra.mrb[40].mxu0 %v11719_v7  ;;  %v4812_v55 = vld [vmem:[#allocation4 + $0xe8] sm:$0xff] }
 0x5d2   : > { %6197 = vmatpush1.bf16.msra.mxu1 %v4557_v30  ;;  %5790 = vmatprep.mubr.bf16.mxu0 %v11724_v35  ;;  %v4872_v30 = vld [vmem:[#allocation4 + $0x2c8] sm:$0xff] }
 0x5d3   : > { %v4644_v15 = vpop.permute.xlu1 %4643  ;;  %v4642_v53 = vpop.permute.xlu0 %4641  ;;  %v11796_v13 = vld [vmem:[%s12603_s2 + $0x130] ss:$44 sps:$4 sm:$0xff]  }
 0x5d4   : > { %v4680_v12 = vsel %vm1285_vm11, %v4642_v53, %v4644_v15 }
 0x5d5   : > { %5801 = vmatprep.subr.bf16.mxu0 %v4680_v12  ;;  %6199 = vmatmul.mubr.bf16.vlgmr.msra.gmra.mrb[24].mxu1 %v11681_v11  ;;  %v4817_v12 = vld [vmem:[#allocation4 + $0x110] sm:$0xff] }
 0x5d6   : > { %6208 = vmatprep.mubr.bf16.mxu1 %v11686_v47 }
 0x5d7   : > { %v4652_v36 = vpop.permute.xlu1 %4651  ;;  %v4640_v28 = vpop.permute.xlu0 %4639 }
 0x5d8   : > { %v4679_v22 = vsel %vm1285_vm11, %v4640_v28, %v4642_v53  ;;  %v4917_v53 = vld [vmem:[#allocation4 + $0x430] sm:$0xff]  ;;  %v4862_v28 = vld [vmem:[#allocation4 + $0x278] sm:$0xff] }
 0x5d9   : > { %5802 = vmatpush1.bf16.msra.mxu0 %v4679_v22  ;;  %v4922_v22 = vld [vmem:[#allocation4 + $0x458] sm:$0xff] }
 0x5da   : > { %5791 = vmatmul.mubr.bf16.gmra.mrb[44].mxu0 %v11737_v56 }
 0x5db   : > { %v4650_v42 = vpop.permute.xlu1 %4649  ;;  %v4654_v46 = vpop.permute.xlu0 %4653  ;;  %5833 = vmatprep.mubr.bf16.mxu0 %v9225_v50 }
 0x5dc   : > { %v4683_v20 = vsel %vm1285_vm11, %v4650_v42, %v4652_v36  ;;  %v4684_v29 = vsel %vm1285_vm11, %v4652_v36, %v4654_v46  ;;  %v4877_v36 = vld [vmem:[#allocation4 + $0x2f0] sm:$0xff]  ;;  %v9040_v42 = vld [vmem:[%s12603_s2 + $0x4] ss:$44 sps:$4 sm:$0xff]  }
 0x5dd   : > { %5803 = vmatprep.subr.bf16.mxu0 %v4684_v29  ;;  %6209 = vmatmul.mubr.bf16.gmra.mrb[28].mxu1 %v11701_v4  ;;  %v4927_v29 = vld [vmem:[#allocation4 + $0x480] sm:$0xff] }
 0x5de   : > { %5804 = vmatpush1.bf16.msra.mxu0 %v4683_v20  ;;  %6218 = vmatprep.mubr.bf16.mxu1 %v11706_v17  ;;  %v4882_v20 = vld [vmem:[#allocation4 + $0x318] sm:$0xff] }
 0x5df   : > { %v4664_v3 = vpop.permute.xlu1 %4663  ;;  %v4662_v49 = vpop.permute.xlu0 %4661 }
 0x5e0   : > { %v4688_v1 = vsel %vm1285_vm11, %v4662_v49, %v4664_v3 }
 0x5e1   : > { %5805 = vmatprep.subr.bf16.mxu0 %v4688_v1  ;;  %v4887_v1 = vld [vmem:[#allocation4 + $0x340] sm:$0xff] }
 0x5e3   : > { %v4672_v9 = vpop.permute.xlu1 %4671  ;;  %v4660_v39 = vpop.permute.xlu0 %4659 }
 0x5e4   : > { %v4687_v27 = vsel %vm1285_vm11, %v4660_v39, %v4662_v49  ;;  %v9041_v49 = vld [vmem:[%s12603_s2] ss:$44 sps:$4 sm:$0xff]   ;;  %v4932_v39 = vld [vmem:[#allocation4 + $0x4a8] sm:$0xff] }
 0x5e5   : > { %5806 = vmatpush1.bf16.msra.mxu0 %v4687_v27  ;;  %6219 = vmatmul.mubr.bf16.gmra.mrb[32].mxu1 %v11719_v7  ;;  %v4992_v27 = vld [vmem:[#allocation4 + $0x688] sm:$0xff] }
 0x5e6   : > { %6228 = vmatprep.mubr.bf16.mxu1 %v11724_v35 }
 0x5e7   : > { %v4670_v43 = vpop.permute.xlu1 %4669  ;;  %v4674_v14 = vpop.permute.xlu0 %4673 }
 0x5e8   : > { %v4691_v41 = vsel %vm1285_vm11, %v4670_v43, %v4672_v9  ;;  %v4692_v18 = vsel %vm1285_vm11, %v4672_v9, %v4674_v14  ;;  %v4947_v9 = vld [vmem:[#allocation4 + $0x520] sm:$0xff] }
 0x5e9   : > { %5807 = vmatprep.subr.bf16.mxu0 %v4692_v18  ;;  %v9042_v43 = vld [vmem:[%s12603_s2 + $0x5c] ss:$44 sps:$4 sm:$0xff]  }
 0x5ea   : > { %5808 = vmatpush1.bf16.msra.mxu0 %v4691_v41  ;;  %v4952_v41 = vld [vmem:[#allocation4 + $0x548] sm:$0xff]  ;;  %v4937_v18 = vld [vmem:[#allocation4 + $0x4d0] sm:$0xff] }
 0x5eb   : > { %v4648_v51 = vpop.permute.xlu1 %4647  ;;  %v4646_v59 = vpop.permute.xlu0 %4645  ;;  %8336 = vmatprep.subr.bf16.mxu0 %v4827_v6  ;;  %v4997_v6 = vld [vmem:[#allocation4 + $0x6b0] sm:$0xff] }
 0x5ec   : > { %4719 = vst.msk [vmem:[#allocation4 + $0xca0] sm:$0xff] %vm1998_vm10, %v4648_v51  ;;  %v4681_v19 = vsel %vm1285_vm11, %v4644_v15, %v4646_v59  ;;  %v4682_v61 = vsel %vm1285_vm11, %v4646_v59, %v4648_v51  ;;  %v4857_v15 = vld [vmem:[#allocation4 + $0x250] sm:$0xff] }
 0x5ed   : > { %8179 = vmatmul.mubr.msk.bf16.vlgmr.msra.gmra.mrb[32].mxu0 %vm5423_vm12, %v11755_v25  ;;  %6239 = vmatprep.subr.bf16.mxu1 %v4682_v61  ;;  %v4897_v51 = vld [vmem:[#allocation4 + $0x390] sm:$0xff]  ;;  %v9044_v61 = vld [vmem:[%s12603_s2 + $0xb4] ss:$44 sps:$4 sm:$0xff]  }
 0x5ee   : > { %6240 = vmatpush1.bf16.msra.mxu1 %v4681_v19  ;;  %8337 = vmatpush3.bf16.msra.mxu0 %v4787_v57  ;;  %v4957_v59 = vld [vmem:[#allocation4 + $0x570] sm:$0xff]  ;;  %v4942_v57 = vld [vmem:[#allocation4 + $0x4f8] sm:$0xff] }
 0x5ef   : > { %v4658_v38 = vpop.permute.xlu1 %4657  ;;  %v4656_v32 = vpop.permute.xlu0 %4655  ;;  %8338 = vmatprep.subr.bf16.mxu0 %v4832_v58  ;;  %5843 = vmatprep.mubr.bf16.mxu0 %v9225_v50  ;;  %v5002_v19 = vld [vmem:[#allocation4 + $0x6d8] sm:$0xff]  ;;  %v9045_v58 = vld [vmem:[%s12603_s2 + $0xc] ss:$44 sps:$4 sm:$0xff]  }
 0x5f0   : > { %4724 = vst.msk [vmem:[#allocation4 + $0xcc8] sm:$0xff] %vm1998_vm10, %v4658_v38  ;;  %v4685_v34 = vsel %vm1285_vm11, %v4654_v46, %v4656_v32  ;;  %v4686_v24 = vsel %vm1285_vm11, %v4656_v32, %v4658_v38  ;;  %6229 = vmatmul.mubr.bf16.gmra.mrb[36].mxu1 %v11737_v56  ;;  %v4822_v46 = vld [vmem:[#allocation4 + $0x138] sm:$0xff] }
 0x5f1   : > { %6241 = vmatprep.subr.bf16.mxu1 %v4686_v24  ;;  %6271 = vmatprep.mubr.bf16.mxu1 %v9225_v50  ;;  %v4902_v38 = vld [vmem:[#allocation4 + $0x3b8] sm:$0xff]  ;;  %v9046_v24 = vld [vmem:[%s12603_s2 + $0xb0] ss:$44 sps:$4 sm:$0xff]  }
 0x5f2   : > { %6242 = vmatpush1.bf16.msra.mxu1 %v4685_v34  ;;  %8339 = vmatpush3.bf16.msra.mxu0 %v4792_v33  ;;  %v4962_v32 = vld [vmem:[#allocation4 + $0x598] sm:$0xff]  ;;  %v5007_v33 = vld [vmem:[#allocation4 + $0x700] sm:$0xff] }
 0x5f3   : > { %v4668_v37 = vpop.permute.xlu1 %4667  ;;  %v4666_v62 = vpop.permute.xlu0 %4665  ;;  %8340 = vmatprep.subr.bf16.mxu0 %v4837_v52  ;;  %v5067_v34 = vld [vmem:[#allocation4 + $0x8e0] sm:$0xff] }
 0x5f4   : > { %4729 = vst.msk [vmem:[#allocation4 + $0xcf0] sm:$0xff] %vm1998_vm10, %v4668_v37  ;;  %v4689_v16 = vsel %vm1285_vm11, %v4664_v3, %v4666_v62  ;;  %v4690_v23 = vsel %vm1285_vm11, %v4666_v62, %v4668_v37  ;;  %v4987_v3 = vld [vmem:[#allocation4 + $0x660] sm:$0xff] }
 0x5f5   : > { %8180 = vmatmul.mubr.msk.bf16.gmra.mrb[36].mxu0 %vm5423_vm12, %v11770_v45  ;;  %6243 = vmatprep.subr.bf16.mxu1 %v4690_v23  ;;  %v9047_v52 = vld [vmem:[%s12603_s2 + $0x8] ss:$44 sps:$4 sm:$0xff]   ;;  %v9048_v23 = vld [vmem:[%s12603_s2 + $0x10c] ss:$44 sps:$4 sm:$0xff]  }
 0x5f6   : > { %6244 = vmatpush1.bf16.msra.mxu1 %v4689_v16  ;;  %8341 = vmatpush3.bf16.msra.mxu0 %v4797_v8  ;;  %v4967_v37 = vld [vmem:[#allocation4 + $0x5c0] sm:$0xff]  ;;  %v5012_v8 = vld [vmem:[#allocation4 + $0x728] sm:$0xff] }
 0x5f7   : > { %v4678_v5 = vpop.permute.xlu1 %4677  ;;  %v4676_v26 = vpop.permute.xlu0 %4675  ;;  %8342 = vmatprep.subr.bf16.mxu0 %v4842_v48  ;;  %5853 = vmatprep.mubr.bf16.mxu0 %v9225_v50  ;;  %v5027_v62 = vld [vmem:[#allocation4 + $0x7a0] sm:$0xff]  ;;  %v5072_v16 = vld [vmem:[#allocation4 + $0x908] sm:$0xff] }
 0x5f8   : > { %4734 = vst.msk [vmem:[#allocation4 + $0xd18] sm:$0xff] %vm1998_vm10, %v4678_v5  ;;  %v4693_v63 = vsel %vm1285_vm11, %v4674_v14, %v4676_v26  ;;  %v4694_v54 = vsel %vm1285_vm11, %v4676_v26, %v4678_v5  ;;  %v4892_v14 = vld [vmem:[#allocation4 + $0x368] sm:$0xff] }
 0x5f9   : > { %6245 = vmatprep.subr.bf16.mxu1 %v4694_v54  ;;  %v9049_v48 = vld [vmem:[%s12603_s2 + $0x64] ss:$44 sps:$4 sm:$0xff]   ;;  %v9050_v54 = vld [vmem:[%s12603_s2 + $0x108] ss:$44 sps:$4 sm:$0xff]  }
 0x5fa   : > { %6246 = vmatpush1.bf16.msra.mxu1 %v4693_v63  ;;  %8343 = vmatpush3.bf16.msra.mxu0 %v4802_v2  ;;  %v4972_v5 = vld [vmem:[#allocation4 + $0x5e8] sm:$0xff]  ;;  %v5017_v2 = vld [vmem:[#allocation4 + $0x750] sm:$0xff] }
 0x5fb   : > { %8344 = vmatprep.subr.bf16.mxu0 %v4847_v0  ;;  %8376 = vmatprep.subr.bf16.mxu1 %v4907_v60  ;;  %v5032_v26 = vld [vmem:[#allocation4 + $0x7c8] sm:$0xff]  ;;  %v5077_v63 = vld [vmem:[#allocation4 + $0x930] sm:$0xff]  ;;  %v9051_v0 = vld [vmem:[%s12603_s2 + $0x60] ss:$44 sps:$4 sm:$0xff]  }
 0x5fc   : > { %v4977_v60 = vld [vmem:[#allocation4 + $0x610] sm:$0xff] }
 0x5fd   : > { %8181 = vmatmul.mubr.msk.bf16.gmra.mrb[40].mxu0 %vm5423_vm12, %v11785_v31  ;;  %8183 = vmatmul.mubr.msk.bf16.vlgmr.msra.gmra.mrb[24].mxu1 %vm5423_vm12, %v11755_v25 }
 0x5fe   : > { %8345 = vmatpush3.bf16.msra.mxu0 %v4807_v40  ;;  %8377 = vmatpush3.bf16.msra.mxu1 %v4867_v21  ;;  %v5037_v40 = vld [vmem:[#allocation4 + $0x7f0] sm:$0xff]  ;;  %v5022_v21 = vld [vmem:[#allocation4 + $0x778] sm:$0xff] }
 0x5ff   : > { %8346 = vmatprep.subr.bf16.mxu0 %v4852_v10  ;;  %8378 = vmatprep.subr.bf16.mxu1 %v4912_v44  ;;  %v5082_v10 = vld [vmem:[#allocation4 + $0x958] sm:$0xff]  ;;  %v9052_v44 = vld [vmem:[%s12603_s2 + $0xbc] ss:$44 sps:$4 sm:$0xff]  }
 0x600   : > { %5863 = vmatprep.mubr.bf16.mxu0 %v9225_v50  ;;  %6281 = vmatprep.mubr.bf16.mxu1 %v9225_v50 }
 0x602   : > { %8347 = vmatpush3.bf16.msra.mxu0 %v4812_v55  ;;  %8379 = vmatpush3.bf16.msra.mxu1 %v4872_v30  ;;  %v9053_v55 = vld [vmem:[%s12603_s2 + $0x14] ss:$44 sps:$4 sm:$0xff]  }
 0x603   : > { %8348 = vmatprep.subr.bf16.mxu0 %v4857_v15  ;;  %8380 = vmatprep.subr.bf16.mxu1 %v4917_v53  ;;  %v4982_v30 = vld [vmem:[#allocation4 + $0x638] sm:$0xff]  ;;  %v5087_v53 = vld [vmem:[#allocation4 + $0x980] sm:$0xff] }
 0x604   : > { %v5042_v15 = vld [vmem:[#allocation4 + $0x818] sm:$0xff] }
 0x605   : > { %8182 = vmatmul.mubr.msk.bf16.gmra.mrb[44].mxu0 %vm5423_vm12, %v11796_v13  ;;  %8184 = vmatmul.mubr.msk.bf16.gmra.mrb[28].mxu1 %vm5423_vm12, %v11770_v45 }
 0x606   : > { %8349 = vmatpush3.bf16.msra.mxu0 %v4817_v12  ;;  %8381 = vmatpush3.bf16.msra.mxu1 %v4877_v36  ;;  %v5147_v12 = vld [vmem:[#allocation4 + $0xb60] sm:$0xff]  ;;  %v9054_v36 = vld [vmem:[%s12603_s2 + $0xb8] ss:$44 sps:$4 sm:$0xff]  }
 0x607   : > { %8350 = vmatprep.subr.bf16.mxu0 %v4862_v28  ;;  %8382 = vmatprep.subr.bf16.mxu1 %v4922_v22  ;;  %v9055_v28 = vld [vmem:[%s12603_s2 + $0x10] ss:$44 sps:$4 sm:$0xff]   ;;  %v5047_v22 = vld [vmem:[#allocation4 + $0x840] sm:$0xff] }
 0x608   : > { %6291 = vmatprep.mubr.bf16.mxu1 %v9225_v50  ;;  %6344 = vmatprep.mubr.bf16.mxu0 %v9040_v42  ;;  %v5107_v42 = vld [vmem:[#allocation4 + $0xa20] sm:$0xff] }
 0x60a   : > { %8351 = vmatpush3.bf16.msra.mxu0 %v4822_v46  ;;  %8383 = vmatpush3.bf16.msra.mxu1 %v4882_v20  ;;  %v5092_v46 = vld [vmem:[#allocation4 + $0x9a8] sm:$0xff] }
 0x60b   : > { %8384 = vmatprep.subr.bf16.mxu1 %v4927_v29  ;;  %8416 = vmatprep.subr.bf16.mxu0 %v4987_v3  ;;  %v5152_v20 = vld [vmem:[#allocation4 + $0xb88] sm:$0xff]  ;;  %v9057_v3 = vld [vmem:[%s12603_s2 + $0x6c] ss:$44 sps:$4 sm:$0xff]  }
 0x60c   : > { %v9056_v29 = vld [vmem:[%s12603_s2 + $0x114] ss:$44 sps:$4 sm:$0xff]  }
 0x60d   : > { %8185 = vmatmul.mubr.msk.bf16.gmra.mrb[32].mxu1 %vm5423_vm12, %v11785_v31  ;;  %6345 = vmatmul.mubr.bf16.vlgmr.msra.gmra.mrb[48].mxu0 %v9041_v49  ;;  %v5052_v49 = vld [vmem:[#allocation4 + $0x868] sm:$0xff] }
 0x60e   : > { %8385 = vmatpush3.bf16.msra.mxu1 %v4887_v1  ;;  %8417 = vmatpush3.bf16.msra.mxu0 %v4947_v9  ;;  %v5112_v1 = vld [vmem:[#allocation4 + $0xa48] sm:$0xff]  ;;  %v5097_v9 = vld [vmem:[#allocation4 + $0x9d0] sm:$0xff] }
 0x60f   : > { %8386 = vmatprep.subr.bf16.mxu1 %v4932_v39  ;;  %8418 = vmatprep.subr.bf16.mxu0 %v4992_v27  ;;  %v5157_v39 = vld [vmem:[#allocation4 + $0xbb0] sm:$0xff] }
 0x610   : > { %6301 = vmatprep.mubr.bf16.mxu1 %v9225_v50  ;;  %6352 = vmatprep.mubr.bf16.mxu0 %v9042_v43  ;;  %v9043_v50 = vld [vmem:[%s12603_s2 + $0x58] ss:$44 sps:$4 sm:$0xff]   ;;  %v9058_v27 = vld [vmem:[%s12603_s2 + $0x110] ss:$44 sps:$4 sm:$0xff]   ;;  %v9059_v43 = vld [vmem:[%s12603_s2 + $0x68] ss:$44 sps:$4 sm:$0xff]  }
 0x612   : > { %8387 = vmatpush3.bf16.msra.mxu1 %v4892_v14  ;;  %8419 = vmatpush3.bf16.msra.mxu0 %v4952_v41  ;;  %v5057_v14 = vld [vmem:[#allocation4 + $0x890] sm:$0xff] }
 0x613   : > { %8388 = vmatprep.subr.bf16.mxu1 %v4937_v18  ;;  %8420 = vmatprep.subr.bf16.mxu0 %v4997_v6  ;;  %v5117_v41 = vld [vmem:[#allocation4 + $0xa70] sm:$0xff]  ;;  %v5102_v18 = vld [vmem:[#allocation4 + $0x9f8] sm:$0xff] }
 0x614   : > { %v5162_v6 = vld [vmem:[#allocation4 + $0xbd8] sm:$0xff] }
 0x615   : > { %8186 = vmatmul.mubr.msk.bf16.gmra.mrb[36].mxu1 %vm5423_vm12, %v11796_v13  ;;  %6353 = vmatmul.mubr.bf16.gmra.mrb[52].mxu0 %v9043_v50  ;;  %v9060_v50 = vld [vmem:[%s12603_s2 + $0xc4] ss:$44 sps:$4 sm:$0xff]  }
 0x616   : > { %8389 = vmatpush3.bf16.msra.mxu1 %v4897_v51  ;;  %8421 = vmatpush3.bf16.msra.mxu0 %v4957_v59  ;;  %v9061_v51 = vld [vmem:[%s12603_s2 + $0x1c] ss:$44 sps:$4 sm:$0xff]   ;;  %v5062_v59 = vld [vmem:[#allocation4 + $0x8b8] sm:$0xff] }
 0x617   : > { %8390 = vmatprep.subr.bf16.mxu1 %v4942_v57  ;;  %8422 = vmatprep.subr.bf16.mxu0 %v5002_v19  ;;  %v5122_v57 = vld [vmem:[#allocation4 + $0xa98] sm:$0xff]  ;;  %v5167_v19 = vld [vmem:[#allocation4 + $0xc00] sm:$0xff] }
 0x618   : > { %6360 = vmatprep.mubr.bf16.mxu0 %v9044_v61  ;;  %6409 = vmatprep.mubr.bf16.mxu1 %v9045_v58  ;;  %v5187_v61 = vld [vmem:[#allocation4 + $0xca0] sm:$0xff] }
 0x619   : > { %v9062_v58 = vld [vmem:[%s12603_s2 + $0xc0] ss:$44 sps:$4 sm:$0xff]  }
 0x61a   : > { %8391 = vmatpush3.bf16.msra.mxu1 %v4902_v38  ;;  %8423 = vmatpush3.bf16.msra.mxu0 %v4962_v32  ;;  %v9063_v38 = vld [vmem:[%s12603_s2 + $0x18] ss:$44 sps:$4 sm:$0xff]   ;;  %v5127_v32 = vld [vmem:[#allocation4 + $0xac0] sm:$0xff] }
 0x61b   : > { %8424 = vmatprep.subr.bf16.mxu0 %v5007_v33  ;;  %8456 = vmatprep.subr.bf16.mxu1 %v5067_v34  ;;  %v5172_v33 = vld [vmem:[#allocation4 + $0xc28] sm:$0xff] }
 0x61c   : > { %v5192_v34 = vld [vmem:[#allocation4 + $0xcc8] sm:$0xff] }
 0x61d   : > { %6361 = vmatmul.mubr.bf16.gmra.mrb[56].mxu0 %v9046_v24  ;;  %6410 = vmatmul.mubr.bf16.vlgmr.msra.gmra.mrb[40].mxu1 %v9047_v52  ;;  %v9064_v24 = vld [vmem:[%s12603_s2 + $0x11c] ss:$44 sps:$4 sm:$0xff]   ;;  %v9065_v52 = vld [vmem:[%s12603_s2 + $0x74] ss:$44 sps:$4 sm:$0xff]  }
 0x61e   : > { %8425 = vmatpush3.bf16.msra.mxu0 %v4967_v37  ;;  %8457 = vmatpush3.bf16.msra.mxu1 %v5027_v62  ;;  %v5132_v37 = vld [vmem:[#allocation4 + $0xae8] sm:$0xff]  ;;  %v5177_v62 = vld [vmem:[#allocation4 + $0xc50] sm:$0xff] }
 0x61f   : > { %8426 = vmatprep.subr.bf16.mxu0 %v5012_v8  ;;  %8458 = vmatprep.subr.bf16.mxu1 %v5072_v16  ;;  %v5197_v8 = vld [vmem:[#allocation4 + $0xcf0] sm:$0xff] }
 0x620   : > { %6368 = vmatprep.mubr.bf16.mxu0 %v9048_v23  ;;  %6417 = vmatprep.mubr.bf16.mxu1 %v9049_v48  ;;  %v9066_v16 = vld [vmem:[%s12603_s2 + $0x118] ss:$44 sps:$4 sm:$0xff]   ;;  %v9067_v23 = vld [vmem:[%s12603_s2 + $0x70] ss:$44 sps:$4 sm:$0xff]  }
 0x621   : > { %v5137_v48 = vld [vmem:[#allocation4 + $0xb10] sm:$0xff] }
 0x622   : > { %8427 = vmatpush3.bf16.msra.mxu0 %v4972_v5  ;;  %8459 = vmatpush3.bf16.msra.mxu1 %v5032_v26  ;;  %v5182_v5 = vld [vmem:[#allocation4 + $0xc78] sm:$0xff] }
 0x623   : > { %8428 = vmatprep.subr.bf16.mxu0 %v5017_v2  ;;  %8460 = vmatprep.subr.bf16.mxu1 %v5077_v63  ;;  %v5202_v26 = vld [vmem:[#allocation4 + $0xd18] sm:$0xff]  ;;  %v9068_v2 = vld [vmem:[%s12603_s2 + $0xcc] ss:$44 sps:$4 sm:$0xff]  }
 0x624   : > { %v9069_v63 = vld [vmem:[%s12603_s2 + $0x24] ss:$44 sps:$4 sm:$0xff]  }
 0x625   : > { %6369 = vmatmul.mubr.bf16.gmra.mrb[60].mxu0 %v9050_v54  ;;  %6418 = vmatmul.mubr.bf16.gmra.mrb[44].mxu1 %v9051_v0  ;;  %v5142_v54 = vld [vmem:[#allocation4 + $0xb38] sm:$0xff]  ;;  %v9070_v0 = vld [vmem:[%s12603_s2 + $0xc8] ss:$44 sps:$4 sm:$0xff]  }
 0x626   : > { %8429 = vmatpush3.bf16.msra.mxu0 %v4977_v60  ;;  %8461 = vmatpush3.bf16.msra.mxu1 %v5037_v40  ;;  %v9071_v60 = vld [vmem:[%s12603_s2 + $0x124] ss:$44 sps:$4 sm:$0xff]   ;;  %v9072_v40 = vld [vmem:[%s12603_s2 + $0x120] ss:$44 sps:$4 sm:$0xff]  }
 0x627   : > { %8430 = vmatprep.subr.bf16.mxu0 %v5022_v21  ;;  %8462 = vmatprep.subr.bf16.mxu1 %v5082_v10 }
 0x628   : > { %6425 = vmatprep.mubr.bf16.mxu1 %v9052_v44  ;;  %6474 = vmatprep.mubr.bf16.mxu0 %v9053_v55 }
 0x62a   : > { %8431 = vmatpush3.bf16.msra.mxu0 %v4982_v30  ;;  %8463 = vmatpush3.bf16.msra.mxu1 %v5042_v15 }
 0x62b   : > { %8464 = vmatprep.subr.bf16.mxu1 %v5087_v53  ;;  %8496 = vmatprep.subr.bf16.mxu0 %v5147_v12 }
 0x62d   : > { %6426 = vmatmul.mubr.bf16.gmra.mrb[48].mxu1 %v9054_v36  ;;  %6475 = vmatmul.mubr.bf16.vlgmr.msra.gmra.mrb[64].mxu0 %v9055_v28 }
 0x62e   : > { %8465 = vmatpush3.bf16.msra.mxu1 %v5047_v22  ;;  %8497 = vmatpush3.bf16.msra.mxu0 %v5107_v42 }
 0x62f   : > { %8466 = vmatprep.subr.bf16.mxu1 %v5092_v46  ;;  %8498 = vmatprep.subr.bf16.mxu0 %v5152_v20 }
 0x630   : > { %6433 = vmatprep.mubr.bf16.mxu1 %v9056_v29  ;;  %6482 = vmatprep.mubr.bf16.mxu0 %v9057_v3 }
 0x632   : > { %8467 = vmatpush3.bf16.msra.mxu1 %v5052_v49  ;;  %8499 = vmatpush3.bf16.msra.mxu0 %v5112_v1 }
 0x633   : > { %8468 = vmatprep.subr.bf16.mxu1 %v5097_v9  ;;  %8500 = vmatprep.subr.bf16.mxu0 %v5157_v39 }
 0x635   : > { %6434 = vmatmul.mubr.bf16.gmra.mrb[52].mxu1 %v9058_v27  ;;  %6483 = vmatmul.mubr.bf16.gmra.mrb[68].mxu0 %v9059_v43 }
 0x636   : > { %8469 = vmatpush3.bf16.msra.mxu1 %v5057_v14  ;;  %8501 = vmatpush3.bf16.msra.mxu0 %v5117_v41 }
 0x637   : > { %8470 = vmatprep.subr.bf16.mxu1 %v5102_v18  ;;  %8502 = vmatprep.subr.bf16.mxu0 %v5162_v6 }
 0x638   : > { %6490 = vmatprep.mubr.bf16.mxu0 %v9060_v50  ;;  %6539 = vmatprep.mubr.bf16.mxu1 %v9061_v51 }
 0x63a   : > { %8471 = vmatpush3.bf16.msra.mxu1 %v5062_v59  ;;  %8503 = vmatpush3.bf16.msra.mxu0 %v5122_v57 }
 0x63b   : > { %8504 = vmatprep.subr.bf16.mxu0 %v5167_v19  ;;  %8562 = vmatprep.subr.bf16.mxu1 %v5187_v61 }
 0x63d   : > { %6491 = vmatmul.mubr.bf16.gmra.mrb[72].mxu0 %v9062_v58  ;;  %6540 = vmatmul.mubr.bf16.vlgmr.msra.gmra.mrb[56].mxu1 %v9063_v38 }
 0x63e   : > { %8505 = vmatpush3.bf16.msra.mxu0 %v5127_v32  ;;  %8563 = vmatpush3.bf16.msra.mxu1 %v5187_v61 }
 0x63f   : > { %8506 = vmatprep.subr.bf16.mxu0 %v5172_v33  ;;  %8564 = vmatprep.subr.bf16.mxu1 %v5192_v34 }
 0x640   : > { %6498 = vmatprep.mubr.bf16.mxu0 %v9064_v24  ;;  %6547 = vmatprep.mubr.bf16.mxu1 %v9065_v52 }
 0x642   : > { %8507 = vmatpush3.bf16.msra.mxu0 %v5132_v37  ;;  %8565 = vmatpush3.bf16.msra.mxu1 %v5192_v34 }
 0x643   : > { %8508 = vmatprep.subr.bf16.mxu0 %v5177_v62  ;;  %8566 = vmatprep.subr.bf16.mxu1 %v5197_v8 }
 0x645   : > { %6499 = vmatmul.mubr.bf16.gmra.mrb[76].mxu0 %v9066_v16  ;;  %6548 = vmatmul.mubr.bf16.gmra.mrb[60].mxu1 %v9067_v23 }
 0x646   : > { %8509 = vmatpush3.bf16.msra.mxu0 %v5137_v48  ;;  %8567 = vmatpush3.bf16.msra.mxu1 %v5197_v8 }
 0x647   : > { %8510 = vmatprep.subr.bf16.mxu0 %v5182_v5  ;;  %8568 = vmatprep.subr.bf16.mxu1 %v5202_v26 }
 0x648   : > { %6555 = vmatprep.mubr.bf16.mxu1 %v9068_v2  ;;  %6604 = vmatprep.mubr.bf16.mxu0 %v9069_v63 }
 0x64a   : > { %8511 = vmatpush3.bf16.msra.mxu0 %v5142_v54  ;;  %8569 = vmatpush3.bf16.msra.mxu1 %v5202_v26 }
 0x64d   : > { %6556 = vmatmul.mubr.bf16.gmra.mrb[64].mxu1 %v9070_v0  ;;  %6605 = vmatmul.mubr.bf16.vlgmr.msra.gmra.mrb[80].mxu0 %v11681_v11 }
 0x64e   : > { %6563 = vmatprep.mubr.bf16.mxu1 %v9071_v60  ;;  %6612 = vmatprep.mubr.bf16.mxu0 %v11686_v47 }
 0x655   : > { %6564 = vmatmul.mubr.bf16.gmra.mrb[68].mxu1 %v9072_v40  ;;  %6613 = vmatmul.mubr.bf16.gmra.mrb[84].mxu0 %v11701_v4 }
 0x656   : > { %6620 = vmatprep.mubr.bf16.mxu0 %v11706_v17  ;;  %8570 = vmatprep.mubr.msk.bf16.mxu1 %vm5423_vm12, %v11755_v25 }
 0x65d   : > { %6621 = vmatmul.mubr.bf16.gmra.mrb[88].mxu0 %v11719_v7  ;;  %8571 = vmatmul.mubr.msk.bf16.vlgmr.msra.gmra.mrb[72].mxu1 %vm5423_vm12, %v11770_v45 }
 0x65e   : > { %6628 = vmatprep.mubr.bf16.mxu0 %v11724_v35  ;;  %8574 = vmatprep.mubr.msk.bf16.mxu1 %vm5423_vm12, %v11785_v31 }
 0x665   : > { %6629 = vmatmul.mubr.bf16.gmra.mrb[92].mxu0 %v11737_v56  ;;  %8575 = vmatmul.mubr.msk.bf16.gmra.mrb[76].mxu1 %vm5423_vm12, %v11796_v13 }
 0x6c0   : > { %v5835_v11 = vpop.f32.mrb[32].mxu0 }
 0x6c1   : > { %v6742_v47 = vmul.f32 1.442695, %v5835_v11  ;;  %v5837_v4 = vpop.f32.mrb[33].mxu0  ;;  %vm6702_vm11 = vcmp.gt.f32.partialorder %v5835_v11, 0.0 }
 0x6c2   : > { %v6744_v17 = vmul.f32 1.442695, %v5837_v4  ;;  %v5839_v25 = vpop.f32.mrb[34].mxu0  ;;  %vm6703_vm13 = vcmp.gt.f32.partialorder %v5837_v4, 0.0 }
 0x6c3   : > { %8960 = vpow2.f32 %v6742_v47  ;;  %v6752_v7 = vmul.f32 1.442695, %v5839_v25  ;;  %v5841_v21 = vpop.f32.mrb[35].mxu0  ;;  %vm6707_vm14 = vcmp.gt.f32.partialorder %v5839_v25, 0.0 }
 0x6c4   : > { %8962 = vpow2.f32 %v6744_v17  ;;  %v6754_v45 = vmul.f32 1.442695, %v5841_v21  ;;  %vm6708_vm15 = vcmp.gt.f32.partialorder %v5841_v21, 0.0 }
 0x6c5   : > { %8964 = vpow2.f32 %v6752_v7 }
 0x6c6   : > { %8966 = vpow2.f32 %v6754_v45 }
 0x6c8   : > { %v11922_v35 = vpop.f32.mrb[36].mxu0 }
 0x6c9   : > { %v6762_v31 = vmul.f32 1.442695, %v11922_v35  ;;  %v11925_v56 = vpop.f32.mrb[37].mxu0  ;;  %vm6712_vm3 = vcmp.gt.f32.partialorder %v11922_v35, 0.0 }
 0x6ca   : > { %v6764_v13 = vmul.f32 1.442695, %v11925_v56  ;;  %v11928_v10 = vpop.f32.mrb[38].mxu0  ;;  %vm6713_vm9 = vcmp.gt.f32.partialorder %v11925_v56, 0.0 }
 0x6cb   : > { %8968 = vpow2.f32 %v6762_v31  ;;  %v6772_v44 = vmul.f32 1.442695, %v11928_v10  ;;  %v11931_v55 = vpop.f32.mrb[39].mxu0  ;;  %vm6717_vm4 = vcmp.gt.f32.partialorder %v11928_v10, 0.0 }
 0x6cc   : > { %8970 = vpow2.f32 %v6764_v13  ;;  %v6774_v30 = vmul.f32 1.442695, %v11931_v55  ;;  %vm6718_vm6 = vcmp.gt.f32.partialorder %v11931_v55, 0.0 }
 0x6cd   : > { %v8961_v15 = vpop.eup %8960  ;;  %8972 = vpow2.f32 %v6772_v44 }
 0x6ce   : > { %v8963_v53 = vpop.eup %8962  ;;  %v8191_v12 = vadd.f32 -1.0, %v8961_v15  ;;  %8974 = vpow2.f32 %v6774_v30 }
 0x6cf   : > { %v8965_v36 = vpop.eup %8964  ;;  %v8192_v28 = vadd.f32 -1.0, %v8963_v53 }
 0x6d0   : > { %v8967_v22 = vpop.eup %8966  ;;  %v6862_v42 = vmul.f32 1.6732632, %v8191_v12  ;;  %v8196_v46 = vadd.f32 -1.0, %v8965_v36  ;;  %v11934_v20 = vpop.f32.mrb[40].mxu0 }
 0x6d1   : > { %v11936_v29 = vpop.f32.mrb[24].mxu1  ;;  %v6863_v3 = vmul.f32 1.6732632, %v8192_v28  ;;  %v8197_v49 = vadd.f32 -1.0, %v8967_v22  ;;  %v6782_v1 = vmul.f32 1.442695, %v11934_v20 }
 0x6d2   : > { %v6902_v9 = vsel %vm6702_vm11, %v5835_v11, %v6862_v42  ;;  %v6867_v39 = vmul.f32 1.6732632, %v8196_v46  ;;  %v6746_v27 = vmul.f32 1.442695, %v11936_v29  ;;  %v11940_v43 = vpop.f32.mrb[41].mxu0  ;;  %v11942_v18 = vpop.f32.mrb[25].mxu1 }
 0x6d3   : > { %v6903_v14 = vsel %vm6703_vm13, %v5837_v4, %v6863_v3  ;;  %v6868_v41 = vmul.f32 1.6732632, %v8197_v49  ;;  %8976 = vpow2.f32 %v6782_v1  ;;  %v11944_v6 = vpop.f32.mrb[42].mxu0  ;;  %v6942_v50 = vmul.f32 1.050701, %v6902_v9  ;;  %v11946_v57 = vpop.f32.mrb[26].mxu1 }
 0x6d4   : > { %v6943_v51 = vmul.f32 1.050701, %v6903_v14  ;;  %v6907_v59 = vsel %vm6707_vm14, %v5839_v25, %v6867_v39  ;;  %8978 = vpow2.f32 %v6746_v27  ;;  %v11948_v19 = vpop.f32.mrb[43].mxu0  ;;  %v6784_v32 = vmul.f32 1.442695, %v11940_v43  ;;  %v11952_v33 = vpop.f32.mrb[27].mxu1 }
 0x6d5   : > { %v8969_v61 = vpop.eup %8968  ;;  %v6947_v58 = vmul.f32 1.050701, %v6907_v59  ;;  %v6908_v38 = vsel %vm6708_vm15, %v5841_v21, %v6868_v41  ;;  %v6748_v37 = vmul.f32 1.442695, %v11942_v18  ;;  %v6792_v23 = vmul.f32 1.442695, %v11944_v6 }
 0x6d6   : > { %v8971_v34 = vpop.eup %8970  ;;  %v6948_v24 = vmul.f32 1.050701, %v6908_v38  ;;  %v8201_v52 = vadd.f32 -1.0, %v8969_v61  ;;  %8980 = vpow2.f32 %v6784_v32  ;;  %v6756_v17 = vmul.f32 1.442695, %v11946_v57 }
 0x6d7   : > { %v8973_v62 = vpop.eup %8972  ;;  %v6982_v8 = vpack.c.bf16 %v6947_v58, %v6942_v50  ;;  %v8202_v16 = vadd.f32 -1.0, %v8971_v34  ;;  %8982 = vpow2.f32 %v6748_v37  ;;  %vm6722_vm7 = vcmp.gt.f32.partialorder %v11934_v20, 0.0 }
 0x6d8   : > { %v8975_v48 = vpop.eup %8974  ;;  %v6983_v5 = vpack.c.bf16 %v6948_v24, %v6943_v51  ;;  %v6872_v26 = vmul.f32 1.6732632, %v8201_v52  ;;  %v8206_v2 = vadd.f32 -1.0, %v8973_v62  ;;  %v11957_v63 = vpop.f32.mrb[44].mxu0  ;;  %8984 = vpow2.f32 %v6792_v23 }
 0x6d9   : > { %v11959_v54 = vpop.f32.mrb[28].mxu1  ;;  %7002 = vst [vmem:[#allocation5] sm:$0xff] %v6982_v8  ;;  %v6873_v0 = vmul.f32 1.6732632, %v8202_v16  ;;  %v8207_v60 = vadd.f32 -1.0, %v8975_v48  ;;  %v11962_v40 = vpop.f32.mrb[45].mxu0  ;;  %8986 = vpow2.f32 %v6756_v17 }
 0x6da   : > { %v11964_v11 = vpop.f32.mrb[29].mxu1  ;;  %7003 = vst [vmem:[#allocation5 + $0x8] sm:$0xff] %v6983_v5  ;;  %v6912_v47 = vsel %vm6712_vm3, %v11922_v35, %v6872_v26  ;;  %v6877_v4 = vmul.f32 1.6732632, %v8206_v2  ;;  %v11971_v25 = vpop.f32.mrb[46].mxu0  ;;  %vm6704_vm8 = vcmp.gt.f32.partialorder %v11936_v29, 0.0 }
 0x6db   : > { %v6913_v7 = vsel %vm6713_vm9, %v11925_v56, %v6873_v0  ;;  %v6878_v21 = vmul.f32 1.6732632, %v8207_v60  ;;  %v6794_v45 = vmul.f32 1.442695, %v11948_v19  ;;  %v6952_v31 = vmul.f32 1.050701, %v6912_v47 }
 0x6dc   : > { %v6953_v13 = vmul.f32 1.050701, %v6913_v7  ;;  %v6917_v35 = vsel %vm6717_vm4, %v11928_v10, %v6877_v4  ;;  %v11981_v44 = vpop.f32.mrb[30].mxu1  ;;  %v11983_v30 = vpop.f32.mrb[47].mxu0  ;;  %v6758_v12 = vmul.f32 1.442695, %v11952_v33 }
 0x6dd   : > { %v8977_v15 = vpop.eup %8976  ;;  %v6957_v53 = vmul.f32 1.050701, %v6917_v35  ;;  %v6918_v56 = vsel %vm6718_vm6, %v11931_v55, %v6878_v21  ;;  %8988 = vpow2.f32 %v6794_v45  ;;  %v11987_v36 = vpop.f32.mrb[31].mxu1  ;;  %v6802_v10 = vmul.f32 1.442695, %v11957_v63 }
 0x6de   : > { %v8979_v28 = vpop.eup %8978  ;;  %v6958_v22 = vmul.f32 1.050701, %v6918_v56  ;;  %v8211_v42 = vadd.f32 -1.0, %v8977_v15  ;;  %vm6723_vm5 = vcmp.gt.f32.partialorder %v11940_v43, 0.0  ;;  %8990 = vpow2.f32 %v6758_v12 }
 0x6df   : > { %v6987_v46 = vpack.c.bf16 %v6957_v53, %v6952_v31  ;;  %v8193_v3 = vadd.f32 -1.0, %v8979_v28  ;;  %8992 = vpow2.f32 %v6802_v10  ;;  %v6766_v55 = vmul.f32 1.442695, %v11959_v54 }
 0x6e0   : > { %v6988_v49 = vpack.c.bf16 %v6958_v22, %v6953_v13  ;;  %v6882_v1 = vmul.f32 1.6732632, %v8211_v42  ;;  %v11993_v9 = vpop.f32.mrb[32].mxu1  ;;  %v8352_v39 = vpop.f32.mrb[48].mxu0  ;;  %vm6705_vm2 = vcmp.gt.f32.partialorder %v11942_v18, 0.0  ;;  %vm6727_vm11 = vcmp.gt.f32.partialorder %v11944_v6, 0.0 }
 0x6e1   : > { %v8981_v27 = vpop.eup %8980  ;;  %7007 = vst [vmem:[#allocation5 + $0x28] sm:$0xff] %v6987_v46  ;;  %v6864_v14 = vmul.f32 1.6732632, %v8193_v3  ;;  %v6804_v41 = vmul.f32 1.442695, %v11962_v40  ;;  %vm6709_vm13 = vcmp.gt.f32.partialorder %v11946_v57, 0.0  ;;  %8994 = vpow2.f32 %v6766_v55 }
 0x6e2   : > { %v8983_v50 = vpop.eup %8982  ;;  %7008 = vst [vmem:[#allocation5 + $0x30] sm:$0xff] %v6988_v49  ;;  %v6922_v51 = vsel %vm6722_vm7, %v11934_v20, %v6882_v1  ;;  %v8212_v59 = vadd.f32 -1.0, %v8981_v27  ;;  %v6768_v61 = vmul.f32 1.442695, %v11964_v11  ;;  %v12003_v58 = vpop.f32.mrb[33].mxu1  ;;  %vm6728_vm14 = vcmp.gt.f32.partialorder %v11948_v19, 0.0 }
 0x6e3   : > { %v8353_v38 = vpop.f32.mrb[49].mxu0  ;;  %v8985_v32 = vpop.eup %8984  ;;  %v6904_v34 = vsel %vm6704_vm8, %v11936_v29, %v6864_v14  ;;  %v8194_v24 = vadd.f32 -1.0, %v8983_v50  ;;  %8996 = vpow2.f32 %v6804_v41  ;;  %v6962_v37 = vmul.f32 1.050701, %v6922_v51 }
 0x6e4   : > { %v12009_v52 = vpop.f32.mrb[34].mxu1  ;;  %v12011_v20 = vpop.f32.mrb[50].mxu0  ;;  %v6883_v62 = vmul.f32 1.6732632, %v8212_v59  ;;  %v8216_v8 = vadd.f32 -1.0, %v8985_v32  ;;  %8998 = vpow2.f32 %v6768_v61  ;;  %vm6710_vm15 = vcmp.gt.f32.partialorder %v11952_v33, 0.0 }
 0x6e5   : > { %v12013_v16 = vpop.f32.mrb[35].mxu1  ;;  %v6944_v23 = vmul.f32 1.050701, %v6904_v34  ;;  %v6865_v48 = vmul.f32 1.6732632, %v8194_v24  ;;  %v8987_v5 = vpop.eup %8986  ;;  %vm6732_vm3 = vcmp.gt.f32.partialorder %v11957_v63, 0.0  ;;  %v12038_v56 = vadd.f32 %v8353_v38, %v8352_v39 }
 0x6e6   : > { %v6812_v29 = vmul.f32 1.442695, %v11971_v25  ;;  %v6923_v26 = vsel %vm6723_vm5, %v11940_v43, %v6883_v62  ;;  %v6887_v2 = vmul.f32 1.6732632, %v8216_v8  ;;  %v6776_v0 = vmul.f32 1.442695, %v11981_v44 }
 0x6e7   : > { %v12022_v60 = vpop.f32.mrb[51].mxu0  ;;  %v8989_v47 = vpop.eup %8988  ;;  %v6963_v4 = vmul.f32 1.050701, %v6923_v26  ;;  %v6905_v17 = vsel %vm6705_vm2, %v11942_v18, %v6865_v48  ;;  %v8198_v7 = vadd.f32 -1.0, %v8987_v5  ;;  %vm6714_vm9 = vcmp.gt.f32.partialorder %v11959_v54, 0.0 }
 0x6e8   : > { %9000 = vpow2.f32 %v6812_v29  ;;  %v12027_v21 = vmul.f32 1.050701, %v6905_v17  ;;  %v6927_v43 = vsel %vm6727_vm11, %v11944_v6, %v6887_v2  ;;  %v8217_v45 = vadd.f32 -1.0, %v8989_v47  ;;  %v12033_v31 = vpop.f32.mrb[36].mxu1  ;;  %v12035_v13 = vpop.f32.mrb[52].mxu0 }
 0x6e9   : > { %9002 = vpow2.f32 %v6776_v0  ;;  %v8991_v35 = vpop.eup %8990  ;;  %v6967_v15 = vmul.f32 1.050701, %v6927_v43  ;;  %v6869_v53 = vmul.f32 1.6732632, %v8198_v7  ;;  %v6814_v18 = vmul.f32 1.442695, %v11983_v30 }
 0x6ea   : > { %v8993_v12 = vpop.eup %8992  ;;  %v6888_v28 = vmul.f32 1.6732632, %v8217_v45  ;;  %v8199_v22 = vadd.f32 -1.0, %v8991_v35  ;;  %vm6733_vm4 = vcmp.gt.f32.partialorder %v11962_v40, 0.0  ;;  %v6778_v6 = vmul.f32 1.442695, %v11987_v36 }
 0x6eb   : > { %v6992_v42 = vpack.c.bf16 %v6967_v15, %v6962_v37  ;;  %v6909_v10 = vsel %vm6709_vm13, %v11946_v57, %v6869_v53  ;;  %v8221_v46 = vadd.f32 -1.0, %v8993_v12  ;;  %9004 = vpow2.f32 %v6814_v18  ;;  %v12045_v3 = vpop.f32.mrb[37].mxu1  ;;  %v12047_v49 = vpop.f32.mrb[53].mxu0 }
 0x6ec   : > { %v8995_v1 = vpop.eup %8994  ;;  %v6949_v55 = vmul.f32 1.050701, %v6909_v10  ;;  %v6928_v39 = vsel %vm6728_vm14, %v11948_v19, %v6888_v28  ;;  %v6870_v27 = vmul.f32 1.6732632, %v8199_v22  ;;  %9006 = vpow2.f32 %v6778_v6  ;;  %v12052_v14 = vpop.f32.mrb[38].mxu1 }
 0x6ed   : > { %v12054_v41 = vpop.f32.mrb[54].mxu0  ;;  %v8997_v50 = vpop.eup %8996  ;;  %7012 = vst [vmem:[#allocation5 + $0x50] sm:$0xff] %v6992_v42  ;;  %v6968_v57 = vmul.f32 1.050701, %v6928_v39  ;;  %v6892_v51 = vmul.f32 1.6732632, %v8221_v46  ;;  %v8357_v46 = vadd.f32 %v12022_v60, %v12011_v20 }
 0x6ee   : > { %v8203_v59 = vadd.f32 -1.0, %v8995_v1  ;;  %vm6715_vm6 = vcmp.gt.f32.partialorder %v11964_v11, 0.0  ;;  %v8999_v61 = vpop.eup %8998  ;;  %v6984_v38 = vpack.c.bf16 %v6949_v55, %v6944_v23  ;;  %v6910_v32 = vsel %vm6710_vm15, %v11952_v33, %v6870_v27  ;;  %v12061_v24 = vpop.f32.mrb[39].mxu1 }
 0x6ef   : > { %v8222_v19 = vadd.f32 -1.0, %v8997_v50  ;;  %v6786_v34 = vmul.f32 1.442695, %v11993_v9  ;;  %v12063_v37 = vpop.f32.mrb[55].mxu0  ;;  %v6993_v62 = vpack.c.bf16 %v6968_v57, %v6963_v4  ;;  %v6950_v8 = vmul.f32 1.050701, %v6910_v32 }
 0x6f0   : > { %v6932_v48 = vsel %vm6732_vm3, %v11957_v63, %v6892_v51  ;;  %v6874_v29 = vmul.f32 1.6732632, %v8203_v59  ;;  %7004 = vst [vmem:[#allocation5 + $0x10] sm:$0xff] %v6984_v38  ;;  %v8204_v5 = vadd.f32 -1.0, %v8999_v61  ;;  %vm6737_vm7 = vcmp.gt.f32.partialorder %v11971_v25, 0.0  ;;  %v8392_v33 = vpop.f32.mrb[40].mxu1 }
 0x6f1   : > { %v6893_v23 = vmul.f32 1.6732632, %v8222_v19  ;;  %9008 = vpow2.f32 %v6786_v34  ;;  %7013 = vst [vmem:[#allocation5 + $0x58] sm:$0xff] %v6993_v62  ;;  %v6985_v2 = vpack.c.bf16 %v6950_v8, %v12027_v21  ;;  %vm6719_vm8 = vcmp.gt.f32.partialorder %v11981_v44, 0.0  ;;  %v8393_v47 = vpop.f32.mrb[41].mxu1  ;;  %v12075_v4 = vpop.f32.mrb[56].mxu0 }
 0x6f2   : > { %v9001_v26 = vpop.eup %9000  ;;  %v6914_v0 = vsel %vm6714_vm9, %v11959_v54, %v6874_v29  ;;  %v6788_v63 = vmul.f32 1.442695, %v12003_v58  ;;  %v6972_v7 = vmul.f32 1.050701, %v6932_v48  ;;  %v6875_v45 = vmul.f32 1.6732632, %v8204_v5 }
 0x6f3   : > { %v9003_v17 = vpop.eup %9002  ;;  %v6933_v43 = vsel %vm6733_vm4, %v11962_v40, %v6893_v23  ;;  %v8226_v35 = vadd.f32 -1.0, %v9001_v26  ;;  %v12080_v21 = vpop.f32.mrb[42].mxu1  ;;  %7005 = vst [vmem:[#allocation5 + $0x18] sm:$0xff] %v6985_v2  ;;  %v6954_v15 = vmul.f32 1.050701, %v6914_v0  ;;  %vm6738_vm5 = vcmp.gt.f32.partialorder %v11983_v30, 0.0 }
 0x6f4   : > { %v8208_v54 = vadd.f32 -1.0, %v9003_v17  ;;  %9010 = vpow2.f32 %v6788_v63  ;;  %v8396_v53 = vpop.f32.mrb[43].mxu1  ;;  %v12083_v18 = vpop.f32.mrb[57].mxu0  ;;  %vm6720_vm2 = vcmp.gt.f32.partialorder %v11987_v36, 0.0  ;;  %v6796_v28 = vmul.f32 1.442695, %v12009_v52 }
 0x6f5   : > { %v6897_v12 = vmul.f32 1.6732632, %v8226_v35  ;;  %v12087_v22 = vpop.f32.mrb[58].mxu0  ;;  %v9005_v40 = vpop.eup %9004  ;;  %v6973_v6 = vmul.f32 1.050701, %v6933_v43  ;;  %v6915_v55 = vsel %vm6715_vm6, %v11964_v11, %v6875_v45  ;;  %vm6724_vm11 = vcmp.gt.f32.partialorder %v11993_v9, 0.0 }
 0x6f6   : > { %v6879_v42 = vmul.f32 1.6732632, %v8208_v54  ;;  %v6798_v10 = vmul.f32 1.442695, %v12013_v16  ;;  %v9007_v1 = vpop.eup %9006  ;;  %v8227_v27 = vadd.f32 -1.0, %v9005_v40  ;;  %9012 = vpow2.f32 %v6796_v28  ;;  %v8368_v50 = vpop.f32.mrb[59].mxu0 }
 0x6f7   : > { %v6937_v39 = vsel %vm6737_vm7, %v11971_v25, %v6897_v12  ;;  %v8209_v59 = vadd.f32 -1.0, %v9007_v1  ;;  %v6806_v11 = vmul.f32 1.442695, %v12033_v31  ;;  %v8394_v61 = vadd.f32 %v8393_v47, %v8392_v33 }
 0x6f8   : > { %v6977_v57 = vmul.f32 1.050701, %v6937_v39  ;;  %v6919_v51 = vsel %vm6719_vm8, %v11981_v44, %v6879_v42  ;;  %9014 = vpow2.f32 %v6798_v10  ;;  %v6898_v60 = vmul.f32 1.6732632, %v8227_v27  ;;  %v8398_v19 = vpop.f32.mrb[44].mxu1  ;;  %v8370_v29 = vpop.f32.mrb[60].mxu0 }
 0x6f9   : > { %v6959_v20 = vmul.f32 1.050701, %v6919_v51  ;;  %v6880_v32 = vmul.f32 1.6732632, %v8209_v59  ;;  %vm6725_vm13 = vcmp.gt.f32.partialorder %v12003_v58, 0.0  ;;  %9016 = vpow2.f32 %v6806_v11  ;;  %v8399_v48 = vpop.f32.mrb[45].mxu1 }
 0x6fa   : > { %v6997_v38 = vpack.c.bf16 %v6977_v57, %v6972_v7  ;;  %v6808_v25 = vmul.f32 1.442695, %v12045_v3  ;;  %v6955_v62 = vmul.f32 1.050701, %v6915_v55  ;;  %v6938_v44 = vsel %vm6738_vm5, %v11983_v30, %v6898_v60  ;;  %v8401_v26 = vpop.f32.mrb[46].mxu1  ;;  %v8371_v2 = vpop.f32.mrb[61].mxu0 }
 0x6fb   : > { %v9009_v34 = vpop.eup %9008  ;;  %v6989_v8 = vpack.c.bf16 %v6959_v20, %v6954_v15  ;;  %v6978_v23 = vmul.f32 1.050701, %v6938_v44  ;;  %v6920_v5 = vsel %vm6720_vm2, %v11987_v36, %v6880_v32  ;;  %vm6729_vm14 = vcmp.gt.f32.partialorder %v12009_v52, 0.0  ;;  %v8402_v47 = vpop.f32.mrb[47].mxu1 }
 0x6fc   : > { %7017 = vst [vmem:[#allocation5 + $0x78] sm:$0xff] %v6997_v38  ;;  %v8213_v33 = vadd.f32 -1.0, %v9009_v34  ;;  %9018 = vpow2.f32 %v6808_v25  ;;  %v6960_v0 = vmul.f32 1.050701, %v6920_v5  ;;  %v6816_v63 = vmul.f32 1.442695, %v12052_v14 }
 0x6fd   : > { %7009 = vst [vmem:[#allocation5 + $0x38] sm:$0xff] %v6989_v8  ;;  %v6412_v30 = vadd.f32 %v8394_v61, %v12038_v56  ;;  %v6998_v7 = vpack.c.bf16 %v6978_v23, %v6973_v6  ;;  %v6818_v45 = vmul.f32 1.442695, %v12061_v24  ;;  %v8360_v36 = vadd.f32 %v12047_v49, %v12035_v13  ;;  %v8373_v35 = vpop.f32.mrb[62].mxu0 }
 0x6fe   : > { %v9011_v17 = vpop.eup %9010  ;;  %v6884_v43 = vmul.f32 1.6732632, %v8213_v33  ;;  %v6990_v15 = vpack.c.bf16 %v6960_v0, %v6955_v62  ;;  %9020 = vpow2.f32 %v6816_v63  ;;  %v8397_v12 = vadd.f32 %v8396_v53, %v12080_v21  ;;  %v8374_v28 = vpop.f32.mrb[63].mxu0 }
 0x6ff   : > { %v8214_v54 = vadd.f32 -1.0, %v9011_v17  ;;  %7018 = vst [vmem:[#allocation5 + $0x80] sm:$0xff] %v6998_v7  ;;  %vm6730_vm15 = vcmp.gt.f32.partialorder %v12013_v16, 0.0  ;;  %9022 = vpow2.f32 %v6818_v45  ;;  %v8363_v56 = vadd.f32 %v12063_v37, %v12054_v41 }
 0x700   : > { %v8366_v40 = vadd.f32 %v12083_v18, %v12075_v4  ;;  %v9013_v6 = vpop.eup %9012  ;;  %7010 = vst [vmem:[#allocation5 + $0x40] sm:$0xff] %v6990_v15  ;;  %v6924_v13 = vsel %vm6724_vm11, %v11993_v9, %v6884_v43  ;;  %v6415_v42 = vadd.f32 %v8397_v12, %v8357_v46  ;;  %v8400_v21 = vadd.f32 %v8399_v48, %v8398_v19  ;;  %v8404_v53 = vpop.f32.mrb[48].mxu1 }
 0x701   : > { %v6885_v49 = vmul.f32 1.6732632, %v8214_v54  ;;  %v8432_v10 = vpop.f32.mrb[64].mxu0  ;;  %v8218_v55 = vadd.f32 -1.0, %v9013_v6  ;;  %v8369_v39 = vadd.f32 %v8368_v50, %v12087_v22  ;;  %v8403_v27 = vadd.f32 %v8402_v47, %v8401_v26  ;;  %v8405_v37 = vpop.f32.mrb[49].mxu1 }
 0x702   : > { %v9015_v1 = vpop.eup %9014  ;;  %v8372_v41 = vadd.f32 %v8371_v2, %v8370_v29  ;;  %v8433_v57 = vpop.f32.mrb[65].mxu0  ;;  %v6420_v51 = vadd.f32 %v8400_v21, %v8360_v36  ;;  %v12130_v9 = vadd.f32 %v8374_v28, %v8373_v35  ;;  %v6964_v20 = vmul.f32 1.050701, %v6924_v13 }
 0x703   : > { %v6925_v4 = vsel %vm6725_vm13, %v12003_v58, %v6885_v49  ;;  %v8219_v18 = vadd.f32 -1.0, %v9015_v1  ;;  %v8407_v46 = vpop.f32.mrb[50].mxu1  ;;  %v8435_v59 = vpop.f32.mrb[66].mxu0  ;;  %v6889_v60 = vmul.f32 1.6732632, %v8218_v55  ;;  %v6423_v11 = vadd.f32 %v8403_v27, %v8363_v56 }
 0x704   : > { %v8406_v61 = vadd.f32 %v8405_v37, %v8404_v53  ;;  %v8408_v38 = vpop.f32.mrb[51].mxu1  ;;  %v8436_v22 = vpop.f32.mrb[67].mxu0  ;;  %v8434_v25 = vadd.f32 %v8433_v57, %v8432_v10  ;;  %v6965_v8 = vmul.f32 1.050701, %v6925_v4  ;;  %vm6734_vm3 = vcmp.gt.f32.partialorder %v12033_v31, 0.0 }
 0x705   : > { %v9017_v50 = vpop.eup %9016  ;;  %v6890_v32 = vmul.f32 1.6732632, %v8219_v18  ;;  %v8409_v19 = vadd.f32 %v8408_v38, %v8407_v46  ;;  %v8437_v34 = vadd.f32 %v8436_v22, %v8435_v59  ;;  %v6929_v58 = vsel %vm6729_vm14, %v12009_v52, %v6889_v60 }
 0x706   : > { %v9019_v62 = vpop.eup %9018  ;;  %v8223_v44 = vadd.f32 -1.0, %v9017_v50  ;;  %v6428_v48 = vadd.f32 %v8406_v61, %v8366_v40  ;;  %v6969_v29 = vmul.f32 1.050701, %v6929_v58  ;;  %v6477_v33 = vadd.f32 %v8434_v25, %v6412_v30 }
 0x707   : > { %v6930_v23 = vsel %vm6730_vm15, %v12013_v16, %v6890_v32  ;;  %v8224_v5 = vadd.f32 -1.0, %v9019_v62  ;;  %v6431_v0 = vadd.f32 %v8409_v19, %v8369_v39  ;;  %v6480_v63 = vadd.f32 %v8437_v34, %v6415_v42 }
 0x708   : > { %v6970_v26 = vmul.f32 1.050701, %v6930_v23  ;;  %v6894_v2 = vmul.f32 1.6732632, %v8223_v44  ;;  %v9021_v47 = vpop.eup %9020  ;;  %v6994_v17 = vpack.c.bf16 %v6969_v29, %v6964_v20  ;;  %v8410_v43 = vpop.f32.mrb[52].mxu1  ;;  %vm6735_vm9 = vcmp.gt.f32.partialorder %v12045_v3, 0.0 }
 0x709   : > { %v6895_v7 = vmul.f32 1.6732632, %v8224_v5  ;;  %v8438_v45 = vpop.f32.mrb[68].mxu0  ;;  %v9023_v36 = vpop.eup %9022  ;;  %v8228_v35 = vadd.f32 -1.0, %v9021_v47  ;;  %vm6739_vm4 = vcmp.gt.f32.partialorder %v12052_v14, 0.0  ;;  %vm6740_vm6 = vcmp.gt.f32.partialorder %v12061_v24, 0.0 }
 0x70a   : > { %v6995_v52 = vpack.c.bf16 %v6970_v26, %v6965_v8  ;;  %v8411_v15 = vpop.f32.mrb[53].mxu1  ;;  %v8439_v54 = vpop.f32.mrb[69].mxu0  ;;  %7014 = vst [vmem:[#allocation5 + $0x60] sm:$0xff] %v6994_v17  ;;  %v6934_v16 = vsel %vm6734_vm3, %v12033_v31, %v6894_v2  ;;  %v8229_v30 = vadd.f32 -1.0, %v9023_v36  ;;  %vm7025_vm3 = vcmask (!%p8133_p11), 7168  }
 0x70b   : > { %v8412_v12 = vadd.f32 %v8411_v15, %v8410_v43  ;;  %v8413_v28 = vpop.f32.mrb[54].mxu1  ;;  %v8441_v56 = vpop.f32.mrb[70].mxu0  ;;  %v6935_v40 = vsel %vm6735_vm9, %v12045_v3, %v6895_v7  ;;  %v6899_v6 = vmul.f32 1.6732632, %v8228_v35  ;;  %v8440_v13 = vadd.f32 %v8439_v54, %v8438_v45 }
 0x70c   : > { %7015 = vst [vmem:[#allocation5 + $0x68] sm:$0xff] %v6995_v52  ;;  %v8414_v49 = vpop.f32.mrb[55].mxu1  ;;  %v8442_v42 = vpop.f32.mrb[71].mxu0  ;;  %v6900_v21 = vmul.f32 1.6732632, %v8229_v30 }
 0x70d   : > { %v6436_v53 = vadd.f32 %v8412_v12, %v8372_v41  ;;  %v8415_v10 = vadd.f32 %v8414_v49, %v8413_v28  ;;  %v8443_v1 = vadd.f32 %v8442_v42, %v8441_v56  ;;  %v6974_v31 = vmul.f32 1.050701, %v6934_v16 }
 0x70e   : > { %v6939_v55 = vsel %vm6739_vm4, %v12052_v14, %v6899_v6  ;;  %v6485_v39 = vadd.f32 %v8440_v13, %v6420_v51  ;;  %v6940_v37 = vsel %vm6740_vm6, %v12061_v24, %v6900_v21  ;;  %v6975_v4 = vmul.f32 1.050701, %v6935_v40 }
 0x70f   : > { %v6979_v27 = vmul.f32 1.050701, %v6939_v55  ;;  %v6439_v3 = vadd.f32 %v8415_v10, %v12130_v9  ;;  %v6488_v57 = vadd.f32 %v8443_v1, %v6423_v11  ;;  %v6980_v18 = vmul.f32 1.050701, %v6940_v37 }
 0x710   : > { %v8444_v59 = vpop.f32.mrb[72].mxu0  ;;  %v8472_v20 = vpop.f32.mrb[56].mxu1 }
 0x711   : > { %v6999_v46 = vpack.c.bf16 %v6979_v27, %v6974_v31  ;;  %v7000_v41 = vpack.c.bf16 %v6980_v18, %v6975_v4  ;;  %v8445_v60 = vpop.f32.mrb[73].mxu0  ;;  %v8473_v61 = vpop.f32.mrb[57].mxu1 }
 0x712   : > { %v8446_v38 = vadd.f32 %v8445_v60, %v8444_v59  ;;  %v8474_v14 = vadd.f32 %v8473_v61, %v8472_v20  ;;  %v8447_v22 = vpop.f32.mrb[74].mxu0  ;;  %v8475_v50 = vpop.f32.mrb[58].mxu1 }
 0x713   : > { %7019 = vst [vmem:[#allocation5 + $0x88] sm:$0xff] %v6999_v46  ;;  %7020 = vst [vmem:[#allocation5 + $0x90] sm:$0xff] %v7000_v41  ;;  %v8448_v51 = vpop.f32.mrb[75].mxu0  ;;  %v8476_v32 = vpop.f32.mrb[59].mxu1 }
 0x714   : > { %v6493_v24 = vadd.f32 %v8446_v38, %v6428_v48  ;;  %v6542_v25 = vadd.f32 %v8474_v14, %v6477_v33  ;;  %v8449_v9 = vadd.f32 %v8448_v51, %v8447_v22  ;;  %v8477_v11 = vadd.f32 %v8476_v32, %v8475_v50 }
 0x716   : > { %v6496_v19 = vadd.f32 %v8449_v9, %v6431_v0  ;;  %v6545_v34 = vadd.f32 %v8477_v11, %v6480_v63 }
 0x718   : > { %v8450_v62 = vpop.f32.mrb[76].mxu0  ;;  %v8478_v8 = vpop.f32.mrb[60].mxu1 }
 0x719   : > { %v8451_v58 = vpop.f32.mrb[77].mxu0  ;;  %v8479_v44 = vpop.f32.mrb[61].mxu1 }
 0x71a   : > { %v8452_v29 = vadd.f32 %v8451_v58, %v8450_v62  ;;  %v8480_v23 = vadd.f32 %v8479_v44, %v8478_v8  ;;  %v8453_v5 = vpop.f32.mrb[78].mxu0  ;;  %v8481_v26 = vpop.f32.mrb[62].mxu1 }
 0x71b   : > { %v8454_v2 = vpop.f32.mrb[79].mxu0  ;;  %v8482_v47 = vpop.f32.mrb[63].mxu1 }
 0x71c   : > { %v6501_v17 = vadd.f32 %v8452_v29, %v6436_v53  ;;  %v6550_v7 = vadd.f32 %v8480_v23, %v6485_v39  ;;  %v8455_v43 = vadd.f32 %v8454_v2, %v8453_v5  ;;  %v8483_v45 = vadd.f32 %v8482_v47, %v8481_v26 }
 0x71e   : > { %v6504_v48 = vadd.f32 %v8455_v43, %v6439_v3  ;;  %v6553_v33 = vadd.f32 %v8483_v45, %v6488_v57 }
 0x720   : > { %v8484_v36 = vpop.f32.mrb[64].mxu1  ;;  %v8512_v52 = vpop.f32.mrb[80].mxu0 }
 0x721   : > { %v8485_v0 = vpop.f32.mrb[65].mxu1  ;;  %v8513_v63 = vpop.f32.mrb[81].mxu0 }
 0x722   : > { %v8486_v35 = vadd.f32 %v8485_v0, %v8484_v36  ;;  %v8514_v15 = vadd.f32 %v8513_v63, %v8512_v52  ;;  %v8487_v54 = vpop.f32.mrb[66].mxu1  ;;  %v8515_v16 = vpop.f32.mrb[82].mxu0 }
 0x723   : > { %v8488_v30 = vpop.f32.mrb[67].mxu1  ;;  %v8516_v12 = vpop.f32.mrb[83].mxu0 }
 0x724   : > { %v6558_v28 = vadd.f32 %v8486_v35, %v6493_v24  ;;  %v8489_v56 = vadd.f32 %v8488_v30, %v8487_v54  ;;  %v8517_v40 = vadd.f32 %v8516_v12, %v8515_v16  ;;  %v6607_v6 = vadd.f32 %v8514_v15, %v6542_v25 }
 0x726   : > { %v6561_v13 = vadd.f32 %v8489_v56, %v6496_v19  ;;  %v6610_v49 = vadd.f32 %v8517_v40, %v6545_v34 }
 0x728   : > { %v8490_v42 = vpop.f32.mrb[68].mxu1  ;;  %v8518_v21 = vpop.f32.mrb[84].mxu0 }
 0x729   : > { %v8491_v53 = vpop.f32.mrb[69].mxu1  ;;  %v8519_v10 = vpop.f32.mrb[85].mxu0 }
 0x72a   : > { %v8492_v1 = vadd.f32 %v8491_v53, %v8490_v42  ;;  %v8520_v31 = vadd.f32 %v8519_v10, %v8518_v21  ;;  %v8493_v55 = vpop.f32.mrb[70].mxu1  ;;  %v8521_v39 = vpop.f32.mrb[86].mxu0 }
 0x72b   : > { %v8494_v27 = vpop.f32.mrb[71].mxu1  ;;  %v8522_v37 = vpop.f32.mrb[87].mxu0 }
 0x72c   : > { %v6566_v3 = vadd.f32 %v8492_v1, %v6501_v17  ;;  %v8495_v57 = vadd.f32 %v8494_v27, %v8493_v55  ;;  %v8523_v4 = vadd.f32 %v8522_v37, %v8521_v39  ;;  %v6615_v18 = vadd.f32 %v8520_v31, %v6550_v7 }
 0x72e   : > { %v6569_v46 = vadd.f32 %v8495_v57, %v6504_v48  ;;  %v6618_v59 = vadd.f32 %v8523_v4, %v6553_v33 }
 0x730   : > { %v8524_v20 = vpop.f32.mrb[88].mxu0  ;;  %v8572_v41 = vpop.f32.mrb[72].mxu1 }
 0x731   : > { %v6680_v60 = vadd.f32 %v8572_v41, %v6615_v18  ;;  %v8525_v61 = vpop.f32.mrb[89].mxu0  ;;  %v6671_v38 = vpop.f32.mrb[73].mxu1 }
 0x732   : > { %v8526_v14 = vadd.f32 %v8525_v61, %v8524_v20  ;;  %v6672_v22 = vadd.f32 %v6671_v38, %v6607_v6  ;;  %v8527_v50 = vpop.f32.mrb[90].mxu0  ;;  %v8573_v51 = vpop.f32.mrb[74].mxu1 }
 0x733   : > { %v6770_v32 = vmul.f32 1.442695, %v6680_v60  ;;  %v6683_v24 = vadd.f32 %v8573_v51, %v6618_v59  ;;  %v8528_v25 = vpop.f32.mrb[91].mxu0  ;;  %v6674_v9 = vpop.f32.mrb[75].mxu1  ;;  %vm6716_vm7 = vcmp.gt.f32.partialorder %v6680_v60, 0.0 }
 0x734   : > { %v6750_v11 = vmul.f32 1.442695, %v6672_v22  ;;  %v8529_v19 = vadd.f32 %v8528_v25, %v8527_v50  ;;  %v6675_v34 = vadd.f32 %v6674_v9, %v6610_v49  ;;  %v6623_v8 = vadd.f32 %v8526_v14, %v6558_v28 }
 0x735   : > { %9024 = vpow2.f32 %v6770_v32  ;;  %v6780_v62 = vmul.f32 1.442695, %v6683_v24  ;;  %vm6706_vm8 = vcmp.gt.f32.partialorder %v6672_v22, 0.0  ;;  %vm6721_vm5 = vcmp.gt.f32.partialorder %v6683_v24, 0.0 }
 0x736   : > { %9026 = vpow2.f32 %v6750_v11  ;;  %v6760_v58 = vmul.f32 1.442695, %v6675_v34  ;;  %v6626_v44 = vadd.f32 %v8529_v19, %v6561_v13  ;;  %vm6711_vm2 = vcmp.gt.f32.partialorder %v6675_v34, 0.0 }
 0x737   : > { %9028 = vpow2.f32 %v6780_v62 }
 0x738   : > { %9030 = vpow2.f32 %v6760_v58  ;;  %v8530_v29 = vpop.f32.mrb[92].mxu0  ;;  %v8576_v23 = vpop.f32.mrb[76].mxu1 }
 0x739   : > { %v8531_v5 = vpop.f32.mrb[93].mxu0  ;;  %v6687_v26 = vpop.f32.mrb[77].mxu1 }
 0x73a   : > { %v8532_v2 = vadd.f32 %v8531_v5, %v8530_v29  ;;  %v6688_v47 = vadd.f32 %v6687_v26, %v6623_v8  ;;  %v8533_v17 = vpop.f32.mrb[94].mxu0  ;;  %v8577_v7 = vpop.f32.mrb[78].mxu1  ;;  %v9228_v29 = vmov (!%p8133_p11), 0  }
 0x73b   : > { %v8534_v43 = vpop.f32.mrb[95].mxu0  ;;  %v6690_v45 = vpop.f32.mrb[79].mxu1  ;;  %7026 = vst.msk [vmem:[#allocation5] sm:$0xff] (!%p8133_p11), %vm7025_vm3, %v9228_v29  ;;  %7027 = vst.msk [vmem:[#allocation5 + $0x28] sm:$0xff] (!%p8133_p11), %vm7025_vm3, %v9228_v29 }
 0x73c   : > { %v6631_v48 = vadd.f32 %v8532_v2, %v6566_v3  ;;  %v6790_v33 = vmul.f32 1.442695, %v6688_v47  ;;  %v8535_v36 = vadd.f32 %v8534_v43, %v8533_v17  ;;  %v6691_v52 = vadd.f32 %v6690_v45, %v6626_v44  ;;  %7028 = vst.msk [vmem:[#allocation5 + $0x50] sm:$0xff] (!%p8133_p11), %vm7025_vm3, %v9228_v29  ;;  %7029 = vst.msk [vmem:[#allocation5 + $0x78] sm:$0xff] (!%p8133_p11), %vm7025_vm3, %v9228_v29 }
 0x73d   : > { %vm6726_vm11 = vcmp.gt.f32.partialorder %v6688_v47, 0.0 }
 0x73e   : > { %v6696_v0 = vadd.f32 %v8576_v23, %v6631_v48  ;;  %9032 = vpow2.f32 %v6790_v33  ;;  %v6634_v63 = vadd.f32 %v8535_v36, %v6569_v46  ;;  %v6800_v15 = vmul.f32 1.442695, %v6691_v52 }
 0x73f   : > { %v9025_v35 = vpop.eup %9024  ;;  %vm6731_vm13 = vcmp.gt.f32.partialorder %v6691_v52, 0.0 }
 0x740   : > { %v9027_v54 = vpop.eup %9026  ;;  %v8205_v16 = vadd.f32 -1.0, %v9025_v35  ;;  %v6810_v30 = vmul.f32 1.442695, %v6696_v0  ;;  %v6699_v12 = vadd.f32 %v8577_v7, %v6634_v63  ;;  %9034 = vpow2.f32 %v6800_v15 }
 0x741   : > { %v9029_v28 = vpop.eup %9028  ;;  %v8195_v56 = vadd.f32 -1.0, %v9027_v54  ;;  %vm6736_vm14 = vcmp.gt.f32.partialorder %v6696_v0, 0.0 }
 0x742   : > { %v9031_v40 = vpop.eup %9030  ;;  %v6876_v6 = vmul.f32 1.6732632, %v8205_v16  ;;  %v8210_v13 = vadd.f32 -1.0, %v9029_v28  ;;  %9036 = vpow2.f32 %v6810_v30  ;;  %v6820_v21 = vmul.f32 1.442695, %v6699_v12 }
 0x743   : > { %v6866_v49 = vmul.f32 1.6732632, %v8195_v56  ;;  %v8200_v42 = vadd.f32 -1.0, %v9031_v40  ;;  %vm6741_vm15 = vcmp.gt.f32.partialorder %v6699_v12, 0.0 }
 0x744   : > { %v6916_v53 = vsel %vm6716_vm7, %v6680_v60, %v6876_v6  ;;  %v6881_v10 = vmul.f32 1.6732632, %v8210_v13  ;;  %9038 = vpow2.f32 %v6820_v21 }
 0x745   : > { %v6906_v1 = vsel %vm6706_vm8, %v6672_v22, %v6866_v49  ;;  %v6871_v31 = vmul.f32 1.6732632, %v8200_v42  ;;  %v6956_v39 = vmul.f32 1.050701, %v6916_v53 }
 0x746   : > { %v6921_v55 = vsel %vm6721_vm5, %v6683_v24, %v6881_v10  ;;  %v6946_v57 = vmul.f32 1.050701, %v6906_v1 }
 0x747   : > { %v6961_v27 = vmul.f32 1.050701, %v6921_v55  ;;  %v6911_v37 = vsel %vm6711_vm2, %v6675_v34, %v6871_v31 }
 0x748   : > { %v9033_v3 = vpop.eup %9032  ;;  %v6951_v4 = vmul.f32 1.050701, %v6911_v37 }
 0x749   : > { %v6991_v18 = vpack.c.bf16 %v6961_v27, %v6956_v39  ;;  %v8215_v46 = vadd.f32 -1.0, %v9033_v3 }
 0x74a   : > { %v6986_v59 = vpack.c.bf16 %v6951_v4, %v6946_v57  ;;  %v9035_v20 = vpop.eup %9034 }
 0x74b   : > { %7011 = vst.msk [vmem:[#allocation5 + $0x48] sm:$0xff] %vm1998_vm10, %v6991_v18  ;;  %v6886_v41 = vmul.f32 1.6732632, %v8215_v46  ;;  %v8220_v61 = vadd.f32 -1.0, %v9035_v20 }
 0x74c   : > { %v9037_v60 = vpop.eup %9036  ;;  %7006 = vst.msk [vmem:[#allocation5 + $0x20] sm:$0xff] %vm1998_vm10, %v6986_v59 }
 0x74d   : > { %v8225_v38 = vadd.f32 -1.0, %v9037_v60  ;;  %v6926_v14 = vsel %vm6726_vm11, %v6688_v47, %v6886_v41  ;;  %v6891_v22 = vmul.f32 1.6732632, %v8220_v61 }
 0x74e   : > { %v9039_v50 = vpop.eup %9038  ;;  %v6966_v25 = vmul.f32 1.050701, %v6926_v14 }
 0x74f   : > { %v6896_v51 = vmul.f32 1.6732632, %v8225_v38  ;;  %v8230_v32 = vadd.f32 -1.0, %v9039_v50  ;;  %v6931_v24 = vsel %vm6731_vm13, %v6691_v52, %v6891_v22 }
 0x750   : > { %v6971_v9 = vmul.f32 1.050701, %v6931_v24 }
 0x751   : > { %v6936_v11 = vsel %vm6736_vm14, %v6696_v0, %v6896_v51  ;;  %v6901_v19 = vmul.f32 1.6732632, %v8230_v32 }
 0x752   : > { %v6996_v34 = vpack.c.bf16 %v6971_v9, %v6966_v25  ;;  %v6976_v8 = vmul.f32 1.050701, %v6936_v11  ;;  %7024 = sbr.rel (%p8133_p11) target bundleno = 1881 (0x759), region = 48 }
 0x753   : > { %v6941_v62 = vsel %vm6741_vm15, %v6699_v12, %v6901_v19 }
 0x754   : > { %v6981_v58 = vmul.f32 1.050701, %v6941_v62  ;;  %7016 = vst.msk [vmem:[#allocation5 + $0x70] sm:$0xff] %vm1998_vm10, %v6996_v34 }
 0x756   : > { %v7001_v44 = vpack.c.bf16 %v6981_v58, %v6976_v8 }
 0x758   : > { %7021 = vst.msk [vmem:[#allocation5 + $0x98] sm:$0xff] %vm1998_vm10, %v7001_v44 }
 0x759 PF: > { %7032 = sbr.rel (%p8134_p12) target bundleno = 1888 (0x760), region = 52  ;;  %vm7033_vm9 = vcmask (!%p8134_p12), 15368   ;;  %v9229_v23 = vmov (!%p8134_p12), 0  }
 0x75a   : > { %7034 = vst.msk [vmem:[#allocation5 + $0x20] sm:$0xff] (!%p8134_p12), %vm7033_vm9, %v9229_v23  ;;  %7035 = vst.msk [vmem:[#allocation5 + $0x48] sm:$0xff] (!%p8134_p12), %vm7033_vm9, %v9229_v23 }
 0x75b   : > { %7036 = vst.msk [vmem:[#allocation5 + $0x70] sm:$0xff] (!%p8134_p12), %vm7033_vm9, %v9229_v23  ;;  %7037 = vst.msk [vmem:[#allocation5 + $0x98] sm:$0xff] (!%p8134_p12), %vm7033_vm9, %v9229_v23 }
 0x760 PF: > { %v7073_v5 = vld [vmem:[#allocation5 + $0x18] sm:$0xff]  ;;  %v7071_v26 = vld [vmem:[#allocation5 + $0x8] sm:$0xff]  ;;  %v7072_v47 = vld [vmem:[#allocation5 + $0x10] sm:$0xff]  ;;  %s8282_s6 = sshll.u32 (%p9301_p5), %s9187_s17, 2 }
 0x761   : > { %7116 = vrot.lane.b32.xlu1 %v7073_v5, %s9205_s14  ;;  %7112 = vrot.lane.b32.xlu0 %v7071_v26, %s9205_s14  ;;  %v7074_v2 = vld [vmem:[#allocation5 + $0x20] sm:$0xff]  ;;  %v7076_v7 = vld [vmem:[#allocation5 + $0x30] sm:$0xff]  ;;  %v7077_v45 = vld [vmem:[#allocation5 + $0x38] sm:$0xff] }
 0x762   : > { %v7070_v17 = vld [vmem:[#allocation5] sm:$0xff]  ;;  %7503 = vmatprep.subr.bf16.mxu1 %v7073_v5  ;;  %7430 = vmatprep.subr.bf16.mxu0 %v7071_v26  ;;  %v7075_v48 = vld [vmem:[#allocation5 + $0x28] sm:$0xff]  ;;  %v7081_v33 = vld [vmem:[#allocation5 + $0x58] sm:$0xff] }
 0x763   : > { %v7078_v43 = vld [vmem:[#allocation5 + $0x40] sm:$0xff]  ;;  %7504 = vmatpush1.bf16.msra.mxu1 %v7072_v47  ;;  %7431 = vmatpush1.bf16.msra.mxu0 %v7070_v17  ;;  %v7083_v36 = vld [vmem:[#allocation5 + $0x68] sm:$0xff]  ;;  %v7080_v0 = vld [vmem:[#allocation5 + $0x50] sm:$0xff] }
 0x764   : > { %7505 = vmatprep.subr.bf16.mxu1 %v7078_v43  ;;  %7432 = vmatprep.subr.bf16.mxu0 %v7076_v7  ;;  %v7082_v52 = vld [vmem:[#allocation5 + $0x60] sm:$0xff]  ;;  %v7088_v35 = vld [vmem:[#allocation5 + $0x90] sm:$0xff]  ;;  %v7079_v15 = vld [vmem:[#allocation5 + $0x48] sm:$0xff] }
 0x765   : > { %7118 = vrot.lane.b32.xlu1 %v7074_v2, %s9205_s14  ;;  %7114 = vrot.lane.b32.xlu0 %v7072_v47, %s9205_s14  ;;  %v7086_v63 = vld [vmem:[#allocation5 + $0x80] sm:$0xff]  ;;  %v7087_v54 = vld [vmem:[#allocation5 + $0x88] sm:$0xff]  ;;  %v7085_v16 = vld [vmem:[#allocation5 + $0x78] sm:$0xff] }
 0x766   : > { %v7084_v30 = vld [vmem:[#allocation5 + $0x70] sm:$0xff]  ;;  %v7089_v12 = vld [vmem:[#allocation5 + $0x98] sm:$0xff] }
 0x767   : > { %7506 = vmatpush1.bf16.msra.mxu1 %v7077_v45  ;;  %7433 = vmatpush1.bf16.msra.mxu0 %v7075_v48  ;;  %v9075_v28 = vld [vmem:[%s12604_s3 + $0x4] ss:$8 sps:$4 sm:$0xff]  }
 0x768   : > { %7507 = vmatprep.subr.bf16.mxu1 %v7083_v36  ;;  %7434 = vmatprep.subr.bf16.mxu0 %v7081_v33 }
 0x769   : > { %7122 = vrot.lane.b32.xlu1 %v7076_v7, %s9205_s14  ;;  %7110 = vrot.lane.b32.xlu0 %v7070_v17, %s9205_s14 }
 0x76a   : > { %8241 = vmatprep.mubr.msk.bf16.mxu0 %vm5423_vm12, %v9075_v28  ;;  %8245 = vmatprep.mubr.msk.bf16.mxu1 %vm5423_vm12, %v9075_v28 }
 0x76b   : > { %7508 = vmatpush1.bf16.msra.mxu1 %v7082_v52  ;;  %7435 = vmatpush1.bf16.msra.mxu0 %v7080_v0 }
 0x76c   : > { %7509 = vmatprep.subr.bf16.mxu1 %v7088_v35  ;;  %7436 = vmatprep.subr.bf16.mxu0 %v7086_v63 }
 0x76d   : > { %7126 = vrot.lane.b32.xlu1 %v7078_v43, %s9205_s14  ;;  %7124 = vrot.lane.b32.xlu0 %v7077_v45, %s9205_s14 }
 0x76f   : > { %7510 = vmatpush1.bf16.msra.mxu1 %v7087_v54  ;;  %7437 = vmatpush1.bf16.msra.mxu0 %v7085_v16 }
 0x771   : > { %7120 = vrot.lane.b32.xlu1 %v7075_v48, %s9205_s14  ;;  %7128 = vrot.lane.b32.xlu0 %v7079_v15, %s9205_s14 }
 0x775   : > { %7134 = vrot.lane.b32.xlu1 %v7082_v52, %s9205_s14  ;;  %7132 = vrot.lane.b32.xlu0 %v7081_v33, %s9205_s14 }
 0x779   : > { %7138 = vrot.lane.b32.xlu1 %v7084_v30, %s9205_s14  ;;  %7136 = vrot.lane.b32.xlu0 %v7083_v36, %s9205_s14 }
 0x77d   : > { %7142 = vrot.lane.b32.xlu1 %v7086_v63, %s9205_s14  ;;  %7130 = vrot.lane.b32.xlu0 %v7080_v0, %s9205_s14 }
 0x781   : > { %7146 = vrot.lane.b32.xlu1 %v7088_v35, %s9205_s14  ;;  %7144 = vrot.lane.b32.xlu0 %v7087_v54, %s9205_s14 }
 0x785   : > { %7140 = vrot.lane.b32.xlu1 %v7085_v16, %s9205_s14  ;;  %7148 = vrot.lane.b32.xlu0 %v7089_v12, %s9205_s14 }
 0x789   : > { %7242 = vrot.lane.b32.xlu1 %v7072_v47, %s9206_s24  ;;  %7240 = vrot.lane.b32.xlu0 %v7071_v26, %s9206_s24 }
 0x78d   : > { %7246 = vrot.lane.b32.xlu1 %v7074_v2, %s9206_s24  ;;  %7244 = vrot.lane.b32.xlu0 %v7073_v5, %s9206_s24 }
 0x791   : > { %7250 = vrot.lane.b32.xlu1 %v7076_v7, %s9206_s24  ;;  %7238 = vrot.lane.b32.xlu0 %v7070_v17, %s9206_s24 }
 0x795   : > { %7254 = vrot.lane.b32.xlu1 %v7078_v43, %s9206_s24  ;;  %7252 = vrot.lane.b32.xlu0 %v7077_v45, %s9206_s24 }
 0x799   : > { %7248 = vrot.lane.b32.xlu1 %v7075_v48, %s9206_s24  ;;  %7256 = vrot.lane.b32.xlu0 %v7079_v15, %s9206_s24 }
 0x79d   : > { %7262 = vrot.lane.b32.xlu1 %v7082_v52, %s9206_s24  ;;  %7260 = vrot.lane.b32.xlu0 %v7081_v33, %s9206_s24 }
 0x7a1   : > { %7266 = vrot.lane.b32.xlu1 %v7084_v30, %s9206_s24  ;;  %7264 = vrot.lane.b32.xlu0 %v7083_v36, %s9206_s24 }
 0x7a5   : > { %7270 = vrot.lane.b32.xlu1 %v7086_v63, %s9206_s24  ;;  %7258 = vrot.lane.b32.xlu0 %v7080_v0, %s9206_s24 }
 0x7a9   : > { %7274 = vrot.lane.b32.xlu1 %v7088_v35, %s9206_s24  ;;  %7272 = vrot.lane.b32.xlu0 %v7087_v54, %s9206_s24 }
 0x7ad   : > { %7268 = vrot.lane.b32.xlu1 %v7085_v16, %s9206_s24  ;;  %7276 = vrot.lane.b32.xlu0 %v7089_v12, %s9206_s24  ;;  %s8283_s24 = sshll.u32 (%p9301_p5), %s9191_s18, 6 }
 0x7ae   : > { %s7841_s26 = sadd.s32 (%p9301_p5), %s8283_s24, %s8282_s6 }
 0x7af   : > { %s8284_s11 = sshll.u32 (%p9301_p5), %s7841_s26, 3 }
 0x7b0   : > { %s12523_s8 = scalar_lea.vmem (%p9301_p5), %s12605_s4, %s8284_s11 }
 0x7d3   : > { %v7117_v56 = vpop.permute.xlu1 %7116  ;;  %v7113_v40 = vpop.permute.xlu0 %7112 }
 0x7d7   : > { %v7119_v6 = vpop.permute.xlu1 %7118  ;;  %v7115_v13 = vpop.permute.xlu0 %7114 }
 0x7d8   : > { %v7153_v49 = vsel %vm297_vm0, %v7117_v56, %v7119_v6  ;;  %v7151_v42 = vsel %vm297_vm0, %v7113_v40, %v7115_v13  ;;  %v7152_v21 = vsel %vm297_vm0, %v7115_v13, %v7117_v56 }
 0x7d9   : > { %7438 = vmatprep.subr.bf16.mxu0 %v7151_v42  ;;  %7511 = vmatprep.subr.bf16.mxu1 %v7153_v49 }
 0x7da   : > { %7512 = vmatpush1.bf16.msra.mxu1 %v7152_v21 }
 0x7db   : > { %v7123_v53 = vpop.permute.xlu1 %7122  ;;  %v7111_v10 = vpop.permute.xlu0 %7110 }
 0x7dc   : > { %v7150_v1 = vsel %vm297_vm0, %v7111_v10, %v7113_v40 }
 0x7dd   : > { %7439 = vmatpush1.bf16.msra.mxu0 %v7150_v1  ;;  %v9076_v1 = vld [vmem:[%s12604_s3 + $0x14] ss:$8 sps:$4 sm:$0xff]  }
 0x7df   : > { %v7127_v31 = vpop.permute.xlu1 %7126  ;;  %v7125_v55 = vpop.permute.xlu0 %7124 }
 0x7e0   : > { %v7155_v39 = vsel %vm297_vm0, %v7123_v53, %v7125_v55  ;;  %v7156_v4 = vsel %vm297_vm0, %v7125_v55, %v7127_v31  ;;  %v9079_v55 = vld [vmem:[%s12604_s3 + $0x24] ss:$8 sps:$4 sm:$0xff]  }
 0x7e1   : > { %7440 = vmatprep.subr.bf16.mxu0 %v7155_v39  ;;  %v9081_v39 = vld [vmem:[%s12604_s3 + $0x20] ss:$8 sps:$4 sm:$0xff]  }
 0x7e3   : > { %v7121_v27 = vpop.permute.xlu1 %7120  ;;  %v7129_v37 = vpop.permute.xlu0 %7128 }
 0x7e4   : > { %v7154_v3 = vsel %vm297_vm0, %v7121_v27, %v7123_v53  ;;  %v7157_v57 = vsel %vm297_vm0, %v7127_v31, %v7129_v37  ;;  %v9073_v53 = vld [vmem:[%s12604_s3] ss:$8 sps:$4 sm:$0xff]   ;;  %v9078_v31 = vld [vmem:[%s12604_s3 + $0x10] ss:$8 sps:$4 sm:$0xff]  }
 0x7e5   : > { %7441 = vmatpush1.bf16.msra.mxu0 %v7154_v3  ;;  %7513 = vmatprep.subr.bf16.mxu1 %v7157_v57  ;;  %v9082_v27 = vld [vmem:[%s12604_s3 + $0x34] ss:$8 sps:$4 sm:$0x3f]   ;;  %v9084_v37 = vld [vmem:[%s12604_s3 + $0x30] ss:$8 sps:$4 sm:$0x3f]  }
 0x7e6   : > { %7514 = vmatpush1.bf16.msra.mxu1 %v7156_v4 }
 0x7e7   : > { %v7135_v18 = vpop.permute.xlu1 %7134  ;;  %v7133_v46 = vpop.permute.xlu0 %7132 }
 0x7e8   : > { %v7159_v59 = vsel %vm297_vm0, %v7133_v46, %v7135_v18 }
 0x7e9   : > { %7442 = vmatprep.subr.bf16.mxu0 %v7159_v59 }
 0x7eb   : > { %v7139_v20 = vpop.permute.xlu1 %7138  ;;  %v7137_v41 = vpop.permute.xlu0 %7136 }
 0x7ec   : > { %v7161_v60 = vsel %vm297_vm0, %v7137_v41, %v7139_v20  ;;  %v7160_v61 = vsel %vm297_vm0, %v7135_v18, %v7137_v41 }
 0x7ed   : > { %7515 = vmatprep.subr.bf16.mxu1 %v7161_v60 }
 0x7ee   : > { %7516 = vmatpush1.bf16.msra.mxu1 %v7160_v61 }
 0x7ef   : > { %v7143_v38 = vpop.permute.xlu1 %7142  ;;  %v7131_v14 = vpop.permute.xlu0 %7130 }
 0x7f0   : > { %v7158_v22 = vsel %vm297_vm0, %v7131_v14, %v7133_v46 }
 0x7f1   : > { %7443 = vmatpush1.bf16.msra.mxu0 %v7158_v22 }
 0x7f3   : > { %v7147_v50 = vpop.permute.xlu1 %7146  ;;  %v7145_v51 = vpop.permute.xlu0 %7144 }
 0x7f4   : > { %v7163_v32 = vsel %vm297_vm0, %v7143_v38, %v7145_v51  ;;  %v7164_v19 = vsel %vm297_vm0, %v7145_v51, %v7147_v50 }
 0x7f5   : > { %7444 = vmatprep.subr.bf16.mxu0 %v7163_v32 }
 0x7f7   : > { %v7141_v24 = vpop.permute.xlu1 %7140  ;;  %v7149_v25 = vpop.permute.xlu0 %7148 }
 0x7f8   : > { %v7162_v9 = vsel %vm297_vm0, %v7141_v24, %v7143_v38  ;;  %v7165_v11 = vsel %vm297_vm0, %v7147_v50, %v7149_v25 }
 0x7f9   : > { %7445 = vmatpush1.bf16.msra.mxu0 %v7162_v9  ;;  %7517 = vmatprep.subr.bf16.mxu1 %v7165_v11 }
 0x7fa   : > { %7518 = vmatpush1.bf16.msra.mxu1 %v7164_v19 }
 0x7fb   : > { %v7243_v34 = vpop.permute.xlu1 %7242  ;;  %v7241_v62 = vpop.permute.xlu0 %7240 }
 0x7fc   : > { %v7279_v8 = vsel %vm349_vm1, %v7241_v62, %v7243_v34 }
 0x7fd   : > { %7446 = vmatprep.subr.bf16.mxu0 %v7279_v8 }
 0x7ff   : > { %v7247_v58 = vpop.permute.xlu1 %7246  ;;  %v7245_v44 = vpop.permute.xlu0 %7244 }
 0x800   : > { %v7281_v29 = vsel %vm349_vm1, %v7245_v44, %v7247_v58  ;;  %v7280_v23 = vsel %vm349_vm1, %v7243_v34, %v7245_v44 }
 0x801   : > { %7519 = vmatprep.subr.bf16.mxu1 %v7281_v29 }
 0x802   : > { %7520 = vmatpush1.bf16.msra.mxu1 %v7280_v23 }
 0x803   : > { %v7251_v5 = vpop.permute.xlu1 %7250  ;;  %v7239_v26 = vpop.permute.xlu0 %7238 }
 0x804   : > { %v7278_v2 = vsel %vm349_vm1, %v7239_v26, %v7241_v62 }
 0x805   : > { %7447 = vmatpush1.bf16.msra.mxu0 %v7278_v2 }
 0x807   : > { %v7255_v47 = vpop.permute.xlu1 %7254  ;;  %v7253_v17 = vpop.permute.xlu0 %7252 }
 0x808   : > { %v7283_v7 = vsel %vm349_vm1, %v7251_v5, %v7253_v17  ;;  %v7284_v36 = vsel %vm349_vm1, %v7253_v17, %v7255_v47 }
 0x809   : > { %7448 = vmatprep.subr.bf16.mxu0 %v7283_v7 }
 0x80b   : > { %v7249_v43 = vpop.permute.xlu1 %7248  ;;  %v7257_v45 = vpop.permute.xlu0 %7256 }
 0x80c   : > { %v7282_v48 = vsel %vm349_vm1, %v7249_v43, %v7251_v5  ;;  %v7285_v33 = vsel %vm349_vm1, %v7255_v47, %v7257_v45 }
 0x80d   : > { %7449 = vmatpush1.bf16.msra.mxu0 %v7282_v48  ;;  %7521 = vmatprep.subr.bf16.mxu1 %v7285_v33 }
 0x80e   : > { %7522 = vmatpush1.bf16.msra.mxu1 %v7284_v36 }
 0x80f   : > { %v7263_v52 = vpop.permute.xlu1 %7262  ;;  %v7261_v0 = vpop.permute.xlu0 %7260 }
 0x810   : > { %v7287_v63 = vsel %vm349_vm1, %v7261_v0, %v7263_v52 }
 0x811   : > { %7450 = vmatprep.subr.bf16.mxu0 %v7287_v63 }
 0x813   : > { %v7267_v35 = vpop.permute.xlu1 %7266  ;;  %v7265_v15 = vpop.permute.xlu0 %7264 }
 0x814   : > { %v7289_v54 = vsel %vm349_vm1, %v7265_v15, %v7267_v35  ;;  %v7288_v16 = vsel %vm349_vm1, %v7263_v52, %v7265_v15 }
 0x815   : > { %7523 = vmatprep.subr.bf16.mxu1 %v7289_v54 }
 0x816   : > { %7524 = vmatpush1.bf16.msra.mxu1 %v7288_v16 }
 0x817   : > { %v7271_v30 = vpop.permute.xlu1 %7270  ;;  %v7259_v12 = vpop.permute.xlu0 %7258 }
 0x818   : > { %v7286_v28 = vsel %vm349_vm1, %v7259_v12, %v7261_v0 }
 0x819   : > { %7451 = vmatpush1.bf16.msra.mxu0 %v7286_v28 }
 0x81b   : > { %v7275_v56 = vpop.permute.xlu1 %7274  ;;  %v7273_v40 = vpop.permute.xlu0 %7272 }
 0x81c   : > { %v7291_v6 = vsel %vm349_vm1, %v7271_v30, %v7273_v40  ;;  %v7292_v10 = vsel %vm349_vm1, %v7273_v40, %v7275_v56 }
 0x81d   : > { %7452 = vmatprep.subr.bf16.mxu0 %v7291_v6 }
 0x81f   : > { %v7269_v13 = vpop.permute.xlu1 %7268  ;;  %v7277_v49 = vpop.permute.xlu0 %7276 }
 0x820   : > { %v7290_v42 = vsel %vm349_vm1, %v7269_v13, %v7271_v30  ;;  %v7293_v21 = vsel %vm349_vm1, %v7275_v56, %v7277_v49 }
 0x821   : > { %7453 = vmatpush1.bf16.msra.mxu0 %v7290_v42  ;;  %7525 = vmatprep.subr.bf16.mxu1 %v7293_v21 }
 0x822   : > { %7526 = vmatpush1.bf16.msra.mxu1 %v7292_v10 }
 0x824   : > { %7463 = vmatmul.mubr.bf16.vlgmr.msra.gmra.mrb[96].mxu0 %v9073_v53 }
 0x825   : > { %7536 = vmatmul.mubr.bf16.vlgmr.msra.gmra.mrb[80].mxu1 %v9073_v53  ;;  %8242 = vmatprep.mubr.msk.bf16.mxu0 %vm5423_vm12, %v9076_v1 }
 0x826   : > { %8246 = vmatprep.mubr.msk.bf16.mxu1 %vm5423_vm12, %v9076_v1 }
 0x82c   : > { %7473 = vmatmul.mubr.bf16.gmra.mrb[100].mxu0 %v9078_v31 }
 0x82d   : > { %7546 = vmatmul.mubr.bf16.gmra.mrb[84].mxu1 %v9078_v31  ;;  %8243 = vmatprep.mubr.msk.bf16.mxu0 %vm5423_vm12, %v9079_v55 }
 0x82e   : > { %8247 = vmatprep.mubr.msk.bf16.mxu1 %vm5423_vm12, %v9079_v55 }
 0x834   : > { %7483 = vmatmul.mubr.bf16.gmra.mrb[104].mxu0 %v9081_v39 }
 0x835   : > { %7556 = vmatmul.mubr.bf16.gmra.mrb[88].mxu1 %v9081_v39  ;;  %8244 = vmatprep.mubr.msk.bf16.mxu0 %vm5423_vm12, %v9082_v27 }
 0x836   : > { %8248 = vmatprep.mubr.msk.bf16.mxu1 %vm5423_vm12, %v9082_v27 }
 0x83c   : > { %7493 = vmatmul.mubr.bf16.gmra.mrb[108].mxu0 %v9084_v37 }
 0x83d   : > { %7566 = vmatmul.mubr.bf16.gmra.mrb[92].mxu1 %v9084_v37 }
 0x8f7   : > { %v12259_v3 = vpop.f32.mrb[96].mxu0 }
 0x8f8   : > { %v7608_v57 = vmul.f32 1.442695, %v12259_v3  ;;  %v12262_v4 = vpop.f32.mrb[97].mxu0  ;;  %v12264_v18 = vpop.f32.mrb[80].mxu1  ;;  %vm7576_vm0 = vcmp.gt.f32.partialorder %v12259_v3, 0.0 }
 0x8f9   : > { %v7610_v46 = vmul.f32 1.442695, %v12262_v4  ;;  %v7612_v59 = vmul.f32 1.442695, %v12264_v18  ;;  %v12268_v20 = vpop.f32.mrb[98].mxu0  ;;  %v12270_v41 = vpop.f32.mrb[81].mxu1 }
 0x8fa   : > { %9085 = vpow2.f32 %v7608_v57  ;;  %v7616_v60 = vmul.f32 1.442695, %v12268_v20  ;;  %v12273_v61 = vpop.f32.mrb[99].mxu0  ;;  %v12275_v38 = vpop.f32.mrb[82].mxu1  ;;  %v7614_v14 = vmul.f32 1.442695, %v12270_v41 }
 0x8fb   : > { %9087 = vpow2.f32 %v7610_v46  ;;  %v7618_v22 = vmul.f32 1.442695, %v12273_v61  ;;  %v12279_v50 = vpop.f32.mrb[83].mxu1  ;;  %v7620_v51 = vmul.f32 1.442695, %v12275_v38  ;;  %vm7577_vm1 = vcmp.gt.f32.partialorder %v12262_v4, 0.0 }
 0x8fc   : > { %9089 = vpow2.f32 %v7612_v59  ;;  %v7622_v32 = vmul.f32 1.442695, %v12279_v50  ;;  %vm7578_vm10 = vcmp.gt.f32.partialorder %v12264_v18, 0.0  ;;  %vm7580_vm12 = vcmp.gt.f32.partialorder %v12268_v20, 0.0 }
 0x8fd   : > { %9091 = vpow2.f32 %v7616_v60  ;;  %vm7579_vm4 = vcmp.gt.f32.partialorder %v12270_v41, 0.0  ;;  %vm7581_vm6 = vcmp.gt.f32.partialorder %v12273_v61, 0.0  ;;  %vm7582_vm7 = vcmp.gt.f32.partialorder %v12275_v38, 0.0 }
 0x8fe   : > { %9093 = vpow2.f32 %v7614_v14  ;;  %vm7583_vm8 = vcmp.gt.f32.partialorder %v12279_v50, 0.0 }
 0x8ff   : > { %9095 = vpow2.f32 %v7618_v22  ;;  %v12283_v24 = vpop.f32.mrb[100].mxu0 }
 0x900   : > { %9097 = vpow2.f32 %v7620_v51  ;;  %v7624_v25 = vmul.f32 1.442695, %v12283_v24  ;;  %v12286_v9 = vpop.f32.mrb[101].mxu0  ;;  %v12288_v11 = vpop.f32.mrb[84].mxu1  ;;  %vm7584_vm5 = vcmp.gt.f32.partialorder %v12283_v24, 0.0 }
 0x901   : > { %9099 = vpow2.f32 %v7622_v32  ;;  %v7626_v19 = vmul.f32 1.442695, %v12286_v9  ;;  %v12291_v34 = vpop.f32.mrb[102].mxu0  ;;  %v12293_v62 = vpop.f32.mrb[85].mxu1  ;;  %v7628_v8 = vmul.f32 1.442695, %v12288_v11 }
 0x902   : > { %9101 = vpow2.f32 %v7624_v25  ;;  %v7632_v58 = vmul.f32 1.442695, %v12291_v34  ;;  %v12298_v44 = vpop.f32.mrb[103].mxu0  ;;  %v7630_v29 = vmul.f32 1.442695, %v12293_v62  ;;  %v12303_v23 = vpop.f32.mrb[86].mxu1 }
 0x903   : > { %9103 = vpow2.f32 %v7626_v19  ;;  %v7634_v26 = vmul.f32 1.442695, %v12298_v44  ;;  %v7636_v2 = vmul.f32 1.442695, %v12303_v23  ;;  %v12308_v47 = vpop.f32.mrb[87].mxu1  ;;  %vm7585_vm2 = vcmp.gt.f32.partialorder %v12286_v9, 0.0 }
 0x904   : > { %v9086_v5 = vpop.eup %9085  ;;  %9105 = vpow2.f32 %v7628_v8  ;;  %v7638_v43 = vmul.f32 1.442695, %v12308_v47  ;;  %vm7586_vm11 = vcmp.gt.f32.partialorder %v12288_v11, 0.0  ;;  %vm7588_vm13 = vcmp.gt.f32.partialorder %v12291_v34, 0.0 }
 0x905   : > { %v9088_v17 = vpop.eup %9087  ;;  %v8249_v7 = vadd.f32 -1.0, %v9086_v5  ;;  %9107 = vpow2.f32 %v7632_v58  ;;  %vm7587_vm14 = vcmp.gt.f32.partialorder %v12293_v62, 0.0  ;;  %vm7589_vm15 = vcmp.gt.f32.partialorder %v12298_v44, 0.0 }
 0x906   : > { %v9090_v45 = vpop.eup %9089  ;;  %v8250_v48 = vadd.f32 -1.0, %v9088_v17  ;;  %9109 = vpow2.f32 %v7630_v29  ;;  %vm7590_vm3 = vcmp.gt.f32.partialorder %v12303_v23, 0.0  ;;  %vm7591_vm9 = vcmp.gt.f32.partialorder %v12308_v47, 0.0 }
 0x907   : > { %v9092_v33 = vpop.eup %9091  ;;  %v7704_v36 = vmul.f32 1.6732632, %v8249_v7  ;;  %v8251_v52 = vadd.f32 -1.0, %v9090_v45  ;;  %9111 = vpow2.f32 %v7634_v26  ;;  %v12315_v0 = vpop.f32.mrb[104].mxu0 }
 0x908   : > { %v9094_v63 = vpop.eup %9093  ;;  %v7705_v35 = vmul.f32 1.6732632, %v8250_v48  ;;  %v8253_v15 = vadd.f32 -1.0, %v9092_v33  ;;  %9113 = vpow2.f32 %v7636_v2  ;;  %v12318_v54 = vpop.f32.mrb[105].mxu0 }
 0x909   : > { %v12320_v16 = vpop.f32.mrb[88].mxu1  ;;  %v9096_v30 = vpop.eup %9095  ;;  %v7736_v12 = vsel %vm7576_vm0, %v12259_v3, %v7704_v36  ;;  %v7706_v28 = vmul.f32 1.6732632, %v8251_v52  ;;  %v8252_v56 = vadd.f32 -1.0, %v9094_v63  ;;  %9115 = vpow2.f32 %v7638_v43 }
 0x90a   : > { %v12326_v40 = vpop.f32.mrb[106].mxu0  ;;  %v12328_v6 = vpop.f32.mrb[89].mxu1  ;;  %v7768_v49 = vmul.f32 1.050701, %v7736_v12  ;;  %v7737_v42 = vsel %vm7577_vm1, %v12262_v4, %v7705_v35  ;;  %v7708_v21 = vmul.f32 1.6732632, %v8253_v15 }
 0x90b   : > { %v9098_v13 = vpop.eup %9097  ;;  %v8254_v53 = vadd.f32 -1.0, %v9096_v30  ;;  %v12334_v10 = vpop.f32.mrb[107].mxu0  ;;  %v7769_v31 = vmul.f32 1.050701, %v7737_v42  ;;  %v7738_v55 = vsel %vm7578_vm10, %v12264_v18, %v7706_v28  ;;  %v7707_v39 = vmul.f32 1.6732632, %v8252_v56 }
 0x90c   : > { %v9100_v1 = vpop.eup %9099  ;;  %v8255_v27 = vadd.f32 -1.0, %v9098_v13  ;;  %v12340_v37 = vpop.f32.mrb[90].mxu1  ;;  %7800 = vst [vmem:[%s9803_s25] sm:$0xff] %v7768_v49  ;;  %v7770_v57 = vmul.f32 1.050701, %v7738_v55  ;;  %v7740_v4 = vsel %vm7580_vm12, %v12268_v20, %v7708_v21  ;;  %vm7592_vm0 = vcmp.gt.f32.partialorder %v12315_v0, 0.0 }
 0x90d   : > { %v9102_v3 = vpop.eup %9101  ;;  %v7709_v46 = vmul.f32 1.6732632, %v8254_v53  ;;  %v8256_v59 = vadd.f32 -1.0, %v9100_v1  ;;  %v12347_v60 = vpop.f32.mrb[91].mxu1  ;;  %7801 = vst [vmem:[%s9803_s25 + $0x8] sm:$0xff] %v7769_v31  ;;  %v7739_v22 = vsel %vm7579_vm4, %v12270_v41, %v7707_v39  ;;  %vm7593_vm1 = vcmp.gt.f32.partialorder %v12318_v54, 0.0 }
 0x90e   : > { %v9104_v18 = vpop.eup %9103  ;;  %v7772_v14 = vmul.f32 1.050701, %v7740_v4  ;;  %v7710_v51 = vmul.f32 1.6732632, %v8255_v27  ;;  %v8257_v32 = vadd.f32 -1.0, %v9102_v3  ;;  %7802 = vst [vmem:[%s9803_s25 + $0x10] sm:$0xff] %v7770_v57 }
 0x90f   : > { %v9106_v20 = vpop.eup %9105  ;;  %v7771_v25 = vmul.f32 1.050701, %v7739_v22  ;;  %v7741_v19 = vsel %vm7581_vm6, %v12273_v61, %v7709_v46  ;;  %v7711_v8 = vmul.f32 1.6732632, %v8256_v59  ;;  %v8258_v58 = vadd.f32 -1.0, %v9104_v18  ;;  %v12363_v17 = vpop.f32.mrb[108].mxu0 }
 0x910   : > { %v9108_v29 = vpop.eup %9107  ;;  %7804 = vst [vmem:[%s9803_s25 + $0x20] sm:$0xff] %v7772_v14  ;;  %v7773_v41 = vmul.f32 1.050701, %v7741_v19  ;;  %v7742_v5 = vsel %vm7582_vm7, %v12275_v38, %v7710_v51  ;;  %v7712_v26 = vmul.f32 1.6732632, %v8257_v32  ;;  %v8259_v2 = vadd.f32 -1.0, %v9106_v20 }
 0x911   : > { %v9110_v7 = vpop.eup %9109  ;;  %7803 = vst [vmem:[%s9803_s25 + $0x18] sm:$0xff] %v7771_v25  ;;  %v7774_v61 = vmul.f32 1.050701, %v7742_v5  ;;  %v7743_v43 = vsel %vm7583_vm8, %v12279_v50, %v7711_v8  ;;  %v7713_v45 = vmul.f32 1.6732632, %v8258_v58  ;;  %v8261_v48 = vadd.f32 -1.0, %v9108_v29 }
 0x912   : > { %v12369_v33 = vpop.f32.mrb[109].mxu0  ;;  %v9112_v36 = vpop.eup %9111  ;;  %7805 = vst [vmem:[%s9803_s25 + $0x28] sm:$0xff] %v7773_v41  ;;  %v7775_v38 = vmul.f32 1.050701, %v7743_v43  ;;  %v7744_v52 = vsel %vm7584_vm5, %v12283_v24, %v7712_v26  ;;  %v7714_v63 = vmul.f32 1.6732632, %v8259_v2 }
 0x913   : > { %v8260_v35 = vadd.f32 -1.0, %v9110_v7  ;;  %v12375_v15 = vpop.f32.mrb[92].mxu1  ;;  %v9114_v30 = vpop.eup %9113  ;;  %7806 = vst [vmem:[%s9803_s25 + $0x30] sm:$0xff] %v7774_v61  ;;  %v7776_v50 = vmul.f32 1.050701, %v7744_v52  ;;  %v7745_v12 = vsel %vm7585_vm2, %v12286_v9, %v7713_v45  ;;  %v8262_v56 = vadd.f32 -1.0, %v9112_v36 }
 0x914   : > { %v7716_v28 = vmul.f32 1.6732632, %v8261_v48  ;;  %v12381_v13 = vpop.f32.mrb[110].mxu0  ;;  %v9116_v49 = vpop.eup %9115  ;;  %7807 = vst [vmem:[%s9803_s25 + $0x38] sm:$0xff] %v7775_v38  ;;  %v7777_v24 = vmul.f32 1.050701, %v7745_v12  ;;  %v7746_v42 = vsel %vm7586_vm11, %v12288_v11, %v7714_v63 }
 0x915   : > { %v7715_v21 = vmul.f32 1.6732632, %v8260_v35  ;;  %v8263_v53 = vadd.f32 -1.0, %v9114_v30  ;;  %v12387_v1 = vpop.f32.mrb[93].mxu1  ;;  %7808 = vst [vmem:[%s9803_s25 + $0x40] sm:$0xff] %v7776_v50  ;;  %v8264_v39 = vadd.f32 -1.0, %v9116_v49 }
 0x916   : > { %v7778_v31 = vmul.f32 1.050701, %v7746_v42  ;;  %v7748_v9 = vsel %vm7588_vm13, %v12291_v34, %v7716_v28  ;;  %v7717_v55 = vmul.f32 1.6732632, %v8262_v56  ;;  %v12393_v27 = vpop.f32.mrb[111].mxu0  ;;  %7809 = vst [vmem:[%s9803_s25 + $0x48] sm:$0xff] %v7777_v24 }
 0x917   : > { %v7780_v3 = vmul.f32 1.050701, %v7748_v9  ;;  %v7747_v11 = vsel %vm7587_vm14, %v12293_v62, %v7715_v21  ;;  %v7718_v57 = vmul.f32 1.6732632, %v8263_v53  ;;  %v7640_v4 = vmul.f32 1.442695, %v12315_v0 }
 0x918   : > { %7810 = vst [vmem:[%s9803_s25 + $0x50] sm:$0xff] %v7778_v31  ;;  %v7779_v46 = vmul.f32 1.050701, %v7747_v11  ;;  %v7749_v34 = vsel %vm7589_vm15, %v12298_v44, %v7717_v55  ;;  %v7719_v59 = vmul.f32 1.6732632, %v8264_v39  ;;  %v12405_v18 = vpop.f32.mrb[94].mxu1 }
 0x919   : > { %7812 = vst [vmem:[%s9803_s25 + $0x60] sm:$0xff] %v7780_v3  ;;  %v7781_v14 = vmul.f32 1.050701, %v7749_v34  ;;  %v7750_v62 = vsel %vm7590_vm3, %v12303_v23, %v7718_v57  ;;  %9117 = vpow2.f32 %v7640_v4  ;;  %v7642_v22 = vmul.f32 1.442695, %v12318_v54  ;;  %v12412_v51 = vpop.f32.mrb[95].mxu1 }
 0x91a   : > { %7811 = vst [vmem:[%s9803_s25 + $0x58] sm:$0xff] %v7779_v46  ;;  %v7782_v44 = vmul.f32 1.050701, %v7750_v62  ;;  %v7751_v32 = vsel %vm7591_vm9, %v12308_v47, %v7719_v59  ;;  %v7644_v20 = vmul.f32 1.442695, %v12320_v16  ;;  %vm7594_vm10 = vcmp.gt.f32.partialorder %v12320_v16, 0.0 }
 0x91b   : > { %7813 = vst [vmem:[%s9803_s25 + $0x68] sm:$0xff] %v7781_v14  ;;  %v7783_v25 = vmul.f32 1.050701, %v7751_v32  ;;  %9119 = vpow2.f32 %v7642_v22  ;;  %v7648_v19 = vmul.f32 1.442695, %v12326_v40  ;;  %vm7596_vm12 = vcmp.gt.f32.partialorder %v12326_v40, 0.0 }
 0x91c   : > { %7814 = vst [vmem:[%s9803_s25 + $0x70] sm:$0xff] %v7782_v44  ;;  %9121 = vpow2.f32 %v7644_v20  ;;  %v7646_v23 = vmul.f32 1.442695, %v12328_v6  ;;  %v7650_v8 = vmul.f32 1.442695, %v12334_v10  ;;  %vm7595_vm4 = vcmp.gt.f32.partialorder %v12328_v6, 0.0 }
 0x91d   : > { %7815 = vst [vmem:[%s9803_s25 + $0x78] sm:$0xff] %v7783_v25  ;;  %9123 = vpow2.f32 %v7648_v19  ;;  %v7652_v58 = vmul.f32 1.442695, %v12340_v37  ;;  %v7654_v47 = vmul.f32 1.442695, %v12347_v60  ;;  %vm7597_vm6 = vcmp.gt.f32.partialorder %v12334_v10, 0.0 }
 0x91e   : > { %9125 = vpow2.f32 %v7646_v23  ;;  %v7656_v29 = vmul.f32 1.442695, %v12363_v17  ;;  %v7658_v41 = vmul.f32 1.442695, %v12369_v33  ;;  %v7660_v5 = vmul.f32 1.442695, %v12375_v15 }
 0x91f   : > { %9127 = vpow2.f32 %v7650_v8  ;;  %v7664_v26 = vmul.f32 1.442695, %v12381_v13  ;;  %v7662_v2 = vmul.f32 1.442695, %v12387_v1  ;;  %v7666_v61 = vmul.f32 1.442695, %v12393_v27 }
 0x920   : > { %9129 = vpow2.f32 %v7652_v58  ;;  %v7668_v45 = vmul.f32 1.442695, %v12405_v18  ;;  %v7670_v36 = vmul.f32 1.442695, %v12412_v51  ;;  %vm7598_vm7 = vcmp.gt.f32.partialorder %v12340_v37, 0.0 }
 0x921   : > { %9131 = vpow2.f32 %v7654_v47  ;;  %vm7599_vm8 = vcmp.gt.f32.partialorder %v12347_v60, 0.0  ;;  %vm7600_vm5 = vcmp.gt.f32.partialorder %v12363_v17, 0.0  ;;  %vm7601_vm2 = vcmp.gt.f32.partialorder %v12369_v33, 0.0 }
 0x922   : > { %9133 = vpow2.f32 %v7656_v29  ;;  %vm7602_vm11 = vcmp.gt.f32.partialorder %v12375_v15, 0.0  ;;  %vm7604_vm13 = vcmp.gt.f32.partialorder %v12381_v13, 0.0  ;;  %vm7603_vm14 = vcmp.gt.f32.partialorder %v12387_v1, 0.0 }
 0x923   : > { %v9118_v7 = vpop.eup %9117  ;;  %9135 = vpow2.f32 %v7658_v41  ;;  %vm7605_vm15 = vcmp.gt.f32.partialorder %v12393_v27, 0.0  ;;  %vm7606_vm3 = vcmp.gt.f32.partialorder %v12405_v18, 0.0  ;;  %vm7607_vm9 = vcmp.gt.f32.partialorder %v12412_v51, 0.0 }
 0x924   : > { %v8265_v43 = vadd.f32 -1.0, %v9118_v7  ;;  %9137 = vpow2.f32 %v7660_v5 }
 0x925   : > { %v9120_v48 = vpop.eup %9119  ;;  %9139 = vpow2.f32 %v7664_v26 }
 0x926   : > { %v9122_v38 = vpop.eup %9121  ;;  %v7720_v52 = vmul.f32 1.6732632, %v8265_v43  ;;  %v8266_v63 = vadd.f32 -1.0, %v9120_v48  ;;  %9141 = vpow2.f32 %v7662_v2 }
 0x927   : > { %v9124_v35 = vpop.eup %9123  ;;  %v8267_v30 = vadd.f32 -1.0, %v9122_v38  ;;  %9143 = vpow2.f32 %v7666_v61 }
 0x928   : > { %v9126_v50 = vpop.eup %9125  ;;  %v7752_v12 = vsel %vm7592_vm0, %v12315_v0, %v7720_v52  ;;  %v7721_v28 = vmul.f32 1.6732632, %v8266_v63  ;;  %v8269_v56 = vadd.f32 -1.0, %v9124_v35  ;;  %9145 = vpow2.f32 %v7668_v45 }
 0x929   : > { %v9128_v49 = vpop.eup %9127  ;;  %v7784_v24 = vmul.f32 1.050701, %v7752_v12  ;;  %v7722_v42 = vmul.f32 1.6732632, %v8267_v30  ;;  %v8268_v21 = vadd.f32 -1.0, %v9126_v50  ;;  %9147 = vpow2.f32 %v7670_v36 }
 0x92a   : > { %v9130_v53 = vpop.eup %9129  ;;  %v7753_v31 = vsel %vm7593_vm1, %v12318_v54, %v7721_v28  ;;  %v7724_v9 = vmul.f32 1.6732632, %v8269_v56  ;;  %v8270_v0 = vadd.f32 -1.0, %v9128_v49 }
 0x92b   : > { %v9132_v55 = vpop.eup %9131  ;;  %7816 = vst [vmem:[%s9803_s25 + $0x80] sm:$0xff] %v7784_v24  ;;  %v7785_v39 = vmul.f32 1.050701, %v7753_v31  ;;  %v7754_v3 = vsel %vm7594_vm10, %v12320_v16, %v7722_v42  ;;  %v7723_v11 = vmul.f32 1.6732632, %v8268_v21  ;;  %v8271_v57 = vadd.f32 -1.0, %v9130_v53 }
 0x92c   : > { %v9134_v4 = vpop.eup %9133  ;;  %v7786_v46 = vmul.f32 1.050701, %v7754_v3  ;;  %v7756_v54 = vsel %vm7596_vm12, %v12326_v40, %v7724_v9  ;;  %v7725_v34 = vmul.f32 1.6732632, %v8270_v0  ;;  %v8272_v59 = vadd.f32 -1.0, %v9132_v55  ;;  %v7862_v0 = vld [vmem:[%s9803_s25 + $0x18] sm:$0xff] (%p9301_p5) }
 0x92d   : > { %v9136_v14 = vpop.eup %9135  ;;  %7817 = vst [vmem:[%s9803_s25 + $0x88] sm:$0xff] %v7785_v39  ;;  %v7788_v62 = vmul.f32 1.050701, %v7756_v54  ;;  %v7755_v16 = vsel %vm7595_vm4, %v12328_v6, %v7723_v11  ;;  %v7726_v22 = vmul.f32 1.6732632, %v8271_v57  ;;  %v8273_v44 = vadd.f32 -1.0, %v9134_v4 }
 0x92e   : > { %v9138_v32 = vpop.eup %9137  ;;  %7818 = vst [vmem:[%s9803_s25 + $0x90] sm:$0xff] %v7786_v46  ;;  %v7787_v20 = vmul.f32 1.050701, %v7755_v16  ;;  %v7757_v40 = vsel %vm7597_vm6, %v12334_v10, %v7725_v34  ;;  %v7727_v25 = vmul.f32 1.6732632, %v8272_v59  ;;  %v8274_v19 = vadd.f32 -1.0, %v9136_v14 }
 0x92f   : > { %v9140_v23 = vpop.eup %9139  ;;  %7820 = vst [vmem:[%s9803_s25 + $0xa0] sm:$0xff] %v7788_v62  ;;  %v7789_v8 = vmul.f32 1.050701, %v7757_v40  ;;  %v7758_v6 = vsel %vm7598_vm7, %v12340_v37, %v7726_v22  ;;  %v7728_v58 = vmul.f32 1.6732632, %v8273_v44  ;;  %v8275_v47 = vadd.f32 -1.0, %v9138_v32 }
 0x930   : > { %v9142_v29 = vpop.eup %9141  ;;  %7819 = vst [vmem:[%s9803_s25 + $0x98] sm:$0xff] %v7787_v20  ;;  %v7790_v41 = vmul.f32 1.050701, %v7758_v6  ;;  %v7759_v10 = vsel %vm7599_vm8, %v12347_v60, %v7727_v25  ;;  %v7729_v5 = vmul.f32 1.6732632, %v8274_v19  ;;  %v8277_v26 = vadd.f32 -1.0, %v9140_v23 }
 0x931   : > { %v9144_v2 = vpop.eup %9143  ;;  %7821 = vst [vmem:[%s9803_s25 + $0xa8] sm:$0xff] %v7789_v8  ;;  %v7791_v7 = vmul.f32 1.050701, %v7759_v10  ;;  %v7760_v37 = vsel %vm7600_vm5, %v12363_v17, %v7728_v58  ;;  %v7730_v61 = vmul.f32 1.6732632, %v8275_v47  ;;  %v8276_v43 = vadd.f32 -1.0, %v9142_v29 }
 0x932   : > { %v9146_v45 = vpop.eup %9145  ;;  %7822 = vst [vmem:[%s9803_s25 + $0xb0] sm:$0xff] %v7790_v41  ;;  %v7792_v48 = vmul.f32 1.050701, %v7760_v37  ;;  %v7761_v60 = vsel %vm7601_vm2, %v12369_v33, %v7729_v5  ;;  %v7732_v36 = vmul.f32 1.6732632, %v8277_v26  ;;  %v8278_v38 = vadd.f32 -1.0, %v9144_v2 }
 0x933   : > { %v9148_v52 = vpop.eup %9147  ;;  %7823 = vst [vmem:[%s9803_s25 + $0xb8] sm:$0xff] %v7791_v7  ;;  %v7793_v63 = vmul.f32 1.050701, %v7761_v60  ;;  %v7762_v17 = vsel %vm7602_vm11, %v12375_v15, %v7730_v61  ;;  %v7731_v35 = vmul.f32 1.6732632, %v8276_v43  ;;  %v8279_v30 = vadd.f32 -1.0, %v9146_v45 }
 0x934   : > { %7824 = vst [vmem:[%s9803_s25 + $0xc0] sm:$0xff] %v7792_v48  ;;  %v7794_v50 = vmul.f32 1.050701, %v7762_v17  ;;  %v7764_v12 = vsel %vm7604_vm13, %v12381_v13, %v7732_v36  ;;  %v7733_v33 = vmul.f32 1.6732632, %v8278_v38  ;;  %v8280_v28 = vadd.f32 -1.0, %v9148_v52 }
 0x935   : > { %7825 = vst [vmem:[%s9803_s25 + $0xc8] sm:$0xff] %v7793_v63  ;;  %v7796_v56 = vmul.f32 1.050701, %v7764_v12  ;;  %v7763_v49 = vsel %vm7603_vm14, %v12387_v1, %v7731_v35  ;;  %v7734_v15 = vmul.f32 1.6732632, %v8279_v30  ;;  %7838 = sbr.rel (!%p9301_p5) target bundleno = 2379 (0x94b), region = 56 }
 0x936   : > { %7826 = vst [vmem:[%s9803_s25 + $0xd0] sm:$0xff] %v7794_v50  ;;  %v7795_v24 = vmul.f32 1.050701, %v7763_v49  ;;  %v7765_v42 = vsel %vm7605_vm15, %v12393_v27, %v7733_v33  ;;  %v7735_v13 = vmul.f32 1.6732632, %v8280_v28  ;;  %v7856_v27 = vld [vmem:[%s9803_s25] sm:$0xff] (%p9301_p5) }
 0x937   : > { %7828 = vst [vmem:[%s9803_s25 + $0xe0] sm:$0xf] %v7796_v56  ;;  %v7797_v21 = vmul.f32 1.050701, %v7765_v42  ;;  %v7766_v53 = vsel %vm7606_vm3, %v12405_v18, %v7734_v15  ;;  %v7858_v18 = vld [vmem:[%s9803_s25 + $0x8] sm:$0xff] (%p9301_p5)  ;;  %v7864_v55 = vld [vmem:[%s9803_s25 + $0x20] sm:$0xff] (%p9301_p5)  ;;  %7857 = vst [vmem:[%s12523_s8] sm:$0xff] (%p9301_p5), %v7856_v27 }
 0x938   : > { %7827 = vst [vmem:[%s9803_s25 + $0xd8] sm:$0xff] %v7795_v24  ;;  %v7798_v1 = vmul.f32 1.050701, %v7766_v53  ;;  %v7767_v31 = vsel %vm7607_vm9, %v12412_v51, %v7735_v13  ;;  %v7860_v51 = vld [vmem:[%s9803_s25 + $0x10] sm:$0xff] (%p9301_p5)  ;;  %v7866_v39 = vld [vmem:[%s9803_s25 + $0x28] sm:$0xff] (%p9301_p5)  ;;  %v7870_v11 = vld [vmem:[%s9803_s25 + $0x38] sm:$0xff] (%p9301_p5) }
 0x939   : > { %7829 = vst [vmem:[%s9803_s25 + $0xe8] sm:$0xf] %v7797_v21  ;;  %v7799_v9 = vmul.f32 1.050701, %v7767_v31  ;;  %v7868_v3 = vld [vmem:[%s9803_s25 + $0x30] sm:$0xff] (%p9301_p5)  ;;  %v7872_v57 = vld [vmem:[%s9803_s25 + $0x40] sm:$0xff] (%p9301_p5) }
 0x93a   : > { %7830 = vst [vmem:[%s9803_s25 + $0xf0] sm:$0xf] %v7798_v1  ;;  %v7874_v4 = vld [vmem:[%s9803_s25 + $0x48] sm:$0xff] (%p9301_p5)  ;;  %v7876_v46 = vld [vmem:[%s9803_s25 + $0x50] sm:$0xff] (%p9301_p5)  ;;  %v7878_v54 = vld [vmem:[%s9803_s25 + $0x58] sm:$0xff] (%p9301_p5) }
 0x93b   : > { %7831 = vst [vmem:[%s9803_s25 + $0xf8] sm:$0xf] %v7799_v9  ;;  %7859 = vst [vmem:[%s12523_s8 + $0x8] sm:$0xff] (%p9301_p5), %v7858_v18  ;;  %v7880_v34 = vld [vmem:[%s9803_s25 + $0x60] sm:$0xff] (%p9301_p5)  ;;  %v7882_v59 = vld [vmem:[%s9803_s25 + $0x68] sm:$0xff] (%p9301_p5) }
 0x93c   : > { %7861 = vst [vmem:[%s12523_s8 + $0x10] sm:$0xff] %v7860_v51  ;;  %7863 = vst [vmem:[%s12523_s8 + $0x18] sm:$0xff] %v7862_v0  ;;  %v7884_v14 = vld [vmem:[%s9803_s25 + $0x70] sm:$0xff]  ;;  %v7886_v62 = vld [vmem:[%s9803_s25 + $0x78] sm:$0xff] }
 0x93d   : > { %7865 = vst [vmem:[%s12523_s8 + $0x40] sm:$0xff] %v7864_v55  ;;  %7867 = vst [vmem:[%s12523_s8 + $0x48] sm:$0xff] %v7866_v39  ;;  %v7888_v16 = vld [vmem:[%s9803_s25 + $0x80] sm:$0xff]  ;;  %v7890_v22 = vld [vmem:[%s9803_s25 + $0x88] sm:$0xff] }
 0x93e   : > { %7869 = vst [vmem:[%s12523_s8 + $0x50] sm:$0xff] %v7868_v3  ;;  %7871 = vst [vmem:[%s12523_s8 + $0x58] sm:$0xff] %v7870_v11  ;;  %v7892_v44 = vld [vmem:[%s9803_s25 + $0x90] sm:$0xff]  ;;  %v7894_v32 = vld [vmem:[%s9803_s25 + $0x98] sm:$0xff] }
 0x93f   : > { %7873 = vst [vmem:[%s12523_s8 + $0x80] sm:$0xff] %v7872_v57  ;;  %7875 = vst [vmem:[%s12523_s8 + $0x88] sm:$0xff] %v7874_v4  ;;  %v7896_v20 = vld [vmem:[%s9803_s25 + $0xa0] sm:$0xff]  ;;  %v7898_v40 = vld [vmem:[%s9803_s25 + $0xa8] sm:$0xff] }
 0x940   : > { %7877 = vst [vmem:[%s12523_s8 + $0x90] sm:$0xff] %v7876_v46  ;;  %7879 = vst [vmem:[%s12523_s8 + $0x98] sm:$0xff] %v7878_v54  ;;  %v7900_v25 = vld [vmem:[%s9803_s25 + $0xb0] sm:$0xff]  ;;  %v7902_v19 = vld [vmem:[%s9803_s25 + $0xb8] sm:$0xff] }
 0x941   : > { %7881 = vst [vmem:[%s12523_s8 + $0xc0] sm:$0xff] %v7880_v34  ;;  %7883 = vst [vmem:[%s12523_s8 + $0xc8] sm:$0xff] %v7882_v59  ;;  %v7904_v23 = vld [vmem:[%s9803_s25 + $0xc0] sm:$0xff]  ;;  %v7906_v8 = vld [vmem:[%s9803_s25 + $0xc8] sm:$0xff] }
 0x942   : > { %7885 = vst [vmem:[%s12523_s8 + $0xd0] sm:$0xff] %v7884_v14  ;;  %7887 = vst [vmem:[%s12523_s8 + $0xd8] sm:$0xff] %v7886_v62  ;;  %v7908_v6 = vld [vmem:[%s9803_s25 + $0xd0] sm:$0xff]  ;;  %v7910_v58 = vld [vmem:[%s9803_s25 + $0xd8] sm:$0xff] }
 0x943   : > { %7889 = vst [vmem:[%s12523_s8 + $0x100] sm:$0xff] %v7888_v16  ;;  %7891 = vst [vmem:[%s12523_s8 + $0x108] sm:$0xff] %v7890_v22  ;;  %v7912_v47 = vld [vmem:[%s9803_s25 + $0xe0] sm:$0xff]  ;;  %v7914_v29 = vld [vmem:[%s9803_s25 + $0xe8] sm:$0xff] }
 0x944   : > { %7893 = vst [vmem:[%s12523_s8 + $0x110] sm:$0xff] %v7892_v44  ;;  %7895 = vst [vmem:[%s12523_s8 + $0x118] sm:$0xff] %v7894_v32  ;;  %v7916_v41 = vld [vmem:[%s9803_s25 + $0xf0] sm:$0xff]  ;;  %v7918_v10 = vld [vmem:[%s9803_s25 + $0xf8] sm:$0xff] }
 0x945   : > { %7897 = vst [vmem:[%s12523_s8 + $0x140] sm:$0xff] %v7896_v20  ;;  %7899 = vst [vmem:[%s12523_s8 + $0x148] sm:$0xff] %v7898_v40 }
 0x946   : > { %7901 = vst [vmem:[%s12523_s8 + $0x150] sm:$0xff] %v7900_v25  ;;  %7903 = vst [vmem:[%s12523_s8 + $0x158] sm:$0xff] %v7902_v19 }
 0x947   : > { %7905 = vst [vmem:[%s12523_s8 + $0x180] sm:$0xff] %v7904_v23  ;;  %7907 = vst [vmem:[%s12523_s8 + $0x188] sm:$0xff] %v7906_v8 }
 0x948   : > { %7909 = vst [vmem:[%s12523_s8 + $0x190] sm:$0xff] %v7908_v6  ;;  %7911 = vst [vmem:[%s12523_s8 + $0x198] sm:$0xff] %v7910_v58 }
 0x949   : > { %7913 = vst [vmem:[%s12523_s8 + $0x1c0] sm:$0xff] %v7912_v47  ;;  %7915 = vst [vmem:[%s12523_s8 + $0x1c8] sm:$0xff] %v7914_v29 }
 0x94a   : > { %7917 = vst [vmem:[%s12523_s8 + $0x1d0] sm:$0xff] %v7916_v41  ;;  %7919 = vst [vmem:[%s12523_s8 + $0x1d8] sm:$0xff] %v7918_v10 }
 0x94b PF: > { %s14_s21 = sadd.s32 1, %s9203_s21   ;;  %s12723_s15 = smov %s9183_s16 }
 0x94c   : > { %p11_p13 = scmp.ge.s32.totalorder %s14_s21, 6   ;;  %s12724_s16 = smov %s9312_s30 }
 0x94d   : > { %s12725_s17 = smov %s9195_s19  ;;  %s12726_s18 = smov %s9199_s20 }
 0x94e   : > { %s12727_s19 = smov %s12730_s22  ;;  %s12728_s20 = smov %s12734_s23 }
 0x94f   :  { %13 = sbr.rel (!%p11_p13) target bundleno = 4 (0x4), region = 105 }

</bundles_post_ra>
